<compile_context>
chip_gen: v6e
topology: v6e:2x2x1
jax: 0.10.0
libtpu: 0.0.40
codegen_flags: <defaults>
</compile_context>

<pallas_src>
import numpy as np
import jax
import jax.numpy as jnp
from jax import lax
from jax.experimental import pallas as pl
from jax.experimental.pallas import tpu as pltpu

_LANES = 8   # channel lane width carried through the kernel (zero-extended)
_WOFF = 8    # 8-aligned sublane offset of the conv interior in the padded scratch


def fused_forward(x_nchw, branch0, branch1, flag, n1, n2):
    """Fused forward of MyModule_AddSubCat (single pallas_call).

    branch0: [(w_hwio(K,K,Ci,8), bias(8,)), ...]  stride-1 'same' KxK convs
    branch1: [(w_hwio(1,1,Ci,8), bias(8,))]       single 1x1 conv
    flag: 0 -> n1*b0 + n2*b1 ; 1 -> n1*b0 - n2*b1 ; 2 -> concat(b0, b1)
    """
    if flag not in (0, 1, 2):
        raise ValueError("flag must be 0, 1 or 2")
    N, Cin, H, W = x_nchw.shape
    HW = H * W
    M = N * HW
    assert W % 8 == 0 and HW % 128 == 0, "kernel assumes a lane-dense H*W"
    assert Cin <= _LANES

    # ---- fold combine scalars (and the flag==1 sign) into the last convs ----
    branch0 = [(jnp.asarray(w, jnp.float32), jnp.asarray(b, jnp.float32))
               for (w, b) in branch0]
    branch1 = [(jnp.asarray(w, jnp.float32), jnp.asarray(b, jnp.float32))
               for (w, b) in branch1]
    if flag in (0, 1):
        s0 = float(n1)
        s1 = float(n2) if flag == 0 else -float(n2)
        w, b = branch0[-1]
        branch0[-1] = (w * s0, b * s0)
        w, b = branch1[-1]
        branch1[-1] = (w * s1, b * s1)

    # ---- branch 0: chain of same-padded KxK convs (shared K / pad) ----------
    convs0 = []
    K = None
    for (w, b) in branch0:
        kh, kw, ci, co = w.shape
        assert kh == kw and kh % 2 == 1 and kh >= 3
        assert co == _LANES and ci <= _LANES
        K = kh if K is None else K
        assert kh == K, "branch-0 convs must share the kernel size"
        w_ext = jnp.pad(w, ((0, 0), (0, 0), (0, _LANES - ci), (0, 0)))
        convs0.append((w_ext, b.reshape(1, _LANES)))
    PAD = (K - 1) // 2
    assert 1 <= PAD <= _WOFF
    Hp = H + 2 * PAD
    Wp = _WOFF + W + 8           # 8-wide aligned zero block on each side
    n0 = len(convs0)

    # ---- branch 1: single 1x1 conv -------------------------------------------
    (w1, b1), = branch1
    kh, kw, ci1, co1 = w1.shape
    assert (kh, kw) == (1, 1) and co1 == _LANES and ci1 <= _LANES
    w1_ext = jnp.pad(w1[0, 0], ((0, _LANES - ci1), (0, 0)))          # (8, 8)
    b1_row = b1.reshape(1, _LANES)

    C0 = C1 = _LANES
    C_out = C0 + C1 if flag == 2 else _LANES

    def kernel(x_ref, *refs):
        wb0 = refs[:2 * n0]
        w1_ref, b1_ref = refs[2 * n0], refs[2 * n0 + 1]
        o_ref = refs[2 * n0 + 2]
        stage_ref, pad_ref = refs[2 * n0 + 3], refs[2 * n0 + 4]

        # 1) NCHW -> NHWC-flat relayout, batch folded into the row (M) dim.
        #    Rows Cin..7 stay zero -> zero-extended channels for the 1st layer.
        stage_ref[...] = jnp.zeros_like(stage_ref)
        for n in range(N):
            stage_ref[0:Cin, n * HW:(n + 1) * HW] = (
                x_ref[n, :, :].astype(jnp.float32))
        t = jnp.transpose(stage_ref[...])                   # (M, 8)

        # 2) Branch 1 (1x1 conv) straight off the relayout.
        r1 = jnp.dot(t, w1_ref[...],
                     preferred_element_type=jnp.float32) + b1_ref[...]

        # 3) Zero ONLY the halo of the shared padded buffer (aligned stores);
        #    the interior is fully overwritten before each conv reads it.
        zrow = jnp.zeros((N, PAD, Wp, _LANES), jnp.float32)
        pad_ref[:, 0:PAD, :, :] = zrow
        pad_ref[:, PAD + H:Hp, :, :] = zrow
        zcol = jnp.zeros((N, H, _WOFF, _LANES), jnp.float32)
        pad_ref[:, PAD:PAD + H, 0:_WOFF, :] = zcol
        pad_ref[:, PAD:PAD + H, _WOFF + W:Wp, :] = zcol

        # 4) Branch 0: per-tap MXU accumulation over the padded buffer.
        cur = t
        for i in range(n0):
            w_ref, b_ref = wb0[2 * i], wb0[2 * i + 1]
            pad_ref[:, PAD:PAD + H, _WOFF:_WOFF + W, :] = (
                cur.reshape(N, H, W, _LANES))
            acc = [None, None]
            tap = 0
            for kh_ in range(K):                 # taps fully unrolled (9 MXU pushes)
                for kw_ in range(K):
                    c0 = _WOFF - PAD + kw_
                    patch = pad_ref[:, kh_:kh_ + H, c0:c0 + W, :]
                    part = jnp.dot(patch.reshape(M, _LANES), w_ref[kh_, kw_],
                                   preferred_element_type=jnp.float32)
                    j = tap & 1
                    acc[j] = part if acc[j] is None else acc[j] + part
                    tap += 1
            cur = acc[0] + acc[1] + b_ref[...]
        r0 = cur

        # 5) Combine and store lane-dense, already in NCHW orientation.
        if flag != 2:
            ot = jnp.transpose(r0 + r1)                      # (8, M)
            for n in range(N):
                o_ref[n, :, :] = ot[:, n * HW:(n + 1) * HW].astype(o_ref.dtype)
        else:                                                # channel concat
            ot0 = jnp.transpose(r0)
            ot1 = jnp.transpose(r1)
            for n in range(N):
                o_ref[n, 0:C0, :] = ot0[:, n * HW:(n + 1) * HW].astype(o_ref.dtype)
                o_ref[n, C0:C0 + C1, :] = (
                    ot1[:, n * HW:(n + 1) * HW].astype(o_ref.dtype))

    # ---- single-step pallas_call: everything resident in VMEM ----------------
    x_flat = x_nchw.reshape(N, Cin, HW)                      # free reshape
    flat_inputs = [x_flat]
    in_specs = [pl.BlockSpec((N, Cin, HW), lambda i: (0, 0, 0))]
    for (w_ext, b_row) in convs0:
        flat_inputs += [w_ext, b_row]
        in_specs += [pl.BlockSpec((K, K, _LANES, _LANES),
                                  lambda i: (0, 0, 0, 0)),
                     pl.BlockSpec((1, _LANES), lambda i: (0, 0))]
    flat_inputs += [w1_ext, b1_row]
    in_specs += [pl.BlockSpec((_LANES, _LANES), lambda i: (0, 0)),
                 pl.BlockSpec((1, _LANES), lambda i: (0, 0))]

    y_flat = pl.pallas_call(
        kernel,
        out_shape=jax.ShapeDtypeStruct((N, C_out, HW), x_nchw.dtype),
        grid=(1,),
        in_specs=in_specs,
        out_specs=pl.BlockSpec((N, C_out, HW), lambda i: (0, 0, 0)),
        scratch_shapes=[
            pltpu.VMEM((_LANES, M), jnp.float32),            # relayout staging
            pltpu.VMEM((N, Hp, Wp, _LANES), jnp.float32),    # shared padded buffer
        ],
    )(*flat_inputs)

    return y_flat.reshape(N, C_out, H, W)                    # free reshape


# ----------------------------------------------------------------------------
# Deterministic parameter init (HWIO weights) + pure-JAX reference.
# ----------------------------------------------------------------------------
def make_conv_params(key, cin, cout, k):
    kw_, kb_ = jax.random.split(key)
    fan_in = cin * k * k
    w = jax.random.uniform(kw_, (k, k, cin, cout), jnp.float32,
                           minval=-1.0, maxval=1.0) / np.sqrt(fan_in)
    b = jax.random.uniform(kb_, (cout,), jnp.float32,
                           minval=-1.0, maxval=1.0) / np.sqrt(fan_in)
    return w, b


def _conv_ref_nchw(x, w_hwio, b, pad):
    y = lax.conv_general_dilated(
        x, w_hwio, window_strides=(1, 1),
        padding=[(pad, pad), (pad, pad)],
        dimension_numbers=("NCHW", "HWIO", "NCHW"))
    return y + b.reshape(1, -1, 1, 1)


if __name__ == "__main__":
    key = jax.random.PRNGKey(0)
    kx, k0a, k0b, k1 = jax.random.split(key, 4)

    N, Cin, H, W = 2, 4, 16, 16
    x = jax.random.normal(kx, (N, Cin, H, W), jnp.float32)   # NCHW, like torch

    # Branch 0: Conv(4->8, 3x3, pad 1) -> Conv(8->8, 3x3, pad 1)
    w0a, b0a = make_conv_params(k0a, 4, 8, 3)
    w0b, b0b = make_conv_params(k0b, 8, 8, 3)
    # Branch 1: Conv(4->8, 1x1)
    w1, b1 = make_conv_params(k1, 4, 8, 1)

    flag, n1, n2 = 0, 2.0, 3.0
    fwd = jax.jit(fused_forward, static_argnums=(3, 4, 5))
    out = fwd(x, [(w0a, b0a), (w0b, b0b)], [(w1, b1)], flag, n1, n2)
    out = jax.block_until_ready(out)
    assert out.shape == (N, 8, H, W), out.shape

    # Reference in plain JAX (NCHW throughout).
    r0 = _conv_ref_nchw(_conv_ref_nchw(x, w0a, b0a, 1), w0b, b0b, 1)
    r1 = _conv_ref_nchw(x, w1, b1, 0)
    ref = r0 * n1 + r1 * n2
    np.testing.assert_allclose(np.asarray(out), np.asarray(ref),
                               rtol=1e-4, atol=1e-4)

    print("KERNEL_OK")
</pallas_src>

<mosaic_0001>
module attributes {stable_mosaic.version = 11 : i64} {
  func.func @kernel(%arg0: i32, %arg1: memref<2x4x256xf32, #tpu.memory_space<vmem>>, %arg2: memref<3x3x8x8xf32, #tpu.memory_space<vmem>>, %arg3: memref<1x8xf32, #tpu.memory_space<vmem>>, %arg4: memref<3x3x8x8xf32, #tpu.memory_space<vmem>>, %arg5: memref<1x8xf32, #tpu.memory_space<vmem>>, %arg6: memref<8x8xf32, #tpu.memory_space<vmem>>, %arg7: memref<1x8xf32, #tpu.memory_space<vmem>>, %arg8: memref<2x8x256xf32, #tpu.memory_space<vmem>>, %arg9: memref<8x512xf32, #tpu.memory_space<vmem>>, %arg10: memref<2x18x32x8xf32, #tpu.memory_space<vmem>>) attributes {dimension_semantics = [#tpu.dimension_semantics<arbitrary>], iteration_bounds = array<i64: 1>, scalar_prefetch = 0 : i64, scratch_operands = 2 : i64, tpu.core_type = #tpu.core_type<tc>, window_params = [{pipeline_mode = #tpu.pipeline_mode<synchronous>, transform_indices = @transform_0, window_bounds = array<i64: 2, 4, 256>}, {pipeline_mode = #tpu.pipeline_mode<synchronous>, transform_indices = @transform_1, window_bounds = array<i64: 3, 3, 8, 8>}, {pipeline_mode = #tpu.pipeline_mode<synchronous>, transform_indices = @transform_2, window_bounds = array<i64: 1, 8>}, {pipeline_mode = #tpu.pipeline_mode<synchronous>, transform_indices = @transform_3, window_bounds = array<i64: 3, 3, 8, 8>}, {pipeline_mode = #tpu.pipeline_mode<synchronous>, transform_indices = @transform_4, window_bounds = array<i64: 1, 8>}, {pipeline_mode = #tpu.pipeline_mode<synchronous>, transform_indices = @transform_5, window_bounds = array<i64: 8, 8>}, {pipeline_mode = #tpu.pipeline_mode<synchronous>, transform_indices = @transform_6, window_bounds = array<i64: 1, 8>}, {pipeline_mode = #tpu.pipeline_mode<synchronous>, transform_indices = @transform_7, window_bounds = array<i64: 2, 8, 256>}]} {
    %cst = arith.constant 0.000000e+00 : f32
    %0 = vector.broadcast %cst : f32 to vector<8x512xf32>
    %c0 = arith.constant 0 : index
    %c0_0 = arith.constant 0 : index
    %1 = vector.load %arg9[%c0, %c0_0] : memref<8x512xf32, #tpu.memory_space<vmem>>, vector<8x512xf32>
    tpu.vector_store %arg9[%c0, %c0_0], %0 {strides = array<i32>} : memref<8x512xf32, #tpu.memory_space<vmem>>, vector<8x512xf32>,
    %c0_1 = arith.constant 0 : index
    %c0_2 = arith.constant 0 : index
    %c0_3 = arith.constant 0 : index
    %2 = vector.load %arg1[%c0_1, %c0_2, %c0_3] : memref<2x4x256xf32, #tpu.memory_space<vmem>>, vector<1x4x256xf32>
    %3 = vector.shape_cast %2 : vector<1x4x256xf32> to vector<4x256xf32>
    %c0_4 = arith.constant 0 : index
    %c0_5 = arith.constant 0 : index
    %4 = vector.load %arg9[%c0_4, %c0_5] : memref<8x512xf32, #tpu.memory_space<vmem>>, vector<4x256xf32>
    tpu.vector_store %arg9[%c0_4, %c0_5], %3 {strides = array<i32>} : memref<8x512xf32, #tpu.memory_space<vmem>>, vector<4x256xf32>,
    %c1 = arith.constant 1 : index
    %c0_6 = arith.constant 0 : index
    %c0_7 = arith.constant 0 : index
    %5 = vector.load %arg1[%c1, %c0_6, %c0_7] : memref<2x4x256xf32, #tpu.memory_space<vmem>>, vector<1x4x256xf32>
    %6 = vector.shape_cast %5 : vector<1x4x256xf32> to vector<4x256xf32>
    %c0_8 = arith.constant 0 : index
    %c256 = arith.constant 256 : index
    %7 = vector.load %arg9[%c0_8, %c256] : memref<8x512xf32, #tpu.memory_space<vmem>>, vector<4x256xf32>
    tpu.vector_store %arg9[%c0_8, %c256], %6 {strides = array<i32>} : memref<8x512xf32, #tpu.memory_space<vmem>>, vector<4x256xf32>,
    %c0_9 = arith.constant 0 : index
    %c0_10 = arith.constant 0 : index
    %8 = vector.load %arg9[%c0_9, %c0_10] : memref<8x512xf32, #tpu.memory_space<vmem>>, vector<8x512xf32>
    %9 = tpu.transpose %8, [1, 0] : vector<8x512xf32> -> vector<512x8xf32>
    %c0_11 = arith.constant 0 : index
    %c0_12 = arith.constant 0 : index
    %10 = vector.load %arg6[%c0_11, %c0_12] : memref<8x8xf32, #tpu.memory_space<vmem>>, vector<8x8xf32>
    %cst_13 = arith.constant dense<0.000000e+00> : vector<512x8xf32>
    %11 = tpu.matmul %9, %10, %cst_13 {dimension_numbers = #tpu.dot_dimension_numbers<[1], [0], [0], [1], [0, 0, 1, 1], [], []>} : vector<512x8xf32>, vector<8x8xf32>, vector<512x8xf32> -> vector<512x8xf32>
    %c0_14 = arith.constant 0 : index
    %c0_15 = arith.constant 0 : index
    %12 = vector.load %arg7[%c0_14, %c0_15] : memref<1x8xf32, #tpu.memory_space<vmem>>, vector<1x8xf32>
    %13 = vector.broadcast %12 : vector<1x8xf32> to vector<512x8xf32>
    %14 = arith.addf %11, %13 : vector<512x8xf32>
    %cst_16 = arith.constant 0.000000e+00 : f32
    %15 = vector.broadcast %cst_16 : f32 to vector<2x1x32x8xf32>
    %c0_17 = arith.constant 0 : index
    %c0_18 = arith.constant 0 : index
    %c0_19 = arith.constant 0 : index
    %c0_20 = arith.constant 0 : index
    %16 = vector.load %arg10[%c0_17, %c0_18, %c0_19, %c0_20] : memref<2x18x32x8xf32, #tpu.memory_space<vmem>>, vector<2x1x32x8xf32>
    tpu.vector_store %arg10[%c0_17, %c0_18, %c0_19, %c0_20], %15 {strides = array<i32>} : memref<2x18x32x8xf32, #tpu.memory_space<vmem>>, vector<2x1x32x8xf32>,
    %c0_21 = arith.constant 0 : index
    %c17 = arith.constant 17 : index
    %c0_22 = arith.constant 0 : index
    %c0_23 = arith.constant 0 : index
    %17 = vector.load %arg10[%c0_21, %c17, %c0_22, %c0_23] : memref<2x18x32x8xf32, #tpu.memory_space<vmem>>, vector<2x1x32x8xf32>
    tpu.vector_store %arg10[%c0_21, %c17, %c0_22, %c0_23], %15 {strides = array<i32>} : memref<2x18x32x8xf32, #tpu.memory_space<vmem>>, vector<2x1x32x8xf32>,
    %cst_24 = arith.constant 0.000000e+00 : f32
    %18 = vector.broadcast %cst_24 : f32 to vector<2x16x8x8xf32>
    %c0_25 = arith.constant 0 : index
    %c1_26 = arith.constant 1 : index
    %c0_27 = arith.constant 0 : index
    %c0_28 = arith.constant 0 : index
    %19 = vector.load %arg10[%c0_25, %c1_26, %c0_27, %c0_28] : memref<2x18x32x8xf32, #tpu.memory_space<vmem>>, vector<2x16x8x8xf32>
    tpu.vector_store %arg10[%c0_25, %c1_26, %c0_27, %c0_28], %18 {strides = array<i32>} : memref<2x18x32x8xf32, #tpu.memory_space<vmem>>, vector<2x16x8x8xf32>,
    %c0_29 = arith.constant 0 : index
    %c1_30 = arith.constant 1 : index
    %c24 = arith.constant 24 : index
    %c0_31 = arith.constant 0 : index
    %20 = vector.load %arg10[%c0_29, %c1_30, %c24, %c0_31] : memref<2x18x32x8xf32, #tpu.memory_space<vmem>>, vector<2x16x8x8xf32>
    tpu.vector_store %arg10[%c0_29, %c1_30, %c24, %c0_31], %18 {strides = array<i32>} : memref<2x18x32x8xf32, #tpu.memory_space<vmem>>, vector<2x16x8x8xf32>,
    %21 = vector.shape_cast %9 : vector<512x8xf32> to vector<2x16x16x8xf32>
    %c0_32 = arith.constant 0 : index
    %c1_33 = arith.constant 1 : index
    %c8 = arith.constant 8 : index
    %c0_34 = arith.constant 0 : index
    %22 = vector.load %arg10[%c0_32, %c1_33, %c8, %c0_34] : memref<2x18x32x8xf32, #tpu.memory_space<vmem>>, vector<2x16x16x8xf32>
    tpu.vector_store %arg10[%c0_32, %c1_33, %c8, %c0_34], %21 {strides = array<i32>} : memref<2x18x32x8xf32, #tpu.memory_space<vmem>>, vector<2x16x16x8xf32>,
    %c0_35 = arith.constant 0 : index
    %c0_36 = arith.constant 0 : index
    %c7 = arith.constant 7 : index
    %c0_37 = arith.constant 0 : index
    %23 = vector.load %arg10[%c0_35, %c0_36, %c7, %c0_37] : memref<2x18x32x8xf32, #tpu.memory_space<vmem>>, vector<2x16x16x8xf32>
    %24 = vector.shape_cast %23 : vector<2x16x16x8xf32> to vector<512x8xf32>
    %c0_38 = arith.constant 0 : index
    %c0_39 = arith.constant 0 : index
    %c0_40 = arith.constant 0 : index
    %c0_41 = arith.constant 0 : index
    %25 = vector.load %arg2[%c0_38, %c0_39, %c0_40, %c0_41] : memref<3x3x8x8xf32, #tpu.memory_space<vmem>>, vector<1x1x8x8xf32>
    %26 = vector.shape_cast %25 : vector<1x1x8x8xf32> to vector<8x8xf32>
    %cst_42 = arith.constant dense<0.000000e+00> : vector<512x8xf32>
    %27 = tpu.matmul %24, %26, %cst_42 {dimension_numbers = #tpu.dot_dimension_numbers<[1], [0], [0], [1], [0, 0, 1, 1], [], []>} : vector<512x8xf32>, vector<8x8xf32>, vector<512x8xf32> -> vector<512x8xf32>
    %c0_43 = arith.constant 0 : index
    %c0_44 = arith.constant 0 : index
    %c8_45 = arith.constant 8 : index
    %c0_46 = arith.constant 0 : index
    %28 = vector.load %arg10[%c0_43, %c0_44, %c8_45, %c0_46] : memref<2x18x32x8xf32, #tpu.memory_space<vmem>>, vector<2x16x16x8xf32>
    %29 = vector.shape_cast %28 : vector<2x16x16x8xf32> to vector<512x8xf32>
    %c0_47 = arith.constant 0 : index
    %c1_48 = arith.constant 1 : index
    %c0_49 = arith.constant 0 : index
    %c0_50 = arith.constant 0 : index
    %30 = vector.load %arg2[%c0_47, %c1_48, %c0_49, %c0_50] : memref<3x3x8x8xf32, #tpu.memory_space<vmem>>, vector<1x1x8x8xf32>
    %31 = vector.shape_cast %30 : vector<1x1x8x8xf32> to vector<8x8xf32>
    %cst_51 = arith.constant dense<0.000000e+00> : vector<512x8xf32>
    %32 = tpu.matmul %29, %31, %cst_51 {dimension_numbers = #tpu.dot_dimension_numbers<[1], [0], [0], [1], [0, 0, 1, 1], [], []>} : vector<512x8xf32>, vector<8x8xf32>, vector<512x8xf32> -> vector<512x8xf32>
    %c0_52 = arith.constant 0 : index
    %c0_53 = arith.constant 0 : index
    %c9 = arith.constant 9 : index
    %c0_54 = arith.constant 0 : index
    %33 = vector.load %arg10[%c0_52, %c0_53, %c9, %c0_54] : memref<2x18x32x8xf32, #tpu.memory_space<vmem>>, vector<2x16x16x8xf32>
    %34 = vector.shape_cast %33 : vector<2x16x16x8xf32> to vector<512x8xf32>
    %c0_55 = arith.constant 0 : index
    %c2 = arith.constant 2 : index
    %c0_56 = arith.constant 0 : index
    %c0_57 = arith.constant 0 : index
    %35 = vector.load %arg2[%c0_55, %c2, %c0_56, %c0_57] : memref<3x3x8x8xf32, #tpu.memory_space<vmem>>, vector<1x1x8x8xf32>
    %36 = vector.shape_cast %35 : vector<1x1x8x8xf32> to vector<8x8xf32>
    %cst_58 = arith.constant dense<0.000000e+00> : vector<512x8xf32>
    %37 = tpu.matmul %34, %36, %cst_58 {dimension_numbers = #tpu.dot_dimension_numbers<[1], [0], [0], [1], [0, 0, 1, 1], [], []>} : vector<512x8xf32>, vector<8x8xf32>, vector<512x8xf32> -> vector<512x8xf32>
    %38 = arith.addf %27, %37 : vector<512x8xf32>
    %c0_59 = arith.constant 0 : index
    %c1_60 = arith.constant 1 : index
    %c7_61 = arith.constant 7 : index
    %c0_62 = arith.constant 0 : index
    %39 = vector.load %arg10[%c0_59, %c1_60, %c7_61, %c0_62] : memref<2x18x32x8xf32, #tpu.memory_space<vmem>>, vector<2x16x16x8xf32>
    %40 = vector.shape_cast %39 : vector<2x16x16x8xf32> to vector<512x8xf32>
    %c1_63 = arith.constant 1 : index
    %c0_64 = arith.constant 0 : index
    %c0_65 = arith.constant 0 : index
    %c0_66 = arith.constant 0 : index
    %41 = vector.load %arg2[%c1_63, %c0_64, %c0_65, %c0_66] : memref<3x3x8x8xf32, #tpu.memory_space<vmem>>, vector<1x1x8x8xf32>
    %42 = vector.shape_cast %41 : vector<1x1x8x8xf32> to vector<8x8xf32>
    %cst_67 = arith.constant dense<0.000000e+00> : vector<512x8xf32>
    %43 = tpu.matmul %40, %42, %cst_67 {dimension_numbers = #tpu.dot_dimension_numbers<[1], [0], [0], [1], [0, 0, 1, 1], [], []>} : vector<512x8xf32>, vector<8x8xf32>, vector<512x8xf32> -> vector<512x8xf32>
    %44 = arith.addf %32, %43 : vector<512x8xf32>
    %c0_68 = arith.constant 0 : index
    %c1_69 = arith.constant 1 : index
    %c8_70 = arith.constant 8 : index
    %c0_71 = arith.constant 0 : index
    %45 = vector.load %arg10[%c0_68, %c1_69, %c8_70, %c0_71] : memref<2x18x32x8xf32, #tpu.memory_space<vmem>>, vector<2x16x16x8xf32>
    %46 = vector.shape_cast %45 : vector<2x16x16x8xf32> to vector<512x8xf32>
    %c1_72 = arith.constant 1 : index
    %c1_73 = arith.constant 1 : index
    %c0_74 = arith.constant 0 : index
    %c0_75 = arith.constant 0 : index
    %47 = vector.load %arg2[%c1_72, %c1_73, %c0_74, %c0_75] : memref<3x3x8x8xf32, #tpu.memory_space<vmem>>, vector<1x1x8x8xf32>
    %48 = vector.shape_cast %47 : vector<1x1x8x8xf32> to vector<8x8xf32>
    %cst_76 = arith.constant dense<0.000000e+00> : vector<512x8xf32>
    %49 = tpu.matmul %46, %48, %cst_76 {dimension_numbers = #tpu.dot_dimension_numbers<[1], [0], [0], [1], [0, 0, 1, 1], [], []>} : vector<512x8xf32>, vector<8x8xf32>, vector<512x8xf32> -> vector<512x8xf32>
    %50 = arith.addf %38, %49 : vector<512x8xf32>
    %c0_77 = arith.constant 0 : index
    %c1_78 = arith.constant 1 : index
    %c9_79 = arith.constant 9 : index
    %c0_80 = arith.constant 0 : index
    %51 = vector.load %arg10[%c0_77, %c1_78, %c9_79, %c0_80] : memref<2x18x32x8xf32, #tpu.memory_space<vmem>>, vector<2x16x16x8xf32>
    %52 = vector.shape_cast %51 : vector<2x16x16x8xf32> to vector<512x8xf32>
    %c1_81 = arith.constant 1 : index
    %c2_82 = arith.constant 2 : index
    %c0_83 = arith.constant 0 : index
    %c0_84 = arith.constant 0 : index
    %53 = vector.load %arg2[%c1_81, %c2_82, %c0_83, %c0_84] : memref<3x3x8x8xf32, #tpu.memory_space<vmem>>, vector<1x1x8x8xf32>
    %54 = vector.shape_cast %53 : vector<1x1x8x8xf32> to vector<8x8xf32>
    %cst_85 = arith.constant dense<0.000000e+00> : vector<512x8xf32>
    %55 = tpu.matmul %52, %54, %cst_85 {dimension_numbers = #tpu.dot_dimension_numbers<[1], [0], [0], [1], [0, 0, 1, 1], [], []>} : vector<512x8xf32>, vector<8x8xf32>, vector<512x8xf32> -> vector<512x8xf32>
    %56 = arith.addf %44, %55 : vector<512x8xf32>
    %c0_86 = arith.constant 0 : index
    %c2_87 = arith.constant 2 : index
    %c7_88 = arith.constant 7 : index
    %c0_89 = arith.constant 0 : index
    %57 = vector.load %arg10[%c0_86, %c2_87, %c7_88, %c0_89] : memref<2x18x32x8xf32, #tpu.memory_space<vmem>>, vector<2x16x16x8xf32>
    %58 = vector.shape_cast %57 : vector<2x16x16x8xf32> to vector<512x8xf32>
    %c2_90 = arith.constant 2 : index
    %c0_91 = arith.constant 0 : index
    %c0_92 = arith.constant 0 : index
    %c0_93 = arith.constant 0 : index
    %59 = vector.load %arg2[%c2_90, %c0_91, %c0_92, %c0_93] : memref<3x3x8x8xf32, #tpu.memory_space<vmem>>, vector<1x1x8x8xf32>
    %60 = vector.shape_cast %59 : vector<1x1x8x8xf32> to vector<8x8xf32>
    %cst_94 = arith.constant dense<0.000000e+00> : vector<512x8xf32>
    %61 = tpu.matmul %58, %60, %cst_94 {dimension_numbers = #tpu.dot_dimension_numbers<[1], [0], [0], [1], [0, 0, 1, 1], [], []>} : vector<512x8xf32>, vector<8x8xf32>, vector<512x8xf32> -> vector<512x8xf32>
    %62 = arith.addf %50, %61 : vector<512x8xf32>
    %c0_95 = arith.constant 0 : index
    %c2_96 = arith.constant 2 : index
    %c8_97 = arith.constant 8 : index
    %c0_98 = arith.constant 0 : index
    %63 = vector.load %arg10[%c0_95, %c2_96, %c8_97, %c0_98] : memref<2x18x32x8xf32, #tpu.memory_space<vmem>>, vector<2x16x16x8xf32>
    %64 = vector.shape_cast %63 : vector<2x16x16x8xf32> to vector<512x8xf32>
    %c2_99 = arith.constant 2 : index
    %c1_100 = arith.constant 1 : index
    %c0_101 = arith.constant 0 : index
    %c0_102 = arith.constant 0 : index
    %65 = vector.load %arg2[%c2_99, %c1_100, %c0_101, %c0_102] : memref<3x3x8x8xf32, #tpu.memory_space<vmem>>, vector<1x1x8x8xf32>
    %66 = vector.shape_cast %65 : vector<1x1x8x8xf32> to vector<8x8xf32>
    %cst_103 = arith.constant dense<0.000000e+00> : vector<512x8xf32>
    %67 = tpu.matmul %64, %66, %cst_103 {dimension_numbers = #tpu.dot_dimension_numbers<[1], [0], [0], [1], [0, 0, 1, 1], [], []>} : vector<512x8xf32>, vector<8x8xf32>, vector<512x8xf32> -> vector<512x8xf32>
    %68 = arith.addf %56, %67 : vector<512x8xf32>
    %c0_104 = arith.constant 0 : index
    %c2_105 = arith.constant 2 : index
    %c9_106 = arith.constant 9 : index
    %c0_107 = arith.constant 0 : index
    %69 = vector.load %arg10[%c0_104, %c2_105, %c9_106, %c0_107] : memref<2x18x32x8xf32, #tpu.memory_space<vmem>>, vector<2x16x16x8xf32>
    %70 = vector.shape_cast %69 : vector<2x16x16x8xf32> to vector<512x8xf32>
    %c2_108 = arith.constant 2 : index
    %c2_109 = arith.constant 2 : index
    %c0_110 = arith.constant 0 : index
    %c0_111 = arith.constant 0 : index
    %71 = vector.load %arg2[%c2_108, %c2_109, %c0_110, %c0_111] : memref<3x3x8x8xf32, #tpu.memory_space<vmem>>, vector<1x1x8x8xf32>
    %72 = vector.shape_cast %71 : vector<1x1x8x8xf32> to vector<8x8xf32>
    %cst_112 = arith.constant dense<0.000000e+00> : vector<512x8xf32>
    %73 = tpu.matmul %70, %72, %cst_112 {dimension_numbers = #tpu.dot_dimension_numbers<[1], [0], [0], [1], [0, 0, 1, 1], [], []>} : vector<512x8xf32>, vector<8x8xf32>, vector<512x8xf32> -> vector<512x8xf32>
    %74 = arith.addf %62, %73 : vector<512x8xf32>
    %75 = arith.addf %74, %68 : vector<512x8xf32>
    %c0_113 = arith.constant 0 : index
    %c0_114 = arith.constant 0 : index
    %76 = vector.load %arg3[%c0_113, %c0_114] : memref<1x8xf32, #tpu.memory_space<vmem>>, vector<1x8xf32>
    %77 = vector.broadcast %76 : vector<1x8xf32> to vector<512x8xf32>
    %78 = arith.addf %75, %77 : vector<512x8xf32>
    %79 = vector.shape_cast %78 : vector<512x8xf32> to vector<2x16x16x8xf32>
    %c0_115 = arith.constant 0 : index
    %c1_116 = arith.constant 1 : index
    %c8_117 = arith.constant 8 : index
    %c0_118 = arith.constant 0 : index
    %80 = vector.load %arg10[%c0_115, %c1_116, %c8_117, %c0_118] : memref<2x18x32x8xf32, #tpu.memory_space<vmem>>, vector<2x16x16x8xf32>
    tpu.vector_store %arg10[%c0_115, %c1_116, %c8_117, %c0_118], %79 {strides = array<i32>} : memref<2x18x32x8xf32, #tpu.memory_space<vmem>>, vector<2x16x16x8xf32>,
    %c0_119 = arith.constant 0 : index
    %c0_120 = arith.constant 0 : index
    %c7_121 = arith.constant 7 : index
    %c0_122 = arith.constant 0 : index
    %81 = vector.load %arg10[%c0_119, %c0_120, %c7_121, %c0_122] : memref<2x18x32x8xf32, #tpu.memory_space<vmem>>, vector<2x16x16x8xf32>
    %82 = vector.shape_cast %81 : vector<2x16x16x8xf32> to vector<512x8xf32>
    %c0_123 = arith.constant 0 : index
    %c0_124 = arith.constant 0 : index
    %c0_125 = arith.constant 0 : index
    %c0_126 = arith.constant 0 : index
    %83 = vector.load %arg4[%c0_123, %c0_124, %c0_125, %c0_126] : memref<3x3x8x8xf32, #tpu.memory_space<vmem>>, vector<1x1x8x8xf32>
    %84 = vector.shape_cast %83 : vector<1x1x8x8xf32> to vector<8x8xf32>
    %cst_127 = arith.constant dense<0.000000e+00> : vector<512x8xf32>
    %85 = tpu.matmul %82, %84, %cst_127 {dimension_numbers = #tpu.dot_dimension_numbers<[1], [0], [0], [1], [0, 0, 1, 1], [], []>} : vector<512x8xf32>, vector<8x8xf32>, vector<512x8xf32> -> vector<512x8xf32>
    %c0_128 = arith.constant 0 : index
    %c0_129 = arith.constant 0 : index
    %c8_130 = arith.constant 8 : index
    %c0_131 = arith.constant 0 : index
    %86 = vector.load %arg10[%c0_128, %c0_129, %c8_130, %c0_131] : memref<2x18x32x8xf32, #tpu.memory_space<vmem>>, vector<2x16x16x8xf32>
    %87 = vector.shape_cast %86 : vector<2x16x16x8xf32> to vector<512x8xf32>
    %c0_132 = arith.constant 0 : index
    %c1_133 = arith.constant 1 : index
    %c0_134 = arith.constant 0 : index
    %c0_135 = arith.constant 0 : index
    %88 = vector.load %arg4[%c0_132, %c1_133, %c0_134, %c0_135] : memref<3x3x8x8xf32, #tpu.memory_space<vmem>>, vector<1x1x8x8xf32>
    %89 = vector.shape_cast %88 : vector<1x1x8x8xf32> to vector<8x8xf32>
    %cst_136 = arith.constant dense<0.000000e+00> : vector<512x8xf32>
    %90 = tpu.matmul %87, %89, %cst_136 {dimension_numbers = #tpu.dot_dimension_numbers<[1], [0], [0], [1], [0, 0, 1, 1], [], []>} : vector<512x8xf32>, vector<8x8xf32>, vector<512x8xf32> -> vector<512x8xf32>
    %c0_137 = arith.constant 0 : index
    %c0_138 = arith.constant 0 : index
    %c9_139 = arith.constant 9 : index
    %c0_140 = arith.constant 0 : index
    %91 = vector.load %arg10[%c0_137, %c0_138, %c9_139, %c0_140] : memref<2x18x32x8xf32, #tpu.memory_space<vmem>>, vector<2x16x16x8xf32>
    %92 = vector.shape_cast %91 : vector<2x16x16x8xf32> to vector<512x8xf32>
    %c0_141 = arith.constant 0 : index
    %c2_142 = arith.constant 2 : index
    %c0_143 = arith.constant 0 : index
    %c0_144 = arith.constant 0 : index
    %93 = vector.load %arg4[%c0_141, %c2_142, %c0_143, %c0_144] : memref<3x3x8x8xf32, #tpu.memory_space<vmem>>, vector<1x1x8x8xf32>
    %94 = vector.shape_cast %93 : vector<1x1x8x8xf32> to vector<8x8xf32>
    %cst_145 = arith.constant dense<0.000000e+00> : vector<512x8xf32>
    %95 = tpu.matmul %92, %94, %cst_145 {dimension_numbers = #tpu.dot_dimension_numbers<[1], [0], [0], [1], [0, 0, 1, 1], [], []>} : vector<512x8xf32>, vector<8x8xf32>, vector<512x8xf32> -> vector<512x8xf32>
    %96 = arith.addf %85, %95 : vector<512x8xf32>
    %c0_146 = arith.constant 0 : index
    %c1_147 = arith.constant 1 : index
    %c7_148 = arith.constant 7 : index
    %c0_149 = arith.constant 0 : index
    %97 = vector.load %arg10[%c0_146, %c1_147, %c7_148, %c0_149] : memref<2x18x32x8xf32, #tpu.memory_space<vmem>>, vector<2x16x16x8xf32>
    %98 = vector.shape_cast %97 : vector<2x16x16x8xf32> to vector<512x8xf32>
    %c1_150 = arith.constant 1 : index
    %c0_151 = arith.constant 0 : index
    %c0_152 = arith.constant 0 : index
    %c0_153 = arith.constant 0 : index
    %99 = vector.load %arg4[%c1_150, %c0_151, %c0_152, %c0_153] : memref<3x3x8x8xf32, #tpu.memory_space<vmem>>, vector<1x1x8x8xf32>
    %100 = vector.shape_cast %99 : vector<1x1x8x8xf32> to vector<8x8xf32>
    %cst_154 = arith.constant dense<0.000000e+00> : vector<512x8xf32>
    %101 = tpu.matmul %98, %100, %cst_154 {dimension_numbers = #tpu.dot_dimension_numbers<[1], [0], [0], [1], [0, 0, 1, 1], [], []>} : vector<512x8xf32>, vector<8x8xf32>, vector<512x8xf32> -> vector<512x8xf32>
    %102 = arith.addf %90, %101 : vector<512x8xf32>
    %c0_155 = arith.constant 0 : index
    %c1_156 = arith.constant 1 : index
    %c8_157 = arith.constant 8 : index
    %c0_158 = arith.constant 0 : index
    %103 = vector.load %arg10[%c0_155, %c1_156, %c8_157, %c0_158] : memref<2x18x32x8xf32, #tpu.memory_space<vmem>>, vector<2x16x16x8xf32>
    %104 = vector.shape_cast %103 : vector<2x16x16x8xf32> to vector<512x8xf32>
    %c1_159 = arith.constant 1 : index
    %c1_160 = arith.constant 1 : index
    %c0_161 = arith.constant 0 : index
    %c0_162 = arith.constant 0 : index
    %105 = vector.load %arg4[%c1_159, %c1_160, %c0_161, %c0_162] : memref<3x3x8x8xf32, #tpu.memory_space<vmem>>, vector<1x1x8x8xf32>
    %106 = vector.shape_cast %105 : vector<1x1x8x8xf32> to vector<8x8xf32>
    %cst_163 = arith.constant dense<0.000000e+00> : vector<512x8xf32>
    %107 = tpu.matmul %104, %106, %cst_163 {dimension_numbers = #tpu.dot_dimension_numbers<[1], [0], [0], [1], [0, 0, 1, 1], [], []>} : vector<512x8xf32>, vector<8x8xf32>, vector<512x8xf32> -> vector<512x8xf32>
    %108 = arith.addf %96, %107 : vector<512x8xf32>
    %c0_164 = arith.constant 0 : index
    %c1_165 = arith.constant 1 : index
    %c9_166 = arith.constant 9 : index
    %c0_167 = arith.constant 0 : index
    %109 = vector.load %arg10[%c0_164, %c1_165, %c9_166, %c0_167] : memref<2x18x32x8xf32, #tpu.memory_space<vmem>>, vector<2x16x16x8xf32>
    %110 = vector.shape_cast %109 : vector<2x16x16x8xf32> to vector<512x8xf32>
    %c1_168 = arith.constant 1 : index
    %c2_169 = arith.constant 2 : index
    %c0_170 = arith.constant 0 : index
    %c0_171 = arith.constant 0 : index
    %111 = vector.load %arg4[%c1_168, %c2_169, %c0_170, %c0_171] : memref<3x3x8x8xf32, #tpu.memory_space<vmem>>, vector<1x1x8x8xf32>
    %112 = vector.shape_cast %111 : vector<1x1x8x8xf32> to vector<8x8xf32>
    %cst_172 = arith.constant dense<0.000000e+00> : vector<512x8xf32>
    %113 = tpu.matmul %110, %112, %cst_172 {dimension_numbers = #tpu.dot_dimension_numbers<[1], [0], [0], [1], [0, 0, 1, 1], [], []>} : vector<512x8xf32>, vector<8x8xf32>, vector<512x8xf32> -> vector<512x8xf32>
    %114 = arith.addf %102, %113 : vector<512x8xf32>
    %c0_173 = arith.constant 0 : index
    %c2_174 = arith.constant 2 : index
    %c7_175 = arith.constant 7 : index
    %c0_176 = arith.constant 0 : index
    %115 = vector.load %arg10[%c0_173, %c2_174, %c7_175, %c0_176] : memref<2x18x32x8xf32, #tpu.memory_space<vmem>>, vector<2x16x16x8xf32>
    %116 = vector.shape_cast %115 : vector<2x16x16x8xf32> to vector<512x8xf32>
    %c2_177 = arith.constant 2 : index
    %c0_178 = arith.constant 0 : index
    %c0_179 = arith.constant 0 : index
    %c0_180 = arith.constant 0 : index
    %117 = vector.load %arg4[%c2_177, %c0_178, %c0_179, %c0_180] : memref<3x3x8x8xf32, #tpu.memory_space<vmem>>, vector<1x1x8x8xf32>
    %118 = vector.shape_cast %117 : vector<1x1x8x8xf32> to vector<8x8xf32>
    %cst_181 = arith.constant dense<0.000000e+00> : vector<512x8xf32>
    %119 = tpu.matmul %116, %118, %cst_181 {dimension_numbers = #tpu.dot_dimension_numbers<[1], [0], [0], [1], [0, 0, 1, 1], [], []>} : vector<512x8xf32>, vector<8x8xf32>, vector<512x8xf32> -> vector<512x8xf32>
    %120 = arith.addf %108, %119 : vector<512x8xf32>
    %c0_182 = arith.constant 0 : index
    %c2_183 = arith.constant 2 : index
    %c8_184 = arith.constant 8 : index
    %c0_185 = arith.constant 0 : index
    %121 = vector.load %arg10[%c0_182, %c2_183, %c8_184, %c0_185] : memref<2x18x32x8xf32, #tpu.memory_space<vmem>>, vector<2x16x16x8xf32>
    %122 = vector.shape_cast %121 : vector<2x16x16x8xf32> to vector<512x8xf32>
    %c2_186 = arith.constant 2 : index
    %c1_187 = arith.constant 1 : index
    %c0_188 = arith.constant 0 : index
    %c0_189 = arith.constant 0 : index
    %123 = vector.load %arg4[%c2_186, %c1_187, %c0_188, %c0_189] : memref<3x3x8x8xf32, #tpu.memory_space<vmem>>, vector<1x1x8x8xf32>
    %124 = vector.shape_cast %123 : vector<1x1x8x8xf32> to vector<8x8xf32>
    %cst_190 = arith.constant dense<0.000000e+00> : vector<512x8xf32>
    %125 = tpu.matmul %122, %124, %cst_190 {dimension_numbers = #tpu.dot_dimension_numbers<[1], [0], [0], [1], [0, 0, 1, 1], [], []>} : vector<512x8xf32>, vector<8x8xf32>, vector<512x8xf32> -> vector<512x8xf32>
    %126 = arith.addf %114, %125 : vector<512x8xf32>
    %c0_191 = arith.constant 0 : index
    %c2_192 = arith.constant 2 : index
    %c9_193 = arith.constant 9 : index
    %c0_194 = arith.constant 0 : index
    %127 = vector.load %arg10[%c0_191, %c2_192, %c9_193, %c0_194] : memref<2x18x32x8xf32, #tpu.memory_space<vmem>>, vector<2x16x16x8xf32>
    %128 = vector.shape_cast %127 : vector<2x16x16x8xf32> to vector<512x8xf32>
    %c2_195 = arith.constant 2 : index
    %c2_196 = arith.constant 2 : index
    %c0_197 = arith.constant 0 : index
    %c0_198 = arith.constant 0 : index
    %129 = vector.load %arg4[%c2_195, %c2_196, %c0_197, %c0_198] : memref<3x3x8x8xf32, #tpu.memory_space<vmem>>, vector<1x1x8x8xf32>
    %130 = vector.shape_cast %129 : vector<1x1x8x8xf32> to vector<8x8xf32>
    %cst_199 = arith.constant dense<0.000000e+00> : vector<512x8xf32>
    %131 = tpu.matmul %128, %130, %cst_199 {dimension_numbers = #tpu.dot_dimension_numbers<[1], [0], [0], [1], [0, 0, 1, 1], [], []>} : vector<512x8xf32>, vector<8x8xf32>, vector<512x8xf32> -> vector<512x8xf32>
    %132 = arith.addf %120, %131 : vector<512x8xf32>
    %133 = arith.addf %132, %126 : vector<512x8xf32>
    %c0_200 = arith.constant 0 : index
    %c0_201 = arith.constant 0 : index
    %134 = vector.load %arg5[%c0_200, %c0_201] : memref<1x8xf32, #tpu.memory_space<vmem>>, vector<1x8xf32>
    %135 = vector.broadcast %134 : vector<1x8xf32> to vector<512x8xf32>
    %136 = arith.addf %133, %135 : vector<512x8xf32>
    %137 = arith.addf %136, %14 : vector<512x8xf32>
    %138 = tpu.transpose %137, [1, 0] : vector<512x8xf32> -> vector<8x512xf32>
    %139 = vector.extract_strided_slice %138 {offsets = [0, 0], sizes = [8, 256], strides = [1, 1]} : vector<8x512xf32> to vector<8x256xf32>
    %c0_202 = arith.constant 0 : index
    %c0_203 = arith.constant 0 : index
    %c0_204 = arith.constant 0 : index
    %140 = vector.load %arg8[%c0_202, %c0_203, %c0_204] : memref<2x8x256xf32, #tpu.memory_space<vmem>>, vector<1x8x256xf32>
    %141 = vector.shape_cast %140 : vector<1x8x256xf32> to vector<8x256xf32>
    %142 = vector.shape_cast %139 : vector<8x256xf32> to vector<1x8x256xf32>
    tpu.vector_store %arg8[%c0_202, %c0_203, %c0_204], %142 {strides = array<i32>} : memref<2x8x256xf32, #tpu.memory_space<vmem>>, vector<1x8x256xf32>,
    %143 = vector.extract_strided_slice %138 {offsets = [0, 256], sizes = [8, 256], strides = [1, 1]} : vector<8x512xf32> to vector<8x256xf32>
    %c1_205 = arith.constant 1 : index
    %c0_206 = arith.constant 0 : index
    %c0_207 = arith.constant 0 : index
    %144 = vector.load %arg8[%c1_205, %c0_206, %c0_207] : memref<2x8x256xf32, #tpu.memory_space<vmem>>, vector<1x8x256xf32>
    %145 = vector.shape_cast %144 : vector<1x8x256xf32> to vector<8x256xf32>
    %146 = vector.shape_cast %143 : vector<8x256xf32> to vector<1x8x256xf32>
    tpu.vector_store %arg8[%c1_205, %c0_206, %c0_207], %146 {strides = array<i32>} : memref<2x8x256xf32, #tpu.memory_space<vmem>>, vector<1x8x256xf32>,
    return
  }
  func.func @transform_0(%arg0: i32) -> (i32, i32, i32) {
    %c0_i32 = arith.constant 0 : i32
    %c0_i32_0 = arith.constant 0 : i32
    %c0_i32_1 = arith.constant 0 : i32
    %c0_i32_2 = arith.constant 0 : i32
    return %c0_i32, %c0_i32_0, %c0_i32_1 : i32, i32, i32
  }
  func.func @transform_1(%arg0: i32) -> (i32, i32, i32, i32) {
    %c0_i32 = arith.constant 0 : i32
    %c0_i32_0 = arith.constant 0 : i32
    %c0_i32_1 = arith.constant 0 : i32
    %c0_i32_2 = arith.constant 0 : i32
    %c0_i32_3 = arith.constant 0 : i32
    return %c0_i32, %c0_i32_0, %c0_i32_1, %c0_i32_2 : i32, i32, i32, i32
  }
  func.func @transform_2(%arg0: i32) -> (i32, i32) {
    %c0_i32 = arith.constant 0 : i32
    %c0_i32_0 = arith.constant 0 : i32
    %c0_i32_1 = arith.constant 0 : i32
    return %c0_i32, %c0_i32_0 : i32, i32
  }
  func.func @transform_3(%arg0: i32) -> (i32, i32, i32, i32) {
    %c0_i32 = arith.constant 0 : i32
    %c0_i32_0 = arith.constant 0 : i32
    %c0_i32_1 = arith.constant 0 : i32
    %c0_i32_2 = arith.constant 0 : i32
    %c0_i32_3 = arith.constant 0 : i32
    return %c0_i32, %c0_i32_0, %c0_i32_1, %c0_i32_2 : i32, i32, i32, i32
  }
  func.func @transform_4(%arg0: i32) -> (i32, i32) {
    %c0_i32 = arith.constant 0 : i32
    %c0_i32_0 = arith.constant 0 : i32
    %c0_i32_1 = arith.constant 0 : i32
    return %c0_i32, %c0_i32_0 : i32, i32
  }
  func.func @transform_5(%arg0: i32) -> (i32, i32) {
    %c0_i32 = arith.constant 0 : i32
    %c0_i32_0 = arith.constant 0 : i32
    %c0_i32_1 = arith.constant 0 : i32
    return %c0_i32, %c0_i32_0 : i32, i32
  }
  func.func @transform_6(%arg0: i32) -> (i32, i32) {
    %c0_i32 = arith.constant 0 : i32
    %c0_i32_0 = arith.constant 0 : i32
    %c0_i32_1 = arith.constant 0 : i32
    return %c0_i32, %c0_i32_0 : i32, i32
  }
  func.func @transform_7(%arg0: i32) -> (i32, i32, i32) {
    %c0_i32 = arith.constant 0 : i32
    %c0_i32_0 = arith.constant 0 : i32
    %c0_i32_1 = arith.constant 0 : i32
    %c0_i32_2 = arith.constant 0 : i32
    return %c0_i32, %c0_i32_0, %c0_i32_1 : i32, i32, i32
  }
}

</mosaic_0001>

<bundles_post_ra>
// kernel: fused_forward.1
= control target key start
LH: loop header
LB: loop body
LE: loop exit
PB: predicated region body
PF: predicated region fallthrough
CT: control target
= control target key end

     0   :  { %vm183_vm0 = vcmask 64512   ;;  %v18017_v0 = vmov 0.0   ;;  %s23349_s0 = inlined_call_operand.vmem [shape: f32[2,4,256], index: 0, kind: input, shape index: {}]   ;;  %s23350_s5 = inlined_call_operand.vmem [shape: f32[8,8], index: 5, kind: input, shape index: {}]   ;;  %s23351_s1 = inlined_call_operand.vmem [shape: f32[3,3,8,8], index: 1, kind: input, shape index: {}]   ;;  %s23352_s3 = inlined_call_operand.vmem [shape: f32[3,3,8,8], index: 3, kind: input, shape index: {}]   ;;  %s23353_s2 = inlined_call_operand.vmem [shape: f32[1,8], index: 2, kind: input, shape index: {}]   ;;  %s23354_s4 = inlined_call_operand.vmem [shape: f32[1,8], index: 4, kind: input, shape index: {}]   ;;  %s23355_s6 = inlined_call_operand.vmem [shape: f32[1,8], index: 6, kind: input, shape index: {}]   ;;  %s23356_s7 = inlined_call_operand.vmem [shape: f32[2,8,256], index: 7, kind: output, shape index: {}]  }
   0x1   :  { %28 = vst [vmem:[#allocation2 + $0x18] sm:$0xff] %v18017_v0  ;;  %v18062_v1 = vld [vmem:[%s23349_s0 + $0x8] sm:$0xff]  ;;  %26 = vst [vmem:[#allocation2 + $0x10] sm:$0xff] %v18017_v0  ;;  %v18070_v2 = vld [vmem:[%s23349_s0] sm:$0xff] }
   0x2   :  { %27 = vst [vmem:[#allocation2] sm:$0xff] %v18017_v0  ;;  %29 = vst [vmem:[#allocation2 + $0x8] sm:$0xff] %v18017_v0  ;;  %v39_v3 = vcombine.high %v18062_v1, %v18062_v1  ;;  %v32_v4 = vcombine.high %v18070_v2, %v18070_v2  ;;  %v175_v5 = vld [vmem:[%s23350_s5] sm:$0xff]  ;;  %v13722_v10 = vld [vmem:[%s23351_s1 + $0x10] sm:$0xff] }
   0x3   :  { %761 = vst.msk [vmem:[#allocation3] sm:$0xff] %vm183_vm0, %v18017_v0  ;;  %762 = vst.msk [vmem:[#allocation3 + $0x8] sm:$0xff] %vm183_vm0, %v18017_v0  ;;  %17990 = vmatprep.subr.mxu1 %v175_v5  ;;  %16128 = vmatprep.subr.mxu0 %v175_v5  ;;  %v971_v11 = vld [vmem:[%s23351_s1] sm:$0xff]  ;;  %v18254_v16 = vld [vmem:[%s23351_s1 + $0x18] sm:$0xff] }
   0x4   :  { %763 = vst.msk [vmem:[#allocation3 + $0x10] sm:$0xff] %vm183_vm0, %v18017_v0  ;;  %764 = vst.msk [vmem:[#allocation3 + $0x18] sm:$0xff] %vm183_vm0, %v18017_v0  ;;  %17991 = vmatpush3.msra.mxu1 %v175_v5  ;;  %16129 = vmatpush3.msra.mxu0 %v175_v5 }
   0x5   :  { %765 = vst.msk [vmem:[#allocation3 + $0x240] sm:$0xff] %vm183_vm0, %v18017_v0  ;;  %766 = vst.msk [vmem:[#allocation3 + $0x248] sm:$0xff] %vm183_vm0, %v18017_v0  ;;  %16226 = vmatprep.subr.mxu1 %v13722_v10  ;;  %16324 = vmatprep.subr.mxu0 %v971_v11 }
   0x6   :  { %767 = vst.msk [vmem:[#allocation3 + $0x250] sm:$0xff] %vm183_vm0, %v18017_v0  ;;  %768 = vst.msk [vmem:[#allocation3 + $0x258] sm:$0xff] %vm183_vm0, %v18017_v0 }
   0x7   :  { %770 = vst.msk [vmem:[#allocation3 + $0x220] sm:$0xff] %vm183_vm0, %v18017_v0  ;;  %771 = vst.msk [vmem:[#allocation3 + $0x228] sm:$0xff] %vm183_vm0, %v18017_v0 }
   0x8   :  { %772 = vst.msk [vmem:[#allocation3 + $0x230] sm:$0xff] %vm183_vm0, %v18017_v0  ;;  %773 = vst.msk [vmem:[#allocation3 + $0x238] sm:$0xff] %vm183_vm0, %v18017_v0 }
   0x9   :  { %774 = vst.msk [vmem:[#allocation3 + $0x460] sm:$0xff] %vm183_vm0, %v18017_v0  ;;  %775 = vst.msk [vmem:[#allocation3 + $0x468] sm:$0xff] %vm183_vm0, %v18017_v0 }
   0xa   :  { %776 = vst.msk [vmem:[#allocation3 + $0x470] sm:$0xff] %vm183_vm0, %v18017_v0  ;;  %777 = vst.msk [vmem:[#allocation3 + $0x478] sm:$0xff] %vm183_vm0, %v18017_v0 }
   0xb   :  { %779 = vst.msk [vmem:[#allocation3 + $0x20] sm:$0xff] %vm183_vm0, %v18017_v0  ;;  %780 = vst.msk [vmem:[#allocation3 + $0x40] sm:$0xff] %vm183_vm0, %v18017_v0 }
   0xc   :  { %781 = vst.msk [vmem:[#allocation3 + $0x60] sm:$0xff] %vm183_vm0, %v18017_v0  ;;  %782 = vst.msk [vmem:[#allocation3 + $0x80] sm:$0xff] %vm183_vm0, %v18017_v0 }
   0xd   :  { %783 = vst.msk [vmem:[#allocation3 + $0xa0] sm:$0xff] %vm183_vm0, %v18017_v0  ;;  %784 = vst.msk [vmem:[#allocation3 + $0xc0] sm:$0xff] %vm183_vm0, %v18017_v0 }
   0xe   :  { %785 = vst.msk [vmem:[#allocation3 + $0xe0] sm:$0xff] %vm183_vm0, %v18017_v0  ;;  %786 = vst.msk [vmem:[#allocation3 + $0x100] sm:$0xff] %vm183_vm0, %v18017_v0 }
   0xf   :  { %787 = vst.msk [vmem:[#allocation3 + $0x120] sm:$0xff] %vm183_vm0, %v18017_v0  ;;  %788 = vst.msk [vmem:[#allocation3 + $0x140] sm:$0xff] %vm183_vm0, %v18017_v0 }
  0x10   :  { %789 = vst.msk [vmem:[#allocation3 + $0x160] sm:$0xff] %vm183_vm0, %v18017_v0  ;;  %790 = vst.msk [vmem:[#allocation3 + $0x180] sm:$0xff] %vm183_vm0, %v18017_v0 }
  0x11   :  { %791 = vst.msk [vmem:[#allocation3 + $0x1a0] sm:$0xff] %vm183_vm0, %v18017_v0  ;;  %792 = vst.msk [vmem:[#allocation3 + $0x1c0] sm:$0xff] %vm183_vm0, %v18017_v0 }
  0x12   :  { %793 = vst.msk [vmem:[#allocation3 + $0x1e0] sm:$0xff] %vm183_vm0, %v18017_v0  ;;  %794 = vst.msk [vmem:[#allocation3 + $0x200] sm:$0xff] %vm183_vm0, %v18017_v0 }
  0x13   :  { %795 = vst.msk [vmem:[#allocation3 + $0x260] sm:$0xff] %vm183_vm0, %v18017_v0  ;;  %796 = vst.msk [vmem:[#allocation3 + $0x280] sm:$0xff] %vm183_vm0, %v18017_v0 }
  0x14   :  { %797 = vst.msk [vmem:[#allocation3 + $0x2a0] sm:$0xff] %vm183_vm0, %v18017_v0  ;;  %798 = vst.msk [vmem:[#allocation3 + $0x2c0] sm:$0xff] %vm183_vm0, %v18017_v0 }
  0x15   :  { %799 = vst.msk [vmem:[#allocation3 + $0x2e0] sm:$0xff] %vm183_vm0, %v18017_v0  ;;  %800 = vst.msk [vmem:[#allocation3 + $0x300] sm:$0xff] %vm183_vm0, %v18017_v0 }
  0x16   :  { %801 = vst.msk [vmem:[#allocation3 + $0x320] sm:$0xff] %vm183_vm0, %v18017_v0  ;;  %802 = vst.msk [vmem:[#allocation3 + $0x340] sm:$0xff] %vm183_vm0, %v18017_v0 }
  0x17   :  { %803 = vst.msk [vmem:[#allocation3 + $0x360] sm:$0xff] %vm183_vm0, %v18017_v0  ;;  %804 = vst.msk [vmem:[#allocation3 + $0x380] sm:$0xff] %vm183_vm0, %v18017_v0 }
  0x18   :  { %805 = vst.msk [vmem:[#allocation3 + $0x3a0] sm:$0xff] %vm183_vm0, %v18017_v0  ;;  %806 = vst.msk [vmem:[#allocation3 + $0x3c0] sm:$0xff] %vm183_vm0, %v18017_v0 }
  0x19   :  { %807 = vst.msk [vmem:[#allocation3 + $0x3e0] sm:$0xff] %vm183_vm0, %v18017_v0  ;;  %808 = vst.msk [vmem:[#allocation3 + $0x400] sm:$0xff] %vm183_vm0, %v18017_v0 }
  0x1a   :  { %809 = vst.msk [vmem:[#allocation3 + $0x420] sm:$0xff] %vm183_vm0, %v18017_v0  ;;  %810 = vst.msk [vmem:[#allocation3 + $0x440] sm:$0xff] %vm183_vm0, %v18017_v0 }
  0x1b   :  { %811 = vst.msk [vmem:[#allocation3 + $0x38] sm:$0xff] %vm183_vm0, %v18017_v0  ;;  %812 = vst.msk [vmem:[#allocation3 + $0x58] sm:$0xff] %vm183_vm0, %v18017_v0 }
  0x1c   :  { %813 = vst.msk [vmem:[#allocation3 + $0x78] sm:$0xff] %vm183_vm0, %v18017_v0  ;;  %814 = vst.msk [vmem:[#allocation3 + $0x98] sm:$0xff] %vm183_vm0, %v18017_v0 }
  0x1d   :  { %815 = vst.msk [vmem:[#allocation3 + $0xb8] sm:$0xff] %vm183_vm0, %v18017_v0  ;;  %816 = vst.msk [vmem:[#allocation3 + $0xd8] sm:$0xff] %vm183_vm0, %v18017_v0 }
  0x1e   :  { %817 = vst.msk [vmem:[#allocation3 + $0xf8] sm:$0xff] %vm183_vm0, %v18017_v0  ;;  %818 = vst.msk [vmem:[#allocation3 + $0x118] sm:$0xff] %vm183_vm0, %v18017_v0 }
  0x1f   :  { %819 = vst.msk [vmem:[#allocation3 + $0x138] sm:$0xff] %vm183_vm0, %v18017_v0  ;;  %820 = vst.msk [vmem:[#allocation3 + $0x158] sm:$0xff] %vm183_vm0, %v18017_v0 }
  0x20   :  { %821 = vst.msk [vmem:[#allocation3 + $0x178] sm:$0xff] %vm183_vm0, %v18017_v0  ;;  %822 = vst.msk [vmem:[#allocation3 + $0x198] sm:$0xff] %vm183_vm0, %v18017_v0 }
  0x21   :  { %823 = vst.msk [vmem:[#allocation3 + $0x1b8] sm:$0xff] %vm183_vm0, %v18017_v0  ;;  %824 = vst.msk [vmem:[#allocation3 + $0x1d8] sm:$0xff] %vm183_vm0, %v18017_v0 }
  0x22   :  { %825 = vst.msk [vmem:[#allocation3 + $0x1f8] sm:$0xff] %vm183_vm0, %v18017_v0  ;;  %826 = vst.msk [vmem:[#allocation3 + $0x218] sm:$0xff] %vm183_vm0, %v18017_v0 }
  0x23   :  { %827 = vst.msk [vmem:[#allocation3 + $0x278] sm:$0xff] %vm183_vm0, %v18017_v0  ;;  %828 = vst.msk [vmem:[#allocation3 + $0x298] sm:$0xff] %vm183_vm0, %v18017_v0 }
  0x24   :  { %829 = vst.msk [vmem:[#allocation3 + $0x2b8] sm:$0xff] %vm183_vm0, %v18017_v0  ;;  %830 = vst.msk [vmem:[#allocation3 + $0x2d8] sm:$0xff] %vm183_vm0, %v18017_v0 }
  0x25   :  { %831 = vst.msk [vmem:[#allocation3 + $0x2f8] sm:$0xff] %vm183_vm0, %v18017_v0  ;;  %832 = vst.msk [vmem:[#allocation3 + $0x318] sm:$0xff] %vm183_vm0, %v18017_v0 }
  0x26   :  { %833 = vst.msk [vmem:[#allocation3 + $0x338] sm:$0xff] %vm183_vm0, %v18017_v0  ;;  %834 = vst.msk [vmem:[#allocation3 + $0x358] sm:$0xff] %vm183_vm0, %v18017_v0 }
  0x27   :  { %835 = vst.msk [vmem:[#allocation3 + $0x378] sm:$0xff] %vm183_vm0, %v18017_v0  ;;  %836 = vst.msk [vmem:[#allocation3 + $0x398] sm:$0xff] %vm183_vm0, %v18017_v0 }
  0x28   :  { %837 = vst.msk [vmem:[#allocation3 + $0x3b8] sm:$0xff] %vm183_vm0, %v18017_v0  ;;  %838 = vst.msk [vmem:[#allocation3 + $0x3d8] sm:$0xff] %vm183_vm0, %v18017_v0 }
  0x29   :  { %839 = vst.msk [vmem:[#allocation3 + $0x3f8] sm:$0xff] %vm183_vm0, %v18017_v0  ;;  %840 = vst.msk [vmem:[#allocation3 + $0x418] sm:$0xff] %vm183_vm0, %v18017_v0 }
  0x2a   :  { %841 = vst.msk [vmem:[#allocation3 + $0x438] sm:$0xff] %vm183_vm0, %v18017_v0  ;;  %842 = vst.msk [vmem:[#allocation3 + $0x458] sm:$0xff] %vm183_vm0, %v18017_v0 }
  0x2b   :  { %41 = vst [vmem:[#allocation2 + $0x18] sm:$0xf] %v18062_v1  ;;  %34 = vst [vmem:[#allocation2 + $0x10] sm:$0xf] %v18070_v2 }
  0x2c   :  { %35 = vst [vmem:[#allocation2] sm:$0xf] %v32_v4  ;;  %42 = vst [vmem:[#allocation2 + $0x8] sm:$0xf] %v39_v3 }
  0x32   :  { %v45_v6 = vld [vmem:[#allocation2 + $0x18] sm:$0xff]  ;;  %v43_v7 = vld [vmem:[#allocation2 + $0x10] sm:$0xff] }
  0x33   :  { %111 = vxpose.xlu0.b32.start.end [1/1] (short) %v45_v6, 128  ;;  %47 = vxpose.xlu1.b32.start.end [1/1] (short) %v43_v7, 128  ;;  %v46_v8 = vld [vmem:[#allocation2 + $0x8] sm:$0xff]  ;;  %v44_v9 = vld [vmem:[#allocation2] sm:$0xff] }
  0x70   :  { %143 = vxpose.xlu0.b32.start.end [1/1] (short) %v46_v8, 128  ;;  %79 = vxpose.xlu1.b32.start.end [1/1] (short) %v44_v9, 128 }
  0xaf   :  { %v127_v12 = vpop.trf.xlu0  ;;  %v63_v13 = vpop.trf.xlu1 }
  0xb0   :  { %875 = vst.msk [vmem:[#allocation3 + $0x268] sm:$0xff] %vm183_vm0, %v127_v12  ;;  %843 = vst.msk [vmem:[#allocation3 + $0x28] sm:$0xff] %vm183_vm0, %v63_v13  ;;  %16178 = vmatprep.mubr.msk.f32.mxu1 %vm183_vm0, %v127_v12  ;;  %16130 = vmatprep.mubr.msk.f32.mxu0 %vm183_vm0, %v63_v13  ;;  %v907_v12 = vld [vmem:[#allocation3 + $0x7] sm:$0xff] }
  0xb3   :  { %v128_v14 = vpop.trf.xlu0  ;;  %v64_v15 = vpop.trf.xlu1 }
  0xb4   :  { %876 = vst.msk [vmem:[#allocation3 + $0x270] sm:$0xff] %vm183_vm0, %v128_v14  ;;  %844 = vst.msk [vmem:[#allocation3 + $0x30] sm:$0xff] %vm183_vm0, %v64_v15  ;;  %16179 = vmatmul.mubr.msk.f32.vlgmr.msra.gmra.mxu1 %vm183_vm0, %v128_v14  ;;  %16131 = vmatmul.mubr.msk.f32.vlgmr.msra.gmra.mxu0 %vm183_vm0, %v64_v15  ;;  %v1039_v15 = vld [vmem:[#allocation3 + $0x11] sm:$0xff] }
  0xb5   :  { %16227 = vmatpush3.msra.mxu1 %v13722_v10  ;;  %16325 = vmatpush3.msra.mxu0 %v971_v11  ;;  %v1038_v11 = vld [vmem:[#allocation3 + $0x9] sm:$0xff] }
  0xb6   :  { %16422 = vmatprep.subr.mxu1 %v18254_v16 }
  0xb7   :  { %v129_v17 = vpop.trf.xlu0  ;;  %v65_v18 = vpop.trf.xlu1 }
  0xb8   :  { %877 = vst.msk [vmem:[#allocation3 + $0x288] sm:$0xff] %vm183_vm0, %v129_v17  ;;  %845 = vst.msk [vmem:[#allocation3 + $0x48] sm:$0xff] %vm183_vm0, %v65_v18  ;;  %16181 = vmatprep.mubr.msk.f32.mxu1 %vm183_vm0, %v129_v17  ;;  %16133 = vmatprep.mubr.msk.f32.mxu0 %vm183_vm0, %v65_v18  ;;  %v908_v17 = vld [vmem:[#allocation3 + $0xf] sm:$0xff] }
  0xb9   :  { %v13721_v18 = vld [vmem:[%s23351_s1 + $0x8] sm:$0xff] }
  0xba   :  { %16520 = vmatprep.subr.mxu0 %v13721_v18 }
  0xbb   :  { %v130_v19 = vpop.trf.xlu0  ;;  %v66_v20 = vpop.trf.xlu1 }
  0xbc   :  { %878 = vst.msk [vmem:[#allocation3 + $0x290] sm:$0xff] %vm183_vm0, %v130_v19  ;;  %846 = vst.msk [vmem:[#allocation3 + $0x50] sm:$0xff] %vm183_vm0, %v66_v20  ;;  %16182 = vmatmul.mubr.msk.f32.gmra.mxu1 %vm183_vm0, %v130_v19  ;;  %16134 = vmatmul.mubr.msk.f32.gmra.mxu0 %vm183_vm0, %v66_v20  ;;  %v1040_v19 = vld [vmem:[#allocation3 + $0x29] sm:$0xff]  ;;  %v18391_v20 = vld [vmem:[%s23351_s1 + $0x20] sm:$0xff] }
  0xbf   :  { %v131_v21 = vpop.trf.xlu0  ;;  %v67_v22 = vpop.trf.xlu1 }
  0xc0   :  { %879 = vst.msk [vmem:[#allocation3 + $0x2a8] sm:$0xff] %vm183_vm0, %v131_v21  ;;  %847 = vst.msk [vmem:[#allocation3 + $0x68] sm:$0xff] %vm183_vm0, %v67_v22  ;;  %16184 = vmatprep.mubr.msk.f32.mxu1 %vm183_vm0, %v131_v21  ;;  %16136 = vmatprep.mubr.msk.f32.mxu0 %vm183_vm0, %v67_v22  ;;  %v18395_v21 = vld [vmem:[#allocation3 + $0x27] sm:$0xff]  ;;  %v1041_v22 = vld [vmem:[#allocation3 + $0x31] sm:$0xff] }
  0xc3   :  { %v132_v23 = vpop.trf.xlu0  ;;  %v68_v24 = vpop.trf.xlu1 }
  0xc4   :  { %880 = vst.msk [vmem:[#allocation3 + $0x2b0] sm:$0xff] %vm183_vm0, %v132_v23  ;;  %848 = vst.msk [vmem:[#allocation3 + $0x70] sm:$0xff] %vm183_vm0, %v68_v24  ;;  %16185 = vmatmul.mubr.msk.f32.gmra.mxu1 %vm183_vm0, %v132_v23  ;;  %16137 = vmatmul.mubr.msk.f32.gmra.mxu0 %vm183_vm0, %v68_v24  ;;  %v18399_v23 = vld [vmem:[#allocation3 + $0x2f] sm:$0xff]  ;;  %v18405_v24 = vld [vmem:[#allocation3 + $0x47] sm:$0xff] }
  0xc7   :  { %v133_v25 = vpop.trf.xlu0  ;;  %v69_v26 = vpop.trf.xlu1 }
  0xc8   :  { %881 = vst.msk [vmem:[#allocation3 + $0x2c8] sm:$0xff] %vm183_vm0, %v133_v25  ;;  %849 = vst.msk [vmem:[#allocation3 + $0x88] sm:$0xff] %vm183_vm0, %v69_v26  ;;  %16187 = vmatprep.mubr.msk.f32.mxu1 %vm183_vm0, %v133_v25  ;;  %16139 = vmatprep.mubr.msk.f32.mxu0 %vm183_vm0, %v69_v26  ;;  %v1043_v25 = vld [vmem:[#allocation3 + $0x51] sm:$0xff] }
  0xc9   :  { %v18410_v26 = vld [vmem:[#allocation3 + $0x4f] sm:$0xff] }
  0xcb   :  { %v134_v27 = vpop.trf.xlu0  ;;  %v70_v28 = vpop.trf.xlu1 }
  0xcc   :  { %882 = vst.msk [vmem:[#allocation3 + $0x2d0] sm:$0xff] %vm183_vm0, %v134_v27  ;;  %850 = vst.msk [vmem:[#allocation3 + $0x90] sm:$0xff] %vm183_vm0, %v70_v28  ;;  %16188 = vmatmul.mubr.msk.f32.gmra.mxu1 %vm183_vm0, %v134_v27  ;;  %16140 = vmatmul.mubr.msk.f32.gmra.mxu0 %vm183_vm0, %v70_v28  ;;  %v1044_v27 = vld [vmem:[#allocation3 + $0x69] sm:$0xff] }
  0xcd   :  { %v18415_v28 = vld [vmem:[#allocation3 + $0x67] sm:$0xff] }
  0xcf   :  { %v135_v29 = vpop.trf.xlu0  ;;  %v71_v30 = vpop.trf.xlu1 }
  0xd0   :  { %883 = vst.msk [vmem:[#allocation3 + $0x2e8] sm:$0xff] %vm183_vm0, %v135_v29  ;;  %851 = vst.msk [vmem:[#allocation3 + $0xa8] sm:$0xff] %vm183_vm0, %v71_v30  ;;  %16190 = vmatprep.mubr.msk.f32.mxu1 %vm183_vm0, %v135_v29  ;;  %16142 = vmatprep.mubr.msk.f32.mxu0 %vm183_vm0, %v71_v30  ;;  %v1045_v29 = vld [vmem:[#allocation3 + $0x71] sm:$0xff] }
  0xd1   :  { %v18420_v30 = vld [vmem:[#allocation3 + $0x6f] sm:$0xff] }
  0xd3   :  { %v136_v31 = vpop.trf.xlu0  ;;  %v72_v32 = vpop.trf.xlu1 }
  0xd4   :  { %884 = vst.msk [vmem:[#allocation3 + $0x2f0] sm:$0xff] %vm183_vm0, %v136_v31  ;;  %852 = vst.msk [vmem:[#allocation3 + $0xb0] sm:$0xff] %vm183_vm0, %v72_v32  ;;  %16191 = vmatmul.mubr.msk.f32.gmra.mxu1 %vm183_vm0, %v136_v31  ;;  %16143 = vmatmul.mubr.msk.f32.gmra.mxu0 %vm183_vm0, %v72_v32  ;;  %v1046_v31 = vld [vmem:[#allocation3 + $0x89] sm:$0xff] }
  0xd5   :  { %v18425_v32 = vld [vmem:[#allocation3 + $0x87] sm:$0xff] }
  0xd7   :  { %v137_v33 = vpop.trf.xlu0  ;;  %v73_v34 = vpop.trf.xlu1 }
  0xd8   :  { %885 = vst.msk [vmem:[#allocation3 + $0x308] sm:$0xff] %vm183_vm0, %v137_v33  ;;  %853 = vst.msk [vmem:[#allocation3 + $0xc8] sm:$0xff] %vm183_vm0, %v73_v34  ;;  %16193 = vmatprep.mubr.msk.f32.mxu1 %vm183_vm0, %v137_v33  ;;  %16145 = vmatprep.mubr.msk.f32.mxu0 %vm183_vm0, %v73_v34  ;;  %v1047_v33 = vld [vmem:[#allocation3 + $0x91] sm:$0xff] }
  0xd9   :  { %v18430_v34 = vld [vmem:[#allocation3 + $0x8f] sm:$0xff] }
  0xdb   :  { %v138_v35 = vpop.trf.xlu0  ;;  %v74_v36 = vpop.trf.xlu1 }
  0xdc   :  { %886 = vst.msk [vmem:[#allocation3 + $0x310] sm:$0xff] %vm183_vm0, %v138_v35  ;;  %854 = vst.msk [vmem:[#allocation3 + $0xd0] sm:$0xff] %vm183_vm0, %v74_v36  ;;  %16194 = vmatmul.mubr.msk.f32.gmra.mxu1 %vm183_vm0, %v138_v35  ;;  %16146 = vmatmul.mubr.msk.f32.gmra.mxu0 %vm183_vm0, %v74_v36  ;;  %v1048_v35 = vld [vmem:[#allocation3 + $0xa9] sm:$0xff] }
  0xdd   :  { %v18435_v36 = vld [vmem:[#allocation3 + $0xa7] sm:$0xff] }
  0xdf   :  { %v139_v37 = vpop.trf.xlu0  ;;  %v75_v38 = vpop.trf.xlu1 }
  0xe0   :  { %887 = vst.msk [vmem:[#allocation3 + $0x328] sm:$0xff] %vm183_vm0, %v139_v37  ;;  %855 = vst.msk [vmem:[#allocation3 + $0xe8] sm:$0xff] %vm183_vm0, %v75_v38  ;;  %16196 = vmatprep.mubr.msk.f32.mxu1 %vm183_vm0, %v139_v37  ;;  %16148 = vmatprep.mubr.msk.f32.mxu0 %vm183_vm0, %v75_v38  ;;  %v1049_v37 = vld [vmem:[#allocation3 + $0xb1] sm:$0xff] }
  0xe1   :  { %v18440_v38 = vld [vmem:[#allocation3 + $0xaf] sm:$0xff] }
  0xe3   :  { %v140_v39 = vpop.trf.xlu0  ;;  %v76_v40 = vpop.trf.xlu1 }
  0xe4   :  { %888 = vst.msk [vmem:[#allocation3 + $0x330] sm:$0xff] %vm183_vm0, %v140_v39  ;;  %856 = vst.msk [vmem:[#allocation3 + $0xf0] sm:$0xff] %vm183_vm0, %v76_v40  ;;  %16197 = vmatmul.mubr.msk.f32.gmra.mxu1 %vm183_vm0, %v140_v39  ;;  %16149 = vmatmul.mubr.msk.f32.gmra.mxu0 %vm183_vm0, %v76_v40  ;;  %v1050_v39 = vld [vmem:[#allocation3 + $0xc9] sm:$0xff] }
  0xe5   :  { %v18445_v40 = vld [vmem:[#allocation3 + $0xc7] sm:$0xff] }
  0xe7   :  { %v141_v41 = vpop.trf.xlu0  ;;  %v77_v42 = vpop.trf.xlu1 }
  0xe8   :  { %889 = vst.msk [vmem:[#allocation3 + $0x348] sm:$0xff] %vm183_vm0, %v141_v41  ;;  %857 = vst.msk [vmem:[#allocation3 + $0x108] sm:$0xff] %vm183_vm0, %v77_v42  ;;  %16199 = vmatprep.mubr.msk.f32.mxu1 %vm183_vm0, %v141_v41  ;;  %16151 = vmatprep.mubr.msk.f32.mxu0 %vm183_vm0, %v77_v42  ;;  %v1051_v41 = vld [vmem:[#allocation3 + $0xd1] sm:$0xff] }
  0xe9   :  { %v18450_v42 = vld [vmem:[#allocation3 + $0xcf] sm:$0xff] }
  0xeb   :  { %v142_v43 = vpop.trf.xlu0  ;;  %v78_v44 = vpop.trf.xlu1 }
  0xec   :  { %890 = vst.msk [vmem:[#allocation3 + $0x350] sm:$0xff] %vm183_vm0, %v142_v43  ;;  %858 = vst.msk [vmem:[#allocation3 + $0x110] sm:$0xff] %vm183_vm0, %v78_v44  ;;  %16200 = vmatmul.mubr.msk.f32.gmra.mxu1 %vm183_vm0, %v142_v43  ;;  %16152 = vmatmul.mubr.msk.f32.gmra.mxu0 %vm183_vm0, %v78_v44  ;;  %v1052_v43 = vld [vmem:[#allocation3 + $0xe9] sm:$0xff] }
  0xed   :  { %v18455_v44 = vld [vmem:[#allocation3 + $0xe7] sm:$0xff] }
  0xef   :  { %v159_v45 = vpop.trf.xlu0  ;;  %v95_v46 = vpop.trf.xlu1 }
  0xf0   :  { %891 = vst.msk [vmem:[#allocation3 + $0x368] sm:$0xff] %vm183_vm0, %v159_v45  ;;  %859 = vst.msk [vmem:[#allocation3 + $0x128] sm:$0xff] %vm183_vm0, %v95_v46  ;;  %16202 = vmatprep.mubr.msk.f32.mxu1 %vm183_vm0, %v159_v45  ;;  %16154 = vmatprep.mubr.msk.f32.mxu0 %vm183_vm0, %v95_v46  ;;  %v1053_v45 = vld [vmem:[#allocation3 + $0xf1] sm:$0xff] }
  0xf1   :  { %v18460_v46 = vld [vmem:[#allocation3 + $0xef] sm:$0xff] }
  0xf3   :  { %v160_v47 = vpop.trf.xlu0  ;;  %v96_v48 = vpop.trf.xlu1 }
  0xf4   :  { %892 = vst.msk [vmem:[#allocation3 + $0x370] sm:$0xff] %vm183_vm0, %v160_v47  ;;  %860 = vst.msk [vmem:[#allocation3 + $0x130] sm:$0xff] %vm183_vm0, %v96_v48  ;;  %16203 = vmatmul.mubr.msk.f32.gmra.mxu1 %vm183_vm0, %v160_v47  ;;  %16155 = vmatmul.mubr.msk.f32.gmra.mxu0 %vm183_vm0, %v96_v48  ;;  %v1054_v47 = vld [vmem:[#allocation3 + $0x109] sm:$0xff] }
  0xf5   :  { %v18465_v48 = vld [vmem:[#allocation3 + $0x107] sm:$0xff] }
  0xf7   :  { %v161_v49 = vpop.trf.xlu0  ;;  %v97_v50 = vpop.trf.xlu1 }
  0xf8   :  { %893 = vst.msk [vmem:[#allocation3 + $0x388] sm:$0xff] %vm183_vm0, %v161_v49  ;;  %861 = vst.msk [vmem:[#allocation3 + $0x148] sm:$0xff] %vm183_vm0, %v97_v50  ;;  %16205 = vmatprep.mubr.msk.f32.mxu1 %vm183_vm0, %v161_v49  ;;  %16157 = vmatprep.mubr.msk.f32.mxu0 %vm183_vm0, %v97_v50  ;;  %v1055_v49 = vld [vmem:[#allocation3 + $0x111] sm:$0xff] }
  0xf9   :  { %v18470_v50 = vld [vmem:[#allocation3 + $0x10f] sm:$0xff] }
  0xfb   :  { %v162_v51 = vpop.trf.xlu0  ;;  %v98_v52 = vpop.trf.xlu1 }
  0xfc   :  { %894 = vst.msk [vmem:[#allocation3 + $0x390] sm:$0xff] %vm183_vm0, %v162_v51  ;;  %862 = vst.msk [vmem:[#allocation3 + $0x150] sm:$0xff] %vm183_vm0, %v98_v52  ;;  %16206 = vmatmul.mubr.msk.f32.gmra.mxu1 %vm183_vm0, %v162_v51  ;;  %16158 = vmatmul.mubr.msk.f32.gmra.mxu0 %vm183_vm0, %v98_v52  ;;  %v1056_v51 = vld [vmem:[#allocation3 + $0x129] sm:$0xff] }
  0xfd   :  { %v18475_v52 = vld [vmem:[#allocation3 + $0x127] sm:$0xff] }
  0xff   :  { %v163_v53 = vpop.trf.xlu0  ;;  %v99_v54 = vpop.trf.xlu1 }
 0x100   :  { %895 = vst.msk [vmem:[#allocation3 + $0x3a8] sm:$0xff] %vm183_vm0, %v163_v53  ;;  %863 = vst.msk [vmem:[#allocation3 + $0x168] sm:$0xff] %vm183_vm0, %v99_v54  ;;  %16208 = vmatprep.mubr.msk.f32.mxu1 %vm183_vm0, %v163_v53  ;;  %16160 = vmatprep.mubr.msk.f32.mxu0 %vm183_vm0, %v99_v54  ;;  %v1057_v53 = vld [vmem:[#allocation3 + $0x131] sm:$0xff] }
 0x101   :  { %v18480_v54 = vld [vmem:[#allocation3 + $0x12f] sm:$0xff] }
 0x103   :  { %v164_v55 = vpop.trf.xlu0  ;;  %v100_v56 = vpop.trf.xlu1 }
 0x104   :  { %896 = vst.msk [vmem:[#allocation3 + $0x3b0] sm:$0xff] %vm183_vm0, %v164_v55  ;;  %864 = vst.msk [vmem:[#allocation3 + $0x170] sm:$0xff] %vm183_vm0, %v100_v56  ;;  %16209 = vmatmul.mubr.msk.f32.gmra.mxu1 %vm183_vm0, %v164_v55  ;;  %16161 = vmatmul.mubr.msk.f32.gmra.mxu0 %vm183_vm0, %v100_v56  ;;  %v1058_v55 = vld [vmem:[#allocation3 + $0x149] sm:$0xff] }
 0x105   :  { %v18485_v56 = vld [vmem:[#allocation3 + $0x147] sm:$0xff] }
 0x107   :  { %v165_v57 = vpop.trf.xlu0  ;;  %v101_v58 = vpop.trf.xlu1 }
 0x108   :  { %897 = vst.msk [vmem:[#allocation3 + $0x3c8] sm:$0xff] %vm183_vm0, %v165_v57  ;;  %865 = vst.msk [vmem:[#allocation3 + $0x188] sm:$0xff] %vm183_vm0, %v101_v58  ;;  %16211 = vmatprep.mubr.msk.f32.mxu1 %vm183_vm0, %v165_v57  ;;  %16163 = vmatprep.mubr.msk.f32.mxu0 %vm183_vm0, %v101_v58  ;;  %v1059_v57 = vld [vmem:[#allocation3 + $0x151] sm:$0xff] }
 0x109   :  { %v18490_v58 = vld [vmem:[#allocation3 + $0x14f] sm:$0xff] }
 0x10b   :  { %v166_v59 = vpop.trf.xlu0  ;;  %v102_v60 = vpop.trf.xlu1 }
 0x10c   :  { %898 = vst.msk [vmem:[#allocation3 + $0x3d0] sm:$0xff] %vm183_vm0, %v166_v59  ;;  %866 = vst.msk [vmem:[#allocation3 + $0x190] sm:$0xff] %vm183_vm0, %v102_v60  ;;  %16212 = vmatmul.mubr.msk.f32.gmra.mxu1 %vm183_vm0, %v166_v59  ;;  %16164 = vmatmul.mubr.msk.f32.gmra.mxu0 %vm183_vm0, %v102_v60  ;;  %v1060_v59 = vld [vmem:[#allocation3 + $0x169] sm:$0xff] }
 0x10d   :  { %v18495_v60 = vld [vmem:[#allocation3 + $0x167] sm:$0xff] }
 0x10f   :  { %v167_v61 = vpop.trf.xlu0  ;;  %v103_v62 = vpop.trf.xlu1 }
 0x110   :  { %899 = vst.msk [vmem:[#allocation3 + $0x3e8] sm:$0xff] %vm183_vm0, %v167_v61  ;;  %867 = vst.msk [vmem:[#allocation3 + $0x1a8] sm:$0xff] %vm183_vm0, %v103_v62  ;;  %16214 = vmatprep.mubr.msk.f32.mxu1 %vm183_vm0, %v167_v61  ;;  %16166 = vmatprep.mubr.msk.f32.mxu0 %vm183_vm0, %v103_v62  ;;  %v1061_v61 = vld [vmem:[#allocation3 + $0x171] sm:$0xff] }
 0x111   :  { %v18500_v62 = vld [vmem:[#allocation3 + $0x16f] sm:$0xff] }
 0x113   :  { %v168_v63 = vpop.trf.xlu0  ;;  %v104_v0 = vpop.trf.xlu1 }
 0x114   :  { %900 = vst.msk [vmem:[#allocation3 + $0x3f0] sm:$0xff] %vm183_vm0, %v168_v63  ;;  %868 = vst.msk [vmem:[#allocation3 + $0x1b0] sm:$0xff] %vm183_vm0, %v104_v0  ;;  %16215 = vmatmul.mubr.msk.f32.gmra.mxu1 %vm183_vm0, %v168_v63  ;;  %16167 = vmatmul.mubr.msk.f32.gmra.mxu0 %vm183_vm0, %v104_v0  ;;  %v1062_v63 = vld [vmem:[#allocation3 + $0x189] sm:$0xff] }
 0x115   :  { %v18505_v0 = vld [vmem:[#allocation3 + $0x187] sm:$0xff] }
 0x117   :  { %v169_v1 = vpop.trf.xlu0  ;;  %v105_v2 = vpop.trf.xlu1 }
 0x118   :  { %901 = vst.msk [vmem:[#allocation3 + $0x408] sm:$0xff] %vm183_vm0, %v169_v1  ;;  %869 = vst.msk [vmem:[#allocation3 + $0x1c8] sm:$0xff] %vm183_vm0, %v105_v2  ;;  %16217 = vmatprep.mubr.msk.f32.mxu1 %vm183_vm0, %v169_v1  ;;  %16169 = vmatprep.mubr.msk.f32.mxu0 %vm183_vm0, %v105_v2  ;;  %v1063_v1 = vld [vmem:[#allocation3 + $0x191] sm:$0xff] }
 0x119   :  { %v18510_v2 = vld [vmem:[#allocation3 + $0x18f] sm:$0xff] }
 0x11b   :  { %v170_v3 = vpop.trf.xlu0  ;;  %v106_v4 = vpop.trf.xlu1 }
 0x11c   :  { %902 = vst.msk [vmem:[#allocation3 + $0x410] sm:$0xff] %vm183_vm0, %v170_v3  ;;  %870 = vst.msk [vmem:[#allocation3 + $0x1d0] sm:$0xff] %vm183_vm0, %v106_v4  ;;  %16218 = vmatmul.mubr.msk.f32.gmra.mxu1 %vm183_vm0, %v170_v3  ;;  %16170 = vmatmul.mubr.msk.f32.gmra.mxu0 %vm183_vm0, %v106_v4  ;;  %v1064_v3 = vld [vmem:[#allocation3 + $0x1a9] sm:$0xff] }
 0x11d   :  { %v18515_v4 = vld [vmem:[#allocation3 + $0x1a7] sm:$0xff] }
 0x11f   :  { %v171_v5 = vpop.trf.xlu0  ;;  %v107_v6 = vpop.trf.xlu1 }
 0x120   :  { %903 = vst.msk [vmem:[#allocation3 + $0x428] sm:$0xff] %vm183_vm0, %v171_v5  ;;  %871 = vst.msk [vmem:[#allocation3 + $0x1e8] sm:$0xff] %vm183_vm0, %v107_v6  ;;  %16220 = vmatprep.mubr.msk.f32.mxu1 %vm183_vm0, %v171_v5  ;;  %16172 = vmatprep.mubr.msk.f32.mxu0 %vm183_vm0, %v107_v6  ;;  %v1065_v5 = vld [vmem:[#allocation3 + $0x1b1] sm:$0xff] }
 0x121   :  { %v18520_v6 = vld [vmem:[#allocation3 + $0x1af] sm:$0xff] }
 0x123   :  { %v172_v7 = vpop.trf.xlu0  ;;  %v108_v8 = vpop.trf.xlu1 }
 0x124   :  { %904 = vst.msk [vmem:[#allocation3 + $0x430] sm:$0xff] %vm183_vm0, %v172_v7  ;;  %872 = vst.msk [vmem:[#allocation3 + $0x1f0] sm:$0xff] %vm183_vm0, %v108_v8  ;;  %16221 = vmatmul.mubr.msk.f32.gmra.mxu1 %vm183_vm0, %v172_v7  ;;  %16173 = vmatmul.mubr.msk.f32.gmra.mxu0 %vm183_vm0, %v108_v8  ;;  %v1066_v7 = vld [vmem:[#allocation3 + $0x1c9] sm:$0xff] }
 0x125   :  { %v18525_v8 = vld [vmem:[#allocation3 + $0x1c7] sm:$0xff] }
 0x127   :  { %v173_v9 = vpop.trf.xlu0  ;;  %v109_v10 = vpop.trf.xlu1 }
 0x128   :  { %905 = vst.msk [vmem:[#allocation3 + $0x448] sm:$0xff] %vm183_vm0, %v173_v9  ;;  %873 = vst.msk [vmem:[#allocation3 + $0x208] sm:$0xff] %vm183_vm0, %v109_v10  ;;  %16223 = vmatprep.mubr.msk.f32.mxu1 %vm183_vm0, %v173_v9  ;;  %16175 = vmatprep.mubr.msk.f32.mxu0 %vm183_vm0, %v109_v10  ;;  %v1067_v9 = vld [vmem:[#allocation3 + $0x1d1] sm:$0xff] }
 0x129   :  { %v18530_v10 = vld [vmem:[#allocation3 + $0x1cf] sm:$0xff] }
 0x12b   :  { %v174_v13 = vpop.trf.xlu0  ;;  %v110_v14 = vpop.trf.xlu1 }
 0x12c   :  { %906 = vst.msk [vmem:[#allocation3 + $0x450] sm:$0xff] %vm183_vm0, %v174_v13  ;;  %874 = vst.msk [vmem:[#allocation3 + $0x210] sm:$0xff] %vm183_vm0, %v110_v14  ;;  %16176 = vmatmul.mubr.msk.f32.gmra.mxu0 %vm183_vm0, %v110_v14  ;;  %16224 = vmatmul.mubr.msk.f32.gmra.mxu1 %vm183_vm0, %v174_v13  ;;  %v1069_v13 = vld [vmem:[#allocation3 + $0x1f1] sm:$0xff]  ;;  %v1070_v14 = vld [vmem:[#allocation3 + $0x249] sm:$0xff] }
 0x12d   :  { %16228 = vmatprep.mubr.msk.f32.mxu1 %vm183_vm0, %v1038_v11  ;;  %16326 = vmatprep.mubr.msk.f32.mxu0 %vm183_vm0, %v907_v12  ;;  %v1068_v11 = vld [vmem:[#allocation3 + $0x1e9] sm:$0xff] }
 0x12e   :  { %v18535_v12 = vld [vmem:[#allocation3 + $0x1e7] sm:$0xff] }
 0x130   :  { %16229 = vmatmul.mubr.msk.f32.vlgmr.msra.gmra.mxu1 %vm183_vm0, %v1039_v15  ;;  %16327 = vmatmul.mubr.msk.f32.vlgmr.msra.gmra.mxu0 %vm183_vm0, %v908_v17  ;;  %v939_v15 = vld [vmem:[#allocation3 + $0x247] sm:$0xff]  ;;  %v18540_v17 = vld [vmem:[#allocation3 + $0x1ef] sm:$0xff] }
 0x131   :  { %16423 = vmatpush3.msra.mxu1 %v18254_v16  ;;  %16231 = vmatprep.mubr.msk.f32.mxu1 %vm183_vm0, %v1040_v19  ;;  %v1042_v16 = vld [vmem:[#allocation3 + $0x49] sm:$0xff] }
 0x132   :  { %16329 = vmatprep.mubr.msk.f32.mxu0 %vm183_vm0, %v18395_v21  ;;  %16521 = vmatpush3.msra.mxu0 %v13721_v18  ;;  %v1071_v18 = vld [vmem:[#allocation3 + $0x251] sm:$0xff] }
 0x133   :  { %16618 = vmatprep.subr.mxu1 %v18391_v20  ;;  %v940_v19 = vld [vmem:[#allocation3 + $0x24f] sm:$0xff] }
 0x134   :  { %16232 = vmatmul.mubr.msk.f32.gmra.mxu1 %vm183_vm0, %v1041_v22  ;;  %16330 = vmatmul.mubr.msk.f32.gmra.mxu0 %vm183_vm0, %v18399_v23  ;;  %v1072_v22 = vld [vmem:[#allocation3 + $0x269] sm:$0xff] }
 0x135   :  { %16234 = vmatprep.mubr.msk.f32.mxu1 %vm183_vm0, %v1042_v16  ;;  %16332 = vmatprep.mubr.msk.f32.mxu0 %vm183_vm0, %v18405_v24  ;;  %v18549_v16 = vld [vmem:[#allocation3 + $0x267] sm:$0xff] }
 0x138   :  { %16235 = vmatmul.mubr.msk.f32.gmra.mxu1 %vm183_vm0, %v1043_v25  ;;  %16333 = vmatmul.mubr.msk.f32.gmra.mxu0 %vm183_vm0, %v18410_v26  ;;  %v1073_v25 = vld [vmem:[#allocation3 + $0x271] sm:$0xff] }
 0x139   :  { %16237 = vmatprep.mubr.msk.f32.mxu1 %vm183_vm0, %v1044_v27  ;;  %16335 = vmatprep.mubr.msk.f32.mxu0 %vm183_vm0, %v18415_v28  ;;  %v18554_v27 = vld [vmem:[#allocation3 + $0x26f] sm:$0xff] }
 0x13c   :  { %16238 = vmatmul.mubr.msk.f32.gmra.mxu1 %vm183_vm0, %v1045_v29  ;;  %16336 = vmatmul.mubr.msk.f32.gmra.mxu0 %vm183_vm0, %v18420_v30  ;;  %v1074_v29 = vld [vmem:[#allocation3 + $0x289] sm:$0xff] }
 0x13d   :  { %16240 = vmatprep.mubr.msk.f32.mxu1 %vm183_vm0, %v1046_v31  ;;  %16338 = vmatprep.mubr.msk.f32.mxu0 %vm183_vm0, %v18425_v32  ;;  %v18559_v31 = vld [vmem:[#allocation3 + $0x287] sm:$0xff] }
 0x140   :  { %16241 = vmatmul.mubr.msk.f32.gmra.mxu1 %vm183_vm0, %v1047_v33  ;;  %16339 = vmatmul.mubr.msk.f32.gmra.mxu0 %vm183_vm0, %v18430_v34 }
 0x141   :  { %16243 = vmatprep.mubr.msk.f32.mxu1 %vm183_vm0, %v1048_v35  ;;  %16341 = vmatprep.mubr.msk.f32.mxu0 %vm183_vm0, %v18435_v36  ;;  %v1075_v35 = vld [vmem:[#allocation3 + $0x291] sm:$0xff] }
 0x144   :  { %16244 = vmatmul.mubr.msk.f32.gmra.mxu1 %vm183_vm0, %v1049_v37  ;;  %16342 = vmatmul.mubr.msk.f32.gmra.mxu0 %vm183_vm0, %v18440_v38  ;;  %v18566_v37 = vld [vmem:[#allocation3 + $0x28f] sm:$0xff] }
 0x145   :  { %16246 = vmatprep.mubr.msk.f32.mxu1 %vm183_vm0, %v1050_v39  ;;  %16344 = vmatprep.mubr.msk.f32.mxu0 %vm183_vm0, %v18445_v40  ;;  %v1076_v39 = vld [vmem:[#allocation3 + $0x2a9] sm:$0xff] }
 0x148   :  { %16247 = vmatmul.mubr.msk.f32.gmra.mxu1 %vm183_vm0, %v1051_v41  ;;  %16345 = vmatmul.mubr.msk.f32.gmra.mxu0 %vm183_vm0, %v18450_v42  ;;  %v18571_v41 = vld [vmem:[#allocation3 + $0x2a7] sm:$0xff] }
 0x149   :  { %16249 = vmatprep.mubr.msk.f32.mxu1 %vm183_vm0, %v1052_v43  ;;  %16347 = vmatprep.mubr.msk.f32.mxu0 %vm183_vm0, %v18455_v44 }
 0x14c   :  { %16250 = vmatmul.mubr.msk.f32.gmra.mxu1 %vm183_vm0, %v1053_v45  ;;  %16348 = vmatmul.mubr.msk.f32.gmra.mxu0 %vm183_vm0, %v18460_v46  ;;  %v1077_v45 = vld [vmem:[#allocation3 + $0x2b1] sm:$0xff] }
 0x14d   :  { %16252 = vmatprep.mubr.msk.f32.mxu1 %vm183_vm0, %v1054_v47  ;;  %16350 = vmatprep.mubr.msk.f32.mxu0 %vm183_vm0, %v18465_v48  ;;  %v18578_v47 = vld [vmem:[#allocation3 + $0x2af] sm:$0xff] }
 0x150   :  { %16253 = vmatmul.mubr.msk.f32.gmra.mxu1 %vm183_vm0, %v1055_v49  ;;  %16351 = vmatmul.mubr.msk.f32.gmra.mxu0 %vm183_vm0, %v18470_v50  ;;  %v1078_v49 = vld [vmem:[#allocation3 + $0x2c9] sm:$0xff] }
 0x151   :  { %16255 = vmatprep.mubr.msk.f32.mxu1 %vm183_vm0, %v1056_v51  ;;  %16353 = vmatprep.mubr.msk.f32.mxu0 %vm183_vm0, %v18475_v52  ;;  %v18583_v51 = vld [vmem:[#allocation3 + $0x2c7] sm:$0xff] }
 0x154   :  { %16256 = vmatmul.mubr.msk.f32.gmra.mxu1 %vm183_vm0, %v1057_v53  ;;  %16354 = vmatmul.mubr.msk.f32.gmra.mxu0 %vm183_vm0, %v18480_v54 }
 0x155   :  { %16258 = vmatprep.mubr.msk.f32.mxu1 %vm183_vm0, %v1058_v55  ;;  %16356 = vmatprep.mubr.msk.f32.mxu0 %vm183_vm0, %v18485_v56  ;;  %v1079_v55 = vld [vmem:[#allocation3 + $0x2d1] sm:$0xff] }
 0x158   :  { %16259 = vmatmul.mubr.msk.f32.gmra.mxu1 %vm183_vm0, %v1059_v57  ;;  %16357 = vmatmul.mubr.msk.f32.gmra.mxu0 %vm183_vm0, %v18490_v58  ;;  %v18590_v57 = vld [vmem:[#allocation3 + $0x2cf] sm:$0xff] }
 0x159   :  { %16261 = vmatprep.mubr.msk.f32.mxu1 %vm183_vm0, %v1060_v59  ;;  %16359 = vmatprep.mubr.msk.f32.mxu0 %vm183_vm0, %v18495_v60  ;;  %v1080_v59 = vld [vmem:[#allocation3 + $0x2e9] sm:$0xff] }
 0x15c   :  { %16262 = vmatmul.mubr.msk.f32.gmra.mxu1 %vm183_vm0, %v1061_v61  ;;  %16360 = vmatmul.mubr.msk.f32.gmra.mxu0 %vm183_vm0, %v18500_v62  ;;  %v18595_v61 = vld [vmem:[#allocation3 + $0x2e7] sm:$0xff] }
 0x15d   :  { %16264 = vmatprep.mubr.msk.f32.mxu1 %vm183_vm0, %v1062_v63  ;;  %16362 = vmatprep.mubr.msk.f32.mxu0 %vm183_vm0, %v18505_v0 }
 0x160   :  { %16265 = vmatmul.mubr.msk.f32.gmra.mxu1 %vm183_vm0, %v1063_v1  ;;  %16363 = vmatmul.mubr.msk.f32.gmra.mxu0 %vm183_vm0, %v18510_v2  ;;  %v1081_v1 = vld [vmem:[#allocation3 + $0x2f1] sm:$0xff] }
 0x161   :  { %16267 = vmatprep.mubr.msk.f32.mxu1 %vm183_vm0, %v1064_v3  ;;  %16365 = vmatprep.mubr.msk.f32.mxu0 %vm183_vm0, %v18515_v4  ;;  %v18602_v3 = vld [vmem:[#allocation3 + $0x2ef] sm:$0xff] }
 0x164   :  { %16268 = vmatmul.mubr.msk.f32.gmra.mxu1 %vm183_vm0, %v1065_v5  ;;  %16366 = vmatmul.mubr.msk.f32.gmra.mxu0 %vm183_vm0, %v18520_v6  ;;  %v1082_v5 = vld [vmem:[#allocation3 + $0x309] sm:$0xff] }
 0x165   :  { %16270 = vmatprep.mubr.msk.f32.mxu1 %vm183_vm0, %v1066_v7  ;;  %16368 = vmatprep.mubr.msk.f32.mxu0 %vm183_vm0, %v18525_v8  ;;  %v18607_v7 = vld [vmem:[#allocation3 + $0x307] sm:$0xff] }
 0x168   :  { %16271 = vmatmul.mubr.msk.f32.gmra.mxu1 %vm183_vm0, %v1067_v9  ;;  %16369 = vmatmul.mubr.msk.f32.gmra.mxu0 %vm183_vm0, %v18530_v10 }
 0x169   :  { %16273 = vmatprep.mubr.msk.f32.mxu1 %vm183_vm0, %v1068_v11  ;;  %16371 = vmatprep.mubr.msk.f32.mxu0 %vm183_vm0, %v18535_v12  ;;  %v1083_v11 = vld [vmem:[#allocation3 + $0x311] sm:$0xff] }
 0x16c   :  { %16274 = vmatmul.mubr.msk.f32.gmra.mxu1 %vm183_vm0, %v1069_v13  ;;  %16372 = vmatmul.mubr.msk.f32.gmra.mxu0 %vm183_vm0, %v18540_v17  ;;  %v18614_v13 = vld [vmem:[#allocation3 + $0x30f] sm:$0xff] }
 0x16d   :  { %16276 = vmatprep.mubr.msk.f32.mxu1 %vm183_vm0, %v1070_v14  ;;  %16374 = vmatprep.mubr.msk.f32.mxu0 %vm183_vm0, %v939_v15  ;;  %v1084_v14 = vld [vmem:[#allocation3 + $0x329] sm:$0xff] }
 0x16e   :  { %v18619_v15 = vld [vmem:[#allocation3 + $0x327] sm:$0xff] }
 0x170   :  { %16277 = vmatmul.mubr.msk.f32.gmra.mxu1 %vm183_vm0, %v1071_v18  ;;  %16375 = vmatmul.mubr.msk.f32.gmra.mxu0 %vm183_vm0, %v940_v19  ;;  %v1085_v19 = vld [vmem:[#allocation3 + $0x331] sm:$0xff] }
 0x171   :  { %16279 = vmatprep.mubr.msk.f32.mxu1 %vm183_vm0, %v1072_v22  ;;  %16377 = vmatprep.mubr.msk.f32.mxu0 %vm183_vm0, %v18549_v16  ;;  %v18626_v22 = vld [vmem:[#allocation3 + $0x32f] sm:$0xff] }
 0x174   :  { %16280 = vmatmul.mubr.msk.f32.gmra.mxu1 %vm183_vm0, %v1073_v25  ;;  %16378 = vmatmul.mubr.msk.f32.gmra.mxu0 %vm183_vm0, %v18554_v27  ;;  %v18561_v33 = vpop.f32.mrf.mxu0  ;;  %v1086_v25 = vld [vmem:[#allocation3 + $0x349] sm:$0xff] }
 0x175   :  { %23377 = vst [vmem:[#allocation4_spill] sm:$0xff] %v18561_v33  ;;  %16282 = vmatprep.mubr.msk.f32.mxu1 %vm183_vm0, %v1074_v29  ;;  %16380 = vmatprep.mubr.msk.f32.mxu0 %vm183_vm0, %v18559_v31  ;;  %v18631_v29 = vld [vmem:[#allocation3 + $0x347] sm:$0xff] }
 0x176   :  { %v18573_v43 = vpop.f32.mrf.mxu0  ;;  %v18717_v33 = vld [vmem:[#allocation3 + $0x407] sm:$0xff] }
 0x177   :  { %23378 = vst [vmem:[#allocation5_spill] sm:$0xff] %v18573_v43  ;;  %23398 = vst [vmem:[#allocation25_spill] sm:$0xff] %v18717_v33 }
 0x178   :  { %16283 = vmatmul.mubr.msk.f32.gmra.mxu1 %vm183_vm0, %v1075_v35  ;;  %16381 = vmatmul.mubr.msk.f32.gmra.mxu0 %vm183_vm0, %v18566_v37 }
 0x179   :  { %16285 = vmatprep.mubr.msk.f32.mxu1 %vm183_vm0, %v1076_v39  ;;  %16383 = vmatprep.mubr.msk.f32.mxu0 %vm183_vm0, %v18571_v41  ;;  %v1087_v39 = vld [vmem:[#allocation3 + $0x351] sm:$0xff] }
 0x17c   :  { %16286 = vmatmul.mubr.msk.f32.gmra.mxu1 %vm183_vm0, %v1077_v45  ;;  %16384 = vmatmul.mubr.msk.f32.gmra.mxu0 %vm183_vm0, %v18578_v47  ;;  %v18585_v53 = vpop.f32.mrf.mxu0  ;;  %v18638_v45 = vld [vmem:[#allocation3 + $0x34f] sm:$0xff] }
 0x17d   :  { %23379 = vst [vmem:[#allocation6_spill] sm:$0xff] %v18585_v53  ;;  %16288 = vmatprep.mubr.msk.f32.mxu1 %vm183_vm0, %v1078_v49  ;;  %16386 = vmatprep.mubr.msk.f32.mxu0 %vm183_vm0, %v18583_v51  ;;  %v1088_v49 = vld [vmem:[#allocation3 + $0x369] sm:$0xff] }
 0x17e   :  { %v18597_v63 = vpop.f32.mrf.mxu0 }
 0x17f   :  { %23380 = vst [vmem:[#allocation7_spill] sm:$0xff] %v18597_v63 }
 0x180   :  { %16289 = vmatmul.mubr.msk.f32.gmra.mxu1 %vm183_vm0, %v1079_v55  ;;  %16387 = vmatmul.mubr.msk.f32.gmra.mxu0 %vm183_vm0, %v18590_v57  ;;  %v18643_v55 = vld [vmem:[#allocation3 + $0x367] sm:$0xff] }
 0x181   :  { %16291 = vmatprep.mubr.msk.f32.mxu1 %vm183_vm0, %v1080_v59  ;;  %16389 = vmatprep.mubr.msk.f32.mxu0 %vm183_vm0, %v18595_v61 }
 0x184   :  { %16292 = vmatmul.mubr.msk.f32.gmra.mxu1 %vm183_vm0, %v1081_v1  ;;  %16390 = vmatmul.mubr.msk.f32.gmra.mxu0 %vm183_vm0, %v18602_v3  ;;  %v18609_v9 = vpop.f32.mrf.mxu0  ;;  %v18650_v1 = vpop.f32.mrf.mxu1 }
 0x185   :  { %23381 = vst [vmem:[#allocation8_spill] sm:$0xff] %v18609_v9  ;;  %16294 = vmatprep.mubr.msk.f32.mxu1 %vm183_vm0, %v1082_v5  ;;  %16392 = vmatprep.mubr.msk.f32.mxu0 %vm183_vm0, %v18607_v7  ;;  %23385 = vst [vmem:[#allocation12_spill] sm:$0xff] %v18650_v1  ;;  %v1089_v5 = vld [vmem:[#allocation3 + $0x371] sm:$0xff] }
 0x186   :  { %v18621_v18 = vpop.f32.mrf.mxu0  ;;  %v18666_v1 = vld [vmem:[#allocation3 + $0x38f] sm:$0xff] }
 0x187   :  { %23382 = vst [vmem:[#allocation9_spill] sm:$0xff] %v18621_v18  ;;  %v18673_v18 = vld [vmem:[#allocation3 + $0x3a7] sm:$0xff]  ;;  %v18696_v9 = vld [vmem:[#allocation3 + $0x3cf] sm:$0xff] }
 0x188   :  { %16295 = vmatmul.mubr.msk.f32.gmra.mxu1 %vm183_vm0, %v1083_v11  ;;  %16393 = vmatmul.mubr.msk.f32.gmra.mxu0 %vm183_vm0, %v18614_v13  ;;  %v18652_v11 = vld [vmem:[#allocation3 + $0x36f] sm:$0xff] }
 0x189   :  { %16297 = vmatprep.mubr.msk.f32.mxu1 %vm183_vm0, %v1084_v14  ;;  %16395 = vmatprep.mubr.msk.f32.mxu0 %vm183_vm0, %v18619_v15  ;;  %v1090_v14 = vld [vmem:[#allocation3 + $0x389] sm:$0xff] }
 0x18c   :  { %16298 = vmatmul.mubr.msk.f32.gmra.mxu1 %vm183_vm0, %v1085_v19  ;;  %16396 = vmatmul.mubr.msk.f32.gmra.mxu0 %vm183_vm0, %v18626_v22  ;;  %v18633_v35 = vpop.f32.mrf.mxu0  ;;  %v18657_v19 = vld [vmem:[#allocation3 + $0x387] sm:$0xff] }
 0x18d   :  { %23383 = vst [vmem:[#allocation10_spill] sm:$0xff] %v18633_v35  ;;  %16300 = vmatprep.mubr.msk.f32.mxu1 %vm183_vm0, %v1086_v25  ;;  %16398 = vmatprep.mubr.msk.f32.mxu0 %vm183_vm0, %v18631_v29 }
 0x18e   :  { %v18645_v59 = vpop.f32.mrf.mxu0 }
 0x18f   :  { %23384 = vst [vmem:[#allocation11_spill] sm:$0xff] %v18645_v59 }
 0x190   :  { %16301 = vmatmul.mubr.msk.f32.gmra.mxu1 %vm183_vm0, %v1087_v39  ;;  %16399 = vmatmul.mubr.msk.f32.gmra.mxu0 %vm183_vm0, %v18638_v45  ;;  %v18664_v39 = vpop.f32.mrf.mxu1 }
 0x191   :  { %16303 = vmatprep.mubr.msk.f32.mxu1 %vm183_vm0, %v1088_v49  ;;  %16401 = vmatprep.mubr.msk.f32.mxu0 %vm183_vm0, %v18643_v55  ;;  %23387 = vst [vmem:[#allocation14_spill] sm:$0xff] %v18664_v39  ;;  %v1091_v49 = vld [vmem:[#allocation3 + $0x391] sm:$0xff] }
 0x192   :  { %v18668_v59 = vpop.f32.mrf.mxu1  ;;  %v18680_v39 = vld [vmem:[#allocation3 + $0x3af] sm:$0xff] }
 0x193   :  { %23388 = vst [vmem:[#allocation15_spill] sm:$0xff] %v18668_v59  ;;  %v18687_v59 = vld [vmem:[#allocation3 + $0x3c7] sm:$0xff] }
 0x194   :  { %16304 = vmatmul.mubr.msk.f32.gmra.mxu1 %vm183_vm0, %v1089_v5  ;;  %16402 = vmatmul.mubr.msk.f32.gmra.mxu0 %vm183_vm0, %v18652_v11  ;;  %v18659_v25 = vpop.f32.mrf.mxu0  ;;  %v1092_v5 = vld [vmem:[#allocation3 + $0x3a9] sm:$0xff]  ;;  %v18682_v35 = vpop.f32.mrf.mxu1 }
 0x195   :  { %23386 = vst [vmem:[#allocation13_spill] sm:$0xff] %v18659_v25  ;;  %16306 = vmatprep.mubr.msk.f32.mxu1 %vm183_vm0, %v1090_v14  ;;  %16404 = vmatprep.mubr.msk.f32.mxu0 %vm183_vm0, %v18657_v19  ;;  %v1093_v14 = vld [vmem:[#allocation3 + $0x3b1] sm:$0xff]  ;;  %23390 = vst [vmem:[#allocation17_spill] sm:$0xff] %v18682_v35  ;;  %v18701_v35 = vld [vmem:[#allocation3 + $0x3e7] sm:$0xff] }
 0x196   :  { %v18675_v25 = vpop.f32.mrf.mxu0  ;;  %23393 = vst [vmem:[#allocation20_spill] sm:$0xff] %v18701_v35 }
 0x197   :  { %23389 = vst [vmem:[#allocation16_spill] sm:$0xff] %v18675_v25  ;;  %v1095_v25 = vld [vmem:[#allocation3 + $0x3d1] sm:$0xff] }
 0x198   :  { %16307 = vmatmul.mubr.msk.f32.gmra.mxu1 %vm183_vm0, %v1091_v49  ;;  %16405 = vmatmul.mubr.msk.f32.gmra.mxu0 %vm183_vm0, %v18666_v1  ;;  %v1094_v49 = vld [vmem:[#allocation3 + $0x3c9] sm:$0xff] }
 0x199   :  { %16309 = vmatprep.mubr.msk.f32.mxu1 %vm183_vm0, %v1092_v5  ;;  %16407 = vmatprep.mubr.msk.f32.mxu0 %vm183_vm0, %v18673_v18  ;;  %v18694_v5 = vpop.f32.mrf.mxu1 }
 0x19a   :  { %23392 = vst [vmem:[#allocation19_spill] sm:$0xff] %v18694_v5  ;;  %v1097_v5 = vld [vmem:[#allocation3 + $0x3f1] sm:$0xff] }
 0x19c   :  { %16310 = vmatmul.mubr.msk.f32.gmra.mxu1 %vm183_vm0, %v1093_v14  ;;  %16408 = vmatmul.mubr.msk.f32.gmra.mxu0 %vm183_vm0, %v18680_v39  ;;  %v18689_v63 = vpop.f32.mrf.mxu0  ;;  %v1096_v14 = vld [vmem:[#allocation3 + $0x3e9] sm:$0xff] }
 0x19d   :  { %23391 = vst [vmem:[#allocation18_spill] sm:$0xff] %v18689_v63  ;;  %16312 = vmatprep.mubr.msk.f32.mxu1 %vm183_vm0, %v1094_v49  ;;  %16410 = vmatprep.mubr.msk.f32.mxu0 %vm183_vm0, %v18687_v59  ;;  %v18708_v49 = vpop.f32.mrf.mxu1  ;;  %v18710_v63 = vld [vmem:[#allocation3 + $0x3ef] sm:$0xff] }
 0x19e   :  { %v18703_v53 = vpop.f32.mrf.mxu0  ;;  %23395 = vst [vmem:[#allocation22_spill] sm:$0xff] %v18708_v49  ;;  %23396 = vst [vmem:[#allocation23_spill] sm:$0xff] %v18710_v63  ;;  %v18724_v49 = vld [vmem:[#allocation3 + $0x40f] sm:$0xff] }
 0x19f   :  { %23394 = vst [vmem:[#allocation21_spill] sm:$0xff] %v18703_v53  ;;  %v18712_v43 = vpop.f32.mrf.mxu1 }
 0x1a0   :  { %16313 = vmatmul.mubr.msk.f32.gmra.mxu1 %vm183_vm0, %v1095_v25  ;;  %16411 = vmatmul.mubr.msk.f32.gmra.mxu0 %vm183_vm0, %v18696_v9  ;;  %23397 = vst [vmem:[#allocation24_spill] sm:$0xff] %v18712_v43  ;;  %v1098_v25 = vld [vmem:[#allocation3 + $0x409] sm:$0xff] }
 0x1a1   :  { %16315 = vmatprep.mubr.msk.f32.mxu1 %vm183_vm0, %v1096_v14  ;;  %16413 = vmatprep.mubr.msk.f32.mxu0 %vm183_vm0, %v18701_v35  ;;  %v1099_v14 = vld [vmem:[#allocation3 + $0x411] sm:$0xff]  ;;  %v18726_v35 = vpop.f32.mrf.mxu1  ;;  %v18731_v43 = vld [vmem:[#allocation3 + $0x427] sm:$0xff] }
 0x1a2   :  { %23400 = vst [vmem:[#allocation27_spill] sm:$0xff] %v18726_v35  ;;  %23401 = vst [vmem:[#allocation28_spill] sm:$0xff] %v18731_v43  ;;  %v18740_v35 = vld [vmem:[#allocation3 + $0x42f] sm:$0xff] }
 0x1a4   :  { %16316 = vmatmul.mubr.msk.f32.gmra.mxu1 %vm183_vm0, %v1097_v5  ;;  %16414 = vmatmul.mubr.msk.f32.gmra.mxu0 %vm183_vm0, %v18710_v63  ;;  %v18719_v53 = vpop.f32.mrf.mxu0  ;;  %v1100_v5 = vld [vmem:[#allocation3 + $0x429] sm:$0xff] }
 0x1a5   :  { %23399 = vst [vmem:[#allocation26_spill] sm:$0xff] %v18719_v53  ;;  %16318 = vmatprep.mubr.msk.f32.mxu1 %vm183_vm0, %v1098_v25  ;;  %16416 = vmatprep.mubr.msk.f32.mxu0 %vm183_vm0, %v18717_v33  ;;  %v18738_v25 = vpop.f32.mrf.mxu1  ;;  %v972_v53 = vld [vmem:[#allocation3 + $0x8] sm:$0xff]  ;;  %v1101_v33 = vld [vmem:[#allocation3 + $0x431] sm:$0xff] }
 0x1a6   :  { %v18733_v63 = vpop.f32.mrf.mxu0  ;;  %23403 = vst [vmem:[#allocation30_spill] sm:$0xff] %v18738_v25  ;;  %v14045_v25 = vld [vmem:[%s23351_s1 + $0x28] sm:$0xff] }
 0x1a7   :  { %23402 = vst [vmem:[#allocation29_spill] sm:$0xff] %v18733_v63  ;;  %v18750_v63 = vpop.f32.mrf.mxu1  ;;  %16716 = vmatprep.subr.mxu0 %v14045_v25 }
 0x1a8   :  { %16319 = vmatmul.mubr.msk.f32.gmra.mxu1 %vm183_vm0, %v1099_v14  ;;  %16417 = vmatmul.mubr.msk.f32.gmra.mxu0 %vm183_vm0, %v18724_v49  ;;  %23405 = vst [vmem:[#allocation32_spill] sm:$0xff] %v18750_v63  ;;  %v18793_v63 = vld [vmem:[#allocation3 + $0x50] sm:$0xff] }
 0x1a9   :  { %16321 = vmatprep.mubr.msk.f32.mxu1 %vm183_vm0, %v1100_v5  ;;  %16419 = vmatprep.mubr.msk.f32.mxu0 %vm183_vm0, %v18731_v43  ;;  %v973_v5 = vld [vmem:[#allocation3 + $0x10] sm:$0xff]  ;;  %v18755_v43 = vpop.f32.mrf.mxu1 }
 0x1aa   :  { %23406 = vst [vmem:[#allocation33_spill] sm:$0xff] %v18755_v43 }
 0x1ac   :  { %16322 = vmatmul.mubr.msk.f32.gmra.mxu1 %vm183_vm0, %v1101_v33  ;;  %16420 = vmatmul.mubr.msk.f32.gmra.mxu0 %vm183_vm0, %v18740_v35  ;;  %v18745_v14 = vpop.f32.mrf.mxu0 }
 0x1ad   :  { %23404 = vst [vmem:[#allocation31_spill] sm:$0xff] %v18745_v14  ;;  %16424 = vmatprep.mubr.msk.f32.mxu1 %vm183_vm0, %v18395_v21  ;;  %16522 = vmatprep.mubr.msk.f32.mxu0 %vm183_vm0, %v972_v53  ;;  %v18765_v21 = vld [vmem:[%s23351_s1 + $0x30] sm:$0xff]  ;;  %v18770_v53 = vld [vmem:[#allocation3 + $0x28] sm:$0xff] }
 0x1ae   :  { %v18760_v33 = vpop.f32.mrf.mxu0 }
 0x1af   :  { %23407 = vst [vmem:[#allocation34_spill] sm:$0xff] %v18760_v33  ;;  %v19008_v33 = vld [vmem:[#allocation3 + $0x1f0] sm:$0xff] }
 0x1b0   :  { %16425 = vmatmul.mubr.msk.f32.vlgmr.msra.gmra.mxu1 %vm183_vm0, %v18399_v23  ;;  %16523 = vmatmul.mubr.msk.f32.vlgmr.msra.gmra.mxu0 %vm183_vm0, %v973_v5  ;;  %v18774_v23 = vld [vmem:[#allocation3 + $0x30] sm:$0xff]  ;;  %v18777_v5 = vpop.f32.mrf.mxu1 }
 0x1b1   :  { %16619 = vmatpush3.msra.mxu1 %v18391_v20  ;;  %16427 = vmatprep.mubr.msk.f32.mxu1 %vm183_vm0, %v18405_v24  ;;  %23408 = vst [vmem:[#allocation35_spill] sm:$0xff] %v18777_v5  ;;  %v18783_v20 = vld [vmem:[#allocation3 + $0x48] sm:$0xff] }
 0x1b2   :  { %16525 = vmatprep.mubr.msk.f32.mxu0 %vm183_vm0, %v18770_v53  ;;  %16717 = vmatpush3.msra.mxu0 %v14045_v25  ;;  %v18791_v25 = vpop.f32.mrf.mxu1 }
 0x1b3   :  { %16814 = vmatprep.subr.mxu1 %v18765_v21  ;;  %23410 = vst [vmem:[#allocation37_spill] sm:$0xff] %v18791_v25  ;;  %v18809_v25 = vld [vmem:[#allocation3 + $0x70] sm:$0xff] }
 0x1b4   :  { %16428 = vmatmul.mubr.msk.f32.gmra.mxu1 %vm183_vm0, %v18410_v26  ;;  %16526 = vmatmul.mubr.msk.f32.gmra.mxu0 %vm183_vm0, %v18774_v23  ;;  %v18785_v24 = vpop.f32.mrf.mxu0  ;;  %v18799_v26 = vld [vmem:[#allocation3 + $0x68] sm:$0xff] }
 0x1b5   :  { %23409 = vst [vmem:[#allocation36_spill] sm:$0xff] %v18785_v24  ;;  %16430 = vmatprep.mubr.msk.f32.mxu1 %vm183_vm0, %v18415_v28  ;;  %16528 = vmatprep.mubr.msk.f32.mxu0 %vm183_vm0, %v18783_v20  ;;  %v18807_v28 = vpop.f32.mrf.mxu1  ;;  %v2289_v24 = vld [vmem:[#allocation3 + $0x20f] sm:$0xff] }
 0x1b6   :  { %v18801_v5 = vpop.f32.mrf.mxu0  ;;  %23412 = vst [vmem:[#allocation39_spill] sm:$0xff] %v18807_v28 }
 0x1b7   :  { %23411 = vst [vmem:[#allocation38_spill] sm:$0xff] %v18801_v5  ;;  %v18811_v43 = vpop.f32.mrf.mxu1 }
 0x1b8   :  { %16431 = vmatmul.mubr.msk.f32.gmra.mxu1 %vm183_vm0, %v18420_v30  ;;  %16529 = vmatmul.mubr.msk.f32.gmra.mxu0 %vm183_vm0, %v18793_v63  ;;  %23413 = vst [vmem:[#allocation40_spill] sm:$0xff] %v18811_v43  ;;  %v18817_v30 = vld [vmem:[#allocation3 + $0x88] sm:$0xff] }
 0x1b9   :  { %16433 = vmatprep.mubr.msk.f32.mxu1 %vm183_vm0, %v18425_v32  ;;  %16531 = vmatprep.mubr.msk.f32.mxu0 %vm183_vm0, %v18799_v26  ;;  %v18825_v32 = vld [vmem:[#allocation3 + $0x90] sm:$0xff]  ;;  %v18827_v28 = vpop.f32.mrf.mxu1 }
 0x1ba   :  { %23415 = vst [vmem:[#allocation42_spill] sm:$0xff] %v18827_v28 }
 0x1bc   :  { %16434 = vmatmul.mubr.msk.f32.gmra.mxu1 %vm183_vm0, %v18430_v34  ;;  %16532 = vmatmul.mubr.msk.f32.gmra.mxu0 %vm183_vm0, %v18809_v25  ;;  %v18819_v5 = vpop.f32.mrf.mxu0  ;;  %v18833_v34 = vld [vmem:[#allocation3 + $0xa8] sm:$0xff] }
 0x1bd   :  { %23414 = vst [vmem:[#allocation41_spill] sm:$0xff] %v18819_v5  ;;  %16436 = vmatprep.mubr.msk.f32.mxu1 %vm183_vm0, %v18435_v36  ;;  %16534 = vmatprep.mubr.msk.f32.mxu0 %vm183_vm0, %v18817_v30  ;;  %v18841_v36 = vpop.f32.mrf.mxu1  ;;  %v18843_v5 = vld [vmem:[#allocation3 + $0xb0] sm:$0xff] }
 0x1be   :  { %v18835_v43 = vpop.f32.mrf.mxu0  ;;  %23417 = vst [vmem:[#allocation44_spill] sm:$0xff] %v18841_v36  ;;  %v18859_v36 = vld [vmem:[#allocation3 + $0xd0] sm:$0xff] }
 0x1bf   :  { %23416 = vst [vmem:[#allocation43_spill] sm:$0xff] %v18835_v43 }
 0x1c0   :  { %16437 = vmatmul.mubr.msk.f32.gmra.mxu1 %vm183_vm0, %v18440_v38  ;;  %16535 = vmatmul.mubr.msk.f32.gmra.mxu0 %vm183_vm0, %v18825_v32  ;;  %v18849_v38 = vld [vmem:[#allocation3 + $0xc8] sm:$0xff] }
 0x1c1   :  { %16439 = vmatprep.mubr.msk.f32.mxu1 %vm183_vm0, %v18445_v40  ;;  %16537 = vmatprep.mubr.msk.f32.mxu0 %vm183_vm0, %v18833_v34  ;;  %v18857_v40 = vpop.f32.mrf.mxu1 }
 0x1c2   :  { %23419 = vst [vmem:[#allocation46_spill] sm:$0xff] %v18857_v40 }
 0x1c3   :  { %v18861_v43 = vpop.f32.mrf.mxu1 }
 0x1c4   :  { %16440 = vmatmul.mubr.msk.f32.gmra.mxu1 %vm183_vm0, %v18450_v42  ;;  %16538 = vmatmul.mubr.msk.f32.gmra.mxu0 %vm183_vm0, %v18843_v5  ;;  %v18851_v28 = vpop.f32.mrf.mxu0  ;;  %23420 = vst [vmem:[#allocation47_spill] sm:$0xff] %v18861_v43  ;;  %v18867_v42 = vld [vmem:[#allocation3 + $0xe8] sm:$0xff] }
 0x1c5   :  { %23418 = vst [vmem:[#allocation45_spill] sm:$0xff] %v18851_v28  ;;  %16442 = vmatprep.mubr.msk.f32.mxu1 %vm183_vm0, %v18455_v44  ;;  %16540 = vmatprep.mubr.msk.f32.mxu0 %vm183_vm0, %v18849_v38  ;;  %v18875_v44 = vld [vmem:[#allocation3 + $0xf0] sm:$0xff]  ;;  %v18877_v40 = vpop.f32.mrf.mxu1 }
 0x1c6   :  { %v18869_v28 = vpop.f32.mrf.mxu0  ;;  %23422 = vst [vmem:[#allocation49_spill] sm:$0xff] %v18877_v40 }
 0x1c7   :  { %23421 = vst [vmem:[#allocation48_spill] sm:$0xff] %v18869_v28  ;;  %v18893_v28 = vld [vmem:[#allocation3 + $0x110] sm:$0xff] }
 0x1c8   :  { %16443 = vmatmul.mubr.msk.f32.gmra.mxu1 %vm183_vm0, %v18460_v46  ;;  %16541 = vmatmul.mubr.msk.f32.gmra.mxu0 %vm183_vm0, %v18859_v36  ;;  %v18883_v46 = vld [vmem:[#allocation3 + $0x108] sm:$0xff] }
 0x1c9   :  { %16445 = vmatprep.mubr.msk.f32.mxu1 %vm183_vm0, %v18465_v48  ;;  %16543 = vmatprep.mubr.msk.f32.mxu0 %vm183_vm0, %v18867_v42  ;;  %v18891_v48 = vpop.f32.mrf.mxu1 }
 0x1ca   :  { %23424 = vst [vmem:[#allocation51_spill] sm:$0xff] %v18891_v48  ;;  %v18909_v48 = vld [vmem:[#allocation3 + $0x130] sm:$0xff] }
 0x1cc   :  { %16446 = vmatmul.mubr.msk.f32.gmra.mxu1 %vm183_vm0, %v18470_v50  ;;  %16544 = vmatmul.mubr.msk.f32.gmra.mxu0 %vm183_vm0, %v18875_v44  ;;  %v18885_v43 = vpop.f32.mrf.mxu0  ;;  %v18899_v50 = vld [vmem:[#allocation3 + $0x128] sm:$0xff] }
 0x1cd   :  { %23423 = vst [vmem:[#allocation50_spill] sm:$0xff] %v18885_v43  ;;  %16448 = vmatprep.mubr.msk.f32.mxu1 %vm183_vm0, %v18475_v52  ;;  %16546 = vmatprep.mubr.msk.f32.mxu0 %vm183_vm0, %v18883_v46  ;;  %v18907_v52 = vpop.f32.mrf.mxu1 }
 0x1ce   :  { %v18901_v40 = vpop.f32.mrf.mxu0  ;;  %23426 = vst [vmem:[#allocation53_spill] sm:$0xff] %v18907_v52 }
 0x1cf   :  { %23425 = vst [vmem:[#allocation52_spill] sm:$0xff] %v18901_v40  ;;  %v18911_v43 = vpop.f32.mrf.mxu1 }
 0x1d0   :  { %16449 = vmatmul.mubr.msk.f32.gmra.mxu1 %vm183_vm0, %v18480_v54  ;;  %16547 = vmatmul.mubr.msk.f32.gmra.mxu0 %vm183_vm0, %v18893_v28  ;;  %23427 = vst [vmem:[#allocation54_spill] sm:$0xff] %v18911_v43  ;;  %v18917_v54 = vld [vmem:[#allocation3 + $0x148] sm:$0xff] }
 0x1d1   :  { %16451 = vmatprep.mubr.msk.f32.mxu1 %vm183_vm0, %v18485_v56  ;;  %16549 = vmatprep.mubr.msk.f32.mxu0 %vm183_vm0, %v18899_v50  ;;  %v18925_v56 = vld [vmem:[#allocation3 + $0x150] sm:$0xff]  ;;  %v18927_v52 = vpop.f32.mrf.mxu1 }
 0x1d2   :  { %23429 = vst [vmem:[#allocation56_spill] sm:$0xff] %v18927_v52 }
 0x1d4   :  { %16452 = vmatmul.mubr.msk.f32.gmra.mxu1 %vm183_vm0, %v18490_v58  ;;  %16550 = vmatmul.mubr.msk.f32.gmra.mxu0 %vm183_vm0, %v18909_v48  ;;  %v18919_v40 = vpop.f32.mrf.mxu0  ;;  %v18933_v58 = vld [vmem:[#allocation3 + $0x168] sm:$0xff] }
 0x1d5   :  { %23428 = vst [vmem:[#allocation55_spill] sm:$0xff] %v18919_v40  ;;  %16454 = vmatprep.mubr.msk.f32.mxu1 %vm183_vm0, %v18495_v60  ;;  %16552 = vmatprep.mubr.msk.f32.mxu0 %vm183_vm0, %v18917_v54  ;;  %v18941_v60 = vpop.f32.mrf.mxu1  ;;  %v18943_v40 = vld [vmem:[#allocation3 + $0x170] sm:$0xff] }
 0x1d6   :  { %v18935_v43 = vpop.f32.mrf.mxu0  ;;  %23431 = vst [vmem:[#allocation58_spill] sm:$0xff] %v18941_v60  ;;  %v18959_v60 = vld [vmem:[#allocation3 + $0x190] sm:$0xff] }
 0x1d7   :  { %23430 = vst [vmem:[#allocation57_spill] sm:$0xff] %v18935_v43 }
 0x1d8   :  { %16455 = vmatmul.mubr.msk.f32.gmra.mxu1 %vm183_vm0, %v18500_v62  ;;  %16553 = vmatmul.mubr.msk.f32.gmra.mxu0 %vm183_vm0, %v18925_v56  ;;  %v18949_v62 = vld [vmem:[#allocation3 + $0x188] sm:$0xff] }
 0x1d9   :  { %16457 = vmatprep.mubr.msk.f32.mxu1 %vm183_vm0, %v18505_v0  ;;  %16555 = vmatprep.mubr.msk.f32.mxu0 %vm183_vm0, %v18933_v58  ;;  %v18957_v0 = vpop.f32.mrf.mxu1 }
 0x1da   :  { %23433 = vst [vmem:[#allocation60_spill] sm:$0xff] %v18957_v0 }
 0x1dc   :  { %16458 = vmatmul.mubr.msk.f32.gmra.mxu1 %vm183_vm0, %v18510_v2  ;;  %16556 = vmatmul.mubr.msk.f32.gmra.mxu0 %vm183_vm0, %v18943_v40  ;;  %v18951_v52 = vpop.f32.mrf.mxu0  ;;  %v18961_v43 = vpop.f32.mrf.mxu1  ;;  %v18967_v2 = vld [vmem:[#allocation3 + $0x1a8] sm:$0xff] }
 0x1dd   :  { %23432 = vst [vmem:[#allocation59_spill] sm:$0xff] %v18951_v52  ;;  %16460 = vmatprep.mubr.msk.f32.mxu1 %vm183_vm0, %v18515_v4  ;;  %16558 = vmatprep.mubr.msk.f32.mxu0 %vm183_vm0, %v18949_v62  ;;  %23434 = vst [vmem:[#allocation61_spill] sm:$0xff] %v18961_v43  ;;  %v18975_v4 = vld [vmem:[#allocation3 + $0x1b0] sm:$0xff] }
 0x1de   :  { %v18969_v52 = vpop.f32.mrf.mxu0  ;;  %v18977_v0 = vpop.f32.mrf.mxu1 }
 0x1df   :  { %23435 = vst [vmem:[#allocation62_spill] sm:$0xff] %v18969_v52  ;;  %23436 = vst [vmem:[#allocation63_spill] sm:$0xff] %v18977_v0  ;;  %v18993_v52 = vld [vmem:[#allocation3 + $0x1d0] sm:$0xff]  ;;  %v18999_v0 = vld [vmem:[#allocation3 + $0x1e8] sm:$0xff] }
 0x1e0   :  { %16461 = vmatmul.mubr.msk.f32.gmra.mxu1 %vm183_vm0, %v18520_v6  ;;  %16559 = vmatmul.mubr.msk.f32.gmra.mxu0 %vm183_vm0, %v18959_v60  ;;  %v18983_v6 = vld [vmem:[#allocation3 + $0x1c8] sm:$0xff]  ;;  %23439 = vst [vmem:[#allocation66_spill] sm:$0xff] %v18993_v52  ;;  %23440 = vst [vmem:[#allocation67_spill] sm:$0xff] %v18999_v0 }
 0x1e1   :  { %16463 = vmatprep.mubr.msk.f32.mxu1 %vm183_vm0, %v18525_v8  ;;  %16561 = vmatprep.mubr.msk.f32.mxu0 %vm183_vm0, %v18967_v2 }
 0x1e4   :  { %16464 = vmatmul.mubr.msk.f32.gmra.mxu1 %vm183_vm0, %v18530_v10  ;;  %16562 = vmatmul.mubr.msk.f32.gmra.mxu0 %vm183_vm0, %v18975_v4  ;;  %v18985_v43 = vpop.f32.mrf.mxu0  ;;  %v18991_v8 = vpop.f32.mrf.mxu1  ;;  %v2288_v10 = vld [vmem:[#allocation3 + $0x207] sm:$0xff] }
 0x1e5   :  { %23437 = vst [vmem:[#allocation64_spill] sm:$0xff] %v18985_v43  ;;  %16466 = vmatprep.mubr.msk.f32.mxu1 %vm183_vm0, %v18535_v12  ;;  %16564 = vmatprep.mubr.msk.f32.mxu0 %vm183_vm0, %v18983_v6  ;;  %23438 = vst [vmem:[#allocation65_spill] sm:$0xff] %v18991_v8  ;;  %v1004_v8 = vld [vmem:[#allocation3 + $0x248] sm:$0xff] }
 0x1e6   :  { %v19001_v43 = vpop.f32.mrf.mxu0  ;;  %v19006_v12 = vpop.f32.mrf.mxu1 }
 0x1e7   :  { %23441 = vst [vmem:[#allocation68_spill] sm:$0xff] %v19001_v43  ;;  %23442 = vst [vmem:[#allocation69_spill] sm:$0xff] %v19006_v12 }
 0x1e8   :  { %16467 = vmatmul.mubr.msk.f32.gmra.mxu1 %vm183_vm0, %v18540_v17  ;;  %16565 = vmatmul.mubr.msk.f32.gmra.mxu0 %vm183_vm0, %v18993_v52 }
 0x1e9   :  { %16469 = vmatprep.mubr.msk.f32.mxu1 %vm183_vm0, %v2288_v10  ;;  %16567 = vmatprep.mubr.msk.f32.mxu0 %vm183_vm0, %v18999_v0  ;;  %v1005_v10 = vld [vmem:[#allocation3 + $0x250] sm:$0xff] }
 0x1ec   :  { %v19010_v17 = vpop.f32.mrf.mxu0  ;;  %v19012_v14 = vpop.f32.mrf.mxu1  ;;  %16470 = vmatmul.mubr.msk.f32.gmra.mxu1 %vm183_vm0, %v2289_v24  ;;  %16568 = vmatmul.mubr.msk.f32.gmra.mxu0 %vm183_vm0, %v19008_v33  ;;  %v19027_v24 = vld [vmem:[#allocation3 + $0x268] sm:$0xff] }
 0x1ed   :  { %23443 = vst [vmem:[#allocation70_spill] sm:$0xff] %v19010_v17  ;;  %23444 = vst [vmem:[#allocation71_spill] sm:$0xff] %v19012_v14  ;;  %16472 = vmatprep.mubr.msk.f32.mxu1 %vm183_vm0, %v18549_v16  ;;  %16570 = vmatprep.mubr.msk.f32.mxu0 %vm183_vm0, %v1004_v8 }
 0x1ee   :  { %v19020_v12 = vpop.f32.mrf.mxu0  ;;  %v19022_v43 = vpop.f32.mrf.mxu1 }
 0x1ef   :  { %23445 = vst [vmem:[#allocation72_spill] sm:$0xff] %v19020_v12  ;;  %23446 = vst [vmem:[#allocation73_spill] sm:$0xff] %v19022_v43  ;;  %v19037_v12 = vld [vmem:[#allocation3 + $0x270] sm:$0xff] }
 0x1f0   :  { %v16230_v0 = vpop.f32.mrf.mxu1  ;;  %v16328_v52 = vpop.f32.mrf.mxu0  ;;  %16473 = vmatmul.mubr.msk.f32.gmra.mxu1 %vm183_vm0, %v18554_v27  ;;  %16571 = vmatmul.mubr.msk.f32.gmra.mxu0 %vm183_vm0, %v1005_v10 }
 0x1f1   :  { %v19029_v14 = vadd.f32 %v16328_v52, %v16230_v0  ;;  %16475 = vmatprep.mubr.msk.f32.mxu1 %vm183_vm0, %v18559_v31  ;;  %16573 = vmatprep.mubr.msk.f32.mxu0 %vm183_vm0, %v19027_v24  ;;  %v19043_v52 = vld [vmem:[#allocation3 + $0x288] sm:$0xff] }
 0x1f2   :  { %v1362_v16 = vpop.f32.mrf.mxu1  ;;  %v1939_v8 = vpop.f32.mrf.mxu0 }
 0x1f3   :  { %23447 = vst [vmem:[#allocation74_spill] sm:$0xff] %v19029_v14  ;;  %v19035_v43 = vadd.f32 %v1939_v8, %v1362_v16  ;;  %v19053_v8 = vld [vmem:[#allocation3 + $0x290] sm:$0xff] }
 0x1f4   :  { %v16233_v17 = vpop.f32.mrf.mxu1  ;;  %v16331_v27 = vpop.f32.mrf.mxu0  ;;  %16476 = vmatmul.mubr.msk.f32.gmra.mxu1 %vm183_vm0, %v18566_v37  ;;  %16574 = vmatmul.mubr.msk.f32.gmra.mxu0 %vm183_vm0, %v19037_v12 }
 0x1f5   :  { %23448 = vst [vmem:[#allocation75_spill] sm:$0xff] %v19035_v43  ;;  %v19045_v31 = vadd.f32 %v16331_v27, %v16233_v17  ;;  %16478 = vmatprep.mubr.msk.f32.mxu1 %vm183_vm0, %v18571_v41  ;;  %16576 = vmatprep.mubr.msk.f32.mxu0 %vm183_vm0, %v19043_v52  ;;  %v19059_v17 = vld [vmem:[#allocation3 + $0x2a8] sm:$0xff] }
 0x1f6   :  { %v1372_v0 = vpop.f32.mrf.mxu1  ;;  %v1949_v10 = vpop.f32.mrf.mxu0 }
 0x1f7   :  { %23449 = vst [vmem:[#allocation76_spill] sm:$0xff] %v19045_v31  ;;  %v19051_v16 = vadd.f32 %v1949_v10, %v1372_v0 }
 0x1f8   :  { %v16236_v37 = vpop.f32.mrf.mxu1  ;;  %v16334_v43 = vpop.f32.mrf.mxu0  ;;  %16479 = vmatmul.mubr.msk.f32.gmra.mxu1 %vm183_vm0, %v18578_v47  ;;  %16577 = vmatmul.mubr.msk.f32.gmra.mxu0 %vm183_vm0, %v19053_v8 }
 0x1f9   :  { %23450 = vst [vmem:[#allocation77_spill] sm:$0xff] %v19051_v16  ;;  %v19061_v41 = vadd.f32 %v16334_v43, %v16236_v37  ;;  %16481 = vmatprep.mubr.msk.f32.mxu1 %vm183_vm0, %v18583_v51  ;;  %16579 = vmatprep.mubr.msk.f32.mxu0 %vm183_vm0, %v19059_v17  ;;  %v19069_v16 = vld [vmem:[#allocation3 + $0x2b0] sm:$0xff]  ;;  %v19075_v43 = vld [vmem:[#allocation3 + $0x2c8] sm:$0xff] }
 0x1fa   :  { %v1382_v27 = vpop.f32.mrf.mxu1  ;;  %v1959_v0 = vpop.f32.mrf.mxu0 }
 0x1fb   :  { %23451 = vst [vmem:[#allocation78_spill] sm:$0xff] %v19061_v41  ;;  %v19067_v10 = vadd.f32 %v1959_v0, %v1382_v27 }
 0x1fc   :  { %v16239_v47 = vpop.f32.mrf.mxu1  ;;  %v16337_v31 = vpop.f32.mrf.mxu0  ;;  %16482 = vmatmul.mubr.msk.f32.gmra.mxu1 %vm183_vm0, %v18590_v57  ;;  %16580 = vmatmul.mubr.msk.f32.gmra.mxu0 %vm183_vm0, %v19069_v16 }
 0x1fd   :  { %23452 = vst [vmem:[#allocation79_spill] sm:$0xff] %v19067_v10  ;;  %v19077_v51 = vadd.f32 %v16337_v31, %v16239_v47  ;;  %16484 = vmatprep.mubr.msk.f32.mxu1 %vm183_vm0, %v18595_v61  ;;  %16582 = vmatprep.mubr.msk.f32.mxu0 %vm183_vm0, %v19075_v43  ;;  %v19085_v10 = vld [vmem:[#allocation3 + $0x2d0] sm:$0xff]  ;;  %v19091_v31 = vld [vmem:[#allocation3 + $0x2e8] sm:$0xff] }
 0x1fe   :  { %v1392_v37 = vpop.f32.mrf.mxu1  ;;  %v1969_v27 = vpop.f32.mrf.mxu0 }
 0x1ff   :  { %23453 = vst [vmem:[#allocation80_spill] sm:$0xff] %v19077_v51  ;;  %v19083_v0 = vadd.f32 %v1969_v27, %v1392_v37 }
 0x200   :  { %v16242_v57 = vpop.f32.mrf.mxu1  ;;  %v16340_v41 = vpop.f32.mrf.mxu0  ;;  %16485 = vmatmul.mubr.msk.f32.gmra.mxu1 %vm183_vm0, %v18602_v3  ;;  %16583 = vmatmul.mubr.msk.f32.gmra.mxu0 %vm183_vm0, %v19085_v10 }
 0x201   :  { %23454 = vst [vmem:[#allocation81_spill] sm:$0xff] %v19083_v0  ;;  %v19093_v61 = vadd.f32 %v16340_v41, %v16242_v57  ;;  %16487 = vmatprep.mubr.msk.f32.mxu1 %vm183_vm0, %v18607_v7  ;;  %16585 = vmatprep.mubr.msk.f32.mxu0 %vm183_vm0, %v19091_v31  ;;  %v19101_v0 = vld [vmem:[#allocation3 + $0x2f0] sm:$0xff]  ;;  %v19107_v41 = vld [vmem:[#allocation3 + $0x308] sm:$0xff] }
 0x202   :  { %v1402_v47 = vpop.f32.mrf.mxu1  ;;  %v1979_v37 = vpop.f32.mrf.mxu0 }
 0x203   :  { %23455 = vst [vmem:[#allocation82_spill] sm:$0xff] %v19093_v61  ;;  %v19099_v27 = vadd.f32 %v1979_v37, %v1402_v47 }
 0x204   :  { %v16245_v3 = vpop.f32.mrf.mxu1  ;;  %v16343_v51 = vpop.f32.mrf.mxu0  ;;  %16488 = vmatmul.mubr.msk.f32.gmra.mxu1 %vm183_vm0, %v18614_v13  ;;  %16586 = vmatmul.mubr.msk.f32.gmra.mxu0 %vm183_vm0, %v19101_v0 }
 0x205   :  { %23456 = vst [vmem:[#allocation83_spill] sm:$0xff] %v19099_v27  ;;  %v19109_v7 = vadd.f32 %v16343_v51, %v16245_v3  ;;  %16490 = vmatprep.mubr.msk.f32.mxu1 %vm183_vm0, %v18619_v15  ;;  %16588 = vmatprep.mubr.msk.f32.mxu0 %vm183_vm0, %v19107_v41  ;;  %v19117_v27 = vld [vmem:[#allocation3 + $0x310] sm:$0xff]  ;;  %v19123_v51 = vld [vmem:[#allocation3 + $0x328] sm:$0xff] }
 0x206   :  { %v1412_v57 = vpop.f32.mrf.mxu1  ;;  %v1989_v47 = vpop.f32.mrf.mxu0 }
 0x207   :  { %23457 = vst [vmem:[#allocation84_spill] sm:$0xff] %v19109_v7  ;;  %v19115_v37 = vadd.f32 %v1989_v47, %v1412_v57 }
 0x208   :  { %v16248_v13 = vpop.f32.mrf.mxu1  ;;  %v16346_v61 = vpop.f32.mrf.mxu0  ;;  %16491 = vmatmul.mubr.msk.f32.gmra.mxu1 %vm183_vm0, %v18626_v22  ;;  %16589 = vmatmul.mubr.msk.f32.gmra.mxu0 %vm183_vm0, %v19117_v27 }
 0x209   :  { %23458 = vst [vmem:[#allocation85_spill] sm:$0xff] %v19115_v37  ;;  %v19125_v15 = vadd.f32 %v16346_v61, %v16248_v13  ;;  %16493 = vmatprep.mubr.msk.f32.mxu1 %vm183_vm0, %v18631_v29  ;;  %16591 = vmatprep.mubr.msk.f32.mxu0 %vm183_vm0, %v19123_v51  ;;  %v19133_v37 = vld [vmem:[#allocation3 + $0x330] sm:$0xff]  ;;  %v19139_v61 = vld [vmem:[#allocation3 + $0x348] sm:$0xff] }
 0x20a   :  { %v1422_v3 = vpop.f32.mrf.mxu1  ;;  %v1999_v57 = vpop.f32.mrf.mxu0 }
 0x20b   :  { %23459 = vst [vmem:[#allocation86_spill] sm:$0xff] %v19125_v15  ;;  %v19131_v47 = vadd.f32 %v1999_v57, %v1422_v3 }
 0x20c   :  { %v16251_v22 = vpop.f32.mrf.mxu1  ;;  %v16349_v7 = vpop.f32.mrf.mxu0  ;;  %16494 = vmatmul.mubr.msk.f32.gmra.mxu1 %vm183_vm0, %v18638_v45  ;;  %16592 = vmatmul.mubr.msk.f32.gmra.mxu0 %vm183_vm0, %v19133_v37 }
 0x20d   :  { %23460 = vst [vmem:[#allocation87_spill] sm:$0xff] %v19131_v47  ;;  %v19141_v29 = vadd.f32 %v16349_v7, %v16251_v22  ;;  %16496 = vmatprep.mubr.msk.f32.mxu1 %vm183_vm0, %v18643_v55  ;;  %16594 = vmatprep.mubr.msk.f32.mxu0 %vm183_vm0, %v19139_v61  ;;  %v19149_v47 = vld [vmem:[#allocation3 + $0x350] sm:$0xff]  ;;  %v19155_v7 = vld [vmem:[#allocation3 + $0x368] sm:$0xff] }
 0x20e   :  { %v1432_v13 = vpop.f32.mrf.mxu1  ;;  %v2009_v3 = vpop.f32.mrf.mxu0 }
 0x20f   :  { %23461 = vst [vmem:[#allocation88_spill] sm:$0xff] %v19141_v29  ;;  %v19147_v57 = vadd.f32 %v2009_v3, %v1432_v13 }
 0x210   :  { %v16254_v45 = vpop.f32.mrf.mxu1  ;;  %v16352_v15 = vpop.f32.mrf.mxu0  ;;  %16497 = vmatmul.mubr.msk.f32.gmra.mxu1 %vm183_vm0, %v18652_v11  ;;  %16595 = vmatmul.mubr.msk.f32.gmra.mxu0 %vm183_vm0, %v19149_v47 }
 0x211   :  { %23462 = vst [vmem:[#allocation89_spill] sm:$0xff] %v19147_v57  ;;  %v19157_v55 = vadd.f32 %v16352_v15, %v16254_v45  ;;  %16499 = vmatprep.mubr.msk.f32.mxu1 %vm183_vm0, %v18657_v19  ;;  %16597 = vmatprep.mubr.msk.f32.mxu0 %vm183_vm0, %v19155_v7  ;;  %v19165_v57 = vld [vmem:[#allocation3 + $0x370] sm:$0xff]  ;;  %v19171_v15 = vld [vmem:[#allocation3 + $0x388] sm:$0xff] }
 0x212   :  { %v1442_v22 = vpop.f32.mrf.mxu1  ;;  %v2019_v13 = vpop.f32.mrf.mxu0 }
 0x213   :  { %23463 = vst [vmem:[#allocation90_spill] sm:$0xff] %v19157_v55  ;;  %v19163_v3 = vadd.f32 %v2019_v13, %v1442_v22 }
 0x214   :  { %v16257_v11 = vpop.f32.mrf.mxu1  ;;  %v16355_v29 = vpop.f32.mrf.mxu0  ;;  %16500 = vmatmul.mubr.msk.f32.gmra.mxu1 %vm183_vm0, %v18666_v1  ;;  %16598 = vmatmul.mubr.msk.f32.gmra.mxu0 %vm183_vm0, %v19165_v57 }
 0x215   :  { %23464 = vst [vmem:[#allocation91_spill] sm:$0xff] %v19163_v3  ;;  %v19173_v19 = vadd.f32 %v16355_v29, %v16257_v11  ;;  %16502 = vmatprep.mubr.msk.f32.mxu1 %vm183_vm0, %v18673_v18  ;;  %16600 = vmatprep.mubr.msk.f32.mxu0 %vm183_vm0, %v19171_v15  ;;  %v19181_v3 = vld [vmem:[#allocation3 + $0x390] sm:$0xff]  ;;  %v19187_v29 = vld [vmem:[#allocation3 + $0x3a8] sm:$0xff] }
 0x216   :  { %v1452_v45 = vpop.f32.mrf.mxu1  ;;  %v2029_v22 = vpop.f32.mrf.mxu0  ;;  %23467 = vst [vmem:[#allocation94_spill] sm:$0xff] %v19187_v29 }
 0x217   :  { %23465 = vst [vmem:[#allocation92_spill] sm:$0xff] %v19173_v19  ;;  %v19179_v13 = vadd.f32 %v2029_v22, %v1452_v45 }
 0x218   :  { %v16260_v1 = vpop.f32.mrf.mxu1  ;;  %v16358_v55 = vpop.f32.mrf.mxu0  ;;  %16503 = vmatmul.mubr.msk.f32.gmra.mxu1 %vm183_vm0, %v18680_v39  ;;  %16601 = vmatmul.mubr.msk.f32.gmra.mxu0 %vm183_vm0, %v19181_v3 }
 0x219   :  { %23466 = vst [vmem:[#allocation93_spill] sm:$0xff] %v19179_v13  ;;  %v19189_v18 = vadd.f32 %v16358_v55, %v16260_v1  ;;  %16505 = vmatprep.mubr.msk.f32.mxu1 %vm183_vm0, %v18687_v59  ;;  %16603 = vmatprep.mubr.msk.f32.mxu0 %vm183_vm0, %v19187_v29  ;;  %v19197_v13 = vld [vmem:[#allocation3 + $0x3b0] sm:$0xff]  ;;  %v19203_v55 = vld [vmem:[#allocation3 + $0x3c8] sm:$0xff]  ;;  %v23472_v1 = vld [vmem:[#allocation20_spill] sm:$0xff] }
 0x21a   :  { %v1462_v11 = vpop.f32.mrf.mxu1  ;;  %v2039_v45 = vpop.f32.mrf.mxu0  ;;  %23470 = vst [vmem:[#allocation97_spill] sm:$0xff] %v19203_v55  ;;  %v23474_v29 = vld [vmem:[#allocation23_spill] sm:$0xff] }
 0x21b   :  { %23468 = vst [vmem:[#allocation95_spill] sm:$0xff] %v19189_v18  ;;  %v19195_v22 = vadd.f32 %v2039_v45, %v1462_v11  ;;  %v19213_v18 = vld [vmem:[#allocation3 + $0x3d0] sm:$0xff] }
 0x21c   :  { %v16263_v39 = vpop.f32.mrf.mxu1  ;;  %v16361_v19 = vpop.f32.mrf.mxu0  ;;  %16506 = vmatmul.mubr.msk.f32.gmra.mxu1 %vm183_vm0, %v18696_v9  ;;  %16604 = vmatmul.mubr.msk.f32.gmra.mxu0 %vm183_vm0, %v19197_v13 }
 0x21d   :  { %23469 = vst [vmem:[#allocation96_spill] sm:$0xff] %v19195_v22  ;;  %v19205_v59 = vadd.f32 %v16361_v19, %v16263_v39  ;;  %16508 = vmatprep.mubr.msk.f32.mxu1 %vm183_vm0, %v23472_v1  ;;  %16606 = vmatprep.mubr.msk.f32.mxu0 %vm183_vm0, %v19203_v55  ;;  %v19219_v19 = vld [vmem:[#allocation3 + $0x3e8] sm:$0xff] }
 0x21e   :  { %v1472_v11 = vpop.f32.mrf.mxu1  ;;  %v2049_v45 = vpop.f32.mrf.mxu0  ;;  %23475 = vst [vmem:[#allocation23_spill] sm:$0xff] %v19219_v19  ;;  %v23477_v1 = vld [vmem:[#allocation25_spill] sm:$0xff] }
 0x21f   :  { %23471 = vst [vmem:[#allocation98_spill] sm:$0xff] %v19205_v59  ;;  %v19211_v22 = vadd.f32 %v2049_v45, %v1472_v11  ;;  %v19229_v59 = vld [vmem:[#allocation3 + $0x3f0] sm:$0xff] }
 0x220   :  { %v16266_v9 = vpop.f32.mrf.mxu1  ;;  %v16364_v14 = vpop.f32.mrf.mxu0  ;;  %16509 = vmatmul.mubr.msk.f32.gmra.mxu1 %vm183_vm0, %v23474_v29  ;;  %16607 = vmatmul.mubr.msk.f32.gmra.mxu0 %vm183_vm0, %v19213_v18  ;;  %23479 = vst [vmem:[#allocation100_spill] sm:$0xff] %v19229_v59 }
 0x221   :  { %23473 = vst [vmem:[#allocation20_spill] sm:$0xff] %v19211_v22  ;;  %v19221_v39 = vadd.f32 %v16364_v14, %v16266_v9  ;;  %16511 = vmatprep.mubr.msk.f32.mxu1 %vm183_vm0, %v23477_v1  ;;  %16609 = vmatprep.mubr.msk.f32.mxu0 %vm183_vm0, %v19219_v19  ;;  %v19235_v14 = vld [vmem:[#allocation3 + $0x408] sm:$0xff]  ;;  %v23482_v1 = vld [vmem:[#allocation28_spill] sm:$0xff] }
 0x222   :  { %v1482_v11 = vpop.f32.mrf.mxu1  ;;  %v2059_v45 = vpop.f32.mrf.mxu0  ;;  %23480 = vst [vmem:[#allocation101_spill] sm:$0xff] %v19235_v14 }
 0x223   :  { %23476 = vst [vmem:[#allocation99_spill] sm:$0xff] %v19221_v39  ;;  %v19227_v22 = vadd.f32 %v2059_v45, %v1482_v11  ;;  %v19245_v39 = vld [vmem:[#allocation3 + $0x410] sm:$0xff] }
 0x224   :  { %v16269_v29 = vpop.f32.mrf.mxu1  ;;  %v16367_v55 = vpop.f32.mrf.mxu0  ;;  %16512 = vmatmul.mubr.msk.f32.gmra.mxu1 %vm183_vm0, %v18724_v49  ;;  %16610 = vmatmul.mubr.msk.f32.gmra.mxu0 %vm183_vm0, %v19229_v59 }
 0x225   :  { %23478 = vst [vmem:[#allocation25_spill] sm:$0xff] %v19227_v22  ;;  %v19237_v9 = vadd.f32 %v16367_v55, %v16269_v29  ;;  %16514 = vmatprep.mubr.msk.f32.mxu1 %vm183_vm0, %v23482_v1  ;;  %16612 = vmatprep.mubr.msk.f32.mxu0 %vm183_vm0, %v19235_v14  ;;  %v2320_v55 = vld [vmem:[#allocation3 + $0x447] sm:$0xff]  ;;  %v19260_v14 = vld [vmem:[#allocation3 + $0x430] sm:$0xff] }
 0x226   :  { %v1492_v11 = vpop.f32.mrf.mxu1  ;;  %v2069_v45 = vpop.f32.mrf.mxu0  ;;  %v19251_v29 = vld [vmem:[#allocation3 + $0x428] sm:$0xff] }
 0x227   :  { %23481 = vst [vmem:[#allocation102_spill] sm:$0xff] %v19237_v9  ;;  %v19243_v22 = vadd.f32 %v2069_v45, %v1492_v11  ;;  %23484 = vst [vmem:[#allocation103_spill] sm:$0xff] %v19251_v29  ;;  %v2321_v9 = vld [vmem:[#allocation3 + $0x44f] sm:$0xff] }
 0x228   :  { %v16272_v49 = vpop.f32.mrf.mxu1  ;;  %v16370_v19 = vpop.f32.mrf.mxu0  ;;  %16515 = vmatmul.mubr.msk.f32.gmra.mxu1 %vm183_vm0, %v18740_v35  ;;  %16613 = vmatmul.mubr.msk.f32.gmra.mxu0 %vm183_vm0, %v19245_v39 }
 0x229   :  { %23483 = vst [vmem:[#allocation28_spill] sm:$0xff] %v19243_v22  ;;  %v19253_v1 = vadd.f32 %v16370_v19, %v16272_v49  ;;  %16517 = vmatprep.mubr.msk.f32.mxu1 %vm183_vm0, %v2320_v55  ;;  %16615 = vmatprep.mubr.msk.f32.mxu0 %vm183_vm0, %v19251_v29  ;;  %v4185_v19 = vld [vmem:[#allocation3 + $0x29] sm:$0xff] }
 0x22a   :  { %v1502_v11 = vpop.f32.mrf.mxu1  ;;  %v2079_v45 = vpop.f32.mrf.mxu0 }
 0x22b   :  { %23485 = vst [vmem:[#allocation104_spill] sm:$0xff] %v19253_v1  ;;  %v19258_v22 = vadd.f32 %v2079_v45, %v1502_v11 }
 0x22c   :  { %v16275_v35 = vpop.f32.mrf.mxu1  ;;  %v16373_v59 = vpop.f32.mrf.mxu0  ;;  %16518 = vmatmul.mubr.msk.f32.gmra.mxu1 %vm183_vm0, %v2321_v9  ;;  %16616 = vmatmul.mubr.msk.f32.gmra.mxu0 %vm183_vm0, %v19260_v14  ;;  %v14175_v9 = vld [vmem:[%s23351_s1 + $0x38] sm:$0xff] }
 0x22d   :  { %23486 = vst [vmem:[#allocation105_spill] sm:$0xff] %v19258_v22  ;;  %v19265_v49 = vadd.f32 %v16373_v59, %v16275_v35  ;;  %16620 = vmatprep.mubr.msk.f32.mxu1 %vm183_vm0, %v18770_v53  ;;  %16718 = vmatprep.mubr.msk.f32.mxu0 %vm183_vm0, %v4185_v19  ;;  %v4186_v22 = vld [vmem:[#allocation3 + $0x31] sm:$0xff]  ;;  %v19281_v53 = vld [vmem:[%s23351_s1 + $0x40] sm:$0xff]  ;;  %v4187_v35 = vld [vmem:[#allocation3 + $0x49] sm:$0xff] }
 0x22e   :  { %v1512_v55 = vpop.f32.mrf.mxu1  ;;  %v2089_v11 = vpop.f32.mrf.mxu0  ;;  %16912 = vmatprep.subr.mxu0 %v14175_v9 }
 0x22f   :  { %v19270_v45 = vadd.f32 %v2089_v11, %v1512_v55 }
 0x230   :  { %v16278_v1 = vpop.f32.mrf.mxu1  ;;  %v16376_v29 = vpop.f32.mrf.mxu0  ;;  %16621 = vmatmul.mubr.msk.f32.vlgmr.msra.gmra.mxu1 %vm183_vm0, %v18774_v23  ;;  %16719 = vmatmul.mubr.msk.f32.vlgmr.msra.gmra.mxu0 %vm183_vm0, %v4186_v22  ;;  %v4188_v22 = vld [vmem:[#allocation3 + $0x51] sm:$0xff] }
 0x231   :  { %v19283_v59 = vadd.f32 %v16376_v29, %v16278_v1  ;;  %16815 = vmatpush3.msra.mxu1 %v18765_v21  ;;  %16623 = vmatprep.mubr.msk.f32.mxu1 %vm183_vm0, %v18783_v20  ;;  %v4189_v21 = vld [vmem:[#allocation3 + $0x69] sm:$0xff] }
 0x232   :  { %16721 = vmatprep.mubr.msk.f32.mxu0 %vm183_vm0, %v4187_v35  ;;  %v1522_v19 = vpop.f32.mrf.mxu1  ;;  %v2099_v55 = vpop.f32.mrf.mxu0  ;;  %16913 = vmatpush3.msra.mxu0 %v14175_v9 }
 0x233   :  { %v19289_v23 = vadd.f32 %v2099_v55, %v1522_v19  ;;  %17010 = vmatprep.subr.mxu1 %v19281_v53  ;;  %v4190_v19 = vld [vmem:[#allocation3 + $0x71] sm:$0xff] }
 0x234   :  { %v16281_v11 = vpop.f32.mrf.mxu1  ;;  %v16379_v29 = vpop.f32.mrf.mxu0  ;;  %16624 = vmatmul.mubr.msk.f32.gmra.mxu1 %vm183_vm0, %v18793_v63  ;;  %16722 = vmatmul.mubr.msk.f32.gmra.mxu0 %vm183_vm0, %v4188_v22  ;;  %v4191_v63 = vld [vmem:[#allocation3 + $0x89] sm:$0xff] }
 0x235   :  { %23487 = vst [vmem:[#allocation106_spill] sm:$0xff] %v19289_v23  ;;  %v19295_v20 = vadd.f32 %v16379_v29, %v16281_v11  ;;  %16626 = vmatprep.mubr.msk.f32.mxu1 %vm183_vm0, %v18799_v26  ;;  %16724 = vmatprep.mubr.msk.f32.mxu0 %vm183_vm0, %v4189_v21  ;;  %v4192_v21 = vld [vmem:[#allocation3 + $0x91] sm:$0xff] }
 0x236   :  { %v1532_v1 = vpop.f32.mrf.mxu1  ;;  %v2109_v35 = vpop.f32.mrf.mxu0 }
 0x237   :  { %v19300_v9 = vadd.f32 %v2109_v35, %v1532_v1 }
 0x238   :  { %v16284_v55 = vpop.f32.mrf.mxu1  ;;  %v16382_v23 = vpop.f32.mrf.mxu0  ;;  %16627 = vmatmul.mubr.msk.f32.gmra.mxu1 %vm183_vm0, %v18809_v25  ;;  %16725 = vmatmul.mubr.msk.f32.gmra.mxu0 %vm183_vm0, %v4190_v19  ;;  %v4193_v25 = vld [vmem:[#allocation3 + $0xa9] sm:$0xff] }
 0x239   :  { %v19305_v22 = vadd.f32 %v16382_v23, %v16284_v55  ;;  %16629 = vmatprep.mubr.msk.f32.mxu1 %vm183_vm0, %v18817_v30  ;;  %16727 = vmatprep.mubr.msk.f32.mxu0 %vm183_vm0, %v4191_v63  ;;  %v4194_v63 = vld [vmem:[#allocation3 + $0xb1] sm:$0xff] }
 0x23a   :  { %v1542_v26 = vpop.f32.mrf.mxu1  ;;  %v2119_v11 = vpop.f32.mrf.mxu0 }
 0x23b   :  { %v19310_v29 = vadd.f32 %v2119_v11, %v1542_v26 }
 0x23c   :  { %v16287_v1 = vpop.f32.mrf.mxu1  ;;  %v16385_v35 = vpop.f32.mrf.mxu0  ;;  %16630 = vmatmul.mubr.msk.f32.gmra.mxu1 %vm183_vm0, %v18825_v32  ;;  %16728 = vmatmul.mubr.msk.f32.gmra.mxu0 %vm183_vm0, %v4192_v21  ;;  %v4195_v32 = vld [vmem:[#allocation3 + $0xc9] sm:$0xff] }
 0x23d   :  { %v19315_v23 = vadd.f32 %v16385_v35, %v16287_v1  ;;  %16632 = vmatprep.mubr.msk.f32.mxu1 %vm183_vm0, %v18833_v34  ;;  %16730 = vmatprep.mubr.msk.f32.mxu0 %vm183_vm0, %v4193_v25  ;;  %v4196_v25 = vld [vmem:[#allocation3 + $0xd1] sm:$0xff] }
 0x23e   :  { %v1552_v30 = vpop.f32.mrf.mxu1  ;;  %v2129_v19 = vpop.f32.mrf.mxu0 }
 0x23f   :  { %v19320_v55 = vadd.f32 %v2129_v19, %v1552_v30 }
 0x240   :  { %v16290_v26 = vpop.f32.mrf.mxu1  ;;  %v16388_v11 = vpop.f32.mrf.mxu0  ;;  %16633 = vmatmul.mubr.msk.f32.gmra.mxu1 %vm183_vm0, %v18843_v5  ;;  %16731 = vmatmul.mubr.msk.f32.gmra.mxu0 %vm183_vm0, %v4194_v63  ;;  %v4197_v5 = vld [vmem:[#allocation3 + $0xe9] sm:$0xff] }
 0x241   :  { %v19325_v21 = vadd.f32 %v16388_v11, %v16290_v26  ;;  %16635 = vmatprep.mubr.msk.f32.mxu1 %vm183_vm0, %v18849_v38  ;;  %16733 = vmatprep.mubr.msk.f32.mxu0 %vm183_vm0, %v4195_v32  ;;  %v4198_v32 = vld [vmem:[#allocation3 + $0xf1] sm:$0xff] }
 0x242   :  { %v1562_v34 = vpop.f32.mrf.mxu1  ;;  %v2139_v1 = vpop.f32.mrf.mxu0 }
 0x243   :  { %v19330_v35 = vadd.f32 %v2139_v1, %v1562_v34 }
 0x244   :  { %v16293_v30 = vpop.f32.mrf.mxu1  ;;  %v16391_v19 = vpop.f32.mrf.mxu0  ;;  %16636 = vmatmul.mubr.msk.f32.gmra.mxu1 %vm183_vm0, %v18859_v36  ;;  %16734 = vmatmul.mubr.msk.f32.gmra.mxu0 %vm183_vm0, %v4196_v25  ;;  %v4199_v36 = vld [vmem:[#allocation3 + $0x109] sm:$0xff] }
 0x245   :  { %v19335_v63 = vadd.f32 %v16391_v19, %v16293_v30  ;;  %16638 = vmatprep.mubr.msk.f32.mxu1 %vm183_vm0, %v18867_v42  ;;  %16736 = vmatprep.mubr.msk.f32.mxu0 %vm183_vm0, %v4197_v5  ;;  %v4200_v5 = vld [vmem:[#allocation3 + $0x111] sm:$0xff] }
 0x246   :  { %v1572_v38 = vpop.f32.mrf.mxu1  ;;  %v2149_v26 = vpop.f32.mrf.mxu0 }
 0x247   :  { %v19340_v11 = vadd.f32 %v2149_v26, %v1572_v38 }
 0x248   :  { %v16296_v34 = vpop.f32.mrf.mxu1  ;;  %v16394_v1 = vpop.f32.mrf.mxu0  ;;  %16639 = vmatmul.mubr.msk.f32.gmra.mxu1 %vm183_vm0, %v18875_v44  ;;  %16737 = vmatmul.mubr.msk.f32.gmra.mxu0 %vm183_vm0, %v4198_v32  ;;  %v4201_v44 = vld [vmem:[#allocation3 + $0x129] sm:$0xff] }
 0x249   :  { %v19345_v25 = vadd.f32 %v16394_v1, %v16296_v34  ;;  %16641 = vmatprep.mubr.msk.f32.mxu1 %vm183_vm0, %v18883_v46  ;;  %16739 = vmatprep.mubr.msk.f32.mxu0 %vm183_vm0, %v4199_v36  ;;  %v4202_v36 = vld [vmem:[#allocation3 + $0x131] sm:$0xff] }
 0x24a   :  { %v1582_v42 = vpop.f32.mrf.mxu1  ;;  %v2159_v30 = vpop.f32.mrf.mxu0 }
 0x24b   :  { %v19350_v19 = vadd.f32 %v2159_v30, %v1582_v42 }
 0x24c   :  { %v16299_v38 = vpop.f32.mrf.mxu1  ;;  %v16397_v26 = vpop.f32.mrf.mxu0  ;;  %16642 = vmatmul.mubr.msk.f32.gmra.mxu1 %vm183_vm0, %v18893_v28  ;;  %16740 = vmatmul.mubr.msk.f32.gmra.mxu0 %vm183_vm0, %v4200_v5  ;;  %v4203_v28 = vld [vmem:[#allocation3 + $0x149] sm:$0xff] }
 0x24d   :  { %v19355_v32 = vadd.f32 %v16397_v26, %v16299_v38  ;;  %16644 = vmatprep.mubr.msk.f32.mxu1 %vm183_vm0, %v18899_v50  ;;  %16742 = vmatprep.mubr.msk.f32.mxu0 %vm183_vm0, %v4201_v44  ;;  %v4204_v44 = vld [vmem:[#allocation3 + $0x151] sm:$0xff] }
 0x24e   :  { %v1592_v46 = vpop.f32.mrf.mxu1  ;;  %v2169_v34 = vpop.f32.mrf.mxu0 }
 0x24f   :  { %23488 = vst [vmem:[#allocation107_spill] sm:$0xff] %v19355_v32  ;;  %v19360_v1 = vadd.f32 %v2169_v34, %v1592_v46 }
 0x250   :  { %v16302_v42 = vpop.f32.mrf.mxu1  ;;  %v16400_v30 = vpop.f32.mrf.mxu0  ;;  %16645 = vmatmul.mubr.msk.f32.gmra.mxu1 %vm183_vm0, %v18909_v48  ;;  %16743 = vmatmul.mubr.msk.f32.gmra.mxu0 %vm183_vm0, %v4202_v36  ;;  %v4205_v48 = vld [vmem:[#allocation3 + $0x169] sm:$0xff] }
 0x251   :  { %23489 = vst [vmem:[#allocation108_spill] sm:$0xff] %v19360_v1  ;;  %v19365_v5 = vadd.f32 %v16400_v30, %v16302_v42  ;;  %16647 = vmatprep.mubr.msk.f32.mxu1 %vm183_vm0, %v18917_v54  ;;  %16745 = vmatprep.mubr.msk.f32.mxu0 %vm183_vm0, %v4203_v28  ;;  %v4206_v28 = vld [vmem:[#allocation3 + $0x171] sm:$0xff] }
 0x252   :  { %v1602_v50 = vpop.f32.mrf.mxu1  ;;  %v2179_v38 = vpop.f32.mrf.mxu0 }
 0x253   :  { %23490 = vst [vmem:[#allocation109_spill] sm:$0xff] %v19365_v5  ;;  %v19370_v26 = vadd.f32 %v2179_v38, %v1602_v50 }
 0x254   :  { %v16305_v46 = vpop.f32.mrf.mxu1  ;;  %v16403_v34 = vpop.f32.mrf.mxu0  ;;  %16648 = vmatmul.mubr.msk.f32.gmra.mxu1 %vm183_vm0, %v18925_v56  ;;  %16746 = vmatmul.mubr.msk.f32.gmra.mxu0 %vm183_vm0, %v4204_v44  ;;  %v4207_v56 = vld [vmem:[#allocation3 + $0x189] sm:$0xff] }
 0x255   :  { %23491 = vst [vmem:[#allocation110_spill] sm:$0xff] %v19370_v26  ;;  %v19375_v36 = vadd.f32 %v16403_v34, %v16305_v46  ;;  %16650 = vmatprep.mubr.msk.f32.mxu1 %vm183_vm0, %v18933_v58  ;;  %16748 = vmatprep.mubr.msk.f32.mxu0 %vm183_vm0, %v4205_v48  ;;  %v4208_v48 = vld [vmem:[#allocation3 + $0x191] sm:$0xff] }
 0x256   :  { %v1612_v54 = vpop.f32.mrf.mxu1  ;;  %v2189_v42 = vpop.f32.mrf.mxu0 }
 0x257   :  { %23492 = vst [vmem:[#allocation111_spill] sm:$0xff] %v19375_v36  ;;  %v19380_v30 = vadd.f32 %v2189_v42, %v1612_v54 }
 0x258   :  { %v16308_v50 = vpop.f32.mrf.mxu1  ;;  %v16406_v38 = vpop.f32.mrf.mxu0  ;;  %16651 = vmatmul.mubr.msk.f32.gmra.mxu1 %vm183_vm0, %v18943_v40  ;;  %16749 = vmatmul.mubr.msk.f32.gmra.mxu0 %vm183_vm0, %v4206_v28  ;;  %v4209_v40 = vld [vmem:[#allocation3 + $0x1a9] sm:$0xff] }
 0x259   :  { %23493 = vst [vmem:[#allocation112_spill] sm:$0xff] %v19380_v30  ;;  %v19385_v44 = vadd.f32 %v16406_v38, %v16308_v50  ;;  %16653 = vmatprep.mubr.msk.f32.mxu1 %vm183_vm0, %v18949_v62  ;;  %16751 = vmatprep.mubr.msk.f32.mxu0 %vm183_vm0, %v4207_v56  ;;  %v4210_v56 = vld [vmem:[#allocation3 + $0x1b1] sm:$0xff] }
 0x25a   :  { %v1622_v58 = vpop.f32.mrf.mxu1  ;;  %v2199_v46 = vpop.f32.mrf.mxu0 }
 0x25b   :  { %23494 = vst [vmem:[#allocation113_spill] sm:$0xff] %v19385_v44  ;;  %v19390_v34 = vadd.f32 %v2199_v46, %v1622_v58 }
 0x25c   :  { %v16311_v54 = vpop.f32.mrf.mxu1  ;;  %v16409_v42 = vpop.f32.mrf.mxu0  ;;  %16654 = vmatmul.mubr.msk.f32.gmra.mxu1 %vm183_vm0, %v18959_v60  ;;  %16752 = vmatmul.mubr.msk.f32.gmra.mxu0 %vm183_vm0, %v4208_v48  ;;  %v4211_v60 = vld [vmem:[#allocation3 + $0x1c9] sm:$0xff] }
 0x25d   :  { %23495 = vst [vmem:[#allocation114_spill] sm:$0xff] %v19390_v34  ;;  %v19395_v28 = vadd.f32 %v16409_v42, %v16311_v54  ;;  %16656 = vmatprep.mubr.msk.f32.mxu1 %vm183_vm0, %v18967_v2  ;;  %16754 = vmatprep.mubr.msk.f32.mxu0 %vm183_vm0, %v4209_v40  ;;  %v4212_v40 = vld [vmem:[#allocation3 + $0x1d1] sm:$0xff] }
 0x25e   :  { %v1632_v62 = vpop.f32.mrf.mxu1  ;;  %v2209_v50 = vpop.f32.mrf.mxu0 }
 0x25f   :  { %23496 = vst [vmem:[#allocation115_spill] sm:$0xff] %v19395_v28  ;;  %v19400_v38 = vadd.f32 %v2209_v50, %v1632_v62 }
 0x260   :  { %v16314_v58 = vpop.f32.mrf.mxu1  ;;  %v16412_v46 = vpop.f32.mrf.mxu0  ;;  %16657 = vmatmul.mubr.msk.f32.gmra.mxu1 %vm183_vm0, %v18975_v4  ;;  %16755 = vmatmul.mubr.msk.f32.gmra.mxu0 %vm183_vm0, %v4210_v56  ;;  %v4213_v4 = vld [vmem:[#allocation3 + $0x1e9] sm:$0xff] }
 0x261   :  { %23497 = vst [vmem:[#allocation116_spill] sm:$0xff] %v19400_v38  ;;  %v19405_v48 = vadd.f32 %v16412_v46, %v16314_v58  ;;  %16659 = vmatprep.mubr.msk.f32.mxu1 %vm183_vm0, %v18983_v6  ;;  %16757 = vmatprep.mubr.msk.f32.mxu0 %vm183_vm0, %v4211_v60  ;;  %v23500_v38 = vld [vmem:[#allocation66_spill] sm:$0xff]  ;;  %v23502_v58 = vld [vmem:[#allocation67_spill] sm:$0xff] }
 0x262   :  { %v1642_v2 = vpop.f32.mrf.mxu1  ;;  %v2219_v54 = vpop.f32.mrf.mxu0 }
 0x263   :  { %23498 = vst [vmem:[#allocation117_spill] sm:$0xff] %v19405_v48  ;;  %v19410_v42 = vadd.f32 %v2219_v54, %v1642_v2  ;;  %v4214_v2 = vld [vmem:[#allocation3 + $0x1f1] sm:$0xff] }
 0x264   :  { %v16317_v62 = vpop.f32.mrf.mxu1  ;;  %v16415_v50 = vpop.f32.mrf.mxu0  ;;  %16660 = vmatmul.mubr.msk.f32.gmra.mxu1 %vm183_vm0, %v23500_v38  ;;  %16758 = vmatmul.mubr.msk.f32.gmra.mxu0 %vm183_vm0, %v4212_v40  ;;  %v19425_v38 = vld [vmem:[#allocation3 + $0x208] sm:$0xff] }
 0x265   :  { %23499 = vst [vmem:[#allocation118_spill] sm:$0xff] %v19410_v42  ;;  %v19415_v56 = vadd.f32 %v16415_v50, %v16317_v62  ;;  %16662 = vmatprep.mubr.msk.f32.mxu1 %vm183_vm0, %v23502_v58  ;;  %16760 = vmatprep.mubr.msk.f32.mxu0 %vm183_vm0, %v4213_v4  ;;  %v4215_v40 = vld [vmem:[#allocation3 + $0x209] sm:$0xff] }
 0x266   :  { %v1652_v6 = vpop.f32.mrf.mxu1  ;;  %v2229_v46 = vpop.f32.mrf.mxu0 }
 0x267   :  { %23501 = vst [vmem:[#allocation66_spill] sm:$0xff] %v19415_v56  ;;  %v19420_v60 = vadd.f32 %v2229_v46, %v1652_v6  ;;  %v19434_v6 = vld [vmem:[#allocation3 + $0x210] sm:$0xff] }
 0x268   :  { %v16320_v54 = vpop.f32.mrf.mxu1  ;;  %v16418_v42 = vpop.f32.mrf.mxu0  ;;  %16663 = vmatmul.mubr.msk.f32.gmra.mxu1 %vm183_vm0, %v19008_v33  ;;  %16761 = vmatmul.mubr.msk.f32.gmra.mxu0 %vm183_vm0, %v4214_v2  ;;  %v4216_v46 = vld [vmem:[#allocation3 + $0x211] sm:$0xff] }
 0x269   :  { %23503 = vst [vmem:[#allocation67_spill] sm:$0xff] %v19420_v60  ;;  %v19427_v62 = vadd.f32 %v16418_v42, %v16320_v54  ;;  %16665 = vmatprep.mubr.msk.f32.mxu1 %vm183_vm0, %v19425_v38  ;;  %16763 = vmatprep.mubr.msk.f32.mxu0 %vm183_vm0, %v4215_v40  ;;  %v4217_v42 = vld [vmem:[#allocation3 + $0x269] sm:$0xff] }
 0x26a   :  { %v1662_v50 = vpop.f32.mrf.mxu1  ;;  %v2239_v4 = vpop.f32.mrf.mxu0  ;;  %v5601_v56 = vld [vmem:[#allocation3 + $0x50] sm:$0xff] }
 0x26b   :  { %23504 = vst [vmem:[#allocation119_spill] sm:$0xff] %v19427_v62  ;;  %v19432_v58 = vadd.f32 %v2239_v4, %v1662_v50  ;;  %v4218_v4 = vld [vmem:[#allocation3 + $0x271] sm:$0xff] }
 0x26c   :  { %v16323_v33 = vpop.f32.mrf.mxu1  ;;  %v16421_v60 = vpop.f32.mrf.mxu0  ;;  %16666 = vmatmul.mubr.msk.f32.gmra.mxu1 %vm183_vm0, %v19434_v6  ;;  %16764 = vmatmul.mubr.msk.f32.gmra.mxu0 %vm183_vm0, %v4216_v46  ;;  %v4219_v46 = vld [vmem:[#allocation3 + $0x289] sm:$0xff] }
 0x26d   :  { %23505 = vst [vmem:[#allocation120_spill] sm:$0xff] %v19432_v58  ;;  %v19439_v2 = vadd.f32 %v16421_v60, %v16323_v33  ;;  %16668 = vmatprep.mubr.msk.f32.mxu1 %vm183_vm0, %v19027_v24  ;;  %16766 = vmatprep.mubr.msk.f32.mxu0 %vm183_vm0, %v4217_v42 }
 0x26e   :  { %v1672_v54 = vpop.f32.mrf.mxu1  ;;  %v2249_v40 = vpop.f32.mrf.mxu0 }
 0x26f   :  { %23506 = vst [vmem:[#allocation121_spill] sm:$0xff] %v19439_v2  ;;  %v19444_v50 = vadd.f32 %v2249_v40, %v1672_v54  ;;  %v4220_v54 = vld [vmem:[#allocation3 + $0x291] sm:$0xff]  ;;  %v23515_v2 = vld [vmem:[#allocation100_spill] sm:$0xff] }
 0x270   :  { %v16426_v58 = vpop.f32.mrf.mxu1  ;;  %v16524_v62 = vpop.f32.mrf.mxu0  ;;  %16669 = vmatmul.mubr.msk.f32.gmra.mxu1 %vm183_vm0, %v19037_v12  ;;  %16767 = vmatmul.mubr.msk.f32.gmra.mxu0 %vm183_vm0, %v4218_v4  ;;  %v4221_v12 = vld [vmem:[#allocation3 + $0x2a9] sm:$0xff] }
 0x271   :  { %23507 = vst [vmem:[#allocation122_spill] sm:$0xff] %v19444_v50  ;;  %v19449_v60 = vadd.f32 %v16524_v62, %v16426_v58  ;;  %16671 = vmatprep.mubr.msk.f32.mxu1 %vm183_vm0, %v19043_v52  ;;  %16769 = vmatprep.mubr.msk.f32.mxu0 %vm183_vm0, %v4219_v46  ;;  %v4222_v46 = vld [vmem:[#allocation3 + $0x2b1] sm:$0xff] }
 0x272   :  { %v2582_v24 = vpop.f32.mrf.mxu1  ;;  %v3159_v33 = vpop.f32.mrf.mxu0 }
 0x273   :  { %v19454_v42 = vadd.f32 %v3159_v33, %v2582_v24 }
 0x274   :  { %v16429_v40 = vpop.f32.mrf.mxu1  ;;  %v16527_v50 = vpop.f32.mrf.mxu0  ;;  %16672 = vmatmul.mubr.msk.f32.gmra.mxu1 %vm183_vm0, %v19053_v8  ;;  %16770 = vmatmul.mubr.msk.f32.gmra.mxu0 %vm183_vm0, %v4220_v54  ;;  %v4223_v8 = vld [vmem:[#allocation3 + $0x2c9] sm:$0xff] }
 0x275   :  { %v19459_v62 = vadd.f32 %v16527_v50, %v16429_v40  ;;  %16674 = vmatprep.mubr.msk.f32.mxu1 %vm183_vm0, %v19059_v17  ;;  %16772 = vmatprep.mubr.msk.f32.mxu0 %vm183_vm0, %v4221_v12  ;;  %v4224_v12 = vld [vmem:[#allocation3 + $0x2d1] sm:$0xff] }
 0x276   :  { %v2592_v52 = vpop.f32.mrf.mxu1  ;;  %v3169_v58 = vpop.f32.mrf.mxu0 }
 0x277   :  { %v19464_v4 = vadd.f32 %v3169_v58, %v2592_v52 }
 0x278   :  { %v16432_v24 = vpop.f32.mrf.mxu1  ;;  %v16530_v33 = vpop.f32.mrf.mxu0  ;;  %16675 = vmatmul.mubr.msk.f32.gmra.mxu1 %vm183_vm0, %v19069_v16  ;;  %16773 = vmatmul.mubr.msk.f32.gmra.mxu0 %vm183_vm0, %v4222_v46  ;;  %v4225_v16 = vld [vmem:[#allocation3 + $0x2e9] sm:$0xff] }
 0x279   :  { %v19469_v50 = vadd.f32 %v16530_v33, %v16432_v24  ;;  %16677 = vmatprep.mubr.msk.f32.mxu1 %vm183_vm0, %v19075_v43  ;;  %16775 = vmatprep.mubr.msk.f32.mxu0 %vm183_vm0, %v4223_v8  ;;  %v4226_v8 = vld [vmem:[#allocation3 + $0x2f1] sm:$0xff] }
 0x27a   :  { %v2602_v17 = vpop.f32.mrf.mxu1  ;;  %v3179_v54 = vpop.f32.mrf.mxu0 }
 0x27b   :  { %v19474_v40 = vadd.f32 %v3179_v54, %v2602_v17 }
 0x27c   :  { %v16435_v52 = vpop.f32.mrf.mxu1  ;;  %v16533_v58 = vpop.f32.mrf.mxu0  ;;  %16678 = vmatmul.mubr.msk.f32.gmra.mxu1 %vm183_vm0, %v19085_v10  ;;  %16776 = vmatmul.mubr.msk.f32.gmra.mxu0 %vm183_vm0, %v4224_v12  ;;  %v4227_v10 = vld [vmem:[#allocation3 + $0x309] sm:$0xff] }
 0x27d   :  { %v19479_v46 = vadd.f32 %v16533_v58, %v16435_v52  ;;  %16680 = vmatprep.mubr.msk.f32.mxu1 %vm183_vm0, %v19091_v31  ;;  %16778 = vmatprep.mubr.msk.f32.mxu0 %vm183_vm0, %v4225_v16  ;;  %v4228_v16 = vld [vmem:[#allocation3 + $0x311] sm:$0xff] }
 0x27e   :  { %v2612_v43 = vpop.f32.mrf.mxu1  ;;  %v3189_v24 = vpop.f32.mrf.mxu0 }
 0x27f   :  { %v19484_v33 = vadd.f32 %v3189_v24, %v2612_v43 }
 0x280   :  { %v16438_v17 = vpop.f32.mrf.mxu1  ;;  %v16536_v54 = vpop.f32.mrf.mxu0  ;;  %16681 = vmatmul.mubr.msk.f32.gmra.mxu1 %vm183_vm0, %v19101_v0  ;;  %16779 = vmatmul.mubr.msk.f32.gmra.mxu0 %vm183_vm0, %v4226_v8  ;;  %v4229_v0 = vld [vmem:[#allocation3 + $0x329] sm:$0xff] }
 0x281   :  { %v19489_v12 = vadd.f32 %v16536_v54, %v16438_v17  ;;  %16683 = vmatprep.mubr.msk.f32.mxu1 %vm183_vm0, %v19107_v41  ;;  %16781 = vmatprep.mubr.msk.f32.mxu0 %vm183_vm0, %v4227_v10  ;;  %v4230_v10 = vld [vmem:[#allocation3 + $0x331] sm:$0xff] }
 0x282   :  { %v2622_v31 = vpop.f32.mrf.mxu1  ;;  %v3199_v52 = vpop.f32.mrf.mxu0 }
 0x283   :  { %v19494_v58 = vadd.f32 %v3199_v52, %v2622_v31 }
 0x284   :  { %v16441_v43 = vpop.f32.mrf.mxu1  ;;  %v16539_v24 = vpop.f32.mrf.mxu0  ;;  %16684 = vmatmul.mubr.msk.f32.gmra.mxu1 %vm183_vm0, %v19117_v27  ;;  %16782 = vmatmul.mubr.msk.f32.gmra.mxu0 %vm183_vm0, %v4228_v16  ;;  %v4231_v27 = vld [vmem:[#allocation3 + $0x349] sm:$0xff] }
 0x285   :  { %v19499_v8 = vadd.f32 %v16539_v24, %v16441_v43  ;;  %16686 = vmatprep.mubr.msk.f32.mxu1 %vm183_vm0, %v19123_v51  ;;  %16784 = vmatprep.mubr.msk.f32.mxu0 %vm183_vm0, %v4229_v0  ;;  %v4232_v0 = vld [vmem:[#allocation3 + $0x351] sm:$0xff] }
 0x286   :  { %v2632_v41 = vpop.f32.mrf.mxu1  ;;  %v3209_v17 = vpop.f32.mrf.mxu0 }
 0x287   :  { %v19504_v54 = vadd.f32 %v3209_v17, %v2632_v41 }
 0x288   :  { %v16444_v31 = vpop.f32.mrf.mxu1  ;;  %v16542_v52 = vpop.f32.mrf.mxu0  ;;  %16687 = vmatmul.mubr.msk.f32.gmra.mxu1 %vm183_vm0, %v19133_v37  ;;  %16785 = vmatmul.mubr.msk.f32.gmra.mxu0 %vm183_vm0, %v4230_v10  ;;  %v4233_v37 = vld [vmem:[#allocation3 + $0x369] sm:$0xff] }
 0x289   :  { %v19509_v16 = vadd.f32 %v16542_v52, %v16444_v31  ;;  %16689 = vmatprep.mubr.msk.f32.mxu1 %vm183_vm0, %v19139_v61  ;;  %16787 = vmatprep.mubr.msk.f32.mxu0 %vm183_vm0, %v4231_v27  ;;  %v4234_v27 = vld [vmem:[#allocation3 + $0x371] sm:$0xff] }
 0x28a   :  { %v2642_v51 = vpop.f32.mrf.mxu1  ;;  %v3219_v43 = vpop.f32.mrf.mxu0 }
 0x28b   :  { %v19514_v24 = vadd.f32 %v3219_v43, %v2642_v51 }
 0x28c   :  { %v16447_v41 = vpop.f32.mrf.mxu1  ;;  %v16545_v17 = vpop.f32.mrf.mxu0  ;;  %16690 = vmatmul.mubr.msk.f32.gmra.mxu1 %vm183_vm0, %v19149_v47  ;;  %16788 = vmatmul.mubr.msk.f32.gmra.mxu0 %vm183_vm0, %v4232_v0  ;;  %v4235_v47 = vld [vmem:[#allocation3 + $0x389] sm:$0xff] }
 0x28d   :  { %v19519_v10 = vadd.f32 %v16545_v17, %v16447_v41  ;;  %16692 = vmatprep.mubr.msk.f32.mxu1 %vm183_vm0, %v19155_v7  ;;  %16790 = vmatprep.mubr.msk.f32.mxu0 %vm183_vm0, %v4233_v37  ;;  %v4236_v37 = vld [vmem:[#allocation3 + $0x391] sm:$0xff] }
 0x28e   :  { %v2652_v61 = vpop.f32.mrf.mxu1  ;;  %v3229_v31 = vpop.f32.mrf.mxu0 }
 0x28f   :  { %v19524_v52 = vadd.f32 %v3229_v31, %v2652_v61 }
 0x290   :  { %v16450_v51 = vpop.f32.mrf.mxu1  ;;  %v16548_v43 = vpop.f32.mrf.mxu0  ;;  %16693 = vmatmul.mubr.msk.f32.gmra.mxu1 %vm183_vm0, %v19165_v57  ;;  %16791 = vmatmul.mubr.msk.f32.gmra.mxu0 %vm183_vm0, %v4234_v27  ;;  %v4237_v57 = vld [vmem:[#allocation3 + $0x3a9] sm:$0xff] }
 0x291   :  { %v19529_v0 = vadd.f32 %v16548_v43, %v16450_v51  ;;  %16695 = vmatprep.mubr.msk.f32.mxu1 %vm183_vm0, %v19171_v15  ;;  %16793 = vmatprep.mubr.msk.f32.mxu0 %vm183_vm0, %v4235_v47  ;;  %v23509_v51 = vld [vmem:[#allocation94_spill] sm:$0xff] }
 0x292   :  { %v2662_v7 = vpop.f32.mrf.mxu1  ;;  %v3239_v41 = vpop.f32.mrf.mxu0 }
 0x293   :  { %v19534_v17 = vadd.f32 %v3239_v41, %v2662_v7  ;;  %v4238_v7 = vld [vmem:[#allocation3 + $0x3b1] sm:$0xff] }
 0x294   :  { %v16453_v61 = vpop.f32.mrf.mxu1  ;;  %v16551_v31 = vpop.f32.mrf.mxu0  ;;  %16696 = vmatmul.mubr.msk.f32.gmra.mxu1 %vm183_vm0, %v19181_v3  ;;  %16794 = vmatmul.mubr.msk.f32.gmra.mxu0 %vm183_vm0, %v4236_v37  ;;  %v4239_v3 = vld [vmem:[#allocation3 + $0x3c9] sm:$0xff] }
 0x295   :  { %23508 = vst [vmem:[#allocation123_spill] sm:$0xff] %v19534_v17  ;;  %v19539_v27 = vadd.f32 %v16551_v31, %v16453_v61  ;;  %16698 = vmatprep.mubr.msk.f32.mxu1 %vm183_vm0, %v23509_v51  ;;  %16796 = vmatprep.mubr.msk.f32.mxu0 %vm183_vm0, %v4237_v57  ;;  %v23511_v61 = vld [vmem:[#allocation97_spill] sm:$0xff] }
 0x296   :  { %v2672_v15 = vpop.f32.mrf.mxu1  ;;  %v3249_v43 = vpop.f32.mrf.mxu0 }
 0x297   :  { %v19544_v47 = vadd.f32 %v3249_v43, %v2672_v15  ;;  %v4240_v15 = vld [vmem:[#allocation3 + $0x3d1] sm:$0xff] }
 0x298   :  { %v16456_v41 = vpop.f32.mrf.mxu1  ;;  %v16554_v17 = vpop.f32.mrf.mxu0  ;;  %16699 = vmatmul.mubr.msk.f32.gmra.mxu1 %vm183_vm0, %v19197_v13  ;;  %16797 = vmatmul.mubr.msk.f32.gmra.mxu0 %vm183_vm0, %v4238_v7  ;;  %v4241_v13 = vld [vmem:[#allocation3 + $0x3e9] sm:$0xff]  ;;  %v23513_v7 = vld [vmem:[#allocation23_spill] sm:$0xff] }
 0x299   :  { %23510 = vst [vmem:[#allocation94_spill] sm:$0xff] %v19544_v47  ;;  %v19549_v37 = vadd.f32 %v16554_v17, %v16456_v41  ;;  %16701 = vmatprep.mubr.msk.f32.mxu1 %vm183_vm0, %v23511_v61  ;;  %16799 = vmatprep.mubr.msk.f32.mxu0 %vm183_vm0, %v4239_v3 }
 0x29a   :  { %v2682_v31 = vpop.f32.mrf.mxu1  ;;  %v3259_v57 = vpop.f32.mrf.mxu0 }
 0x29b   :  { %v19554_v51 = vadd.f32 %v3259_v57, %v2682_v31  ;;  %v4242_v31 = vld [vmem:[#allocation3 + $0x3f1] sm:$0xff] }
 0x29c   :  { %v16459_v43 = vpop.f32.mrf.mxu1  ;;  %v16557_v47 = vpop.f32.mrf.mxu0  ;;  %16702 = vmatmul.mubr.msk.f32.gmra.mxu1 %vm183_vm0, %v19213_v18  ;;  %16800 = vmatmul.mubr.msk.f32.gmra.mxu0 %vm183_vm0, %v4240_v15  ;;  %v4243_v18 = vld [vmem:[#allocation3 + $0x409] sm:$0xff] }
 0x29d   :  { %23512 = vst [vmem:[#allocation97_spill] sm:$0xff] %v19554_v51  ;;  %v19559_v17 = vadd.f32 %v16557_v47, %v16459_v43  ;;  %16704 = vmatprep.mubr.msk.f32.mxu1 %vm183_vm0, %v23513_v7  ;;  %16802 = vmatprep.mubr.msk.f32.mxu0 %vm183_vm0, %v4241_v13  ;;  %v23516_v15 = vld [vmem:[#allocation101_spill] sm:$0xff] }
 0x29e   :  { %v2692_v41 = vpop.f32.mrf.mxu1  ;;  %v3269_v3 = vpop.f32.mrf.mxu0 }
 0x29f   :  { %v19564_v61 = vadd.f32 %v3269_v3, %v2692_v41  ;;  %v4244_v41 = vld [vmem:[#allocation3 + $0x411] sm:$0xff] }
 0x2a0   :  { %v16462_v57 = vpop.f32.mrf.mxu1  ;;  %v16560_v51 = vpop.f32.mrf.mxu0  ;;  %16705 = vmatmul.mubr.msk.f32.gmra.mxu1 %vm183_vm0, %v23515_v2  ;;  %16803 = vmatmul.mubr.msk.f32.gmra.mxu0 %vm183_vm0, %v4242_v31  ;;  %v4245_v2 = vld [vmem:[#allocation3 + $0x429] sm:$0xff]  ;;  %v23518_v31 = vld [vmem:[#allocation103_spill] sm:$0xff] }
 0x2a1   :  { %23514 = vst [vmem:[#allocation23_spill] sm:$0xff] %v19564_v61  ;;  %v19569_v47 = vadd.f32 %v16560_v51, %v16462_v57  ;;  %16707 = vmatprep.mubr.msk.f32.mxu1 %vm183_vm0, %v23516_v15  ;;  %16805 = vmatprep.mubr.msk.f32.mxu0 %vm183_vm0, %v4243_v18 }
 0x2a2   :  { %v2702_v43 = vpop.f32.mrf.mxu1  ;;  %v3279_v13 = vpop.f32.mrf.mxu0 }
 0x2a3   :  { %v19574_v7 = vadd.f32 %v3279_v13, %v2702_v43  ;;  %v4246_v43 = vld [vmem:[#allocation3 + $0x431] sm:$0xff] }
 0x2a4   :  { %v16465_v3 = vpop.f32.mrf.mxu1  ;;  %v16563_v61 = vpop.f32.mrf.mxu0  ;;  %16708 = vmatmul.mubr.msk.f32.gmra.mxu1 %vm183_vm0, %v19245_v39  ;;  %16806 = vmatmul.mubr.msk.f32.gmra.mxu0 %vm183_vm0, %v4244_v41  ;;  %v19589_v39 = vld [vmem:[#allocation3 + $0x448] sm:$0xff] }
 0x2a5   :  { %23517 = vst [vmem:[#allocation100_spill] sm:$0xff] %v19574_v7  ;;  %v19579_v51 = vadd.f32 %v16563_v61, %v16465_v3  ;;  %16710 = vmatprep.mubr.msk.f32.mxu1 %vm183_vm0, %v23518_v31  ;;  %16808 = vmatprep.mubr.msk.f32.mxu0 %vm183_vm0, %v4245_v2  ;;  %v4247_v61 = vld [vmem:[#allocation3 + $0x449] sm:$0xff] }
 0x2a6   :  { %v2712_v57 = vpop.f32.mrf.mxu1  ;;  %v3289_v18 = vpop.f32.mrf.mxu0 }
 0x2a7   :  { %v19584_v15 = vadd.f32 %v3289_v18, %v2712_v57  ;;  %v19598_v57 = vld [vmem:[#allocation3 + $0x450] sm:$0xff] }
 0x2a8   :  { %v16468_v13 = vpop.f32.mrf.mxu1  ;;  %v16566_v7 = vpop.f32.mrf.mxu0  ;;  %16711 = vmatmul.mubr.msk.f32.gmra.mxu1 %vm183_vm0, %v19260_v14  ;;  %16809 = vmatmul.mubr.msk.f32.gmra.mxu0 %vm183_vm0, %v4246_v43  ;;  %v4248_v18 = vld [vmem:[#allocation3 + $0x451] sm:$0xff]  ;;  %v5600_v43 = vld [vmem:[#allocation3 + $0x48] sm:$0xff] }
 0x2a9   :  { %23519 = vst [vmem:[#allocation101_spill] sm:$0xff] %v19584_v15  ;;  %v19591_v41 = vadd.f32 %v16566_v7, %v16468_v13  ;;  %16713 = vmatprep.mubr.msk.f32.mxu1 %vm183_vm0, %v19589_v39  ;;  %16811 = vmatprep.mubr.msk.f32.mxu0 %vm183_vm0, %v4247_v61  ;;  %v4893_v7 = vld [vmem:[#allocation3 + $0x47] sm:$0xff] }
 0x2aa   :  { %v2722_v3 = vpop.f32.mrf.mxu1  ;;  %v3299_v2 = vpop.f32.mrf.mxu0 }
 0x2ab   :  { %v19596_v31 = vadd.f32 %v3299_v2, %v2722_v3 }
 0x2ac   :  { %v16471_v14 = vpop.f32.mrf.mxu1  ;;  %v16569_v15 = vpop.f32.mrf.mxu0  ;;  %16714 = vmatmul.mubr.msk.f32.gmra.mxu1 %vm183_vm0, %v19598_v57  ;;  %16812 = vmatmul.mubr.msk.f32.gmra.mxu0 %vm183_vm0, %v4248_v18  ;;  %v4895_v18 = vld [vmem:[#allocation3 + $0x67] sm:$0xff] }
 0x2ad   :  { %23520 = vst [vmem:[#allocation103_spill] sm:$0xff] %v19596_v31  ;;  %v19603_v13 = vadd.f32 %v16569_v15, %v16471_v14  ;;  %16816 = vmatprep.mubr.msk.f32.mxu1 %vm183_vm0, %v4893_v7  ;;  %16914 = vmatprep.mubr.msk.f32.mxu0 %vm183_vm0, %v5600_v43  ;;  %v4894_v31 = vld [vmem:[#allocation3 + $0x4f] sm:$0xff] }
 0x2ae   :  { %v2732_v61 = vpop.f32.mrf.mxu1  ;;  %v3309_v3 = vpop.f32.mrf.mxu0  ;;  %v5602_v15 = vld [vmem:[#allocation3 + $0x68] sm:$0xff] }
 0x2af   :  { %v19607_v2 = vadd.f32 %v3309_v3, %v2732_v61  ;;  %v4896_v61 = vld [vmem:[#allocation3 + $0x6f] sm:$0xff] }
 0x2b0   :  { %v16474_v48 = vpop.f32.mrf.mxu1  ;;  %v16572_v28 = vpop.f32.mrf.mxu0  ;;  %16817 = vmatmul.mubr.msk.f32.vlgmr.msra.gmra.mxu1 %vm183_vm0, %v4894_v31  ;;  %16915 = vmatmul.mubr.msk.f32.vlgmr.msra.gmra.mxu0 %vm183_vm0, %v5601_v56  ;;  %v5603_v3 = vld [vmem:[#allocation3 + $0x70] sm:$0xff] }
 0x2b1   :  { %23521 = vst [vmem:[#allocation124_spill] sm:$0xff] %v19607_v2  ;;  %v19611_v34 = vadd.f32 %v16572_v28, %v16474_v48  ;;  %17011 = vmatpush3.msra.mxu1 %v19281_v53  ;;  %16819 = vmatprep.mubr.msk.f32.mxu1 %vm183_vm0, %v4895_v18  ;;  %v4897_v28 = vld [vmem:[#allocation3 + $0x87] sm:$0xff] }
 0x2b2   :  { %16917 = vmatprep.mubr.msk.f32.mxu0 %vm183_vm0, %v5602_v15  ;;  %v2742_v14 = vpop.f32.mrf.mxu1  ;;  %v3319_v7 = vpop.f32.mrf.mxu0  ;;  %v5604_v48 = vld [vmem:[#allocation3 + $0x88] sm:$0xff] }
 0x2b3   :  { %v19616_v43 = vadd.f32 %v3319_v7, %v2742_v14  ;;  %v4898_v14 = vld [vmem:[#allocation3 + $0x8f] sm:$0xff] }
 0x2b4   :  { %v16477_v2 = vpop.f32.mrf.mxu1  ;;  %v16575_v31 = vpop.f32.mrf.mxu0  ;;  %16820 = vmatmul.mubr.msk.f32.gmra.mxu1 %vm183_vm0, %v4896_v61  ;;  %16918 = vmatmul.mubr.msk.f32.gmra.mxu0 %vm183_vm0, %v5603_v3  ;;  %v5605_v7 = vld [vmem:[#allocation3 + $0x90] sm:$0xff]  ;;  %v4899_v61 = vld [vmem:[#allocation3 + $0xa7] sm:$0xff] }
 0x2b5   :  { %23522 = vst [vmem:[#allocation125_spill] sm:$0xff] %v19616_v43  ;;  %v19620_v53 = vadd.f32 %v16575_v31, %v16477_v2  ;;  %16822 = vmatprep.mubr.msk.f32.mxu1 %vm183_vm0, %v4897_v28  ;;  %16920 = vmatprep.mubr.msk.f32.mxu0 %vm183_vm0, %v5604_v48  ;;  %v5606_v3 = vld [vmem:[#allocation3 + $0xa8] sm:$0xff] }
 0x2b6   :  { %v2752_v56 = vpop.f32.mrf.mxu1  ;;  %v3329_v18 = vpop.f32.mrf.mxu0 }
 0x2b7   :  { %v19624_v15 = vadd.f32 %v3329_v18, %v2752_v56  ;;  %v4900_v56 = vld [vmem:[#allocation3 + $0xaf] sm:$0xff] }
 0x2b8   :  { %v16480_v43 = vpop.f32.mrf.mxu1  ;;  %v16578_v44 = vpop.f32.mrf.mxu0  ;;  %16823 = vmatmul.mubr.msk.f32.gmra.mxu1 %vm183_vm0, %v4898_v14  ;;  %16921 = vmatmul.mubr.msk.f32.gmra.mxu0 %vm183_vm0, %v5605_v7  ;;  %v5607_v18 = vld [vmem:[#allocation3 + $0xb0] sm:$0xff]  ;;  %v4901_v14 = vld [vmem:[#allocation3 + $0xc7] sm:$0xff] }
 0x2b9   :  { %23523 = vst [vmem:[#allocation126_spill] sm:$0xff] %v19624_v15  ;;  %v19628_v2 = vadd.f32 %v16578_v44, %v16480_v43  ;;  %16825 = vmatprep.mubr.msk.f32.mxu1 %vm183_vm0, %v4899_v61  ;;  %16923 = vmatprep.mubr.msk.f32.mxu0 %vm183_vm0, %v5606_v3  ;;  %v5608_v7 = vld [vmem:[#allocation3 + $0xc8] sm:$0xff] }
 0x2ba   :  { %v2762_v31 = vpop.f32.mrf.mxu1  ;;  %v3339_v28 = vpop.f32.mrf.mxu0 }
 0x2bb   :  { %v19632_v48 = vadd.f32 %v3339_v28, %v2762_v31  ;;  %v4902_v31 = vld [vmem:[#allocation3 + $0xcf] sm:$0xff] }
 0x2bc   :  { %v16483_v15 = vpop.f32.mrf.mxu1  ;;  %v16581_v30 = vpop.f32.mrf.mxu0  ;;  %16826 = vmatmul.mubr.msk.f32.gmra.mxu1 %vm183_vm0, %v4900_v56  ;;  %16924 = vmatmul.mubr.msk.f32.gmra.mxu0 %vm183_vm0, %v5607_v18  ;;  %v5609_v28 = vld [vmem:[#allocation3 + $0xd0] sm:$0xff]  ;;  %v4903_v56 = vld [vmem:[#allocation3 + $0xe7] sm:$0xff] }
 0x2bd   :  { %23524 = vst [vmem:[#allocation127_spill] sm:$0xff] %v19632_v48  ;;  %v19636_v44 = vadd.f32 %v16581_v30, %v16483_v15  ;;  %16828 = vmatprep.mubr.msk.f32.mxu1 %vm183_vm0, %v4901_v14  ;;  %16926 = vmatprep.mubr.msk.f32.mxu0 %vm183_vm0, %v5608_v7  ;;  %v5610_v18 = vld [vmem:[#allocation3 + $0xe8] sm:$0xff] }
 0x2be   :  { %v2772_v43 = vpop.f32.mrf.mxu1  ;;  %v3349_v61 = vpop.f32.mrf.mxu0 }
 0x2bf   :  { %v19640_v3 = vadd.f32 %v3349_v61, %v2772_v43  ;;  %v4904_v43 = vld [vmem:[#allocation3 + $0xef] sm:$0xff] }
 0x2c0   :  { %v16486_v48 = vpop.f32.mrf.mxu1  ;;  %v16584_v36 = vpop.f32.mrf.mxu0  ;;  %16829 = vmatmul.mubr.msk.f32.gmra.mxu1 %vm183_vm0, %v4902_v31  ;;  %16927 = vmatmul.mubr.msk.f32.gmra.mxu0 %vm183_vm0, %v5609_v28  ;;  %v5611_v61 = vld [vmem:[#allocation3 + $0xf0] sm:$0xff]  ;;  %v4905_v31 = vld [vmem:[#allocation3 + $0x107] sm:$0xff] }
 0x2c1   :  { %23525 = vst [vmem:[#allocation128_spill] sm:$0xff] %v19640_v3  ;;  %v19644_v30 = vadd.f32 %v16584_v36, %v16486_v48  ;;  %16831 = vmatprep.mubr.msk.f32.mxu1 %vm183_vm0, %v4903_v56  ;;  %16929 = vmatprep.mubr.msk.f32.mxu0 %vm183_vm0, %v5610_v18  ;;  %v5612_v28 = vld [vmem:[#allocation3 + $0x108] sm:$0xff] }
 0x2c2   :  { %v2782_v15 = vpop.f32.mrf.mxu1  ;;  %v3359_v14 = vpop.f32.mrf.mxu0 }
 0x2c3   :  { %v19648_v7 = vadd.f32 %v3359_v14, %v2782_v15  ;;  %v4906_v15 = vld [vmem:[#allocation3 + $0x10f] sm:$0xff] }
 0x2c4   :  { %v16489_v3 = vpop.f32.mrf.mxu1  ;;  %v16587_v26 = vpop.f32.mrf.mxu0  ;;  %16832 = vmatmul.mubr.msk.f32.gmra.mxu1 %vm183_vm0, %v4904_v43  ;;  %16930 = vmatmul.mubr.msk.f32.gmra.mxu0 %vm183_vm0, %v5611_v61  ;;  %v5613_v14 = vld [vmem:[#allocation3 + $0x110] sm:$0xff]  ;;  %v4907_v43 = vld [vmem:[#allocation3 + $0x127] sm:$0xff] }
 0x2c5   :  { %23526 = vst [vmem:[#allocation129_spill] sm:$0xff] %v19648_v7  ;;  %v19652_v36 = vadd.f32 %v16587_v26, %v16489_v3  ;;  %16834 = vmatprep.mubr.msk.f32.mxu1 %vm183_vm0, %v4905_v31  ;;  %16932 = vmatprep.mubr.msk.f32.mxu0 %vm183_vm0, %v5612_v28  ;;  %v5614_v61 = vld [vmem:[#allocation3 + $0x128] sm:$0xff] }
 0x2c6   :  { %v2792_v48 = vpop.f32.mrf.mxu1  ;;  %v3369_v56 = vpop.f32.mrf.mxu0 }
 0x2c7   :  { %v19656_v18 = vadd.f32 %v3369_v56, %v2792_v48  ;;  %v4908_v48 = vld [vmem:[#allocation3 + $0x12f] sm:$0xff] }
 0x2c8   :  { %v16492_v7 = vpop.f32.mrf.mxu1  ;;  %v16590_v5 = vpop.f32.mrf.mxu0  ;;  %16835 = vmatmul.mubr.msk.f32.gmra.mxu1 %vm183_vm0, %v4906_v15  ;;  %16933 = vmatmul.mubr.msk.f32.gmra.mxu0 %vm183_vm0, %v5613_v14  ;;  %v5615_v56 = vld [vmem:[#allocation3 + $0x130] sm:$0xff]  ;;  %v4909_v15 = vld [vmem:[#allocation3 + $0x147] sm:$0xff] }
 0x2c9   :  { %23527 = vst [vmem:[#allocation130_spill] sm:$0xff] %v19656_v18  ;;  %v19660_v26 = vadd.f32 %v16590_v5, %v16492_v7  ;;  %16837 = vmatprep.mubr.msk.f32.mxu1 %vm183_vm0, %v4907_v43  ;;  %16935 = vmatprep.mubr.msk.f32.mxu0 %vm183_vm0, %v5614_v61  ;;  %v5616_v14 = vld [vmem:[#allocation3 + $0x148] sm:$0xff] }
 0x2ca   :  { %v2802_v3 = vpop.f32.mrf.mxu1  ;;  %v3379_v31 = vpop.f32.mrf.mxu0 }
 0x2cb   :  { %v19664_v28 = vadd.f32 %v3379_v31, %v2802_v3  ;;  %v4910_v3 = vld [vmem:[#allocation3 + $0x14f] sm:$0xff] }
 0x2cc   :  { %v16495_v18 = vpop.f32.mrf.mxu1  ;;  %v16593_v1 = vpop.f32.mrf.mxu0  ;;  %16838 = vmatmul.mubr.msk.f32.gmra.mxu1 %vm183_vm0, %v4908_v48  ;;  %16936 = vmatmul.mubr.msk.f32.gmra.mxu0 %vm183_vm0, %v5615_v56  ;;  %v5617_v31 = vld [vmem:[#allocation3 + $0x150] sm:$0xff]  ;;  %v4911_v48 = vld [vmem:[#allocation3 + $0x167] sm:$0xff] }
 0x2cd   :  { %23528 = vst [vmem:[#allocation131_spill] sm:$0xff] %v19664_v28  ;;  %v19668_v5 = vadd.f32 %v16593_v1, %v16495_v18  ;;  %16840 = vmatprep.mubr.msk.f32.mxu1 %vm183_vm0, %v4909_v15  ;;  %16938 = vmatprep.mubr.msk.f32.mxu0 %vm183_vm0, %v5616_v14  ;;  %v5618_v56 = vld [vmem:[#allocation3 + $0x168] sm:$0xff] }
 0x2ce   :  { %v2812_v7 = vpop.f32.mrf.mxu1  ;;  %v3389_v43 = vpop.f32.mrf.mxu0 }
 0x2cf   :  { %23529 = vst [vmem:[#allocation132_spill] sm:$0xff] %v19668_v5  ;;  %v19672_v61 = vadd.f32 %v3389_v43, %v2812_v7  ;;  %v4912_v7 = vld [vmem:[#allocation3 + $0x16f] sm:$0xff] }
 0x2d0   :  { %v16498_v28 = vpop.f32.mrf.mxu1  ;;  %v16596_v32 = vpop.f32.mrf.mxu0  ;;  %16841 = vmatmul.mubr.msk.f32.gmra.mxu1 %vm183_vm0, %v4910_v3  ;;  %16939 = vmatmul.mubr.msk.f32.gmra.mxu0 %vm183_vm0, %v5617_v31  ;;  %v5619_v43 = vld [vmem:[#allocation3 + $0x170] sm:$0xff]  ;;  %v4913_v3 = vld [vmem:[#allocation3 + $0x187] sm:$0xff] }
 0x2d1   :  { %23530 = vst [vmem:[#allocation133_spill] sm:$0xff] %v19672_v61  ;;  %v19676_v1 = vadd.f32 %v16596_v32, %v16498_v28  ;;  %16843 = vmatprep.mubr.msk.f32.mxu1 %vm183_vm0, %v4911_v48  ;;  %16941 = vmatprep.mubr.msk.f32.mxu0 %vm183_vm0, %v5618_v56  ;;  %v5620_v31 = vld [vmem:[#allocation3 + $0x188] sm:$0xff] }
 0x2d2   :  { %v2822_v18 = vpop.f32.mrf.mxu1  ;;  %v3399_v15 = vpop.f32.mrf.mxu0 }
 0x2d3   :  { %23531 = vst [vmem:[#allocation134_spill] sm:$0xff] %v19676_v1  ;;  %v19680_v14 = vadd.f32 %v3399_v15, %v2822_v18  ;;  %v4914_v18 = vld [vmem:[#allocation3 + $0x18f] sm:$0xff] }
 0x2d4   :  { %v16501_v61 = vpop.f32.mrf.mxu1  ;;  %v16599_v5 = vpop.f32.mrf.mxu0  ;;  %16844 = vmatmul.mubr.msk.f32.gmra.mxu1 %vm183_vm0, %v4912_v7  ;;  %16942 = vmatmul.mubr.msk.f32.gmra.mxu0 %vm183_vm0, %v5619_v43  ;;  %v5621_v15 = vld [vmem:[#allocation3 + $0x190] sm:$0xff]  ;;  %v4915_v7 = vld [vmem:[#allocation3 + $0x1a7] sm:$0xff] }
 0x2d5   :  { %23532 = vst [vmem:[#allocation135_spill] sm:$0xff] %v19680_v14  ;;  %v19684_v32 = vadd.f32 %v16599_v5, %v16501_v61  ;;  %16846 = vmatprep.mubr.msk.f32.mxu1 %vm183_vm0, %v4913_v3  ;;  %16944 = vmatprep.mubr.msk.f32.mxu0 %vm183_vm0, %v5620_v31  ;;  %v5622_v43 = vld [vmem:[#allocation3 + $0x1a8] sm:$0xff] }
 0x2d6   :  { %v2832_v28 = vpop.f32.mrf.mxu1  ;;  %v3409_v48 = vpop.f32.mrf.mxu0 }
 0x2d7   :  { %23533 = vst [vmem:[#allocation136_spill] sm:$0xff] %v19684_v32  ;;  %v19688_v56 = vadd.f32 %v3409_v48, %v2832_v28  ;;  %v4916_v28 = vld [vmem:[#allocation3 + $0x1af] sm:$0xff] }
 0x2d8   :  { %v16504_v14 = vpop.f32.mrf.mxu1  ;;  %v16602_v1 = vpop.f32.mrf.mxu0  ;;  %16847 = vmatmul.mubr.msk.f32.gmra.mxu1 %vm183_vm0, %v4914_v18  ;;  %16945 = vmatmul.mubr.msk.f32.gmra.mxu0 %vm183_vm0, %v5621_v15  ;;  %v5623_v48 = vld [vmem:[#allocation3 + $0x1b0] sm:$0xff]  ;;  %v4917_v18 = vld [vmem:[#allocation3 + $0x1c7] sm:$0xff] }
 0x2d9   :  { %23534 = vst [vmem:[#allocation137_spill] sm:$0xff] %v19688_v56  ;;  %v19692_v5 = vadd.f32 %v16602_v1, %v16504_v14  ;;  %16849 = vmatprep.mubr.msk.f32.mxu1 %vm183_vm0, %v4915_v7  ;;  %16947 = vmatprep.mubr.msk.f32.mxu0 %vm183_vm0, %v5622_v43  ;;  %v5624_v15 = vld [vmem:[#allocation3 + $0x1c8] sm:$0xff] }
 0x2da   :  { %v2842_v61 = vpop.f32.mrf.mxu1  ;;  %v3419_v3 = vpop.f32.mrf.mxu0 }
 0x2db   :  { %23535 = vst [vmem:[#allocation138_spill] sm:$0xff] %v19692_v5  ;;  %v19696_v31 = vadd.f32 %v3419_v3, %v2842_v61  ;;  %v4918_v61 = vld [vmem:[#allocation3 + $0x1cf] sm:$0xff] }
 0x2dc   :  { %v16507_v56 = vpop.f32.mrf.mxu1  ;;  %v16605_v32 = vpop.f32.mrf.mxu0  ;;  %16850 = vmatmul.mubr.msk.f32.gmra.mxu1 %vm183_vm0, %v4916_v28  ;;  %16948 = vmatmul.mubr.msk.f32.gmra.mxu0 %vm183_vm0, %v5623_v48  ;;  %v5625_v3 = vld [vmem:[#allocation3 + $0x1d0] sm:$0xff]  ;;  %v4919_v28 = vld [vmem:[#allocation3 + $0x1e7] sm:$0xff] }
 0x2dd   :  { %23536 = vst [vmem:[#allocation139_spill] sm:$0xff] %v19696_v31  ;;  %v19700_v1 = vadd.f32 %v16605_v32, %v16507_v56  ;;  %16852 = vmatprep.mubr.msk.f32.mxu1 %vm183_vm0, %v4917_v18  ;;  %16950 = vmatprep.mubr.msk.f32.mxu0 %vm183_vm0, %v5624_v15  ;;  %v5626_v48 = vld [vmem:[#allocation3 + $0x1e8] sm:$0xff] }
 0x2de   :  { %v2852_v14 = vpop.f32.mrf.mxu1  ;;  %v3429_v7 = vpop.f32.mrf.mxu0 }
 0x2df   :  { %23537 = vst [vmem:[#allocation140_spill] sm:$0xff] %v19700_v1  ;;  %v19704_v43 = vadd.f32 %v3429_v7, %v2852_v14  ;;  %v4920_v14 = vld [vmem:[#allocation3 + $0x1ef] sm:$0xff] }
 0x2e0   :  { %v16510_v31 = vpop.f32.mrf.mxu1  ;;  %v16608_v5 = vpop.f32.mrf.mxu0  ;;  %16853 = vmatmul.mubr.msk.f32.gmra.mxu1 %vm183_vm0, %v4918_v61  ;;  %16951 = vmatmul.mubr.msk.f32.gmra.mxu0 %vm183_vm0, %v5625_v3  ;;  %v5627_v7 = vld [vmem:[#allocation3 + $0x1f0] sm:$0xff]  ;;  %v4921_v61 = vld [vmem:[#allocation3 + $0x207] sm:$0xff] }
 0x2e1   :  { %23538 = vst [vmem:[#allocation141_spill] sm:$0xff] %v19704_v43  ;;  %v19708_v32 = vadd.f32 %v16608_v5, %v16510_v31  ;;  %16855 = vmatprep.mubr.msk.f32.mxu1 %vm183_vm0, %v4919_v28  ;;  %16953 = vmatprep.mubr.msk.f32.mxu0 %vm183_vm0, %v5626_v48  ;;  %v4923_v28 = vld [vmem:[#allocation3 + $0x227] sm:$0xff] }
 0x2e2   :  { %v2862_v56 = vpop.f32.mrf.mxu1  ;;  %v3439_v18 = vpop.f32.mrf.mxu0  ;;  %v5630_v48 = vld [vmem:[#allocation3 + $0x228] sm:$0xff] }
 0x2e3   :  { %23539 = vst [vmem:[#allocation142_spill] sm:$0xff] %v19708_v32  ;;  %v19712_v15 = vadd.f32 %v3439_v18, %v2862_v56  ;;  %v4922_v18 = vld [vmem:[#allocation3 + $0x20f] sm:$0xff] }
 0x2e4   :  { %v16513_v43 = vpop.f32.mrf.mxu1  ;;  %v16611_v1 = vpop.f32.mrf.mxu0  ;;  %16856 = vmatmul.mubr.msk.f32.gmra.mxu1 %vm183_vm0, %v4920_v14  ;;  %16954 = vmatmul.mubr.msk.f32.gmra.mxu0 %vm183_vm0, %v5627_v7 }
 0x2e5   :  { %23540 = vst [vmem:[#allocation143_spill] sm:$0xff] %v19712_v15  ;;  %v19716_v3 = vadd.f32 %v16611_v1, %v16513_v43  ;;  %16858 = vmatprep.mubr.msk.f32.mxu1 %vm183_vm0, %v4921_v61  ;;  %16956 = vmatprep.mubr.msk.f32.mxu0 %vm183_vm0, %v19425_v38  ;;  %v4924_v38 = vld [vmem:[#allocation3 + $0x22f] sm:$0xff] }
 0x2e6   :  { %v2872_v5 = vpop.f32.mrf.mxu1  ;;  %v3449_v31 = vpop.f32.mrf.mxu0  ;;  %v5631_v43 = vld [vmem:[#allocation3 + $0x230] sm:$0xff] }
 0x2e7   :  { %v19721_v56 = vadd.f32 %v3449_v31, %v2872_v5 }
 0x2e8   :  { %v16516_v15 = vpop.f32.mrf.mxu1  ;;  %v16614_v32 = vpop.f32.mrf.mxu0  ;;  %16859 = vmatmul.mubr.msk.f32.gmra.mxu1 %vm183_vm0, %v4922_v18  ;;  %16957 = vmatmul.mubr.msk.f32.gmra.mxu0 %vm183_vm0, %v19434_v6  ;;  %v4925_v18 = vld [vmem:[#allocation3 + $0x287] sm:$0xff] }
 0x2e9   :  { %23541 = vst [vmem:[#allocation144_spill] sm:$0xff] %v19721_v56  ;;  %v19726_v1 = vadd.f32 %v16614_v32, %v16516_v15  ;;  %16861 = vmatprep.mubr.msk.f32.mxu1 %vm183_vm0, %v4923_v28  ;;  %16959 = vmatprep.mubr.msk.f32.mxu0 %vm183_vm0, %v5630_v48  ;;  %v5632_v6 = vld [vmem:[#allocation3 + $0x288] sm:$0xff] }
 0x2ea   :  { %v2882_v14 = vpop.f32.mrf.mxu1  ;;  %v3459_v7 = vpop.f32.mrf.mxu0 }
 0x2eb   :  { %23542 = vst [vmem:[#allocation145_spill] sm:$0xff] %v19726_v1  ;;  %v19730_v61 = vadd.f32 %v3459_v7, %v2882_v14  ;;  %v4926_v14 = vld [vmem:[#allocation3 + $0x28f] sm:$0xff] }
 0x2ec   :  { %v16519_v5 = vpop.f32.mrf.mxu1  ;;  %v16617_v31 = vpop.f32.mrf.mxu0  ;;  %16862 = vmatmul.mubr.msk.f32.gmra.mxu1 %vm183_vm0, %v4924_v38  ;;  %16960 = vmatmul.mubr.msk.f32.gmra.mxu0 %vm183_vm0, %v5631_v43  ;;  %v5633_v7 = vld [vmem:[#allocation3 + $0x290] sm:$0xff]  ;;  %v4927_v38 = vld [vmem:[#allocation3 + $0x2a7] sm:$0xff] }
 0x2ed   :  { %23543 = vst [vmem:[#allocation146_spill] sm:$0xff] %v19730_v61  ;;  %v19734_v32 = vadd.f32 %v16617_v31, %v16519_v5  ;;  %16864 = vmatprep.mubr.msk.f32.mxu1 %vm183_vm0, %v4925_v18  ;;  %16962 = vmatprep.mubr.msk.f32.mxu0 %vm183_vm0, %v5632_v6  ;;  %v5634_v43 = vld [vmem:[#allocation3 + $0x2a8] sm:$0xff]  ;;  %v23546_v5 = vld [vmem:[#allocation74_spill] sm:$0xff] }
 0x2ee   :  { %v2892_v15 = vpop.f32.mrf.mxu1  ;;  %v3469_v28 = vpop.f32.mrf.mxu0 }
 0x2ef   :  { %23544 = vst [vmem:[#allocation147_spill] sm:$0xff] %v19734_v32  ;;  %v19738_v48 = vadd.f32 %v3469_v28, %v2892_v15  ;;  %v23548_v28 = vld [vmem:[#allocation75_spill] sm:$0xff]  ;;  %v5635_v32 = vld [vmem:[#allocation3 + $0x2b0] sm:$0xff] }
 0x2f0   :  { %v16622_v61 = vpop.f32.mrf.mxu1  ;;  %v16720_v56 = vpop.f32.mrf.mxu0  ;;  %16865 = vmatmul.mubr.msk.f32.gmra.mxu1 %vm183_vm0, %v4926_v14  ;;  %16963 = vmatmul.mubr.msk.f32.gmra.mxu0 %vm183_vm0, %v5633_v7  ;;  %v4928_v7 = vld [vmem:[#allocation3 + $0x2af] sm:$0xff] }
 0x2f1   :  { %23545 = vst [vmem:[#allocation148_spill] sm:$0xff] %v19738_v48  ;;  %v19743_v31 = vadd.f32 %v16622_v61, %v23546_v5  ;;  %v19746_v18 = vadd.f32 %v16720_v56, %v19449_v60  ;;  %16867 = vmatprep.mubr.msk.f32.mxu1 %vm183_vm0, %v4927_v38  ;;  %16965 = vmatprep.mubr.msk.f32.mxu0 %vm183_vm0, %v5634_v43  ;;  %v4929_v60 = vld [vmem:[#allocation3 + $0x2c7] sm:$0xff] }
 0x2f2   :  { %v3802_v6 = vpop.f32.mrf.mxu1  ;;  %v4509_v15 = vpop.f32.mrf.mxu0  ;;  %v5636_v56 = vld [vmem:[#allocation3 + $0x2c8] sm:$0xff]  ;;  %v23550_v38 = vld [vmem:[#allocation76_spill] sm:$0xff] }
 0x2f3   :  { %23547 = vst [vmem:[#allocation74_spill] sm:$0xff] %v19746_v18  ;;  %v19751_v48 = vadd.f32 %v3802_v6, %v23548_v28  ;;  %v19754_v14 = vadd.f32 %v4509_v15, %v19454_v42  ;;  %v23552_v15 = vld [vmem:[#allocation77_spill] sm:$0xff] }
 0x2f4   :  { %v16625_v1 = vpop.f32.mrf.mxu1  ;;  %v16723_v61 = vpop.f32.mrf.mxu0  ;;  %16868 = vmatmul.mubr.msk.f32.gmra.mxu1 %vm183_vm0, %v4928_v7  ;;  %16966 = vmatmul.mubr.msk.f32.gmra.mxu0 %vm183_vm0, %v5635_v32  ;;  %v4930_v32 = vld [vmem:[#allocation3 + $0x2cf] sm:$0xff] }
 0x2f5   :  { %23549 = vst [vmem:[#allocation75_spill] sm:$0xff] %v19754_v14  ;;  %v19759_v43 = vadd.f32 %v16625_v1, %v23550_v38  ;;  %v19762_v5 = vadd.f32 %v16723_v61, %v19459_v62  ;;  %16870 = vmatprep.mubr.msk.f32.mxu1 %vm183_vm0, %v4929_v60  ;;  %16968 = vmatprep.mubr.msk.f32.mxu0 %vm183_vm0, %v5636_v56  ;;  %v5637_v14 = vld [vmem:[#allocation3 + $0x2d0] sm:$0xff]  ;;  %v4931_v62 = vld [vmem:[#allocation3 + $0x2e7] sm:$0xff] }
 0x2f6   :  { %v3812_v42 = vpop.f32.mrf.mxu1  ;;  %v4519_v6 = vpop.f32.mrf.mxu0  ;;  %v5638_v61 = vld [vmem:[#allocation3 + $0x2e8] sm:$0xff]  ;;  %v23554_v60 = vld [vmem:[#allocation78_spill] sm:$0xff] }
 0x2f7   :  { %23551 = vst [vmem:[#allocation76_spill] sm:$0xff] %v19762_v5  ;;  %v19767_v28 = vadd.f32 %v3812_v42, %v23552_v15  ;;  %v19770_v7 = vadd.f32 %v4519_v6, %v19464_v4  ;;  %v23556_v6 = vld [vmem:[#allocation79_spill] sm:$0xff] }
 0x2f8   :  { %v16628_v18 = vpop.f32.mrf.mxu1  ;;  %v16726_v1 = vpop.f32.mrf.mxu0  ;;  %16871 = vmatmul.mubr.msk.f32.gmra.mxu1 %vm183_vm0, %v4930_v32  ;;  %16969 = vmatmul.mubr.msk.f32.gmra.mxu0 %vm183_vm0, %v5637_v14  ;;  %v4932_v14 = vld [vmem:[#allocation3 + $0x2ef] sm:$0xff] }
 0x2f9   :  { %23553 = vst [vmem:[#allocation77_spill] sm:$0xff] %v19770_v7  ;;  %v19775_v56 = vadd.f32 %v16628_v18, %v23554_v60  ;;  %v19778_v38 = vadd.f32 %v16726_v1, %v19469_v50  ;;  %16873 = vmatprep.mubr.msk.f32.mxu1 %vm183_vm0, %v4931_v62  ;;  %16971 = vmatprep.mubr.msk.f32.mxu0 %vm183_vm0, %v5638_v61  ;;  %v5639_v7 = vld [vmem:[#allocation3 + $0x2f0] sm:$0xff]  ;;  %v4933_v50 = vld [vmem:[#allocation3 + $0x307] sm:$0xff] }
 0x2fa   :  { %v3822_v4 = vpop.f32.mrf.mxu1  ;;  %v4529_v42 = vpop.f32.mrf.mxu0  ;;  %v5640_v1 = vld [vmem:[#allocation3 + $0x308] sm:$0xff]  ;;  %v23558_v62 = vld [vmem:[#allocation80_spill] sm:$0xff] }
 0x2fb   :  { %23555 = vst [vmem:[#allocation78_spill] sm:$0xff] %v19778_v38  ;;  %v19783_v15 = vadd.f32 %v3822_v4, %v23556_v6  ;;  %v19786_v32 = vadd.f32 %v4529_v42, %v19474_v40  ;;  %v14307_v42 = vld [vmem:[%s23352_s3 + $0x10] sm:$0xff]  ;;  %v23560_v6 = vld [vmem:[#allocation81_spill] sm:$0xff] }
 0x2fc   :  { %v16631_v5 = vpop.f32.mrf.mxu1  ;;  %v16729_v18 = vpop.f32.mrf.mxu0  ;;  %16874 = vmatmul.mubr.msk.f32.gmra.mxu1 %vm183_vm0, %v4932_v14  ;;  %16972 = vmatmul.mubr.msk.f32.gmra.mxu0 %vm183_vm0, %v5639_v7  ;;  %v5643_v38 = vld [vmem:[#allocation3 + $0x330] sm:$0xff] }
 0x2fd   :  { %23557 = vst [vmem:[#allocation79_spill] sm:$0xff] %v19786_v32  ;;  %v19791_v61 = vadd.f32 %v16631_v5, %v23558_v62  ;;  %v19794_v60 = vadd.f32 %v16729_v18, %v19479_v46  ;;  %16876 = vmatprep.mubr.msk.f32.mxu1 %vm183_vm0, %v4933_v50  ;;  %16974 = vmatprep.mubr.msk.f32.mxu0 %vm183_vm0, %v5640_v1  ;;  %v4934_v5 = vld [vmem:[#allocation3 + $0x30f] sm:$0xff]  ;;  %v4935_v50 = vld [vmem:[#allocation3 + $0x327] sm:$0xff] }
 0x2fe   :  { %v3832_v40 = vpop.f32.mrf.mxu1  ;;  %v4539_v4 = vpop.f32.mrf.mxu0  ;;  %v5641_v62 = vld [vmem:[#allocation3 + $0x310] sm:$0xff]  ;;  %17108 = vmatprep.subr.mxu0 %v14307_v42  ;;  %v5642_v1 = vld [vmem:[#allocation3 + $0x328] sm:$0xff] }
 0x2ff   :  { %23559 = vst [vmem:[#allocation80_spill] sm:$0xff] %v19794_v60  ;;  %v19802_v7 = vadd.f32 %v3832_v40, %v23560_v6  ;;  %v19805_v14 = vadd.f32 %v4539_v4, %v19484_v33  ;;  %v23562_v60 = vld [vmem:[#allocation82_spill] sm:$0xff]  ;;  %17109 = vmatpush3.msra.mxu0 %v14307_v42  ;;  %v23564_v6 = vld [vmem:[#allocation83_spill] sm:$0xff] }
 0x300   :  { %v16634_v46 = vpop.f32.mrf.mxu1  ;;  %v16732_v18 = vpop.f32.mrf.mxu0  ;;  %16877 = vmatmul.mubr.msk.f32.gmra.mxu1 %vm183_vm0, %v4934_v5  ;;  %16975 = vmatmul.mubr.msk.f32.gmra.mxu0 %vm183_vm0, %v5641_v62  ;;  %v4936_v62 = vld [vmem:[#allocation3 + $0x32f] sm:$0xff] }
 0x301   :  { %23561 = vst [vmem:[#allocation81_spill] sm:$0xff] %v19805_v14  ;;  %v19810_v32 = vadd.f32 %v16634_v46, %v23562_v60  ;;  %v19813_v40 = vadd.f32 %v16732_v18, %v19489_v12  ;;  %16879 = vmatprep.mubr.msk.f32.mxu1 %vm183_vm0, %v4935_v50  ;;  %16977 = vmatprep.mubr.msk.f32.mxu0 %vm183_vm0, %v5642_v1  ;;  %v4937_v12 = vld [vmem:[#allocation3 + $0x347] sm:$0xff] }
 0x302   :  { %v3842_v33 = vpop.f32.mrf.mxu1  ;;  %v4549_v4 = vpop.f32.mrf.mxu0  ;;  %v5644_v18 = vld [vmem:[#allocation3 + $0x348] sm:$0xff]  ;;  %v23566_v50 = vld [vmem:[#allocation84_spill] sm:$0xff] }
 0x303   :  { %23563 = vst [vmem:[#allocation82_spill] sm:$0xff] %v19813_v40  ;;  %v19818_v14 = vadd.f32 %v3842_v33, %v23564_v6  ;;  %v19821_v5 = vadd.f32 %v4549_v4, %v19494_v58  ;;  %v23568_v4 = vld [vmem:[#allocation85_spill] sm:$0xff] }
 0x304   :  { %v16637_v60 = vpop.f32.mrf.mxu1  ;;  %v16735_v46 = vpop.f32.mrf.mxu0  ;;  %16880 = vmatmul.mubr.msk.f32.gmra.mxu1 %vm183_vm0, %v4936_v62  ;;  %16978 = vmatmul.mubr.msk.f32.gmra.mxu0 %vm183_vm0, %v5643_v38  ;;  %v4938_v38 = vld [vmem:[#allocation3 + $0x34f] sm:$0xff] }
 0x305   :  { %23565 = vst [vmem:[#allocation83_spill] sm:$0xff] %v19821_v5  ;;  %v19826_v1 = vadd.f32 %v16637_v60, %v23566_v50  ;;  %v19829_v42 = vadd.f32 %v16735_v46, %v19499_v8  ;;  %16882 = vmatprep.mubr.msk.f32.mxu1 %vm183_vm0, %v4937_v12  ;;  %16980 = vmatprep.mubr.msk.f32.mxu0 %vm183_vm0, %v5644_v18  ;;  %v5645_v5 = vld [vmem:[#allocation3 + $0x350] sm:$0xff]  ;;  %v4939_v8 = vld [vmem:[#allocation3 + $0x367] sm:$0xff] }
 0x306   :  { %v3852_v58 = vpop.f32.mrf.mxu1  ;;  %v4559_v33 = vpop.f32.mrf.mxu0  ;;  %v5646_v46 = vld [vmem:[#allocation3 + $0x368] sm:$0xff]  ;;  %v23570_v12 = vld [vmem:[#allocation86_spill] sm:$0xff] }
 0x307   :  { %23567 = vst [vmem:[#allocation84_spill] sm:$0xff] %v19829_v42  ;;  %v19834_v6 = vadd.f32 %v3852_v58, %v23568_v4  ;;  %v19837_v62 = vadd.f32 %v4559_v33, %v19504_v54  ;;  %v23572_v33 = vld [vmem:[#allocation87_spill] sm:$0xff] }
 0x308   :  { %v16640_v40 = vpop.f32.mrf.mxu1  ;;  %v16738_v60 = vpop.f32.mrf.mxu0  ;;  %16883 = vmatmul.mubr.msk.f32.gmra.mxu1 %vm183_vm0, %v4938_v38  ;;  %16981 = vmatmul.mubr.msk.f32.gmra.mxu0 %vm183_vm0, %v5645_v5  ;;  %v4940_v5 = vld [vmem:[#allocation3 + $0x36f] sm:$0xff] }
 0x309   :  { %23569 = vst [vmem:[#allocation85_spill] sm:$0xff] %v19837_v62  ;;  %v19842_v18 = vadd.f32 %v16640_v40, %v23570_v12  ;;  %v19845_v50 = vadd.f32 %v16738_v60, %v19509_v16  ;;  %16885 = vmatprep.mubr.msk.f32.mxu1 %vm183_vm0, %v4939_v8  ;;  %16983 = vmatprep.mubr.msk.f32.mxu0 %vm183_vm0, %v5646_v46  ;;  %v5647_v62 = vld [vmem:[#allocation3 + $0x370] sm:$0xff]  ;;  %v4941_v16 = vld [vmem:[#allocation3 + $0x387] sm:$0xff] }
 0x30a   :  { %v3862_v54 = vpop.f32.mrf.mxu1  ;;  %v4569_v58 = vpop.f32.mrf.mxu0  ;;  %v5648_v60 = vld [vmem:[#allocation3 + $0x388] sm:$0xff]  ;;  %v23574_v8 = vld [vmem:[#allocation88_spill] sm:$0xff] }
 0x30b   :  { %23571 = vst [vmem:[#allocation86_spill] sm:$0xff] %v19845_v50  ;;  %v19850_v4 = vadd.f32 %v3862_v54, %v23572_v33  ;;  %v19853_v38 = vadd.f32 %v4569_v58, %v19514_v24  ;;  %v23576_v58 = vld [vmem:[#allocation89_spill] sm:$0xff] }
 0x30c   :  { %v16643_v42 = vpop.f32.mrf.mxu1  ;;  %v16741_v40 = vpop.f32.mrf.mxu0  ;;  %16886 = vmatmul.mubr.msk.f32.gmra.mxu1 %vm183_vm0, %v4940_v5  ;;  %16984 = vmatmul.mubr.msk.f32.gmra.mxu0 %vm183_vm0, %v5647_v62  ;;  %v4942_v62 = vld [vmem:[#allocation3 + $0x38f] sm:$0xff] }
 0x30d   :  { %23573 = vst [vmem:[#allocation87_spill] sm:$0xff] %v19853_v38  ;;  %v19858_v46 = vadd.f32 %v16643_v42, %v23574_v8  ;;  %v19861_v12 = vadd.f32 %v16741_v40, %v19519_v10  ;;  %16888 = vmatprep.mubr.msk.f32.mxu1 %vm183_vm0, %v4941_v16  ;;  %16986 = vmatprep.mubr.msk.f32.mxu0 %vm183_vm0, %v5648_v60  ;;  %v5649_v38 = vld [vmem:[#allocation3 + $0x390] sm:$0xff]  ;;  %v4943_v10 = vld [vmem:[#allocation3 + $0x3a7] sm:$0xff] }
 0x30e   :  { %v3872_v24 = vpop.f32.mrf.mxu1  ;;  %v4579_v54 = vpop.f32.mrf.mxu0  ;;  %v5650_v40 = vld [vmem:[#allocation3 + $0x3a8] sm:$0xff]  ;;  %v23578_v16 = vld [vmem:[#allocation90_spill] sm:$0xff] }
 0x30f   :  { %23575 = vst [vmem:[#allocation88_spill] sm:$0xff] %v19861_v12  ;;  %v19866_v33 = vadd.f32 %v3872_v24, %v23576_v58  ;;  %v19869_v5 = vadd.f32 %v4579_v54, %v19524_v52  ;;  %v23581_v54 = vld [vmem:[#allocation91_spill] sm:$0xff] }
 0x310   :  { %v16646_v50 = vpop.f32.mrf.mxu1  ;;  %v16744_v42 = vpop.f32.mrf.mxu0  ;;  %16889 = vmatmul.mubr.msk.f32.gmra.mxu1 %vm183_vm0, %v4942_v62  ;;  %16987 = vmatmul.mubr.msk.f32.gmra.mxu0 %vm183_vm0, %v5649_v38  ;;  %v4944_v62 = vld [vmem:[#allocation3 + $0x3af] sm:$0xff] }
 0x311   :  { %23577 = vst [vmem:[#allocation89_spill] sm:$0xff] %v19869_v5  ;;  %v19874_v60 = vadd.f32 %v16646_v50, %v23578_v16  ;;  %v19877_v8 = vadd.f32 %v16744_v42, %v19529_v0  ;;  %16891 = vmatprep.mubr.msk.f32.mxu1 %vm183_vm0, %v4943_v10  ;;  %16989 = vmatprep.mubr.msk.f32.mxu0 %vm183_vm0, %v5650_v40  ;;  %v5651_v38 = vld [vmem:[#allocation3 + $0x3b0] sm:$0xff]  ;;  %v4945_v0 = vld [vmem:[#allocation3 + $0x3c7] sm:$0xff] }
 0x312   :  { %v3882_v52 = vpop.f32.mrf.mxu1  ;;  %v19881_v24 = vpop.f32.mrf.mxu0  ;;  %v5652_v50 = vld [vmem:[#allocation3 + $0x3c8] sm:$0xff]  ;;  %v23583_v42 = vld [vmem:[#allocation92_spill] sm:$0xff] }
 0x313   :  { %23579 = vst [vmem:[#allocation90_spill] sm:$0xff] %v19877_v8  ;;  %23580 = vst [vmem:[#allocation149_spill] sm:$0xff] %v19881_v24  ;;  %v19884_v58 = vadd.f32 %v3882_v52, %v23581_v54  ;;  %v23586_v54 = vld [vmem:[#allocation93_spill] sm:$0xff] }
 0x314   :  { %v16649_v5 = vpop.f32.mrf.mxu1  ;;  %v16747_v12 = vpop.f32.mrf.mxu0  ;;  %16892 = vmatmul.mubr.msk.f32.gmra.mxu1 %vm183_vm0, %v4944_v62  ;;  %16990 = vmatmul.mubr.msk.f32.gmra.mxu0 %vm183_vm0, %v5651_v38  ;;  %v4946_v62 = vld [vmem:[#allocation3 + $0x3cf] sm:$0xff] }
 0x315   :  { %23582 = vst [vmem:[#allocation91_spill] sm:$0xff] %v19884_v58  ;;  %v19889_v10 = vadd.f32 %v16649_v5, %v23583_v42  ;;  %v19892_v40 = vadd.f32 %v16747_v12, %v19539_v27  ;;  %16894 = vmatprep.mubr.msk.f32.mxu1 %vm183_vm0, %v4945_v0  ;;  %16992 = vmatprep.mubr.msk.f32.mxu0 %vm183_vm0, %v5652_v50  ;;  %v5653_v38 = vld [vmem:[#allocation3 + $0x3d0] sm:$0xff]  ;;  %v4947_v27 = vld [vmem:[#allocation3 + $0x3e7] sm:$0xff]  ;;  %v23588_v5 = vld [vmem:[#allocation95_spill] sm:$0xff] }
 0x316   :  { %v3892_v16 = vpop.f32.mrf.mxu1  ;;  %v19896_v52 = vpop.f32.mrf.mxu0  ;;  %v5654_v12 = vld [vmem:[#allocation3 + $0x3e8] sm:$0xff] }
 0x317   :  { %23584 = vst [vmem:[#allocation92_spill] sm:$0xff] %v19892_v40  ;;  %23585 = vst [vmem:[#allocation150_spill] sm:$0xff] %v19896_v52  ;;  %v19899_v8 = vadd.f32 %v3892_v16, %v23586_v54  ;;  %v23591_v54 = vld [vmem:[#allocation96_spill] sm:$0xff] }
 0x318   :  { %v16652_v24 = vpop.f32.mrf.mxu1  ;;  %v16750_v58 = vpop.f32.mrf.mxu0  ;;  %16895 = vmatmul.mubr.msk.f32.gmra.mxu1 %vm183_vm0, %v4946_v62  ;;  %16993 = vmatmul.mubr.msk.f32.gmra.mxu0 %vm183_vm0, %v5653_v38  ;;  %v4948_v62 = vld [vmem:[#allocation3 + $0x3ef] sm:$0xff] }
 0x319   :  { %23587 = vst [vmem:[#allocation93_spill] sm:$0xff] %v19899_v8  ;;  %v19904_v0 = vadd.f32 %v16652_v24, %v23588_v5  ;;  %v19907_v50 = vadd.f32 %v16750_v58, %v19549_v37  ;;  %16897 = vmatprep.mubr.msk.f32.mxu1 %vm183_vm0, %v4947_v27  ;;  %16995 = vmatprep.mubr.msk.f32.mxu0 %vm183_vm0, %v5654_v12  ;;  %v5655_v38 = vld [vmem:[#allocation3 + $0x3f0] sm:$0xff]  ;;  %v4949_v37 = vld [vmem:[#allocation3 + $0x407] sm:$0xff] }
 0x31a   :  { %v3902_v42 = vpop.f32.mrf.mxu1  ;;  %v19911_v16 = vpop.f32.mrf.mxu0  ;;  %v5656_v24 = vld [vmem:[#allocation3 + $0x408] sm:$0xff]  ;;  %v23593_v58 = vld [vmem:[#allocation98_spill] sm:$0xff] }
 0x31b   :  { %23589 = vst [vmem:[#allocation95_spill] sm:$0xff] %v19907_v50  ;;  %23590 = vst [vmem:[#allocation151_spill] sm:$0xff] %v19911_v16  ;;  %v19914_v8 = vadd.f32 %v3902_v42, %v23591_v54  ;;  %v23596_v54 = vld [vmem:[#allocation20_spill] sm:$0xff] }
 0x31c   :  { %v16655_v40 = vpop.f32.mrf.mxu1  ;;  %v16753_v52 = vpop.f32.mrf.mxu0  ;;  %16898 = vmatmul.mubr.msk.f32.gmra.mxu1 %vm183_vm0, %v4948_v62  ;;  %16996 = vmatmul.mubr.msk.f32.gmra.mxu0 %vm183_vm0, %v5655_v38  ;;  %v4950_v62 = vld [vmem:[#allocation3 + $0x40f] sm:$0xff] }
 0x31d   :  { %23592 = vst [vmem:[#allocation96_spill] sm:$0xff] %v19914_v8  ;;  %v19919_v27 = vadd.f32 %v16655_v40, %v23593_v58  ;;  %v19922_v12 = vadd.f32 %v16753_v52, %v19559_v17  ;;  %16900 = vmatprep.mubr.msk.f32.mxu1 %vm183_vm0, %v4949_v37  ;;  %16998 = vmatprep.mubr.msk.f32.mxu0 %vm183_vm0, %v5656_v24  ;;  %v5657_v38 = vld [vmem:[#allocation3 + $0x410] sm:$0xff]  ;;  %v4951_v17 = vld [vmem:[#allocation3 + $0x427] sm:$0xff]  ;;  %v23598_v52 = vld [vmem:[#allocation99_spill] sm:$0xff] }
 0x31e   :  { %v3912_v5 = vpop.f32.mrf.mxu1  ;;  %v19926_v42 = vpop.f32.mrf.mxu0  ;;  %v5658_v40 = vld [vmem:[#allocation3 + $0x428] sm:$0xff] }
 0x31f   :  { %23594 = vst [vmem:[#allocation98_spill] sm:$0xff] %v19922_v12  ;;  %23595 = vst [vmem:[#allocation152_spill] sm:$0xff] %v19926_v42  ;;  %v19929_v8 = vadd.f32 %v3912_v5, %v23596_v54  ;;  %v23601_v54 = vld [vmem:[#allocation25_spill] sm:$0xff] }
 0x320   :  { %v16658_v50 = vpop.f32.mrf.mxu1  ;;  %v16756_v16 = vpop.f32.mrf.mxu0  ;;  %16901 = vmatmul.mubr.msk.f32.gmra.mxu1 %vm183_vm0, %v4950_v62  ;;  %16999 = vmatmul.mubr.msk.f32.gmra.mxu0 %vm183_vm0, %v5657_v38  ;;  %v4952_v62 = vld [vmem:[#allocation3 + $0x42f] sm:$0xff] }
 0x321   :  { %23597 = vst [vmem:[#allocation20_spill] sm:$0xff] %v19929_v8  ;;  %v19934_v37 = vadd.f32 %v16658_v50, %v23598_v52  ;;  %v19937_v24 = vadd.f32 %v16756_v16, %v19569_v47  ;;  %16903 = vmatprep.mubr.msk.f32.mxu1 %vm183_vm0, %v4951_v17  ;;  %17001 = vmatprep.mubr.msk.f32.mxu0 %vm183_vm0, %v5658_v40  ;;  %v5659_v38 = vld [vmem:[#allocation3 + $0x430] sm:$0xff]  ;;  %v4953_v47 = vld [vmem:[#allocation3 + $0x447] sm:$0xff] }
 0x322   :  { %v3922_v58 = vpop.f32.mrf.mxu1  ;;  %v19941_v5 = vpop.f32.mrf.mxu0  ;;  %v23603_v50 = vld [vmem:[#allocation102_spill] sm:$0xff] }
 0x323   :  { %23599 = vst [vmem:[#allocation99_spill] sm:$0xff] %v19937_v24  ;;  %23600 = vst [vmem:[#allocation153_spill] sm:$0xff] %v19941_v5  ;;  %v19944_v8 = vadd.f32 %v3922_v58, %v23601_v54  ;;  %v4955_v58 = vld [vmem:[#allocation3 + $0x467] sm:$0xff] }
 0x324   :  { %v16661_v12 = vpop.f32.mrf.mxu1  ;;  %v16759_v42 = vpop.f32.mrf.mxu0  ;;  %16904 = vmatmul.mubr.msk.f32.gmra.mxu1 %vm183_vm0, %v4952_v62  ;;  %17002 = vmatmul.mubr.msk.f32.gmra.mxu0 %vm183_vm0, %v5659_v38  ;;  %v5662_v54 = vld [vmem:[#allocation3 + $0x468] sm:$0xff]  ;;  %v23606_v62 = vld [vmem:[#allocation28_spill] sm:$0xff] }
 0x325   :  { %23602 = vst [vmem:[#allocation25_spill] sm:$0xff] %v19944_v8  ;;  %v19949_v16 = vadd.f32 %v16661_v12, %v23603_v50  ;;  %v19952_v17 = vadd.f32 %v16759_v42, %v19579_v51  ;;  %16906 = vmatprep.mubr.msk.f32.mxu1 %vm183_vm0, %v4953_v47  ;;  %17004 = vmatprep.mubr.msk.f32.mxu0 %vm183_vm0, %v19589_v39  ;;  %v4954_v38 = vld [vmem:[#allocation3 + $0x44f] sm:$0xff]  ;;  %v23608_v51 = vld [vmem:[#allocation104_spill] sm:$0xff] }
 0x326   :  { %v3932_v40 = vpop.f32.mrf.mxu1  ;;  %v19957_v52 = vpop.f32.mrf.mxu0  ;;  %v4956_v47 = vld [vmem:[#allocation3 + $0x46f] sm:$0xff] }
 0x327   :  { %23604 = vst [vmem:[#allocation102_spill] sm:$0xff] %v19952_v17  ;;  %23605 = vst [vmem:[#allocation154_spill] sm:$0xff] %v19957_v52  ;;  %v19960_v8 = vadd.f32 %v3932_v40, %v23606_v62  ;;  %v5663_v50 = vld [vmem:[#allocation3 + $0x470] sm:$0xff] }
 0x328   :  { %v16664_v24 = vpop.f32.mrf.mxu1  ;;  %v16762_v12 = vpop.f32.mrf.mxu0  ;;  %16907 = vmatmul.mubr.msk.f32.gmra.mxu1 %vm183_vm0, %v4954_v38  ;;  %17005 = vmatmul.mubr.msk.f32.gmra.mxu0 %vm183_vm0, %v19598_v57  ;;  %v6365_v5 = vld [vmem:[#allocation3 + $0x429] sm:$0xff] }
 0x329   :  { %23607 = vst [vmem:[#allocation28_spill] sm:$0xff] %v19960_v8  ;;  %v19966_v42 = vadd.f32 %v16664_v24, %v23608_v51  ;;  %v19969_v39 = vadd.f32 %v16762_v12, %v19591_v41  ;;  %16909 = vmatprep.mubr.msk.f32.mxu1 %vm183_vm0, %v4955_v58  ;;  %17007 = vmatprep.mubr.msk.f32.mxu0 %vm183_vm0, %v5662_v54  ;;  %v23611_v8 = vld [vmem:[#allocation105_spill] sm:$0xff]  ;;  %v6308_v51 = vld [vmem:[#allocation3 + $0x51] sm:$0xff] }
 0x32a   :  { %v3942_v40 = vpop.f32.mrf.mxu1  ;;  %v19973_v62 = vpop.f32.mrf.mxu0  ;;  %v6307_v41 = vld [vmem:[#allocation3 + $0x49] sm:$0xff] }
 0x32b   :  { %23609 = vst [vmem:[#allocation104_spill] sm:$0xff] %v19969_v39  ;;  %23610 = vst [vmem:[#allocation155_spill] sm:$0xff] %v19973_v62  ;;  %v19976_v38 = vadd.f32 %v3942_v40, %v23611_v8  ;;  %v6363_v62 = vld [vmem:[#allocation3 + $0x409] sm:$0xff] }
 0x32c   :  { %v16667_v17 = vpop.f32.mrf.mxu1  ;;  %v16765_v57 = vpop.f32.mrf.mxu0  ;;  %16910 = vmatmul.mubr.msk.f32.gmra.mxu1 %vm183_vm0, %v4956_v47  ;;  %17008 = vmatmul.mubr.msk.f32.gmra.mxu0 %vm183_vm0, %v5663_v50  ;;  %v6309_v50 = vld [vmem:[#allocation3 + $0x69] sm:$0xff] }
 0x32d   :  { %23612 = vst [vmem:[#allocation105_spill] sm:$0xff] %v19976_v38  ;;  %v19981_v24 = vadd.f32 %v16667_v17, %v19265_v49  ;;  %v19984_v58 = vadd.f32 %v16765_v57, %v19603_v13  ;;  %17012 = vmatprep.mubr.msk.f32.mxu1 %vm183_vm0, %v6307_v41  ;;  %v23618_v41 = vld [vmem:[#allocation106_spill] sm:$0xff] }
 0x32e   :  { %v3952_v54 = vpop.f32.mrf.mxu1  ;;  %v19987_v12 = vpop.f32.mrf.mxu0 }
 0x32f   :  { %23613 = vst [vmem:[#allocation156_spill] sm:$0xff] %v19984_v58  ;;  %23614 = vst [vmem:[#allocation157_spill] sm:$0xff] %v19987_v12  ;;  %v19990_v8 = vadd.f32 %v3952_v54, %v19270_v45  ;;  %v6310_v54 = vld [vmem:[#allocation3 + $0x71] sm:$0xff] }
 0x330   :  { %v16670_v40 = vpop.f32.mrf.mxu1  ;;  %v16768_v47 = vpop.f32.mrf.mxu0  ;;  %17013 = vmatmul.mubr.msk.f32.vlgmr.msra.gmra.mxu1 %vm183_vm0, %v6308_v51  ;;  %v6311_v51 = vld [vmem:[#allocation3 + $0x89] sm:$0xff] }
 0x331   :  { %23615 = vst [vmem:[#allocation158_spill] sm:$0xff] %v19990_v8  ;;  %v19994_v49 = vadd.f32 %v16670_v40, %v19283_v59  ;;  %v19997_v13 = vadd.f32 %v16768_v47, %v19611_v34  ;;  %17015 = vmatprep.mubr.msk.f32.mxu1 %vm183_vm0, %v6309_v50 }
 0x332   :  { %v3962_v17 = vpop.f32.mrf.mxu1  ;;  %v20000_v57 = vpop.f32.mrf.mxu0 }
 0x333   :  { %23616 = vst [vmem:[#allocation159_spill] sm:$0xff] %v19997_v13  ;;  %23617 = vst [vmem:[#allocation160_spill] sm:$0xff] %v20000_v57  ;;  %v20003_v45 = vadd.f32 %v3962_v17, %v23618_v41  ;;  %v6312_v17 = vld [vmem:[#allocation3 + $0x91] sm:$0xff] }
 0x334   :  { %v16673_v8 = vpop.f32.mrf.mxu1  ;;  %v16771_v58 = vpop.f32.mrf.mxu0  ;;  %17016 = vmatmul.mubr.msk.f32.gmra.mxu1 %vm183_vm0, %v6310_v54  ;;  %v6313_v54 = vld [vmem:[#allocation3 + $0xa9] sm:$0xff] }
 0x335   :  { %23619 = vst [vmem:[#allocation106_spill] sm:$0xff] %v20003_v45  ;;  %v20007_v59 = vadd.f32 %v16673_v8, %v19295_v20  ;;  %v20010_v34 = vadd.f32 %v16771_v58, %v19620_v53  ;;  %17018 = vmatprep.mubr.msk.f32.mxu1 %vm183_vm0, %v6311_v51  ;;  %v6314_v51 = vld [vmem:[#allocation3 + $0xb1] sm:$0xff] }
 0x336   :  { %v3972_v40 = vpop.f32.mrf.mxu1  ;;  %v20013_v47 = vpop.f32.mrf.mxu0 }
 0x337   :  { %23620 = vst [vmem:[#allocation161_spill] sm:$0xff] %v20010_v34  ;;  %23621 = vst [vmem:[#allocation162_spill] sm:$0xff] %v20013_v47  ;;  %v20016_v50 = vadd.f32 %v3972_v40, %v19300_v9 }
 0x338   :  { %v16676_v41 = vpop.f32.mrf.mxu1  ;;  %v16774_v45 = vpop.f32.mrf.mxu0  ;;  %17019 = vmatmul.mubr.msk.f32.gmra.mxu1 %vm183_vm0, %v6312_v17  ;;  %v6315_v17 = vld [vmem:[#allocation3 + $0xc9] sm:$0xff] }
 0x339   :  { %23622 = vst [vmem:[#allocation163_spill] sm:$0xff] %v20016_v50  ;;  %v20020_v20 = vadd.f32 %v16676_v41, %v19305_v22  ;;  %v20023_v53 = vadd.f32 %v16774_v45, %v19628_v2  ;;  %17021 = vmatprep.mubr.msk.f32.mxu1 %vm183_vm0, %v6313_v54  ;;  %v6316_v54 = vld [vmem:[#allocation3 + $0xd1] sm:$0xff] }
 0x33a   :  { %v3982_v58 = vpop.f32.mrf.mxu1  ;;  %v20026_v8 = vpop.f32.mrf.mxu0 }
 0x33b   :  { %23623 = vst [vmem:[#allocation164_spill] sm:$0xff] %v20023_v53  ;;  %23624 = vst [vmem:[#allocation165_spill] sm:$0xff] %v20026_v8  ;;  %v20029_v9 = vadd.f32 %v3982_v58, %v19310_v29  ;;  %v23674_v53 = vld [vmem:[#allocation66_spill] sm:$0xff]  ;;  %v23685_v8 = vld [vmem:[#allocation121_spill] sm:$0xff] }
 0x33c   :  { %v16679_v40 = vpop.f32.mrf.mxu1  ;;  %v16777_v50 = vpop.f32.mrf.mxu0  ;;  %17022 = vmatmul.mubr.msk.f32.gmra.mxu1 %vm183_vm0, %v6314_v51  ;;  %v6317_v51 = vld [vmem:[#allocation3 + $0xe9] sm:$0xff] }
 0x33d   :  { %23625 = vst [vmem:[#allocation166_spill] sm:$0xff] %v20029_v9  ;;  %v20033_v22 = vadd.f32 %v16679_v40, %v19315_v23  ;;  %v20036_v2 = vadd.f32 %v16777_v50, %v19636_v44  ;;  %17024 = vmatprep.mubr.msk.f32.mxu1 %vm183_vm0, %v6315_v17  ;;  %v6318_v17 = vld [vmem:[#allocation3 + $0xf1] sm:$0xff] }
 0x33e   :  { %v3992_v45 = vpop.f32.mrf.mxu1  ;;  %v20039_v41 = vpop.f32.mrf.mxu0 }
 0x33f   :  { %23626 = vst [vmem:[#allocation167_spill] sm:$0xff] %v20036_v2  ;;  %23627 = vst [vmem:[#allocation168_spill] sm:$0xff] %v20039_v41  ;;  %v20042_v29 = vadd.f32 %v3992_v45, %v19320_v55  ;;  %v23662_v2 = vld [vmem:[#allocation115_spill] sm:$0xff]  ;;  %v23668_v41 = vld [vmem:[#allocation117_spill] sm:$0xff] }
 0x340   :  { %v16682_v58 = vpop.f32.mrf.mxu1  ;;  %v16780_v9 = vpop.f32.mrf.mxu0  ;;  %17025 = vmatmul.mubr.msk.f32.gmra.mxu1 %vm183_vm0, %v6316_v54  ;;  %v6319_v54 = vld [vmem:[#allocation3 + $0x109] sm:$0xff] }
 0x341   :  { %23628 = vst [vmem:[#allocation169_spill] sm:$0xff] %v20042_v29  ;;  %v20046_v23 = vadd.f32 %v16682_v58, %v19325_v21  ;;  %v20049_v44 = vadd.f32 %v16780_v9, %v19644_v30  ;;  %17027 = vmatprep.mubr.msk.f32.mxu1 %vm183_vm0, %v6317_v51  ;;  %v6320_v51 = vld [vmem:[#allocation3 + $0x111] sm:$0xff] }
 0x342   :  { %v4002_v50 = vpop.f32.mrf.mxu1  ;;  %v20052_v40 = vpop.f32.mrf.mxu0 }
 0x343   :  { %23629 = vst [vmem:[#allocation170_spill] sm:$0xff] %v20049_v44  ;;  %23630 = vst [vmem:[#allocation171_spill] sm:$0xff] %v20052_v40  ;;  %v20055_v55 = vadd.f32 %v4002_v50, %v19330_v35  ;;  %v23650_v44 = vld [vmem:[#allocation111_spill] sm:$0xff]  ;;  %v23656_v40 = vld [vmem:[#allocation113_spill] sm:$0xff] }
 0x344   :  { %v16685_v45 = vpop.f32.mrf.mxu1  ;;  %v16783_v29 = vpop.f32.mrf.mxu0  ;;  %17028 = vmatmul.mubr.msk.f32.gmra.mxu1 %vm183_vm0, %v6318_v17  ;;  %v6321_v17 = vld [vmem:[#allocation3 + $0x129] sm:$0xff] }
 0x345   :  { %23631 = vst [vmem:[#allocation172_spill] sm:$0xff] %v20055_v55  ;;  %v20059_v21 = vadd.f32 %v16685_v45, %v19335_v63  ;;  %v20062_v30 = vadd.f32 %v16783_v29, %v19652_v36  ;;  %17030 = vmatprep.mubr.msk.f32.mxu1 %vm183_vm0, %v6319_v54  ;;  %v6322_v54 = vld [vmem:[#allocation3 + $0x131] sm:$0xff] }
 0x346   :  { %v4012_v9 = vpop.f32.mrf.mxu1  ;;  %v20065_v58 = vpop.f32.mrf.mxu0 }
 0x347   :  { %23632 = vst [vmem:[#allocation173_spill] sm:$0xff] %v20062_v30  ;;  %23633 = vst [vmem:[#allocation174_spill] sm:$0xff] %v20065_v58  ;;  %v20068_v35 = vadd.f32 %v4012_v9, %v19340_v11  ;;  %v23638_v30 = vld [vmem:[#allocation107_spill] sm:$0xff]  ;;  %v23644_v58 = vld [vmem:[#allocation109_spill] sm:$0xff] }
 0x348   :  { %v16688_v50 = vpop.f32.mrf.mxu1  ;;  %v16786_v55 = vpop.f32.mrf.mxu0  ;;  %17031 = vmatmul.mubr.msk.f32.gmra.mxu1 %vm183_vm0, %v6320_v51  ;;  %v6323_v51 = vld [vmem:[#allocation3 + $0x149] sm:$0xff] }
 0x349   :  { %23634 = vst [vmem:[#allocation175_spill] sm:$0xff] %v20068_v35  ;;  %v20072_v63 = vadd.f32 %v16688_v50, %v19345_v25  ;;  %v20075_v36 = vadd.f32 %v16786_v55, %v19660_v26  ;;  %17033 = vmatprep.mubr.msk.f32.mxu1 %vm183_vm0, %v6321_v17  ;;  %v23639_v50 = vld [vmem:[#allocation132_spill] sm:$0xff] }
 0x34a   :  { %v4022_v29 = vpop.f32.mrf.mxu1  ;;  %v20078_v45 = vpop.f32.mrf.mxu0 }
 0x34b   :  { %23635 = vst [vmem:[#allocation176_spill] sm:$0xff] %v20075_v36  ;;  %23636 = vst [vmem:[#allocation177_spill] sm:$0xff] %v20078_v45  ;;  %v20081_v11 = vadd.f32 %v4022_v29, %v19350_v19  ;;  %v23642_v36 = vld [vmem:[#allocation108_spill] sm:$0xff]  ;;  %v6324_v29 = vld [vmem:[#allocation3 + $0x151] sm:$0xff] }
 0x34c   :  { %v16691_v9 = vpop.f32.mrf.mxu1  ;;  %v16789_v35 = vpop.f32.mrf.mxu0  ;;  %17034 = vmatmul.mubr.msk.f32.gmra.mxu1 %vm183_vm0, %v6322_v54  ;;  %v6325_v54 = vld [vmem:[#allocation3 + $0x169] sm:$0xff] }
 0x34d   :  { %23637 = vst [vmem:[#allocation178_spill] sm:$0xff] %v20081_v11  ;;  %v20085_v25 = vadd.f32 %v16691_v9, %v23638_v30  ;;  %v20088_v26 = vadd.f32 %v16789_v35, %v23639_v50  ;;  %17036 = vmatprep.mubr.msk.f32.mxu1 %vm183_vm0, %v6323_v51  ;;  %v23645_v9 = vld [vmem:[#allocation134_spill] sm:$0xff] }
 0x34e   :  { %v4032_v55 = vpop.f32.mrf.mxu1  ;;  %v20091_v17 = vpop.f32.mrf.mxu0 }
 0x34f   :  { %23640 = vst [vmem:[#allocation107_spill] sm:$0xff] %v20088_v26  ;;  %23641 = vst [vmem:[#allocation132_spill] sm:$0xff] %v20091_v17  ;;  %v20094_v19 = vadd.f32 %v4032_v55, %v23642_v36  ;;  %v23648_v26 = vld [vmem:[#allocation110_spill] sm:$0xff] }
 0x350   :  { %v16694_v11 = vpop.f32.mrf.mxu1  ;;  %v16792_v45 = vpop.f32.mrf.mxu0  ;;  %17037 = vmatmul.mubr.msk.f32.gmra.mxu1 %vm183_vm0, %v6324_v29  ;;  %v6326_v55 = vld [vmem:[#allocation3 + $0x171] sm:$0xff]  ;;  %v6327_v29 = vld [vmem:[#allocation3 + $0x189] sm:$0xff] }
 0x351   :  { %23643 = vst [vmem:[#allocation108_spill] sm:$0xff] %v20094_v19  ;;  %v20098_v30 = vadd.f32 %v16694_v11, %v23644_v58  ;;  %v20101_v35 = vadd.f32 %v16792_v45, %v23645_v9  ;;  %17039 = vmatprep.mubr.msk.f32.mxu1 %vm183_vm0, %v6325_v54  ;;  %v23651_v11 = vld [vmem:[#allocation136_spill] sm:$0xff] }
 0x352   :  { %v4042_v51 = vpop.f32.mrf.mxu1  ;;  %v20104_v50 = vpop.f32.mrf.mxu0 }
 0x353   :  { %23646 = vst [vmem:[#allocation109_spill] sm:$0xff] %v20101_v35  ;;  %23647 = vst [vmem:[#allocation134_spill] sm:$0xff] %v20104_v50  ;;  %v20107_v36 = vadd.f32 %v4042_v51, %v23648_v26  ;;  %v23654_v35 = vld [vmem:[#allocation112_spill] sm:$0xff]  ;;  %v6328_v51 = vld [vmem:[#allocation3 + $0x191] sm:$0xff] }
 0x354   :  { %v16697_v19 = vpop.f32.mrf.mxu1  ;;  %v16795_v17 = vpop.f32.mrf.mxu0  ;;  %17040 = vmatmul.mubr.msk.f32.gmra.mxu1 %vm183_vm0, %v6326_v55  ;;  %v6329_v55 = vld [vmem:[#allocation3 + $0x1a9] sm:$0xff] }
 0x355   :  { %23649 = vst [vmem:[#allocation110_spill] sm:$0xff] %v20107_v36  ;;  %v20111_v58 = vadd.f32 %v16697_v19, %v23650_v44  ;;  %v20114_v45 = vadd.f32 %v16795_v17, %v23651_v11  ;;  %17042 = vmatprep.mubr.msk.f32.mxu1 %vm183_vm0, %v6327_v29  ;;  %v23657_v19 = vld [vmem:[#allocation138_spill] sm:$0xff] }
 0x356   :  { %v4052_v54 = vpop.f32.mrf.mxu1  ;;  %v20117_v9 = vpop.f32.mrf.mxu0 }
 0x357   :  { %23652 = vst [vmem:[#allocation111_spill] sm:$0xff] %v20114_v45  ;;  %23653 = vst [vmem:[#allocation136_spill] sm:$0xff] %v20117_v9  ;;  %v20120_v26 = vadd.f32 %v4052_v54, %v23654_v35  ;;  %v23660_v45 = vld [vmem:[#allocation114_spill] sm:$0xff] }
 0x358   :  { %v16700_v36 = vpop.f32.mrf.mxu1  ;;  %v16798_v50 = vpop.f32.mrf.mxu0  ;;  %17043 = vmatmul.mubr.msk.f32.gmra.mxu1 %vm183_vm0, %v6328_v51  ;;  %v6330_v54 = vld [vmem:[#allocation3 + $0x1b1] sm:$0xff]  ;;  %v6331_v51 = vld [vmem:[#allocation3 + $0x1c9] sm:$0xff] }
 0x359   :  { %23655 = vst [vmem:[#allocation112_spill] sm:$0xff] %v20120_v26  ;;  %v20124_v44 = vadd.f32 %v16700_v36, %v23656_v40  ;;  %v20127_v17 = vadd.f32 %v16798_v50, %v23657_v19  ;;  %17045 = vmatprep.mubr.msk.f32.mxu1 %vm183_vm0, %v6329_v55  ;;  %v23663_v36 = vld [vmem:[#allocation140_spill] sm:$0xff] }
 0x35a   :  { %v4062_v29 = vpop.f32.mrf.mxu1  ;;  %v20130_v11 = vpop.f32.mrf.mxu0 }
 0x35b   :  { %23658 = vst [vmem:[#allocation113_spill] sm:$0xff] %v20127_v17  ;;  %23659 = vst [vmem:[#allocation138_spill] sm:$0xff] %v20130_v11  ;;  %v20133_v35 = vadd.f32 %v4062_v29, %v23660_v45  ;;  %v23666_v17 = vld [vmem:[#allocation116_spill] sm:$0xff]  ;;  %v6332_v29 = vld [vmem:[#allocation3 + $0x1d1] sm:$0xff] }
 0x35c   :  { %v16703_v26 = vpop.f32.mrf.mxu1  ;;  %v16801_v9 = vpop.f32.mrf.mxu0  ;;  %17046 = vmatmul.mubr.msk.f32.gmra.mxu1 %vm183_vm0, %v6330_v54  ;;  %v6333_v54 = vld [vmem:[#allocation3 + $0x1e9] sm:$0xff] }
 0x35d   :  { %23661 = vst [vmem:[#allocation114_spill] sm:$0xff] %v20133_v35  ;;  %v20137_v40 = vadd.f32 %v16703_v26, %v23662_v2  ;;  %v20140_v50 = vadd.f32 %v16801_v9, %v23663_v36  ;;  %17048 = vmatprep.mubr.msk.f32.mxu1 %vm183_vm0, %v6331_v51  ;;  %v23669_v26 = vld [vmem:[#allocation142_spill] sm:$0xff] }
 0x35e   :  { %v4072_v55 = vpop.f32.mrf.mxu1  ;;  %v20143_v19 = vpop.f32.mrf.mxu0 }
 0x35f   :  { %23664 = vst [vmem:[#allocation115_spill] sm:$0xff] %v20140_v50  ;;  %23665 = vst [vmem:[#allocation140_spill] sm:$0xff] %v20143_v19  ;;  %v20146_v45 = vadd.f32 %v4072_v55, %v23666_v17  ;;  %v23672_v50 = vld [vmem:[#allocation118_spill] sm:$0xff] }
 0x360   :  { %v16706_v35 = vpop.f32.mrf.mxu1  ;;  %v16804_v11 = vpop.f32.mrf.mxu0  ;;  %17049 = vmatmul.mubr.msk.f32.gmra.mxu1 %vm183_vm0, %v6332_v29  ;;  %v6334_v55 = vld [vmem:[#allocation3 + $0x1f1] sm:$0xff]  ;;  %v6335_v29 = vld [vmem:[#allocation3 + $0x209] sm:$0xff] }
 0x361   :  { %23667 = vst [vmem:[#allocation116_spill] sm:$0xff] %v20146_v45  ;;  %v20150_v2 = vadd.f32 %v16706_v35, %v23668_v41  ;;  %v20153_v9 = vadd.f32 %v16804_v11, %v23669_v26  ;;  %17051 = vmatprep.mubr.msk.f32.mxu1 %vm183_vm0, %v6333_v54  ;;  %v6337_v26 = vld [vmem:[#allocation3 + $0x229] sm:$0xff] }
 0x362   :  { %v4082_v51 = vpop.f32.mrf.mxu1  ;;  %v20156_v36 = vpop.f32.mrf.mxu0 }
 0x363   :  { %23670 = vst [vmem:[#allocation117_spill] sm:$0xff] %v20153_v9  ;;  %23671 = vst [vmem:[#allocation142_spill] sm:$0xff] %v20156_v36  ;;  %v20159_v17 = vadd.f32 %v4082_v51, %v23672_v50  ;;  %v23677_v50 = vld [vmem:[#allocation67_spill] sm:$0xff] }
 0x364   :  { %v16709_v45 = vpop.f32.mrf.mxu1  ;;  %v16807_v19 = vpop.f32.mrf.mxu0  ;;  %17052 = vmatmul.mubr.msk.f32.gmra.mxu1 %vm183_vm0, %v6334_v55  ;;  %v23679_v55 = vld [vmem:[#allocation119_spill] sm:$0xff] }
 0x365   :  { %23673 = vst [vmem:[#allocation118_spill] sm:$0xff] %v20159_v17  ;;  %v20163_v41 = vadd.f32 %v16709_v45, %v23674_v53  ;;  %v20166_v11 = vadd.f32 %v16807_v19, %v19716_v3  ;;  %17054 = vmatprep.mubr.msk.f32.mxu1 %vm183_vm0, %v6335_v29  ;;  %v6336_v17 = vld [vmem:[#allocation3 + $0x211] sm:$0xff]  ;;  %v23680_v45 = vld [vmem:[#allocation145_spill] sm:$0xff] }
 0x366   :  { %v4092_v35 = vpop.f32.mrf.mxu1  ;;  %v20169_v54 = vpop.f32.mrf.mxu0  ;;  %v6338_v19 = vld [vmem:[#allocation3 + $0x231] sm:$0xff] }
 0x367   :  { %23675 = vst [vmem:[#allocation66_spill] sm:$0xff] %v20166_v11  ;;  %23676 = vst [vmem:[#allocation179_spill] sm:$0xff] %v20169_v54  ;;  %v20172_v51 = vadd.f32 %v4092_v35, %v23677_v50  ;;  %v23683_v54 = vld [vmem:[#allocation120_spill] sm:$0xff] }
 0x368   :  { %v16712_v9 = vpop.f32.mrf.mxu1  ;;  %v16810_v36 = vpop.f32.mrf.mxu0  ;;  %17055 = vmatmul.mubr.msk.f32.gmra.mxu1 %vm183_vm0, %v6336_v17  ;;  %v6339_v17 = vld [vmem:[#allocation3 + $0x289] sm:$0xff] }
 0x369   :  { %23678 = vst [vmem:[#allocation67_spill] sm:$0xff] %v20172_v51  ;;  %v20176_v53 = vadd.f32 %v16712_v9, %v23679_v55  ;;  %v20179_v3 = vadd.f32 %v16810_v36, %v23680_v45  ;;  %17057 = vmatprep.mubr.msk.f32.mxu1 %vm183_vm0, %v6337_v26  ;;  %v23686_v55 = vld [vmem:[#allocation147_spill] sm:$0xff] }
 0x36a   :  { %v4102_v29 = vpop.f32.mrf.mxu1  ;;  %v20182_v11 = vpop.f32.mrf.mxu0 }
 0x36b   :  { %23681 = vst [vmem:[#allocation119_spill] sm:$0xff] %v20179_v3  ;;  %23682 = vst [vmem:[#allocation145_spill] sm:$0xff] %v20182_v11  ;;  %v20185_v35 = vadd.f32 %v4102_v29, %v23683_v54  ;;  %v23689_v3 = vld [vmem:[#allocation122_spill] sm:$0xff] }
 0x36c   :  { %v16715_v50 = vpop.f32.mrf.mxu1  ;;  %v16813_v51 = vpop.f32.mrf.mxu0  ;;  %17058 = vmatmul.mubr.msk.f32.gmra.mxu1 %vm183_vm0, %v6338_v19  ;;  %v6340_v54 = vld [vmem:[#allocation3 + $0x291] sm:$0xff]  ;;  %v6341_v19 = vld [vmem:[#allocation3 + $0x2a9] sm:$0xff] }
 0x36d   :  { %23684 = vst [vmem:[#allocation120_spill] sm:$0xff] %v20185_v35  ;;  %v20189_v9 = vadd.f32 %v16715_v50, %v23685_v8  ;;  %v20192_v36 = vadd.f32 %v16813_v51, %v23686_v55  ;;  %17060 = vmatprep.mubr.msk.f32.mxu1 %vm183_vm0, %v6339_v17  ;;  %v6342_v17 = vld [vmem:[#allocation3 + $0x2b1] sm:$0xff] }
 0x36e   :  { %v4112_v26 = vpop.f32.mrf.mxu1  ;;  %v20195_v45 = vpop.f32.mrf.mxu0 }
 0x36f   :  { %23687 = vst [vmem:[#allocation121_spill] sm:$0xff] %v20192_v36  ;;  %23688 = vst [vmem:[#allocation147_spill] sm:$0xff] %v20195_v45  ;;  %v20198_v11 = vadd.f32 %v4112_v26, %v23689_v3  ;;  %v6343_v26 = vld [vmem:[#allocation3 + $0x2c9] sm:$0xff] }
 0x370   :  { %v16818_v29 = vpop.f32.mrf.mxu1  ;;  %v20200_v35 = vpop.f32.mrf.mxu0  ;;  %17061 = vmatmul.mubr.msk.f32.gmra.mxu1 %vm183_vm0, %v6340_v54 }
 0x371   :  { %23690 = vst [vmem:[#allocation122_spill] sm:$0xff] %v20198_v11  ;;  %v20204_v8 = vadd.f32 %v16818_v29, %v19743_v31  ;;  %17063 = vmatprep.mubr.msk.f32.mxu1 %vm183_vm0, %v6341_v19  ;;  %v6344_v29 = vld [vmem:[#allocation3 + $0x2d1] sm:$0xff] }
 0x372   :  { %v5217_v51 = vpop.f32.mrf.mxu1  ;;  %v20210_v55 = vpop.f32.mrf.mxu0 }
 0x373   :  { %v20208_v50 = vadd.f32 %v5217_v51, %v19751_v48  ;;  %v6345_v51 = vld [vmem:[#allocation3 + $0x2e9] sm:$0xff] }
 0x374   :  { %v16821_v3 = vpop.f32.mrf.mxu1  ;;  %17064 = vmatmul.mubr.msk.f32.gmra.mxu1 %vm183_vm0, %v6342_v17  ;;  %v20220_v19 = vpop.f32.mrf.mxu0 }
 0x375   :  { %v20214_v11 = vadd.f32 %v16821_v3, %v19759_v43  ;;  %17066 = vmatprep.mubr.msk.f32.mxu1 %vm183_vm0, %v6343_v26  ;;  %v6346_v3 = vld [vmem:[#allocation3 + $0x2f1] sm:$0xff] }
 0x376   :  { %v5227_v31 = vpop.f32.mrf.mxu1  ;;  %v20230_v26 = vpop.f32.mrf.mxu0 }
 0x377   :  { %v20218_v54 = vadd.f32 %v5227_v31, %v19767_v28  ;;  %v6347_v31 = vld [vmem:[#allocation3 + $0x309] sm:$0xff] }
 0x378   :  { %v16824_v48 = vpop.f32.mrf.mxu1  ;;  %17067 = vmatmul.mubr.msk.f32.gmra.mxu1 %vm183_vm0, %v6344_v29 }
 0x379   :  { %v20224_v36 = vadd.f32 %v16824_v48, %v19775_v56  ;;  %17069 = vmatprep.mubr.msk.f32.mxu1 %vm183_vm0, %v6345_v51  ;;  %v6348_v48 = vld [vmem:[#allocation3 + $0x311] sm:$0xff]  ;;  %v20240_v51 = vpop.f32.mrf.mxu0 }
 0x37a   :  { %v5237_v43 = vpop.f32.mrf.mxu1 }
 0x37b   :  { %v20228_v17 = vadd.f32 %v5237_v43, %v19783_v15  ;;  %v6349_v43 = vld [vmem:[#allocation3 + $0x329] sm:$0xff] }
 0x37c   :  { %v16827_v28 = vpop.f32.mrf.mxu1  ;;  %17070 = vmatmul.mubr.msk.f32.gmra.mxu1 %vm183_vm0, %v6346_v3  ;;  %v7344_v3 = vld [vmem:[#allocation3 + $0x9] sm:$0xff] }
 0x37d   :  { %v20234_v45 = vadd.f32 %v16827_v28, %v19791_v61  ;;  %17072 = vmatprep.mubr.msk.f32.mxu1 %vm183_vm0, %v6347_v31  ;;  %v7277_v61 = vld [vmem:[%s23352_s3] sm:$0xff]  ;;  %17110 = vmatprep.mubr.msk.f32.mxu0 %vm183_vm0, %v7344_v3  ;;  %v6350_v31 = vld [vmem:[#allocation3 + $0x331] sm:$0xff] }
 0x37e   :  { %v5247_v56 = vpop.f32.mrf.mxu1  ;;  %17206 = vmatprep.subr.mxu1 %v7277_v61 }
 0x37f   :  { %v20238_v29 = vadd.f32 %v5247_v56, %v19802_v7  ;;  %17207 = vmatpush3.msra.mxu1 %v7277_v61  ;;  %v7345_v56 = vld [vmem:[#allocation3 + $0x11] sm:$0xff] }
 0x380   :  { %v16830_v15 = vpop.f32.mrf.mxu1  ;;  %17073 = vmatmul.mubr.msk.f32.gmra.mxu1 %vm183_vm0, %v6348_v48  ;;  %v20257_v48 = vpop.f32.mrf.mxu0  ;;  %17111 = vmatmul.mubr.msk.f32.vlgmr.msra.gmra.mxu0 %vm183_vm0, %v7345_v56 }
 0x381   :  { %v20244_v34 = vadd.f32 %v16830_v15, %v19810_v32  ;;  %17075 = vmatprep.mubr.msk.f32.mxu1 %vm183_vm0, %v6349_v43  ;;  %v14436_v32 = vld [vmem:[%s23352_s3 + $0x18] sm:$0xff]  ;;  %v6351_v43 = vld [vmem:[#allocation3 + $0x349] sm:$0xff] }
 0x382   :  { %v5257_v28 = vpop.f32.mrf.mxu1  ;;  %17304 = vmatprep.subr.mxu0 %v14436_v32  ;;  %v20268_v47 = vpop.f32.mrf.mxu0 }
 0x383   :  { %v20252_v7 = vadd.f32 %v5257_v28, %v19818_v14  ;;  %17305 = vmatpush3.msra.mxu0 %v14436_v32  ;;  %v6352_v28 = vld [vmem:[#allocation3 + $0x351] sm:$0xff] }
 0x384   :  { %v16833_v15 = vpop.f32.mrf.mxu1  ;;  %17076 = vmatmul.mubr.msk.f32.gmra.mxu1 %vm183_vm0, %v6350_v31  ;;  %v6353_v31 = vld [vmem:[#allocation3 + $0x369] sm:$0xff]  ;;  %v6354_v32 = vld [vmem:[#allocation3 + $0x371] sm:$0xff] }
 0x385   :  { %v20262_v3 = vadd.f32 %v16833_v15, %v19826_v1  ;;  %17078 = vmatprep.mubr.msk.f32.mxu1 %vm183_vm0, %v6351_v43  ;;  %v20278_v43 = vpop.f32.mrf.mxu0 }
 0x386   :  { %v5267_v14 = vpop.f32.mrf.mxu1 }
 0x387   :  { %v20266_v61 = vadd.f32 %v5267_v14, %v19834_v6  ;;  %v6355_v14 = vld [vmem:[#allocation3 + $0x389] sm:$0xff] }
 0x388   :  { %v16836_v13 = vpop.f32.mrf.mxu1  ;;  %17079 = vmatmul.mubr.msk.f32.gmra.mxu1 %vm183_vm0, %v6352_v28  ;;  %v6356_v28 = vld [vmem:[#allocation3 + $0x391] sm:$0xff] }
 0x389   :  { %v20272_v56 = vadd.f32 %v16836_v13, %v19842_v18  ;;  %17081 = vmatprep.mubr.msk.f32.mxu1 %vm183_vm0, %v6353_v31  ;;  %v20288_v31 = vpop.f32.mrf.mxu0 }
 0x38a   :  { %v5277_v1 = vpop.f32.mrf.mxu1 }
 0x38b   :  { %v20276_v15 = vadd.f32 %v5277_v1, %v19850_v4  ;;  %v6357_v1 = vld [vmem:[#allocation3 + $0x3a9] sm:$0xff]  ;;  %v20298_v38 = vpop.f32.mrf.mxu0 }
 0x38c   :  { %v16839_v6 = vpop.f32.mrf.mxu1  ;;  %17082 = vmatmul.mubr.msk.f32.gmra.mxu1 %vm183_vm0, %v6354_v32  ;;  %v23691_v32 = vld [vmem:[#allocation91_spill] sm:$0xff] }
 0x38d   :  { %v20282_v57 = vadd.f32 %v16839_v6, %v19858_v46  ;;  %17084 = vmatprep.mubr.msk.f32.mxu1 %vm183_vm0, %v6355_v14  ;;  %v6358_v14 = vld [vmem:[#allocation3 + $0x3b1] sm:$0xff] }
 0x38e   :  { %v5287_v18 = vpop.f32.mrf.mxu1 }
 0x38f   :  { %v20286_v13 = vadd.f32 %v5287_v18, %v19866_v33  ;;  %v6359_v18 = vld [vmem:[#allocation3 + $0x3c9] sm:$0xff] }
 0x390   :  { %v16842_v4 = vpop.f32.mrf.mxu1  ;;  %17085 = vmatmul.mubr.msk.f32.gmra.mxu1 %vm183_vm0, %v6356_v28  ;;  %v6360_v28 = vld [vmem:[#allocation3 + $0x3d1] sm:$0xff] }
 0x391   :  { %v20292_v12 = vadd.f32 %v16842_v4, %v19874_v60  ;;  %17087 = vmatprep.mubr.msk.f32.mxu1 %vm183_vm0, %v6357_v1  ;;  %v20307_v4 = vpop.f32.mrf.mxu0 }
 0x392   :  { %v5297_v46 = vpop.f32.mrf.mxu1 }
 0x393   :  { %v20296_v6 = vadd.f32 %v5297_v46, %v23691_v32  ;;  %v6361_v46 = vld [vmem:[#allocation3 + $0x3e9] sm:$0xff] }
 0x394   :  { %v16845_v33 = vpop.f32.mrf.mxu1  ;;  %17088 = vmatmul.mubr.msk.f32.gmra.mxu1 %vm183_vm0, %v6358_v14 }
 0x395   :  { %v20302_v39 = vadd.f32 %v16845_v33, %v19889_v10  ;;  %17090 = vmatprep.mubr.msk.f32.mxu1 %vm183_vm0, %v6359_v18  ;;  %v6362_v10 = vld [vmem:[#allocation3 + $0x3f1] sm:$0xff]  ;;  %v20316_v33 = vpop.f32.mrf.mxu0 }
 0x396   :  { %v20305_v60 = vpop.f32.mrf.mxu1 }
 0x398   :  { %v16848_v1 = vpop.f32.mrf.mxu1  ;;  %17091 = vmatmul.mubr.msk.f32.gmra.mxu1 %vm183_vm0, %v6360_v28 }
 0x399   :  { %v20311_v32 = vadd.f32 %v16848_v1, %v19904_v0  ;;  %17093 = vmatprep.mubr.msk.f32.mxu1 %vm183_vm0, %v6361_v46  ;;  %v6364_v0 = vld [vmem:[#allocation3 + $0x411] sm:$0xff]  ;;  %v20325_v1 = vpop.f32.mrf.mxu0 }
 0x39a   :  { %v20314_v14 = vpop.f32.mrf.mxu1 }
 0x39b   :  { %23692 = vst [vmem:[#allocation91_spill] sm:$0xff] %v20311_v32  ;;  %23693 = vst [vmem:[#allocation180_spill] sm:$0xff] %v20314_v14 }
 0x39c   :  { %v16851_v18 = vpop.f32.mrf.mxu1  ;;  %17094 = vmatmul.mubr.msk.f32.gmra.mxu1 %vm183_vm0, %v6362_v10 }
 0x39d   :  { %v20320_v52 = vadd.f32 %v16851_v18, %v19919_v27  ;;  %17096 = vmatprep.mubr.msk.f32.mxu1 %vm183_vm0, %v6363_v62  ;;  %v6366_v27 = vld [vmem:[#allocation3 + $0x431] sm:$0xff]  ;;  %v20334_v18 = vpop.f32.mrf.mxu0 }
 0x39e   :  { %v20323_v28 = vpop.f32.mrf.mxu1 }
 0x39f   :  { %23694 = vst [vmem:[#allocation181_spill] sm:$0xff] %v20320_v52  ;;  %23695 = vst [vmem:[#allocation182_spill] sm:$0xff] %v20323_v28  ;;  %v6367_v52 = vld [vmem:[#allocation3 + $0x449] sm:$0xff] }
 0x3a0   :  { %v16854_v46 = vpop.f32.mrf.mxu1  ;;  %17097 = vmatmul.mubr.msk.f32.gmra.mxu1 %vm183_vm0, %v6364_v0 }
 0x3a1   :  { %v20329_v32 = vadd.f32 %v16854_v46, %v19934_v37  ;;  %17099 = vmatprep.mubr.msk.f32.mxu1 %vm183_vm0, %v6365_v5  ;;  %v6369_v37 = vld [vmem:[#allocation3 + $0x469] sm:$0xff]  ;;  %v6368_v46 = vld [vmem:[#allocation3 + $0x451] sm:$0xff] }
 0x3a2   :  { %v20332_v10 = vpop.f32.mrf.mxu1 }
 0x3a3   :  { %23696 = vst [vmem:[#allocation183_spill] sm:$0xff] %v20329_v32  ;;  %23697 = vst [vmem:[#allocation184_spill] sm:$0xff] %v20332_v10  ;;  %v20343_v32 = vpop.f32.mrf.mxu0 }
 0x3a4   :  { %v16857_v62 = vpop.f32.mrf.mxu1  ;;  %17100 = vmatmul.mubr.msk.f32.gmra.mxu1 %vm183_vm0, %v6366_v27  ;;  %v6370_v27 = vld [vmem:[#allocation3 + $0x471] sm:$0xff] }
 0x3a5   :  { %v20338_v28 = vadd.f32 %v16857_v62, %v19949_v16  ;;  %17102 = vmatprep.mubr.msk.f32.mxu1 %vm183_vm0, %v6367_v52  ;;  %v7213_v16 = vld [vmem:[#allocation3 + $0x7] sm:$0xff]  ;;  %v20352_v62 = vpop.f32.mrf.mxu0 }
 0x3a6   :  { %v20341_v0 = vpop.f32.mrf.mxu1 }
 0x3a7   :  { %23698 = vst [vmem:[#allocation185_spill] sm:$0xff] %v20338_v28  ;;  %23699 = vst [vmem:[#allocation186_spill] sm:$0xff] %v20341_v0 }
 0x3a8   :  { %v16860_v5 = vpop.f32.mrf.mxu1  ;;  %17103 = vmatmul.mubr.msk.f32.gmra.mxu1 %vm183_vm0, %v6368_v46  ;;  %v7214_v46 = vld [vmem:[#allocation3 + $0xf] sm:$0xff] }
 0x3a9   :  { %v20347_v10 = vadd.f32 %v16860_v5, %v19966_v42  ;;  %17105 = vmatprep.mubr.msk.f32.mxu1 %vm183_vm0, %v6369_v37  ;;  %v20361_v42 = vpop.f32.mrf.mxu0 }
 0x3aa   :  { %v20350_v14 = vpop.f32.mrf.mxu1 }
 0x3ab   :  { %23700 = vst [vmem:[#allocation187_spill] sm:$0xff] %v20347_v10  ;;  %23701 = vst [vmem:[#allocation188_spill] sm:$0xff] %v20350_v14  ;;  %v20369_v14 = vpop.f32.mrf.mxu0 }
 0x3ac   :  { %v16863_v52 = vpop.f32.mrf.mxu1  ;;  %17106 = vmatmul.mubr.msk.f32.gmra.mxu1 %vm183_vm0, %v6370_v27 }
 0x3ad   :  { %v20356_v28 = vadd.f32 %v16863_v52, %v19981_v24  ;;  %17208 = vmatprep.mubr.msk.f32.mxu1 %vm183_vm0, %v7213_v16  ;;  %v20376_v52 = vpop.f32.mrf.mxu0 }
 0x3ae   :  { %v20359_v0 = vpop.f32.mrf.mxu1 }
 0x3af   :  { %23702 = vst [vmem:[#allocation189_spill] sm:$0xff] %v20356_v28  ;;  %23703 = vst [vmem:[#allocation190_spill] sm:$0xff] %v20359_v0 }
 0x3b0   :  { %v16866_v37 = vpop.f32.mrf.mxu1  ;;  %17209 = vmatmul.mubr.msk.f32.vlgmr.msra.gmra.mxu1 %vm183_vm0, %v7214_v46 }
 0x3b1   :  { %v20365_v5 = vadd.f32 %v16866_v37, %v19994_v49  ;;  %v20383_v49 = vpop.f32.mrf.mxu0 }
 0x3b2   :  { %v20367_v10 = vpop.f32.mrf.mxu1 }
 0x3b3   :  { %23704 = vst [vmem:[#allocation191_spill] sm:$0xff] %v20365_v5  ;;  %23705 = vst [vmem:[#allocation192_spill] sm:$0xff] %v20367_v10 }
 0x3b4   :  { %v16869_v27 = vpop.f32.mrf.mxu1 }
 0x3b5   :  { %v20372_v24 = vadd.f32 %v16869_v27, %v20007_v59  ;;  %v20390_v59 = vpop.f32.mrf.mxu0 }
 0x3b6   :  { %v20374_v16 = vpop.f32.mrf.mxu1 }
 0x3b7   :  { %23706 = vst [vmem:[#allocation193_spill] sm:$0xff] %v20372_v24  ;;  %23707 = vst [vmem:[#allocation194_spill] sm:$0xff] %v20374_v16 }
 0x3b8   :  { %v16872_v28 = vpop.f32.mrf.mxu1 }
 0x3b9   :  { %v20379_v0 = vadd.f32 %v16872_v28, %v20020_v20  ;;  %v20397_v20 = vpop.f32.mrf.mxu0 }
 0x3ba   :  { %v20381_v46 = vpop.f32.mrf.mxu1 }
 0x3bb   :  { %23708 = vst [vmem:[#allocation195_spill] sm:$0xff] %v20379_v0  ;;  %23709 = vst [vmem:[#allocation196_spill] sm:$0xff] %v20381_v46 }
 0x3bc   :  { %v16875_v37 = vpop.f32.mrf.mxu1 }
 0x3bd   :  { %v20386_v5 = vadd.f32 %v16875_v37, %v20033_v22  ;;  %v20404_v22 = vpop.f32.mrf.mxu0 }
 0x3be   :  { %v20388_v10 = vpop.f32.mrf.mxu1 }
 0x3bf   :  { %23710 = vst [vmem:[#allocation197_spill] sm:$0xff] %v20386_v5  ;;  %23711 = vst [vmem:[#allocation198_spill] sm:$0xff] %v20388_v10 }
 0x3c0   :  { %v16878_v27 = vpop.f32.mrf.mxu1 }
 0x3c1   :  { %v20393_v24 = vadd.f32 %v16878_v27, %v20046_v23  ;;  %v20411_v23 = vpop.f32.mrf.mxu0 }
 0x3c2   :  { %v20395_v16 = vpop.f32.mrf.mxu1 }
 0x3c3   :  { %23712 = vst [vmem:[#allocation199_spill] sm:$0xff] %v20393_v24  ;;  %23713 = vst [vmem:[#allocation200_spill] sm:$0xff] %v20395_v16 }
 0x3c4   :  { %v16881_v28 = vpop.f32.mrf.mxu1 }
 0x3c5   :  { %v20400_v0 = vadd.f32 %v16881_v28, %v20059_v21  ;;  %v20418_v21 = vpop.f32.mrf.mxu0 }
 0x3c6   :  { %v20402_v46 = vpop.f32.mrf.mxu1 }
 0x3c7   :  { %23714 = vst [vmem:[#allocation201_spill] sm:$0xff] %v20400_v0  ;;  %23715 = vst [vmem:[#allocation202_spill] sm:$0xff] %v20402_v46 }
 0x3c8   :  { %v16884_v37 = vpop.f32.mrf.mxu1 }
 0x3c9   :  { %v20407_v5 = vadd.f32 %v16884_v37, %v20072_v63  ;;  %v20425_v63 = vpop.f32.mrf.mxu0 }
 0x3ca   :  { %v20409_v10 = vpop.f32.mrf.mxu1 }
 0x3cb   :  { %23716 = vst [vmem:[#allocation203_spill] sm:$0xff] %v20407_v5  ;;  %23717 = vst [vmem:[#allocation204_spill] sm:$0xff] %v20409_v10 }
 0x3cc   :  { %v16887_v27 = vpop.f32.mrf.mxu1 }
 0x3cd   :  { %v20414_v24 = vadd.f32 %v16887_v27, %v20085_v25  ;;  %v20432_v25 = vpop.f32.mrf.mxu0 }
 0x3ce   :  { %v20416_v16 = vpop.f32.mrf.mxu1 }
 0x3cf   :  { %23718 = vst [vmem:[#allocation205_spill] sm:$0xff] %v20414_v24  ;;  %23719 = vst [vmem:[#allocation206_spill] sm:$0xff] %v20416_v16 }
 0x3d0   :  { %v16890_v28 = vpop.f32.mrf.mxu1 }
 0x3d1   :  { %v20421_v0 = vadd.f32 %v16890_v28, %v20098_v30  ;;  %v20439_v30 = vpop.f32.mrf.mxu0 }
 0x3d2   :  { %v20423_v46 = vpop.f32.mrf.mxu1 }
 0x3d3   :  { %23720 = vst [vmem:[#allocation207_spill] sm:$0xff] %v20421_v0  ;;  %23721 = vst [vmem:[#allocation208_spill] sm:$0xff] %v20423_v46 }
 0x3d4   :  { %v16893_v37 = vpop.f32.mrf.mxu1 }
 0x3d5   :  { %v20428_v5 = vadd.f32 %v16893_v37, %v20111_v58  ;;  %v20446_v58 = vpop.f32.mrf.mxu0 }
 0x3d6   :  { %v20430_v10 = vpop.f32.mrf.mxu1  ;;  %23728 = vst [vmem:[#allocation215_spill] sm:$0xff] %v20446_v58 }
 0x3d7   :  { %23722 = vst [vmem:[#allocation209_spill] sm:$0xff] %v20428_v5  ;;  %23723 = vst [vmem:[#allocation210_spill] sm:$0xff] %v20430_v10 }
 0x3d8   :  { %v16896_v27 = vpop.f32.mrf.mxu1 }
 0x3d9   :  { %v20435_v24 = vadd.f32 %v16896_v27, %v20124_v44  ;;  %v20453_v44 = vpop.f32.mrf.mxu0 }
 0x3da   :  { %v20437_v16 = vpop.f32.mrf.mxu1  ;;  %23731 = vst [vmem:[#allocation218_spill] sm:$0xff] %v20453_v44  ;;  %v23744_v44 = vld [vmem:[#allocation77_spill] sm:$0xff] }
 0x3db   :  { %23724 = vst [vmem:[#allocation211_spill] sm:$0xff] %v20435_v24  ;;  %23725 = vst [vmem:[#allocation212_spill] sm:$0xff] %v20437_v16  ;;  %v6245_v58 = vadd.f32 %v20230_v26, %v23744_v44  ;;  %v23746_v44 = vld [vmem:[#allocation79_spill] sm:$0xff] }
 0x3dc   :  { %v16899_v28 = vpop.f32.mrf.mxu1 }
 0x3dd   :  { %v20442_v0 = vadd.f32 %v16899_v28, %v20137_v40  ;;  %v20460_v40 = vpop.f32.mrf.mxu0 }
 0x3de   :  { %v20444_v46 = vpop.f32.mrf.mxu1  ;;  %23734 = vst [vmem:[#allocation221_spill] sm:$0xff] %v20460_v40 }
 0x3df   :  { %23726 = vst [vmem:[#allocation213_spill] sm:$0xff] %v20442_v0  ;;  %23727 = vst [vmem:[#allocation214_spill] sm:$0xff] %v20444_v46 }
 0x3e0   :  { %v16902_v37 = vpop.f32.mrf.mxu1 }
 0x3e1   :  { %v20449_v5 = vadd.f32 %v16902_v37, %v20150_v2  ;;  %v20467_v2 = vpop.f32.mrf.mxu0 }
 0x3e2   :  { %v20451_v10 = vpop.f32.mrf.mxu1  ;;  %23737 = vst [vmem:[#allocation224_spill] sm:$0xff] %v20467_v2 }
 0x3e3   :  { %23729 = vst [vmem:[#allocation216_spill] sm:$0xff] %v20449_v5  ;;  %23730 = vst [vmem:[#allocation217_spill] sm:$0xff] %v20451_v10 }
 0x3e4   :  { %v16905_v27 = vpop.f32.mrf.mxu1 }
 0x3e5   :  { %v20456_v24 = vadd.f32 %v16905_v27, %v20163_v41  ;;  %v20474_v41 = vpop.f32.mrf.mxu0 }
 0x3e6   :  { %v20458_v16 = vpop.f32.mrf.mxu1  ;;  %23740 = vst [vmem:[#allocation227_spill] sm:$0xff] %v20474_v41  ;;  %v23743_v41 = vld [vmem:[#allocation76_spill] sm:$0xff] }
 0x3e7   :  { %23732 = vst [vmem:[#allocation219_spill] sm:$0xff] %v20456_v24  ;;  %23733 = vst [vmem:[#allocation220_spill] sm:$0xff] %v20458_v16  ;;  %v23741_v24 = vld [vmem:[#allocation74_spill] sm:$0xff] }
 0x3e8   :  { %v16908_v28 = vpop.f32.mrf.mxu1  ;;  %v6244_v16 = vadd.f32 %v20200_v35, %v23741_v24  ;;  %v6246_v35 = vadd.f32 %v20220_v19, %v23743_v41  ;;  %v23745_v19 = vld [vmem:[#allocation78_spill] sm:$0xff] }
 0x3e9   :  { %v20463_v0 = vadd.f32 %v16908_v28, %v20176_v53  ;;  %v20482_v53 = vld [vmem:[%s23353_s2] ss:$0 sm:$0xff]  ;;  %v6248_v41 = vadd.f32 %v20240_v51, %v23745_v19  ;;  %v14306_v51 = vld [vmem:[%s23352_s3 + $0x8] sm:$0xff] }
 0x3ea   :  { %v20465_v46 = vpop.f32.mrf.mxu1  ;;  %17402 = vmatprep.subr.mxu1 %v14306_v51 }
 0x3eb   :  { %23735 = vst [vmem:[#allocation222_spill] sm:$0xff] %v20463_v0  ;;  %23736 = vst [vmem:[#allocation223_spill] sm:$0xff] %v20465_v46  ;;  %v23742_v0 = vld [vmem:[#allocation75_spill] sm:$0xff]  ;;  %17403 = vmatpush3.msra.mxu1 %v14306_v51 }
 0x3ec   :  { %v16911_v37 = vpop.f32.mrf.mxu1 }
 0x3ed   :  { %v20470_v5 = vadd.f32 %v16911_v37, %v20189_v9  ;;  %v6243_v9 = vadd.f32 %v20210_v55, %v23742_v0 }
 0x3ee   :  { %v20472_v10 = vpop.f32.mrf.mxu1 }
 0x3ef   :  { %23738 = vst [vmem:[#allocation225_spill] sm:$0xff] %v20470_v5  ;;  %23739 = vst [vmem:[#allocation226_spill] sm:$0xff] %v20472_v10  ;;  %v20487_v10 = vpop.f32.mrf.mxu0 }
 0x3f0   :  { %v17014_v27 = vpop.f32.mrf.mxu1 }
 0x3f1   :  { %v6951_v40 = vadd.f32 %v17014_v27, %v20204_v8 }
 0x3f2   :  { %v6631_v28 = vpop.f32.mrf.mxu1 }
 0x3f3   :  { %v7015_v37 = vadd.f32 %v6951_v40, %v6244_v16  ;;  %v6950_v5 = vadd.f32 %v6631_v28, %v20208_v50  ;;  %v20498_v16 = vpop.f32.mrf.mxu0  ;;  %v6247_v28 = vadd.f32 %v20257_v48, %v23746_v44  ;;  %v23747_v48 = vld [vmem:[#allocation80_spill] sm:$0xff] }
 0x3f4   :  { %v17017_v46 = vpop.f32.mrf.mxu1 }
 0x3f5   :  { %v7086_v8 = vadd.f32 %v20482_v53, %v7015_v37  ;;  %v7014_v24 = vadd.f32 %v6950_v5, %v6243_v9  ;;  %v6953_v27 = vadd.f32 %v17017_v46, %v20214_v11 }
 0x3f6   :  { %v6641_v2 = vpop.f32.mrf.mxu1 }
 0x3f7   :  { %7150 = vst.msk [vmem:[#allocation3 + $0x30] sm:$0xff] %vm183_vm0, %v7086_v8  ;;  %v7085_v55 = vadd.f32 %v20482_v53, %v7014_v24  ;;  %v7017_v50 = vadd.f32 %v6953_v27, %v6246_v35  ;;  %v6952_v0 = vadd.f32 %v6641_v2, %v20218_v54  ;;  %v6250_v35 = vadd.f32 %v20268_v47, %v23747_v48  ;;  %v23749_v47 = vld [vmem:[#allocation82_spill] sm:$0xff] }
 0x3f8   :  { %v17020_v40 = vpop.f32.mrf.mxu1 }
 0x3f9   :  { %7149 = vst.msk [vmem:[#allocation3 + $0x28] sm:$0xff] %vm183_vm0, %v7085_v55  ;;  %v7088_v11 = vadd.f32 %v20482_v53, %v7017_v50  ;;  %v7016_v5 = vadd.f32 %v6952_v0, %v6245_v58  ;;  %v6955_v26 = vadd.f32 %v17020_v40, %v20224_v36  ;;  %v14565_v58 = vld [vmem:[%s23352_s3 + $0x20] sm:$0xff]  ;;  %v20516_v36 = vpop.f32.mrf.mxu0  ;;  %v23748_v55 = vld [vmem:[#allocation81_spill] sm:$0xff] }
 0x3fa   :  { %v6651_v46 = vpop.f32.mrf.mxu1  ;;  %17500 = vmatprep.subr.mxu0 %v14565_v58  ;;  %v6249_v50 = vadd.f32 %v20278_v43, %v23748_v55  ;;  %v23751_v58 = vld [vmem:[#allocation84_spill] sm:$0xff] }
 0x3fb   :  { %7152 = vst.msk [vmem:[#allocation3 + $0x50] sm:$0xff] %vm183_vm0, %v7088_v11  ;;  %v7087_v54 = vadd.f32 %v20482_v53, %v7016_v5  ;;  %v7019_v2 = vadd.f32 %v6955_v26, %v6248_v41  ;;  %v6954_v9 = vadd.f32 %v6651_v46, %v20228_v17  ;;  %v6252_v41 = vadd.f32 %v20288_v31, %v23749_v47  ;;  %v20530_v11 = vpop.f32.mrf.mxu0  ;;  %v23750_v31 = vld [vmem:[#allocation83_spill] sm:$0xff]  ;;  %v23753_v47 = vld [vmem:[#allocation86_spill] sm:$0xff] }
 0x3fc   :  { %v17023_v37 = vpop.f32.mrf.mxu1 }
 0x3fd   :  { %7151 = vst.msk [vmem:[#allocation3 + $0x48] sm:$0xff] %vm183_vm0, %v7087_v54  ;;  %v7090_v17 = vadd.f32 %v20482_v53, %v7019_v2  ;;  %v7018_v8 = vadd.f32 %v6954_v9, %v6247_v28  ;;  %v6957_v24 = vadd.f32 %v17023_v37, %v20234_v45  ;;  %v6251_v2 = vadd.f32 %v20298_v38, %v23750_v31  ;;  %v20546_v48 = vpop.f32.mrf.mxu0 }
 0x3fe   :  { %v6661_v27 = vpop.f32.mrf.mxu1  ;;  %v6254_v37 = vadd.f32 %v20307_v4, %v23751_v58  ;;  %v23752_v4 = vld [vmem:[#allocation85_spill] sm:$0xff] }
 0x3ff   :  { %7154 = vst.msk [vmem:[#allocation3 + $0x70] sm:$0xff] %vm183_vm0, %v7090_v17  ;;  %v7089_v0 = vadd.f32 %v20482_v53, %v7018_v8  ;;  %v7021_v40 = vadd.f32 %v6957_v24, %v6250_v35  ;;  %v6956_v19 = vadd.f32 %v6661_v27, %v20238_v29  ;;  %v7347_v29 = vld [vmem:[#allocation3 + $0x31] sm:$0xff] }
 0x400   :  { %v17026_v5 = vpop.f32.mrf.mxu1  ;;  %v7346_v26 = vld [vmem:[#allocation3 + $0x29] sm:$0xff] }
 0x401   :  { %v7215_v45 = vld [vmem:[#allocation3 + $0x27] sm:$0xff]  ;;  %v7216_v46 = vld [vmem:[#allocation3 + $0x2f] sm:$0xff]  ;;  %7153 = vst.msk [vmem:[#allocation3 + $0x68] sm:$0xff] %vm183_vm0, %v7089_v0  ;;  %v7092_v43 = vadd.f32 %v20482_v53, %v7021_v40  ;;  %v7020_v44 = vadd.f32 %v6956_v19, %v6249_v50  ;;  %v6959_v28 = vadd.f32 %v17026_v5, %v20244_v34  ;;  %17113 = vmatprep.mubr.msk.f32.mxu0 %vm183_vm0, %v7346_v26  ;;  %v20562_v5 = vpop.f32.mrf.mxu0 }
 0x402   :  { %17211 = vmatprep.mubr.msk.f32.mxu1 %vm183_vm0, %v7215_v45  ;;  %v6671_v54 = vpop.f32.mrf.mxu1  ;;  %17114 = vmatmul.mubr.msk.f32.gmra.mxu0 %vm183_vm0, %v7347_v29  ;;  %v6253_v0 = vadd.f32 %v20316_v33, %v23752_v4  ;;  %v23758_v4 = vld [vmem:[#allocation149_spill] sm:$0xff] }
 0x403   :  { %17212 = vmatmul.mubr.msk.f32.gmra.mxu1 %vm183_vm0, %v7216_v46  ;;  %7156 = vst.msk [vmem:[#allocation3 + $0x90] sm:$0xff] %vm183_vm0, %v7092_v43  ;;  %v7091_v9 = vadd.f32 %v20482_v53, %v7020_v44  ;;  %v7023_v51 = vadd.f32 %v6959_v28, %v6252_v41  ;;  %v6958_v34 = vadd.f32 %v6671_v54, %v20252_v7  ;;  %v7349_v7 = vld [vmem:[#allocation3 + $0x51] sm:$0xff] }
 0x404   :  { %v17029_v35 = vpop.f32.mrf.mxu1  ;;  %v7348_v17 = vld [vmem:[#allocation3 + $0x49] sm:$0xff]  ;;  %v6256_v41 = vadd.f32 %v20325_v1, %v23753_v47  ;;  %v23754_v1 = vld [vmem:[#allocation87_spill] sm:$0xff] }
 0x405   :  { %v7217_v8 = vld [vmem:[#allocation3 + $0x47] sm:$0xff]  ;;  %v7218_v24 = vld [vmem:[#allocation3 + $0x4f] sm:$0xff]  ;;  %7155 = vst.msk [vmem:[#allocation3 + $0x88] sm:$0xff] %vm183_vm0, %v7091_v9  ;;  %v7094_v38 = vadd.f32 %v20482_v53, %v7023_v51  ;;  %v7022_v27 = vadd.f32 %v6958_v34, %v6251_v2  ;;  %v6961_v55 = vadd.f32 %v17029_v35, %v20262_v3  ;;  %17116 = vmatprep.mubr.msk.f32.mxu0 %vm183_vm0, %v7348_v17  ;;  %v20578_v34 = vpop.f32.mrf.mxu0 }
 0x406   :  { %17214 = vmatprep.mubr.msk.f32.mxu1 %vm183_vm0, %v7217_v8  ;;  %v6681_v50 = vpop.f32.mrf.mxu1  ;;  %17117 = vmatmul.mubr.msk.f32.gmra.mxu0 %vm183_vm0, %v7349_v7  ;;  %v6255_v54 = vadd.f32 %v20334_v18, %v23754_v1  ;;  %v23755_v9 = vld [vmem:[#allocation88_spill] sm:$0xff] }
 0x407   :  { %17215 = vmatmul.mubr.msk.f32.gmra.mxu1 %vm183_vm0, %v7218_v24  ;;  %7158 = vst.msk [vmem:[#allocation3 + $0xb0] sm:$0xff] %vm183_vm0, %v7094_v38  ;;  %v7093_v40 = vadd.f32 %v20482_v53, %v7022_v27  ;;  %v7025_v19 = vadd.f32 %v6961_v55, %v6254_v37  ;;  %v6960_v3 = vadd.f32 %v6681_v50, %v20266_v61  ;;  %v7351_v61 = vld [vmem:[#allocation3 + $0x71] sm:$0xff] }
 0x408   :  { %v17032_v26 = vpop.f32.mrf.mxu1  ;;  %v7350_v45 = vld [vmem:[#allocation3 + $0x69] sm:$0xff]  ;;  %v6258_v51 = vadd.f32 %v20343_v32, %v23755_v9  ;;  %v23757_v50 = vld [vmem:[#allocation123_spill] sm:$0xff] }
 0x409   :  { %v7219_v46 = vld [vmem:[#allocation3 + $0x67] sm:$0xff]  ;;  %v7220_v43 = vld [vmem:[#allocation3 + $0x6f] sm:$0xff]  ;;  %7157 = vst.msk [vmem:[#allocation3 + $0xa8] sm:$0xff] %vm183_vm0, %v7093_v40  ;;  %v7096_v33 = vadd.f32 %v20482_v53, %v7025_v19  ;;  %v7024_v44 = vadd.f32 %v6960_v3, %v6253_v0  ;;  %v6963_v28 = vadd.f32 %v17032_v26, %v20272_v56  ;;  %17119 = vmatprep.mubr.msk.f32.mxu0 %vm183_vm0, %v7350_v45  ;;  %v20596_v3 = vpop.f32.mrf.mxu0 }
 0x40a   :  { %17217 = vmatprep.mubr.msk.f32.mxu1 %vm183_vm0, %v7219_v46  ;;  %v6691_v29 = vpop.f32.mrf.mxu1  ;;  %17120 = vmatmul.mubr.msk.f32.gmra.mxu0 %vm183_vm0, %v7351_v61  ;;  %v23756_v32 = vld [vmem:[#allocation89_spill] sm:$0xff]  ;;  %v4844_v0 = vadd.f32 %v23758_v4, %v23757_v50  ;;  %v23759_v40 = vld [vmem:[#allocation90_spill] sm:$0xff] }
 0x40b   :  { %17218 = vmatmul.mubr.msk.f32.gmra.mxu1 %vm183_vm0, %v7220_v43  ;;  %7160 = vst.msk [vmem:[#allocation3 + $0xd0] sm:$0xff] %vm183_vm0, %v7096_v33  ;;  %v7095_v31 = vadd.f32 %v20482_v53, %v7024_v44  ;;  %v7027_v2 = vadd.f32 %v6963_v28, %v6256_v41  ;;  %v6962_v56 = vadd.f32 %v6691_v29, %v20276_v15  ;;  %v7353_v15 = vld [vmem:[#allocation3 + $0x91] sm:$0xff]  ;;  %v20615_v9 = vpop.f32.mrf.mxu0 }
 0x40c   :  { %v17035_v58 = vpop.f32.mrf.mxu1  ;;  %v7352_v37 = vld [vmem:[#allocation3 + $0x89] sm:$0xff]  ;;  %v6257_v27 = vadd.f32 %v20352_v62, %v23756_v32  ;;  %v6260_v19 = vadd.f32 %v20361_v42, %v23759_v40  ;;  %v6259_v42 = vadd.f32 %v20369_v14, %v4844_v0 }
 0x40d   :  { %v7221_v35 = vld [vmem:[#allocation3 + $0x87] sm:$0xff]  ;;  %v7222_v17 = vld [vmem:[#allocation3 + $0x8f] sm:$0xff]  ;;  %7159 = vst.msk [vmem:[#allocation3 + $0xc8] sm:$0xff] %vm183_vm0, %v7095_v31  ;;  %v7098_v18 = vadd.f32 %v20482_v53, %v7027_v2  ;;  %v7026_v8 = vadd.f32 %v6962_v56, %v6255_v54  ;;  %v6965_v24 = vadd.f32 %v17035_v58, %v20282_v57  ;;  %17122 = vmatprep.mubr.msk.f32.mxu0 %vm183_vm0, %v7352_v37  ;;  %v20633_v4 = vpop.f32.mrf.mxu0 }
 0x40e   :  { %17220 = vmatprep.mubr.msk.f32.mxu1 %vm183_vm0, %v7221_v35  ;;  %v6701_v38 = vpop.f32.mrf.mxu1  ;;  %17123 = vmatmul.mubr.msk.f32.gmra.mxu0 %vm183_vm0, %v7353_v15  ;;  %v23761_v29 = vld [vmem:[#allocation150_spill] sm:$0xff]  ;;  %v23762_v54 = vld [vmem:[#allocation92_spill] sm:$0xff]  ;;  %v23763_v2 = vld [vmem:[#allocation93_spill] sm:$0xff] }
 0x40f   :  { %17221 = vmatmul.mubr.msk.f32.gmra.mxu1 %vm183_vm0, %v7222_v17  ;;  %7162 = vst.msk [vmem:[#allocation3 + $0xf0] sm:$0xff] %vm183_vm0, %v7098_v18  ;;  %v7097_v55 = vadd.f32 %v20482_v53, %v7026_v8  ;;  %v7029_v7 = vadd.f32 %v6965_v24, %v6258_v51  ;;  %v6964_v57 = vadd.f32 %v6701_v38, %v20286_v13  ;;  %v7355_v13 = vld [vmem:[#allocation3 + $0xb1] sm:$0xff]  ;;  %v23764_v38 = vld [vmem:[#allocation97_spill] sm:$0xff] }
 0x410   :  { %v17038_v47 = vpop.f32.mrf.mxu1  ;;  %v7354_v41 = vld [vmem:[#allocation3 + $0xa9] sm:$0xff]  ;;  %v6262_v31 = vadd.f32 %v20376_v52, %v23762_v54  ;;  %v5554_v56 = vadd.f32 %v20305_v60, %v23763_v2 }
 0x411   :  { %v7223_v26 = vld [vmem:[#allocation3 + $0xa7] sm:$0xff]  ;;  %v7224_v45 = vld [vmem:[#allocation3 + $0xaf] sm:$0xff]  ;;  %7161 = vst.msk [vmem:[#allocation3 + $0xe8] sm:$0xff] %vm183_vm0, %v7097_v55  ;;  %v7100_v62 = vadd.f32 %v20482_v53, %v7029_v7  ;;  %v7028_v46 = vadd.f32 %v6964_v57, %v6257_v27  ;;  %v6967_v43 = vadd.f32 %v17038_v47, %v20292_v12  ;;  %17125 = vmatprep.mubr.msk.f32.mxu0 %vm183_vm0, %v7354_v41  ;;  %v23766_v27 = vld [vmem:[#allocation95_spill] sm:$0xff] }
 0x412   :  { %17223 = vmatprep.mubr.msk.f32.mxu1 %vm183_vm0, %v7223_v26  ;;  %v6711_v33 = vpop.f32.mrf.mxu1  ;;  %17126 = vmatmul.mubr.msk.f32.gmra.mxu0 %vm183_vm0, %v7355_v13  ;;  %v23760_v12 = vld [vmem:[#allocation94_spill] sm:$0xff]  ;;  %v6264_v55 = vadd.f32 %v20390_v59, %v23766_v27  ;;  %v23767_v7 = vld [vmem:[#allocation96_spill] sm:$0xff]  ;;  %v23769_v26 = vld [vmem:[#allocation91_spill] sm:$0xff] }
 0x413   :  { %17224 = vmatmul.mubr.msk.f32.gmra.mxu1 %vm183_vm0, %v7224_v45  ;;  %7164 = vst.msk [vmem:[#allocation3 + $0x110] sm:$0xff] %vm183_vm0, %v7100_v62  ;;  %v7099_v44 = vadd.f32 %v20482_v53, %v7028_v46  ;;  %v7031_v28 = vadd.f32 %v6967_v43, %v6260_v19  ;;  %v6966_v61 = vadd.f32 %v6711_v33, %v20296_v6  ;;  %v7357_v52 = vld [vmem:[#allocation3 + $0xd1] sm:$0xff]  ;;  %v23768_v57 = vld [vmem:[#allocation180_spill] sm:$0xff] }
 0x414   :  { %v4846_v1 = vadd.f32 %v23761_v29, %v23760_v12  ;;  %v17041_v51 = vpop.f32.mrf.mxu1  ;;  %v7356_v14 = vld [vmem:[#allocation3 + $0xc9] sm:$0xff]  ;;  %v5556_v50 = vadd.f32 %v23768_v57, %v23767_v7  ;;  %v23773_v29 = vld [vmem:[#allocation20_spill] sm:$0xff] }
 0x415   :  { %v7225_v58 = vld [vmem:[#allocation3 + $0xc7] sm:$0xff]  ;;  %v7226_v37 = vld [vmem:[#allocation3 + $0xcf] sm:$0xff]  ;;  %7163 = vst.msk [vmem:[#allocation3 + $0x108] sm:$0xff] %vm183_vm0, %v7099_v44  ;;  %v7102_v35 = vadd.f32 %v20482_v53, %v7031_v28  ;;  %v7030_v6 = vadd.f32 %v6966_v61, %v6259_v42  ;;  %v6969_v17 = vadd.f32 %v17041_v51, %v20302_v39  ;;  %17128 = vmatprep.mubr.msk.f32.mxu0 %vm183_vm0, %v7356_v14  ;;  %v23765_v39 = vld [vmem:[#allocation151_spill] sm:$0xff] }
 0x416   :  { %17226 = vmatprep.mubr.msk.f32.mxu1 %vm183_vm0, %v7225_v58  ;;  %v6721_v18 = vpop.f32.mrf.mxu1  ;;  %17129 = vmatmul.mubr.msk.f32.gmra.mxu0 %vm183_vm0, %v7357_v52  ;;  %v6261_v60 = vadd.f32 %v20383_v49, %v4846_v1  ;;  %v4848_v32 = vadd.f32 %v23765_v39, %v23764_v38  ;;  %v7359_v59 = vld [vmem:[#allocation3 + $0xf1] sm:$0xff]  ;;  %v23771_v44 = vld [vmem:[#allocation152_spill] sm:$0xff] }
 0x417   :  { %17227 = vmatmul.mubr.msk.f32.gmra.mxu1 %vm183_vm0, %v7226_v37  ;;  %7166 = vst.msk [vmem:[#allocation3 + $0x130] sm:$0xff] %vm183_vm0, %v7102_v35  ;;  %v7101_v8 = vadd.f32 %v20482_v53, %v7030_v6  ;;  %v7033_v24 = vadd.f32 %v6969_v17, %v6262_v31  ;;  %v6968_v15 = vadd.f32 %v6721_v18, %v5554_v56  ;;  %v23770_v42 = vld [vmem:[#allocation23_spill] sm:$0xff]  ;;  %v23772_v61 = vld [vmem:[#allocation98_spill] sm:$0xff]  ;;  %v20651_v31 = vpop.f32.mrf.mxu0  ;;  %v23775_v37 = vld [vmem:[#allocation181_spill] sm:$0xff] }
 0x418   :  { %v17044_v0 = vpop.f32.mrf.mxu1  ;;  %v7358_v40 = vld [vmem:[#allocation3 + $0xe9] sm:$0xff]  ;;  %v6263_v46 = vadd.f32 %v20397_v20, %v4848_v32  ;;  %v4850_v28 = vadd.f32 %v23771_v44, %v23770_v42  ;;  %v6266_v12 = vadd.f32 %v20404_v22, %v23772_v61  ;;  %v23778_v38 = vld [vmem:[#allocation99_spill] sm:$0xff]  ;;  %v23780_v27 = vld [vmem:[#allocation184_spill] sm:$0xff] }
 0x419   :  { %v7227_v49 = vld [vmem:[#allocation3 + $0xe7] sm:$0xff]  ;;  %v7228_v19 = vld [vmem:[#allocation3 + $0xef] sm:$0xff]  ;;  %7165 = vst.msk [vmem:[#allocation3 + $0x128] sm:$0xff] %vm183_vm0, %v7101_v8  ;;  %v7104_v47 = vadd.f32 %v20482_v53, %v7033_v24  ;;  %v7032_v41 = vadd.f32 %v6968_v15, %v6261_v60  ;;  %v6971_v45 = vadd.f32 %v17044_v0, %v23769_v26  ;;  %17131 = vmatprep.mubr.msk.f32.mxu0 %vm183_vm0, %v7358_v40  ;;  %v20669_v7 = vpop.f32.mrf.mxu0 }
 0x41a   :  { %17229 = vmatprep.mubr.msk.f32.mxu1 %vm183_vm0, %v7227_v49  ;;  %v6731_v62 = vpop.f32.mrf.mxu1  ;;  %17132 = vmatmul.mubr.msk.f32.gmra.mxu0 %vm183_vm0, %v7359_v59  ;;  %v23774_v1 = vld [vmem:[#allocation182_spill] sm:$0xff]  ;;  %v6265_v17 = vadd.f32 %v20411_v23, %v4850_v28  ;;  %v23776_v8 = vld [vmem:[#allocation100_spill] sm:$0xff]  ;;  %v23777_v24 = vld [vmem:[#allocation153_spill] sm:$0xff]  ;;  %v6268_v39 = vadd.f32 %v20418_v21, %v23778_v38 }
 0x41b   :  { %17230 = vmatmul.mubr.msk.f32.gmra.mxu1 %vm183_vm0, %v7228_v19  ;;  %7168 = vst.msk [vmem:[#allocation3 + $0x150] sm:$0xff] %vm183_vm0, %v7104_v47  ;;  %v7103_v43 = vadd.f32 %v20482_v53, %v7032_v41  ;;  %v7035_v13 = vadd.f32 %v6971_v45, %v6264_v55  ;;  %v6970_v33 = vadd.f32 %v6731_v62, %v5556_v50  ;;  %v7361_v22 = vld [vmem:[#allocation3 + $0x111] sm:$0xff]  ;;  %v23779_v32 = vld [vmem:[#allocation25_spill] sm:$0xff]  ;;  %v23785_v44 = vld [vmem:[#allocation28_spill] sm:$0xff] }
 0x41c   :  { %v5558_v54 = vadd.f32 %v23774_v1, %v23773_v29  ;;  %v17047_v2 = vpop.f32.mrf.mxu1  ;;  %v7360_v56 = vld [vmem:[#allocation3 + $0x109] sm:$0xff]  ;;  %v4852_v15 = vadd.f32 %v23777_v24, %v23776_v8  ;;  %v5560_v55 = vadd.f32 %v23780_v27, %v23779_v32  ;;  %v23781_v19 = vld [vmem:[#allocation183_spill] sm:$0xff] }
 0x41d   :  { %v7229_v20 = vld [vmem:[#allocation3 + $0x107] sm:$0xff]  ;;  %v7230_v51 = vld [vmem:[#allocation3 + $0x10f] sm:$0xff]  ;;  %7167 = vst.msk [vmem:[#allocation3 + $0x148] sm:$0xff] %vm183_vm0, %v7103_v43  ;;  %v7106_v14 = vadd.f32 %v20482_v53, %v7035_v13  ;;  %v7034_v58 = vadd.f32 %v6970_v33, %v6263_v46  ;;  %v6973_v35 = vadd.f32 %v17047_v2, %v23775_v37  ;;  %17134 = vmatprep.mubr.msk.f32.mxu0 %vm183_vm0, %v7360_v56 }
 0x41e   :  { %17232 = vmatprep.mubr.msk.f32.mxu1 %vm183_vm0, %v7229_v20  ;;  %v6741_v6 = vpop.f32.mrf.mxu1  ;;  %17135 = vmatmul.mubr.msk.f32.gmra.mxu0 %vm183_vm0, %v7361_v22  ;;  %v7363_v21 = vld [vmem:[#allocation3 + $0x131] sm:$0xff]  ;;  %v6267_v26 = vadd.f32 %v20425_v63, %v4852_v15  ;;  %v23782_v46 = vld [vmem:[#allocation101_spill] sm:$0xff]  ;;  %v23793_v15 = vld [vmem:[#allocation188_spill] sm:$0xff] }
 0x41f   :  { %17233 = vmatmul.mubr.msk.f32.gmra.mxu1 %vm183_vm0, %v7230_v51  ;;  %7170 = vst.msk [vmem:[#allocation3 + $0x170] sm:$0xff] %vm183_vm0, %v7106_v14  ;;  %v7105_v52 = vadd.f32 %v20482_v53, %v7034_v58  ;;  %v7037_v18 = vadd.f32 %v6973_v35, %v6266_v12  ;;  %v6972_v60 = vadd.f32 %v6741_v6, %v5558_v54  ;;  %v23783_v43 = vld [vmem:[#allocation154_spill] sm:$0xff]  ;;  %v20687_v12 = vpop.f32.mrf.mxu0  ;;  %v23787_v20 = vld [vmem:[#allocation185_spill] sm:$0xff]  ;;  %v23788_v6 = vld [vmem:[#allocation103_spill] sm:$0xff] }
 0x420   :  { %v17050_v57 = vpop.f32.mrf.mxu1  ;;  %v7362_v50 = vld [vmem:[#allocation3 + $0x129] sm:$0xff]  ;;  %v4854_v13 = vadd.f32 %v23783_v43, %v23782_v46  ;;  %v23798_v46 = vld [vmem:[#allocation156_spill] sm:$0xff] }
 0x421   :  { %v7231_v23 = vld [vmem:[#allocation3 + $0x127] sm:$0xff]  ;;  %v7232_v0 = vld [vmem:[#allocation3 + $0x12f] sm:$0xff]  ;;  %7169 = vst.msk [vmem:[#allocation3 + $0x168] sm:$0xff] %vm183_vm0, %v7105_v52  ;;  %v7108_v40 = vadd.f32 %v20482_v53, %v7037_v18  ;;  %v7036_v49 = vadd.f32 %v6972_v60, %v6265_v17  ;;  %v6975_v47 = vadd.f32 %v17050_v57, %v23781_v19  ;;  %17137 = vmatprep.mubr.msk.f32.mxu0 %vm183_vm0, %v7362_v50  ;;  %v23789_v17 = vld [vmem:[#allocation155_spill] sm:$0xff] }
 0x422   :  { %17235 = vmatprep.mubr.msk.f32.mxu1 %vm183_vm0, %v7231_v23  ;;  %v6751_v41 = vpop.f32.mrf.mxu1  ;;  %17138 = vmatmul.mubr.msk.f32.gmra.mxu0 %vm183_vm0, %v7363_v21  ;;  %v23784_v33 = vld [vmem:[#allocation102_spill] sm:$0xff]  ;;  %v6269_v58 = vadd.f32 %v20439_v30, %v4854_v13  ;;  %v4856_v52 = vadd.f32 %v23789_v17, %v23788_v6  ;;  %v23790_v18 = vld [vmem:[#allocation104_spill] sm:$0xff]  ;;  %v23791_v60 = vld [vmem:[#allocation215_spill] sm:$0xff] }
 0x423   :  { %17236 = vmatmul.mubr.msk.f32.gmra.mxu1 %vm183_vm0, %v7232_v0  ;;  %7172 = vst.msk [vmem:[#allocation3 + $0x190] sm:$0xff] %vm183_vm0, %v7108_v40  ;;  %v7107_v45 = vadd.f32 %v20482_v53, %v7036_v49  ;;  %v7039_v59 = vadd.f32 %v6975_v47, %v6268_v39  ;;  %v6974_v62 = vadd.f32 %v6751_v41, %v5560_v55  ;;  %v23786_v28 = vld [vmem:[#allocation186_spill] sm:$0xff]  ;;  %v23792_v24 = vld [vmem:[#allocation105_spill] sm:$0xff]  ;;  %v20705_v39 = vpop.f32.mrf.mxu0  ;;  %v23794_v23 = vld [vmem:[#allocation187_spill] sm:$0xff] }
 0x424   :  { %v6270_v42 = vadd.f32 %v20432_v25, %v23784_v33  ;;  %v5562_v61 = vadd.f32 %v23786_v28, %v23785_v44  ;;  %v17053_v29 = vpop.f32.mrf.mxu1  ;;  %v7364_v1 = vld [vmem:[#allocation3 + $0x149] sm:$0xff]  ;;  %v7365_v25 = vld [vmem:[#allocation3 + $0x151] sm:$0xff]  ;;  %v6272_v8 = vadd.f32 %v23791_v60, %v23790_v18  ;;  %v5564_v38 = vadd.f32 %v23793_v15, %v23792_v24  ;;  %v23805_v17 = vld [vmem:[#allocation160_spill] sm:$0xff] }
 0x425   :  { %v7233_v63 = vld [vmem:[#allocation3 + $0x147] sm:$0xff]  ;;  %v7234_v54 = vld [vmem:[#allocation3 + $0x14f] sm:$0xff]  ;;  %7171 = vst.msk [vmem:[#allocation3 + $0x188] sm:$0xff] %vm183_vm0, %v7107_v45  ;;  %v7110_v2 = vadd.f32 %v20482_v53, %v7039_v59  ;;  %v7038_v56 = vadd.f32 %v6974_v62, %v6267_v26  ;;  %v6977_v51 = vadd.f32 %v17053_v29, %v23787_v20  ;;  %17140 = vmatprep.mubr.msk.f32.mxu0 %vm183_vm0, %v7364_v1  ;;  %v20726_v28 = vpop.f32.mrf.mxu0  ;;  %v23806_v18 = vld [vmem:[#allocation159_spill] sm:$0xff] }
 0x426   :  { %17238 = vmatprep.mubr.msk.f32.mxu1 %vm183_vm0, %v7233_v63  ;;  %v6761_v14 = vpop.f32.mrf.mxu1  ;;  %17141 = vmatmul.mubr.msk.f32.gmra.mxu0 %vm183_vm0, %v7365_v25  ;;  %v7367_v40 = vld [vmem:[#allocation3 + $0x171] sm:$0xff]  ;;  %v23796_v45 = vld [vmem:[#allocation124_spill] sm:$0xff]  ;;  %v23797_v59 = vld [vmem:[#allocation157_spill] sm:$0xff] }
 0x427   :  { %17239 = vmatmul.mubr.msk.f32.gmra.mxu1 %vm183_vm0, %v7234_v54  ;;  %7174 = vst.msk [vmem:[#allocation3 + $0x1b0] sm:$0xff] %vm183_vm0, %v7110_v2  ;;  %v7109_v37 = vadd.f32 %v20482_v53, %v7038_v56  ;;  %v7041_v35 = vadd.f32 %v6977_v51, %v6270_v42  ;;  %v6976_v22 = vadd.f32 %v6761_v14, %v5562_v61  ;;  %v23795_v19 = vld [vmem:[#allocation218_spill] sm:$0xff]  ;;  %v23799_v43 = vld [vmem:[#allocation221_spill] sm:$0xff]  ;;  %v23803_v14 = vld [vmem:[#allocation224_spill] sm:$0xff] }
 0x428   :  { %v17056_v32 = vpop.f32.mrf.mxu1  ;;  %v7366_v27 = vld [vmem:[#allocation3 + $0x169] sm:$0xff]  ;;  %v6271_v47 = vadd.f32 %v23795_v19, %v4856_v52  ;;  %v4858_v62 = vadd.f32 %v23797_v59, %v23796_v45  ;;  %v6274_v13 = vadd.f32 %v23799_v43, %v23798_v46  ;;  %v23807_v60 = vld [vmem:[#allocation227_spill] sm:$0xff]  ;;  %v23809_v15 = vld [vmem:[#allocation192_spill] sm:$0xff] }
 0x429   :  { %v20707_v30 = vld [vmem:[#allocation3 + $0x167] sm:$0xff]  ;;  %v7236_v55 = vld [vmem:[#allocation3 + $0x16f] sm:$0xff]  ;;  %7173 = vst.msk [vmem:[#allocation3 + $0x1a8] sm:$0xff] %vm183_vm0, %v7109_v37  ;;  %v7112_v57 = vadd.f32 %v20482_v53, %v7041_v35  ;;  %v7040_v50 = vadd.f32 %v6976_v22, %v6269_v58  ;;  %v6979_v0 = vadd.f32 %v17056_v32, %v23794_v23  ;;  %17143 = vmatprep.mubr.msk.f32.mxu0 %vm183_vm0, %v7366_v27  ;;  %v20750_v32 = vpop.f32.mrf.mxu0 }
 0x42a   :  { %17241 = vmatprep.mubr.msk.f32.mxu1 %vm183_vm0, %v20707_v30  ;;  %v6771_v49 = vpop.f32.mrf.mxu1  ;;  %17144 = vmatmul.mubr.msk.f32.gmra.mxu0 %vm183_vm0, %v7367_v40  ;;  %v23800_v33 = vld [vmem:[#allocation158_spill] sm:$0xff]  ;;  %v23802_v56 = vld [vmem:[#allocation189_spill] sm:$0xff]  ;;  %v6273_v58 = vadd.f32 %v23803_v14, %v4858_v62  ;;  %v23810_v40 = vld [vmem:[#allocation191_spill] sm:$0xff] }
 0x42b   :  { %17242 = vmatmul.mubr.msk.f32.gmra.mxu1 %vm183_vm0, %v7236_v55  ;;  %7176 = vst.msk [vmem:[#allocation3 + $0x1d0] sm:$0xff] %vm183_vm0, %v7112_v57  ;;  %v7111_v21 = vadd.f32 %v20482_v53, %v7040_v50  ;;  %v7043_v41 = vadd.f32 %v6979_v0, %v6272_v8  ;;  %v6978_v26 = vadd.f32 %v6771_v49, %v5564_v38  ;;  %v23801_v42 = vld [vmem:[#allocation190_spill] sm:$0xff]  ;;  %v23804_v6 = vld [vmem:[#allocation125_spill] sm:$0xff] }
 0x42c   :  { %v5566_v44 = vadd.f32 %v23801_v42, %v23800_v33  ;;  %v17059_v61 = vpop.f32.mrf.mxu1  ;;  %v7368_v29 = vld [vmem:[#allocation3 + $0x189] sm:$0xff]  ;;  %v7369_v51 = vld [vmem:[#allocation3 + $0x191] sm:$0xff]  ;;  %v4860_v52 = vadd.f32 %v23805_v17, %v23804_v6  ;;  %v6276_v8 = vadd.f32 %v23807_v60, %v23806_v18 }
 0x42d   :  { %v20728_v1 = vld [vmem:[#allocation3 + $0x187] sm:$0xff]  ;;  %v20730_v63 = vld [vmem:[#allocation3 + $0x18f] sm:$0xff]  ;;  %7175 = vst.msk [vmem:[#allocation3 + $0x1c8] sm:$0xff] %vm183_vm0, %v7111_v21  ;;  %v7114_v54 = vadd.f32 %v20482_v53, %v7043_v41  ;;  %v7042_v2 = vadd.f32 %v6978_v26, %v6271_v47  ;;  %v6981_v20 = vadd.f32 %v17059_v61, %v23802_v56  ;;  %17146 = vmatprep.mubr.msk.f32.mxu0 %vm183_vm0, %v7368_v29  ;;  %v23814_v33 = vld [vmem:[#allocation163_spill] sm:$0xff]  ;;  %v20774_v61 = vpop.f32.mrf.mxu0 }
 0x42e   :  { %17244 = vmatprep.mubr.msk.f32.mxu1 %vm183_vm0, %v20728_v1  ;;  %v6781_v25 = vpop.f32.mrf.mxu1  ;;  %17147 = vmatmul.mubr.msk.f32.gmra.mxu0 %vm183_vm0, %v7369_v51  ;;  %v23808_v24 = vld [vmem:[#allocation106_spill] sm:$0xff]  ;;  %v6275_v21 = vadd.f32 %v20487_v10, %v4860_v52  ;;  %v23813_v43 = vld [vmem:[#allocation161_spill] sm:$0xff]  ;;  %v23817_v52 = vld [vmem:[#allocation127_spill] sm:$0xff] }
 0x42f   :  { %17245 = vmatmul.mubr.msk.f32.gmra.mxu1 %vm183_vm0, %v20730_v63  ;;  %7178 = vst.msk [vmem:[#allocation3 + $0x1f0] sm:$0xff] %vm183_vm0, %v7114_v54  ;;  %v7113_v37 = vadd.f32 %v20482_v53, %v7042_v2  ;;  %v7045_v35 = vadd.f32 %v6981_v20, %v6274_v13  ;;  %v6980_v22 = vadd.f32 %v6781_v25, %v5566_v44  ;;  %v7371_v19 = vld [vmem:[#allocation3 + $0x1b1] sm:$0xff]  ;;  %v23816_v51 = vld [vmem:[#allocation193_spill] sm:$0xff] }
 0x430   :  { %v5568_v38 = vadd.f32 %v23809_v15, %v23808_v24  ;;  %v17062_v27 = vpop.f32.mrf.mxu1  ;;  %v7370_v55 = vld [vmem:[#allocation3 + $0x1a9] sm:$0xff]  ;;  %v6278_v13 = vadd.f32 %v20498_v16, %v23813_v43 }
 0x431   :  { %v20752_v57 = vld [vmem:[#allocation3 + $0x1a7] sm:$0xff]  ;;  %v20754_v50 = vld [vmem:[#allocation3 + $0x1af] sm:$0xff]  ;;  %7177 = vst.msk [vmem:[#allocation3 + $0x1e8] sm:$0xff] %vm183_vm0, %v7113_v37  ;;  %v7116_v23 = vadd.f32 %v20482_v53, %v7045_v35  ;;  %v7044_v0 = vadd.f32 %v6980_v22, %v6273_v58  ;;  %v6983_v49 = vadd.f32 %v17062_v27, %v23810_v40  ;;  %17149 = vmatprep.mubr.msk.f32.mxu0 %vm183_vm0, %v7370_v55  ;;  %v20798_v55 = vpop.f32.mrf.mxu0 }
 0x432   :  { %17247 = vmatprep.mubr.msk.f32.mxu1 %vm183_vm0, %v20752_v57  ;;  %v6791_v47 = vpop.f32.mrf.mxu1  ;;  %17150 = vmatmul.mubr.msk.f32.gmra.mxu0 %vm183_vm0, %v7371_v19  ;;  %v23811_v59 = vld [vmem:[#allocation126_spill] sm:$0xff]  ;;  %v7245_v17 = vld [vmem:[#allocation3 + $0x247] sm:$0xff] }
 0x433   :  { %17248 = vmatmul.mubr.msk.f32.gmra.mxu1 %vm183_vm0, %v20754_v50  ;;  %7180 = vst.msk [vmem:[#allocation3 + $0x210] sm:$0xff] %vm183_vm0, %v7116_v23  ;;  %v7115_v41 = vadd.f32 %v20482_v53, %v7044_v0  ;;  %v7047_v26 = vadd.f32 %v6983_v49, %v6276_v8  ;;  %v6982_v45 = vadd.f32 %v6791_v47, %v5568_v38  ;;  %v23812_v62 = vld [vmem:[#allocation162_spill] sm:$0xff]  ;;  %v23818_v18 = vld [vmem:[#allocation165_spill] sm:$0xff]  ;;  %v23819_v8 = vld [vmem:[#allocation164_spill] sm:$0xff] }
 0x434   :  { %v4862_v46 = vadd.f32 %v23812_v62, %v23811_v59  ;;  %v23815_v42 = vld [vmem:[#allocation194_spill] sm:$0xff]  ;;  %v17065_v29 = vpop.f32.mrf.mxu1  ;;  %v20776_v10 = vld [vmem:[#allocation3 + $0x1c7] sm:$0xff]  ;;  %v4864_v60 = vadd.f32 %v23818_v18, %v23817_v52  ;;  %v6280_v24 = vadd.f32 %v20530_v11, %v23819_v8  ;;  %v23822_v47 = vld [vmem:[#allocation195_spill] sm:$0xff] }
 0x435   :  { %v5570_v44 = vadd.f32 %v23815_v42, %v23814_v33  ;;  %v7372_v54 = vld [vmem:[#allocation3 + $0x1c9] sm:$0xff]  ;;  %7179 = vst.msk [vmem:[#allocation3 + $0x208] sm:$0xff] %vm183_vm0, %v7115_v41  ;;  %v7118_v56 = vadd.f32 %v20482_v53, %v7047_v26  ;;  %v7046_v20 = vadd.f32 %v6982_v45, %v6275_v21  ;;  %v6985_v25 = vadd.f32 %v17065_v29, %v23816_v51  ;;  %v7373_v16 = vld [vmem:[#allocation3 + $0x1d1] sm:$0xff]  ;;  %v23821_v38 = vld [vmem:[#allocation196_spill] sm:$0xff]  ;;  %v20822_v29 = vpop.f32.mrf.mxu0 }
 0x436   :  { %v20778_v2 = vld [vmem:[#allocation3 + $0x1cf] sm:$0xff]  ;;  %17152 = vmatprep.mubr.msk.f32.mxu0 %vm183_vm0, %v7372_v54  ;;  %17250 = vmatprep.mubr.msk.f32.mxu1 %vm183_vm0, %v20776_v10  ;;  %v6801_v14 = vpop.f32.mrf.mxu1  ;;  %v6277_v58 = vadd.f32 %v20516_v36, %v4862_v46  ;;  %v6279_v41 = vadd.f32 %v20546_v48, %v4864_v60  ;;  %v23824_v48 = vld [vmem:[#allocation168_spill] sm:$0xff]  ;;  %v23825_v42 = vld [vmem:[#allocation167_spill] sm:$0xff] }
 0x437   :  { %17153 = vmatmul.mubr.msk.f32.gmra.mxu0 %vm183_vm0, %v7373_v16  ;;  %17251 = vmatmul.mubr.msk.f32.gmra.mxu1 %vm183_vm0, %v20778_v2  ;;  %7182 = vst.msk [vmem:[#allocation3 + $0x270] sm:$0xff] %vm183_vm0, %v7118_v56  ;;  %v7117_v37 = vadd.f32 %v20482_v53, %v7046_v20  ;;  %v7049_v35 = vadd.f32 %v6985_v25, %v6278_v13  ;;  %v7376_v6 = vld [vmem:[#allocation3 + $0x249] sm:$0xff]  ;;  %v7375_v11 = vld [vmem:[#allocation3 + $0x1f1] sm:$0xff]  ;;  %v23823_v13 = vld [vmem:[#allocation128_spill] sm:$0xff] }
 0x438   :  { %v6984_v22 = vadd.f32 %v6801_v14, %v5570_v44  ;;  %v23820_v15 = vld [vmem:[#allocation166_spill] sm:$0xff]  ;;  %v17068_v36 = vpop.f32.mrf.mxu1  ;;  %v20800_v0 = vld [vmem:[#allocation3 + $0x1e7] sm:$0xff]  ;;  %v4866_v33 = vadd.f32 %v23824_v48, %v23823_v13  ;;  %v6282_v44 = vadd.f32 %v20562_v5, %v23825_v42  ;;  %v23830_v52 = vld [vmem:[#allocation171_spill] sm:$0xff] }
 0x439   :  { %v5572_v27 = vadd.f32 %v23821_v38, %v23820_v15  ;;  %v7374_v23 = vld [vmem:[#allocation3 + $0x1e9] sm:$0xff]  ;;  %7181 = vst.msk [vmem:[#allocation3 + $0x268] sm:$0xff] %vm183_vm0, %v7117_v37  ;;  %v7120_v49 = vadd.f32 %v20482_v53, %v7049_v35  ;;  %v6987_v21 = vadd.f32 %v17068_v36, %v23822_v47  ;;  %17253 = vmatprep.mubr.msk.f32.mxu1 %vm183_vm0, %v20800_v0  ;;  %v7377_v46 = vld [vmem:[#allocation3 + $0x251] sm:$0xff]  ;;  %v23833_v15 = vld [vmem:[#allocation200_spill] sm:$0xff] }
 0x43a   :  { %v20802_v40 = vld [vmem:[#allocation3 + $0x1ef] sm:$0xff]  ;;  %v7048_v19 = vadd.f32 %v6984_v22, %v6277_v58  ;;  %17155 = vmatprep.mubr.msk.f32.mxu0 %vm183_vm0, %v7374_v23  ;;  %v6811_v26 = vpop.f32.mrf.mxu1  ;;  %v6281_v5 = vadd.f32 %v20578_v34, %v4866_v33  ;;  %v23838_v42 = vld [vmem:[#allocation175_spill] sm:$0xff] }
 0x43b   :  { %17156 = vmatmul.mubr.msk.f32.gmra.mxu0 %vm183_vm0, %v7375_v11  ;;  %17254 = vmatmul.mubr.msk.f32.gmra.mxu1 %vm183_vm0, %v20802_v40  ;;  %7184 = vst.msk [vmem:[#allocation3 + $0x290] sm:$0xff] %vm183_vm0, %v7120_v49  ;;  %v7051_v59 = vadd.f32 %v6987_v21, %v6280_v24  ;;  %v6986_v62 = vadd.f32 %v6811_v26, %v5572_v27  ;;  %v7246_v43 = vld [vmem:[#allocation3 + $0x24f] sm:$0xff]  ;;  %v23832_v24 = vld [vmem:[#allocation172_spill] sm:$0xff]  ;;  %v20840_v27 = vpop.f32.mrf.mxu0  ;;  %v23834_v21 = vld [vmem:[#allocation199_spill] sm:$0xff] }
 0x43c   :  { %v7119_v45 = vadd.f32 %v20482_v53, %v7048_v19  ;;  %17158 = vmatprep.mubr.msk.f32.mxu0 %vm183_vm0, %v7376_v6  ;;  %17256 = vmatprep.mubr.msk.f32.mxu1 %vm183_vm0, %v7245_v17  ;;  %v17071_v54 = vpop.f32.mrf.mxu1  ;;  %v23826_v56 = vld [vmem:[#allocation169_spill] sm:$0xff]  ;;  %v23827_v20 = vld [vmem:[#allocation198_spill] sm:$0xff]  ;;  %v5576_v38 = vadd.f32 %v23833_v15, %v23832_v24 }
 0x43d   :  { %v5574_v51 = vadd.f32 %v23827_v20, %v23826_v56  ;;  %v7122_v25 = vadd.f32 %v20482_v53, %v7051_v59  ;;  %v7050_v16 = vadd.f32 %v6986_v62, %v6279_v41  ;;  %v23828_v14 = vld [vmem:[#allocation197_spill] sm:$0xff]  ;;  %v23831_v60 = vld [vmem:[#allocation170_spill] sm:$0xff]  ;;  %v20864_v56 = vpop.f32.mrf.mxu0 }
 0x43e   :  { %7183 = vst.msk [vmem:[#allocation3 + $0x288] sm:$0xff] %vm183_vm0, %v7119_v45  ;;  %v6989_v58 = vadd.f32 %v17071_v54, %v23828_v14  ;;  %v6821_v37 = vpop.f32.mrf.mxu1  ;;  %v23829_v17 = vld [vmem:[#allocation129_spill] sm:$0xff]  ;;  %v6284_v8 = vadd.f32 %v20596_v3, %v23831_v60  ;;  %v7379_v3 = vld [vmem:[#allocation3 + $0x271] sm:$0xff] }
 0x43f   :  { %17159 = vmatmul.mubr.msk.f32.gmra.mxu0 %vm183_vm0, %v7377_v46  ;;  %17257 = vmatmul.mubr.msk.f32.gmra.mxu1 %vm183_vm0, %v7246_v43  ;;  %7186 = vst.msk [vmem:[#allocation3 + $0x2b0] sm:$0xff] %vm183_vm0, %v7122_v25  ;;  %v7121_v35 = vadd.f32 %v20482_v53, %v7050_v16  ;;  %v6988_v6 = vadd.f32 %v6821_v37, %v5574_v51  ;;  %v23835_v46 = vld [vmem:[#allocation130_spill] sm:$0xff]  ;;  %v23837_v48 = vld [vmem:[#allocation173_spill] sm:$0xff] }
 0x440   :  { %v7053_v22 = vadd.f32 %v6989_v58, %v6282_v44  ;;  %v4868_v18 = vadd.f32 %v23830_v52, %v23829_v17  ;;  %v17074_v36 = vpop.f32.mrf.mxu1  ;;  %v7378_v23 = vld [vmem:[#allocation3 + $0x269] sm:$0xff]  ;;  %v6286_v33 = vadd.f32 %v20633_v4, %v23837_v48  ;;  %v23841_v52 = vld [vmem:[#allocation131_spill] sm:$0xff]  ;;  %v23848_v48 = vld [vmem:[#allocation132_spill] sm:$0xff] }
 0x441   :  { %v20842_v34 = vld [vmem:[#allocation3 + $0x267] sm:$0xff]  ;;  %v20844_v49 = vld [vmem:[#allocation3 + $0x26f] sm:$0xff]  ;;  %7185 = vst.msk [vmem:[#allocation3 + $0x2a8] sm:$0xff] %vm183_vm0, %v7121_v35  ;;  %v7052_v47 = vadd.f32 %v6988_v6, %v6281_v5  ;;  %v6991_v11 = vadd.f32 %v17074_v36, %v23834_v21  ;;  %17161 = vmatprep.mubr.msk.f32.mxu0 %vm183_vm0, %v7378_v23  ;;  %v20888_v23 = vpop.f32.mrf.mxu0 }
 0x442   :  { %v7124_v19 = vadd.f32 %v20482_v53, %v7053_v22  ;;  %17259 = vmatprep.mubr.msk.f32.mxu1 %vm183_vm0, %v20842_v34  ;;  %v6831_v41 = vpop.f32.mrf.mxu1  ;;  %v6283_v26 = vadd.f32 %v20615_v9, %v4868_v18  ;;  %v23836_v43 = vld [vmem:[#allocation174_spill] sm:$0xff]  ;;  %v23840_v58 = vld [vmem:[#allocation201_spill] sm:$0xff] }
 0x443   :  { %17162 = vmatmul.mubr.msk.f32.gmra.mxu0 %vm183_vm0, %v7379_v3  ;;  %17260 = vmatmul.mubr.msk.f32.gmra.mxu1 %vm183_vm0, %v20844_v49  ;;  %v7123_v45 = vadd.f32 %v20482_v53, %v7052_v47  ;;  %v7055_v59 = vadd.f32 %v6991_v11, %v6284_v8  ;;  %v6990_v62 = vadd.f32 %v6831_v41, %v5576_v38  ;;  %v23839_v44 = vld [vmem:[#allocation202_spill] sm:$0xff]  ;;  %v23842_v18 = vld [vmem:[#allocation177_spill] sm:$0xff]  ;;  %v23843_v8 = vld [vmem:[#allocation176_spill] sm:$0xff] }
 0x444   :  { %7188 = vst.msk [vmem:[#allocation3 + $0x2d0] sm:$0xff] %vm183_vm0, %v7124_v19  ;;  %v4870_v13 = vadd.f32 %v23836_v43, %v23835_v46  ;;  %v5578_v54 = vadd.f32 %v23839_v44, %v23838_v42  ;;  %v17077_v20 = vpop.f32.mrf.mxu1  ;;  %v7381_v4 = vld [vmem:[#allocation3 + $0x291] sm:$0xff]  ;;  %v4872_v60 = vadd.f32 %v23842_v18, %v23841_v52  ;;  %v6288_v24 = vadd.f32 %v20669_v7, %v23843_v8  ;;  %v23845_v38 = vld [vmem:[#allocation204_spill] sm:$0xff] }
 0x445   :  { %v7380_v51 = vld [vmem:[#allocation3 + $0x289] sm:$0xff]  ;;  %7187 = vst.msk [vmem:[#allocation3 + $0x2c8] sm:$0xff] %vm183_vm0, %v7123_v45  ;;  %v7126_v16 = vadd.f32 %v20482_v53, %v7055_v59  ;;  %v7054_v14 = vadd.f32 %v6990_v62, %v6283_v26  ;;  %v6993_v37 = vadd.f32 %v17077_v20, %v23840_v58  ;;  %v23846_v41 = vld [vmem:[#allocation203_spill] sm:$0xff] }
 0x446   :  { %v20866_v9 = vld [vmem:[#allocation3 + $0x287] sm:$0xff]  ;;  %v20868_v25 = vld [vmem:[#allocation3 + $0x28f] sm:$0xff]  ;;  %17164 = vmatprep.mubr.msk.f32.mxu0 %vm183_vm0, %v7380_v51  ;;  %v6841_v5 = vpop.f32.mrf.mxu1  ;;  %v6285_v35 = vadd.f32 %v20651_v31, %v4870_v13  ;;  %v6287_v59 = vadd.f32 %v20687_v12, %v4872_v60  ;;  %v23849_v42 = vld [vmem:[#allocation107_spill] sm:$0xff] }
 0x447   :  { %17262 = vmatprep.mubr.msk.f32.mxu1 %vm183_vm0, %v20866_v9  ;;  %17165 = vmatmul.mubr.msk.f32.gmra.mxu0 %vm183_vm0, %v7381_v4  ;;  %7190 = vst.msk [vmem:[#allocation3 + $0x2f0] sm:$0xff] %vm183_vm0, %v7126_v16  ;;  %v7125_v22 = vadd.f32 %v20482_v53, %v7054_v14  ;;  %v7057_v6 = vadd.f32 %v6993_v37, %v6286_v33  ;;  %v23844_v15 = vld [vmem:[#allocation178_spill] sm:$0xff]  ;;  %v23847_v13 = vld [vmem:[#allocation133_spill] sm:$0xff]  ;;  %v20912_v16 = vpop.f32.mrf.mxu0  ;;  %v23853_v8 = vld [vmem:[#allocation135_spill] sm:$0xff] }
 0x448   :  { %17263 = vmatmul.mubr.msk.f32.gmra.mxu1 %vm183_vm0, %v20868_v25  ;;  %v6992_v17 = vadd.f32 %v6841_v5, %v5578_v54  ;;  %v5580_v36 = vadd.f32 %v23845_v38, %v23844_v15  ;;  %v17080_v19 = vpop.f32.mrf.mxu1  ;;  %v7382_v47 = vld [vmem:[#allocation3 + $0x2a9] sm:$0xff]  ;;  %v7383_v7 = vld [vmem:[#allocation3 + $0x2b1] sm:$0xff]  ;;  %v4874_v33 = vadd.f32 %v23848_v48, %v23847_v13  ;;  %v6290_v44 = vadd.f32 %v20705_v39, %v23849_v42  ;;  %v23850_v54 = vld [vmem:[#allocation108_spill] sm:$0xff] }
 0x449   :  { %v20890_v31 = vld [vmem:[#allocation3 + $0x2a7] sm:$0xff]  ;;  %v20892_v21 = vld [vmem:[#allocation3 + $0x2af] sm:$0xff]  ;;  %7189 = vst.msk [vmem:[#allocation3 + $0x2e8] sm:$0xff] %vm183_vm0, %v7125_v22  ;;  %v7128_v11 = vadd.f32 %v20482_v53, %v7057_v6  ;;  %v6995_v26 = vadd.f32 %v17080_v19, %v23846_v41  ;;  %17167 = vmatprep.mubr.msk.f32.mxu0 %vm183_vm0, %v7382_v47 }
 0x44a   :  { %v7056_v3 = vadd.f32 %v6992_v17, %v6285_v35  ;;  %17265 = vmatprep.mubr.msk.f32.mxu1 %vm183_vm0, %v20890_v31  ;;  %v6851_v45 = vpop.f32.mrf.mxu1  ;;  %v23851_v20 = vld [vmem:[#allocation206_spill] sm:$0xff]  ;;  %v23852_v35 = vld [vmem:[#allocation205_spill] sm:$0xff]  ;;  %v6289_v17 = vadd.f32 %v20726_v28, %v4874_v33  ;;  %v23857_v47 = vld [vmem:[#allocation208_spill] sm:$0xff] }
 0x44b   :  { %17168 = vmatmul.mubr.msk.f32.gmra.mxu0 %vm183_vm0, %v7383_v7  ;;  %7192 = vst.msk [vmem:[#allocation3 + $0x310] sm:$0xff] %vm183_vm0, %v7128_v11  ;;  %v7059_v46 = vadd.f32 %v6995_v26, %v6288_v24  ;;  %v6994_v43 = vadd.f32 %v6851_v45, %v5580_v36  ;;  %v5582_v51 = vadd.f32 %v23851_v20, %v23850_v54  ;;  %v7385_v39 = vld [vmem:[#allocation3 + $0x2d1] sm:$0xff]  ;;  %v23855_v38 = vld [vmem:[#allocation109_spill] sm:$0xff]  ;;  %v23860_v54 = vld [vmem:[#allocation136_spill] sm:$0xff] }
 0x44c   :  { %17266 = vmatmul.mubr.msk.f32.gmra.mxu1 %vm183_vm0, %v20892_v21  ;;  %v7127_v62 = vadd.f32 %v20482_v53, %v7056_v3  ;;  %v17083_v14 = vpop.f32.mrf.mxu1  ;;  %v7384_v58 = vld [vmem:[#allocation3 + $0x2c9] sm:$0xff]  ;;  %v6292_v36 = vadd.f32 %v20750_v32, %v23855_v38  ;;  %v20936_v3 = vpop.f32.mrf.mxu0 }
 0x44d   :  { %v20914_v12 = vld [vmem:[#allocation3 + $0x2c7] sm:$0xff]  ;;  %v20916_v37 = vld [vmem:[#allocation3 + $0x2cf] sm:$0xff]  ;;  %v7130_v4 = vadd.f32 %v20482_v53, %v7059_v46  ;;  %v7058_v5 = vadd.f32 %v6994_v43, %v6287_v59  ;;  %v6997_v22 = vadd.f32 %v17083_v14, %v23852_v35  ;;  %17170 = vmatprep.mubr.msk.f32.mxu0 %vm183_vm0, %v7384_v58 }
 0x44e   :  { %7191 = vst.msk [vmem:[#allocation3 + $0x308] sm:$0xff] %vm183_vm0, %v7127_v62  ;;  %17268 = vmatprep.mubr.msk.f32.mxu1 %vm183_vm0, %v20914_v12  ;;  %v6861_v6 = vpop.f32.mrf.mxu1  ;;  %v23854_v24 = vld [vmem:[#allocation134_spill] sm:$0xff]  ;;  %v23858_v62 = vld [vmem:[#allocation207_spill] sm:$0xff]  ;;  %v23862_v58 = vld [vmem:[#allocation112_spill] sm:$0xff] }
 0x44f   :  { %17171 = vmatmul.mubr.msk.f32.gmra.mxu0 %vm183_vm0, %v7385_v39  ;;  %7194 = vst.msk [vmem:[#allocation3 + $0x330] sm:$0xff] %vm183_vm0, %v7130_v4  ;;  %v7129_v52 = vadd.f32 %v20482_v53, %v7058_v5  ;;  %v7061_v18 = vadd.f32 %v6997_v22, %v6290_v44  ;;  %v6996_v60 = vadd.f32 %v6861_v6, %v5582_v51  ;;  %v23856_v19 = vld [vmem:[#allocation110_spill] sm:$0xff]  ;;  %v23859_v44 = vld [vmem:[#allocation137_spill] sm:$0xff]  ;;  %v23861_v51 = vld [vmem:[#allocation111_spill] sm:$0xff]  ;;  %v20965_v5 = vpop.f32.mrf.mxu0 }
 0x450   :  { %17269 = vmatmul.mubr.msk.f32.gmra.mxu1 %vm183_vm0, %v20916_v37  ;;  %v4876_v15 = vadd.f32 %v23854_v24, %v23853_v8  ;;  %v5584_v11 = vadd.f32 %v23857_v47, %v23856_v19  ;;  %v17086_v41 = vpop.f32.mrf.mxu1  ;;  %v7386_v26 = vld [vmem:[#allocation3 + $0x2e9] sm:$0xff]  ;;  %v7387_v32 = vld [vmem:[#allocation3 + $0x2f1] sm:$0xff]  ;;  %v4878_v20 = vadd.f32 %v23860_v54, %v23859_v44  ;;  %v6294_v14 = vadd.f32 %v20798_v55, %v23861_v51 }
 0x451   :  { %v20938_v28 = vld [vmem:[#allocation3 + $0x2e7] sm:$0xff]  ;;  %v20940_v7 = vld [vmem:[#allocation3 + $0x2ef] sm:$0xff]  ;;  %7193 = vst.msk [vmem:[#allocation3 + $0x328] sm:$0xff] %vm183_vm0, %v7129_v52  ;;  %v7132_v45 = vadd.f32 %v20482_v53, %v7061_v18  ;;  %v7060_v59 = vadd.f32 %v6996_v60, %v6289_v17  ;;  %v6999_v46 = vadd.f32 %v17086_v41, %v23858_v62  ;;  %17173 = vmatprep.mubr.msk.f32.mxu0 %vm183_vm0, %v7386_v26  ;;  %v20956_v53 = vld [vmem:[%s23353_s2] ss:$0 sm:$0xff] }
 0x452   :  { %17271 = vmatprep.mubr.msk.f32.mxu1 %vm183_vm0, %v20938_v28  ;;  %v6871_v43 = vpop.f32.mrf.mxu1  ;;  %v6291_v13 = vadd.f32 %v20774_v61, %v4876_v15  ;;  %v23863_v4 = vld [vmem:[#allocation210_spill] sm:$0xff]  ;;  %v23864_v18 = vld [vmem:[#allocation209_spill] sm:$0xff]  ;;  %v6293_v24 = vadd.f32 %v20822_v29, %v4878_v20  ;;  %v23865_v19 = vld [vmem:[#allocation139_spill] sm:$0xff] }
 0x453   :  { %17174 = vmatmul.mubr.msk.f32.gmra.mxu0 %vm183_vm0, %v7387_v32  ;;  %7196 = vst.msk [vmem:[#allocation3 + $0x350] sm:$0xff] %vm183_vm0, %v7132_v45  ;;  %v7131_v48 = vadd.f32 %v20956_v53, %v7060_v59  ;;  %v7063_v33 = vadd.f32 %v6999_v46, %v6292_v36  ;;  %v6998_v42 = vadd.f32 %v6871_v43, %v5584_v11  ;;  %v7389_v55 = vld [vmem:[#allocation3 + $0x311] sm:$0xff]  ;;  %v23867_v41 = vld [vmem:[#allocation113_spill] sm:$0xff]  ;;  %v23869_v59 = vld [vmem:[#allocation212_spill] sm:$0xff]  ;;  %v20989_v46 = vpop.f32.mrf.mxu0 }
 0x454   :  { %17272 = vmatmul.mubr.msk.f32.gmra.mxu1 %vm183_vm0, %v20940_v7  ;;  %v5586_v61 = vadd.f32 %v23863_v4, %v23862_v58  ;;  %v17089_v35 = vpop.f32.mrf.mxu1  ;;  %v23866_v47 = vld [vmem:[#allocation138_spill] sm:$0xff]  ;;  %v6296_v26 = vadd.f32 %v20840_v27, %v23867_v41  ;;  %v23871_v4 = vld [vmem:[#allocation141_spill] sm:$0xff] }
 0x455   :  { %v7388_v22 = vld [vmem:[#allocation3 + $0x309] sm:$0xff]  ;;  %7195 = vst.msk [vmem:[#allocation3 + $0x348] sm:$0xff] %vm183_vm0, %v7131_v48  ;;  %v7134_v17 = vadd.f32 %v20956_v53, %v7063_v33  ;;  %v7062_v52 = vadd.f32 %v6998_v42, %v6291_v13  ;;  %v7001_v60 = vadd.f32 %v17089_v35, %v23864_v18  ;;  %v4880_v11 = vadd.f32 %v23866_v47, %v23865_v19  ;;  %v23870_v42 = vld [vmem:[#allocation211_spill] sm:$0xff] }
 0x456   :  { %v20967_v39 = vld [vmem:[#allocation3 + $0x307] sm:$0xff]  ;;  %v20969_v6 = vld [vmem:[#allocation3 + $0x30f] sm:$0xff]  ;;  %17176 = vmatprep.mubr.msk.f32.mxu0 %vm183_vm0, %v7388_v22  ;;  %v6881_v8 = vpop.f32.mrf.mxu1  ;;  %v23873_v22 = vld [vmem:[#allocation115_spill] sm:$0xff] }
 0x457   :  { %17274 = vmatprep.mubr.msk.f32.mxu1 %vm183_vm0, %v20967_v39  ;;  %17177 = vmatmul.mubr.msk.f32.gmra.mxu0 %vm183_vm0, %v7389_v55  ;;  %7198 = vst.msk [vmem:[#allocation3 + $0x370] sm:$0xff] %vm183_vm0, %v7134_v17  ;;  %v7133_v15 = vadd.f32 %v20956_v53, %v7062_v52  ;;  %v7065_v38 = vadd.f32 %v7001_v60, %v6294_v14  ;;  %v23868_v45 = vld [vmem:[#allocation114_spill] sm:$0xff]  ;;  %v23874_v52 = vld [vmem:[#allocation116_spill] sm:$0xff]  ;;  %v6214_v55 = vpop.f32.mrf.mxu0  ;;  %v23876_v19 = vld [vmem:[#allocation213_spill] sm:$0xff] }
 0x458   :  { %17275 = vmatmul.mubr.msk.f32.gmra.mxu1 %vm183_vm0, %v20969_v6  ;;  %v7000_v36 = vadd.f32 %v6881_v8, %v5586_v61  ;;  %v5588_v62 = vadd.f32 %v23869_v59, %v23868_v45  ;;  %v17092_v32 = vpop.f32.mrf.mxu1  ;;  %v7390_v43 = vld [vmem:[#allocation3 + $0x329] sm:$0xff]  ;;  %v7391_v27 = vld [vmem:[#allocation3 + $0x331] sm:$0xff]  ;;  %v6295_v20 = vadd.f32 %v20864_v56, %v4880_v11  ;;  %v23872_v61 = vld [vmem:[#allocation140_spill] sm:$0xff]  ;;  %v6298_v17 = vadd.f32 %v20888_v23, %v23873_v22 }
 0x459   :  { %v20991_v29 = vld [vmem:[#allocation3 + $0x327] sm:$0xff]  ;;  %v20993_v13 = vld [vmem:[#allocation3 + $0x32f] sm:$0xff]  ;;  %7197 = vst.msk [vmem:[#allocation3 + $0x368] sm:$0xff] %vm183_vm0, %v7133_v15  ;;  %v7136_v48 = vadd.f32 %v20956_v53, %v7065_v38  ;;  %v7003_v44 = vadd.f32 %v17092_v32, %v23870_v42  ;;  %17179 = vmatprep.mubr.msk.f32.mxu0 %vm183_vm0, %v7390_v43  ;;  %v4882_v35 = vadd.f32 %v23872_v61, %v23871_v4 }
 0x45a   :  { %v7064_v33 = vadd.f32 %v7000_v36, %v6293_v24  ;;  %17277 = vmatprep.mubr.msk.f32.mxu1 %vm183_vm0, %v20991_v29  ;;  %v6891_v54 = vpop.f32.mrf.mxu1  ;;  %v23875_v18 = vld [vmem:[#allocation214_spill] sm:$0xff]  ;;  %v23882_v61 = vld [vmem:[#allocation216_spill] sm:$0xff] }
 0x45b   :  { %17180 = vmatmul.mubr.msk.f32.gmra.mxu0 %vm183_vm0, %v7391_v27  ;;  %7200 = vst.msk [vmem:[#allocation3 + $0x390] sm:$0xff] %vm183_vm0, %v7136_v48  ;;  %v7067_v14 = vadd.f32 %v7003_v44, %v6296_v26  ;;  %v7002_v58 = vadd.f32 %v6891_v54, %v5588_v62  ;;  %v5590_v60 = vadd.f32 %v23875_v18, %v23874_v52  ;;  %v7393_v23 = vld [vmem:[#allocation3 + $0x351] sm:$0xff]  ;;  %v23879_v48 = vld [vmem:[#allocation117_spill] sm:$0xff]  ;;  %v17006_v54 = vpop.f32.mrf.mxu0 }
 0x45c   :  { %17278 = vmatmul.mubr.msk.f32.gmra.mxu1 %vm183_vm0, %v20993_v13  ;;  %v7135_v51 = vadd.f32 %v20956_v53, %v7064_v33  ;;  %v17095_v8 = vpop.f32.mrf.mxu1  ;;  %v7392_v24 = vld [vmem:[#allocation3 + $0x349] sm:$0xff]  ;;  %v6297_v41 = vadd.f32 %v20912_v16, %v4882_v35  ;;  %v23877_v62 = vld [vmem:[#allocation143_spill] sm:$0xff]  ;;  %v6300_v33 = vadd.f32 %v20936_v3, %v23879_v48 }
 0x45d   :  { %v21013_v15 = vld [vmem:[#allocation3 + $0x347] sm:$0xff]  ;;  %v21015_v56 = vld [vmem:[#allocation3 + $0x34f] sm:$0xff]  ;;  %v7138_v38 = vadd.f32 %v20956_v53, %v7067_v14  ;;  %v7066_v36 = vadd.f32 %v7002_v58, %v6295_v20  ;;  %v7005_v47 = vadd.f32 %v17095_v8, %v23876_v19  ;;  %17182 = vmatprep.mubr.msk.f32.mxu0 %vm183_vm0, %v7392_v24  ;;  %v23884_v24 = vld [vmem:[#allocation179_spill] sm:$0xff] }
 0x45e   :  { %7199 = vst.msk [vmem:[#allocation3 + $0x388] sm:$0xff] %vm183_vm0, %v7135_v51  ;;  %17280 = vmatprep.mubr.msk.f32.mxu1 %vm183_vm0, %v21013_v15  ;;  %v6901_v11 = vpop.f32.mrf.mxu1  ;;  %v23878_v32 = vld [vmem:[#allocation142_spill] sm:$0xff]  ;;  %v23881_v44 = vld [vmem:[#allocation217_spill] sm:$0xff]  ;;  %v23883_v8 = vld [vmem:[#allocation144_spill] sm:$0xff] }
 0x45f   :  { %17183 = vmatmul.mubr.msk.f32.gmra.mxu0 %vm183_vm0, %v7393_v23  ;;  %7202 = vst.msk [vmem:[#allocation3 + $0x3b0] sm:$0xff] %vm183_vm0, %v7138_v38  ;;  %v7137_v26 = vadd.f32 %v20956_v53, %v7066_v36  ;;  %v7069_v45 = vadd.f32 %v7005_v47, %v6298_v17  ;;  %v7004_v59 = vadd.f32 %v6901_v11, %v5590_v60  ;;  %v23880_v42 = vld [vmem:[#allocation118_spill] sm:$0xff]  ;;  %v23886_v47 = vld [vmem:[#allocation67_spill] sm:$0xff]  ;;  %v23887_v23 = vld [vmem:[#allocation220_spill] sm:$0xff] }
 0x460   :  { %17281 = vmatmul.mubr.msk.f32.gmra.mxu1 %vm183_vm0, %v21015_v56  ;;  %v4884_v43 = vadd.f32 %v23878_v32, %v23877_v62  ;;  %v5592_v27 = vadd.f32 %v23881_v44, %v23880_v42  ;;  %v17098_v20 = vpop.f32.mrf.mxu1  ;;  %v7394_v51 = vld [vmem:[#allocation3 + $0x369] sm:$0xff]  ;;  %v7395_v3 = vld [vmem:[#allocation3 + $0x371] sm:$0xff]  ;;  %v4886_v38 = vadd.f32 %v23884_v24, %v23883_v8  ;;  %v5594_v11 = vadd.f32 %v23887_v23, %v23886_v47 }
 0x461   :  { %v21035_v14 = vld [vmem:[#allocation3 + $0x367] sm:$0xff]  ;;  %v21037_v16 = vld [vmem:[#allocation3 + $0x36f] sm:$0xff]  ;;  %7201 = vst.msk [vmem:[#allocation3 + $0x3a8] sm:$0xff] %vm183_vm0, %v7137_v26  ;;  %v7140_v58 = vadd.f32 %v20956_v53, %v7069_v45  ;;  %v7068_v4 = vadd.f32 %v7004_v59, %v6297_v41  ;;  %v7007_v35 = vadd.f32 %v17098_v20, %v23882_v61  ;;  %17185 = vmatprep.mubr.msk.f32.mxu0 %vm183_vm0, %v7394_v51  ;;  %v6224_v41 = vpop.f32.mrf.mxu0  ;;  %v23891_v61 = vld [vmem:[#allocation119_spill] sm:$0xff] }
 0x462   :  { %17283 = vmatprep.mubr.msk.f32.mxu1 %vm183_vm0, %v21035_v14  ;;  %v6911_v22 = vpop.f32.mrf.mxu1  ;;  %v6299_v17 = vadd.f32 %v20965_v5, %v4884_v43  ;;  %v23885_v36 = vld [vmem:[#allocation66_spill] sm:$0xff]  ;;  %v23888_v43 = vld [vmem:[#allocation219_spill] sm:$0xff]  ;;  %v6301_v42 = vadd.f32 %v6214_v55, %v4886_v38 }
 0x463   :  { %17186 = vmatmul.mubr.msk.f32.gmra.mxu0 %vm183_vm0, %v7395_v3  ;;  %7204 = vst.msk [vmem:[#allocation3 + $0x3d0] sm:$0xff] %vm183_vm0, %v7140_v58  ;;  %v7139_v52 = vadd.f32 %v20956_v53, %v7068_v4  ;;  %v7071_v18 = vadd.f32 %v7007_v35, %v6300_v33  ;;  %v7006_v60 = vadd.f32 %v6911_v22, %v5592_v27  ;;  %v23889_v51 = vld [vmem:[#allocation146_spill] sm:$0xff]  ;;  %v23890_v58 = vld [vmem:[#allocation145_spill] sm:$0xff]  ;;  %v23892_v3 = vld [vmem:[#allocation120_spill] sm:$0xff] }
 0x464   :  { %17284 = vmatmul.mubr.msk.f32.gmra.mxu1 %vm183_vm0, %v21037_v16  ;;  %v6302_v19 = vadd.f32 %v20989_v46, %v23885_v36  ;;  %v17101_v26 = vpop.f32.mrf.mxu1  ;;  %v7397_v46 = vld [vmem:[#allocation3 + $0x391] sm:$0xff]  ;;  %v4888_v4 = vadd.f32 %v23890_v58, %v23889_v51  ;;  %v6304_v35 = vadd.f32 %v17006_v54, %v23891_v61 }
 0x465   :  { %v7396_v45 = vld [vmem:[#allocation3 + $0x389] sm:$0xff]  ;;  %7203 = vst.msk [vmem:[#allocation3 + $0x3c8] sm:$0xff] %vm183_vm0, %v7139_v52  ;;  %v7142_v62 = vadd.f32 %v20956_v53, %v7071_v18  ;;  %v7070_v32 = vadd.f32 %v7006_v60, %v6299_v17  ;;  %v7009_v48 = vadd.f32 %v17101_v26, %v23888_v43  ;;  %v23893_v22 = vld [vmem:[#allocation223_spill] sm:$0xff]  ;;  %v17009_v52 = vpop.f32.mrf.mxu0 }
 0x466   :  { %v21057_v59 = vld [vmem:[#allocation3 + $0x387] sm:$0xff]  ;;  %v21059_v5 = vld [vmem:[#allocation3 + $0x38f] sm:$0xff]  ;;  %17188 = vmatprep.mubr.msk.f32.mxu0 %vm183_vm0, %v7396_v45  ;;  %v6921_v33 = vpop.f32.mrf.mxu1  ;;  %v5596_v17 = vadd.f32 %v23893_v22, %v23892_v3  ;;  %v6303_v23 = vadd.f32 %v6224_v41, %v4888_v4 }
 0x467   :  { %17286 = vmatprep.mubr.msk.f32.mxu1 %vm183_vm0, %v21057_v59  ;;  %17189 = vmatmul.mubr.msk.f32.gmra.mxu0 %vm183_vm0, %v7397_v46  ;;  %7206 = vst.msk [vmem:[#allocation3 + $0x3f0] sm:$0xff] %vm183_vm0, %v7142_v62  ;;  %v7141_v44 = vadd.f32 %v20956_v53, %v7070_v32  ;;  %v7073_v27 = vadd.f32 %v7009_v48, %v6302_v19  ;;  %v23894_v36 = vld [vmem:[#allocation222_spill] sm:$0xff]  ;;  %v23895_v62 = vld [vmem:[#allocation148_spill] sm:$0xff]  ;;  %v23896_v32 = vld [vmem:[#allocation147_spill] sm:$0xff] }
 0x468   :  { %17287 = vmatmul.mubr.msk.f32.gmra.mxu1 %vm183_vm0, %v21059_v5  ;;  %v7008_v20 = vadd.f32 %v6921_v33, %v5594_v11  ;;  %v17104_v18 = vpop.f32.mrf.mxu1  ;;  %v7398_v60 = vld [vmem:[#allocation3 + $0x3a9] sm:$0xff]  ;;  %v7399_v54 = vld [vmem:[#allocation3 + $0x3b1] sm:$0xff]  ;;  %v4890_v43 = vadd.f32 %v23896_v32, %v23895_v62 }
 0x469   :  { %v21077_v8 = vld [vmem:[#allocation3 + $0x3a7] sm:$0xff]  ;;  %v21079_v55 = vld [vmem:[#allocation3 + $0x3af] sm:$0xff]  ;;  %7205 = vst.msk [vmem:[#allocation3 + $0x3e8] sm:$0xff] %vm183_vm0, %v7141_v44  ;;  %v7144_v24 = vadd.f32 %v20956_v53, %v7073_v27  ;;  %v7011_v19 = vadd.f32 %v17104_v18, %v23894_v36  ;;  %17191 = vmatprep.mubr.msk.f32.mxu0 %vm183_vm0, %v7398_v60  ;;  %v6234_v27 = vpop.f32.mrf.mxu0 }
 0x46a   :  { %v7072_v38 = vadd.f32 %v7008_v20, %v6301_v42  ;;  %17289 = vmatprep.mubr.msk.f32.mxu1 %vm183_vm0, %v21077_v8  ;;  %v6931_v47 = vpop.f32.mrf.mxu1  ;;  %v23897_v48 = vld [vmem:[#allocation121_spill] sm:$0xff]  ;;  %v23898_v33 = vld [vmem:[#allocation122_spill] sm:$0xff] }
 0x46b   :  { %17192 = vmatmul.mubr.msk.f32.gmra.mxu0 %vm183_vm0, %v7399_v54  ;;  %7208 = vst.msk [vmem:[#allocation3 + $0x410] sm:$0xff] %vm183_vm0, %v7144_v24  ;;  %v7075_v26 = vadd.f32 %v7011_v19, %v6304_v35  ;;  %v7010_v45 = vadd.f32 %v6931_v47, %v5596_v17  ;;  %v6306_v46 = vadd.f32 %v17009_v52, %v23897_v48  ;;  %v23899_v42 = vld [vmem:[#allocation226_spill] sm:$0xff]  ;;  %v23900_v35 = vld [vmem:[#allocation225_spill] sm:$0xff]  ;;  %v17112_v54 = vpop.f32.mrf.mxu0 }
 0x46c   :  { %17290 = vmatmul.mubr.msk.f32.gmra.mxu1 %vm183_vm0, %v21079_v55  ;;  %v7143_v11 = vadd.f32 %v20956_v53, %v7072_v38  ;;  %v5598_v44 = vadd.f32 %v23899_v42, %v23898_v33  ;;  %v17107_v20 = vpop.f32.mrf.mxu1  ;;  %v7400_v51 = vld [vmem:[#allocation3 + $0x3c9] sm:$0xff]  ;;  %v7401_v22 = vld [vmem:[#allocation3 + $0x3d1] sm:$0xff]  ;;  %v6305_v52 = vadd.f32 %v6234_v27, %v4890_v43 }
 0x46d   :  { %v21097_v58 = vld [vmem:[#allocation3 + $0x3c7] sm:$0xff]  ;;  %v21099_v41 = vld [vmem:[#allocation3 + $0x3cf] sm:$0xff]  ;;  %v7146_v4 = vadd.f32 %v20956_v53, %v7075_v26  ;;  %v7074_v61 = vadd.f32 %v7010_v45, %v6303_v23  ;;  %v7013_v3 = vadd.f32 %v17107_v20, %v23900_v35  ;;  %17194 = vmatprep.mubr.msk.f32.mxu0 %vm183_vm0, %v7400_v51 }
 0x46e   :  { %7207 = vst.msk [vmem:[#allocation3 + $0x408] sm:$0xff] %vm183_vm0, %v7143_v11  ;;  %17292 = vmatprep.mubr.msk.f32.mxu1 %vm183_vm0, %v21097_v58  ;;  %v6941_v17 = vpop.f32.mrf.mxu1  ;;  %v7403_v26 = vld [vmem:[#allocation3 + $0x3f1] sm:$0xff]  ;;  %v7278_v33 = vld [vmem:[#allocation3 + $0x8] sm:$0xff] }
 0x46f   :  { %17195 = vmatmul.mubr.msk.f32.gmra.mxu0 %vm183_vm0, %v7401_v22  ;;  %7210 = vst.msk [vmem:[#allocation3 + $0x430] sm:$0xff] %vm183_vm0, %v7146_v4  ;;  %v7145_v18 = vadd.f32 %v20956_v53, %v7074_v61  ;;  %v7077_v60 = vadd.f32 %v7013_v3, %v6306_v46  ;;  %v7012_v24 = vadd.f32 %v6941_v17, %v5598_v44  ;;  %v8564_v20 = vld [vmem:[#allocation3 + $0x27] sm:$0xff]  ;;  %v7279_v51 = vld [vmem:[#allocation3 + $0x10] sm:$0xff] }
 0x470   :  { %17293 = vmatmul.mubr.msk.f32.gmra.mxu1 %vm183_vm0, %v21099_v41  ;;  %v7402_v38 = vld [vmem:[#allocation3 + $0x3e9] sm:$0xff]  ;;  %v17210_v47 = vpop.f32.mrf.mxu1  ;;  %v17996_v22 = vld [vmem:[%s23352_s3 + $0x20] sm:$0xff] }
 0x471   :  { %v21112_v36 = vld [vmem:[#allocation3 + $0x3e7] sm:$0xff]  ;;  %v21114_v19 = vld [vmem:[#allocation3 + $0x3ef] sm:$0xff]  ;;  %7209 = vst.msk [vmem:[#allocation3 + $0x428] sm:$0xff] %vm183_vm0, %v7145_v18  ;;  %v7148_v23 = vadd.f32 %v20956_v53, %v7077_v60  ;;  %v7076_v11 = vadd.f32 %v7012_v24, %v6305_v52  ;;  %17197 = vmatprep.mubr.msk.f32.mxu0 %vm183_vm0, %v7402_v38  ;;  %v21121_v45 = vadd.f32 %v17210_v47, %v17112_v54 }
 0x472   :  { %17295 = vmatprep.mubr.msk.f32.mxu1 %vm183_vm0, %v21112_v36  ;;  %v7405_v46 = vld [vmem:[#allocation3 + $0x411] sm:$0xff]  ;;  %v14630_v61 = vld [vmem:[%s23352_s3 + $0x28] sm:$0xff] }
 0x473   :  { %23901 = vst [vmem:[#allocation74_spill] sm:$0xff] %v21121_v45  ;;  %17198 = vmatmul.mubr.msk.f32.gmra.mxu0 %vm183_vm0, %v7403_v26  ;;  %7212 = vst.msk [vmem:[#allocation3 + $0x450] sm:$0xff] %vm183_vm0, %v7148_v23  ;;  %v7147_v62 = vadd.f32 %v20956_v53, %v7076_v11  ;;  %v8565_v4 = vld [vmem:[#allocation3 + $0x2f] sm:$0xff]  ;;  %v8566_v35 = vld [vmem:[#allocation3 + $0x47] sm:$0xff]  ;;  %17598 = vmatprep.subr.mxu1 %v14630_v61 }
 0x474   :  { %17296 = vmatmul.mubr.msk.f32.gmra.mxu1 %vm183_vm0, %v21114_v19  ;;  %v21159_v3 = vld [vmem:[%s23352_s3 + $0x30] sm:$0xff]  ;;  %v21165_v17 = vld [vmem:[#allocation3 + $0x28] sm:$0xff] }
 0x475   :  { %v7404_v32 = vld [vmem:[#allocation3 + $0x409] sm:$0xff]  ;;  %7211 = vst.msk [vmem:[#allocation3 + $0x448] sm:$0xff] %vm183_vm0, %v7147_v62 }
 0x476   :  { %v21128_v43 = vld [vmem:[#allocation3 + $0x407] sm:$0xff]  ;;  %v21130_v48 = vld [vmem:[#allocation3 + $0x40f] sm:$0xff]  ;;  %17200 = vmatprep.mubr.msk.f32.mxu0 %vm183_vm0, %v7404_v32 }
 0x477   :  { %17298 = vmatprep.mubr.msk.f32.mxu1 %vm183_vm0, %v21128_v43  ;;  %17201 = vmatmul.mubr.msk.f32.gmra.mxu0 %vm183_vm0, %v7405_v46  ;;  %v7407_v27 = vld [vmem:[#allocation3 + $0x431] sm:$0xff]  ;;  %v21175_v60 = vld [vmem:[#allocation3 + $0x48] sm:$0xff] }
 0x478   :  { %17299 = vmatmul.mubr.msk.f32.gmra.mxu1 %vm183_vm0, %v21130_v48  ;;  %v7406_v53 = vld [vmem:[#allocation3 + $0x429] sm:$0xff] }
 0x479   :  { %v21139_v42 = vld [vmem:[#allocation3 + $0x427] sm:$0xff]  ;;  %v21141_v44 = vld [vmem:[#allocation3 + $0x42f] sm:$0xff]  ;;  %17203 = vmatprep.mubr.msk.f32.mxu0 %vm183_vm0, %v7406_v53 }
 0x47a   :  { %17301 = vmatprep.mubr.msk.f32.mxu1 %vm183_vm0, %v21139_v42  ;;  %v21169_v52 = vld [vmem:[#allocation3 + $0x30] sm:$0xff]  ;;  %v17998_v24 = vld [vmem:[#allocation3 + $0x67] sm:$0xff] }
 0x47b   :  { %17204 = vmatmul.mubr.msk.f32.gmra.mxu0 %vm183_vm0, %v7407_v27  ;;  %v17997_v18 = vld [vmem:[#allocation3 + $0x4f] sm:$0xff]  ;;  %v18000_v23 = vld [vmem:[#allocation3 + $0x87] sm:$0xff] }
 0x47c   :  { %17302 = vmatmul.mubr.msk.f32.gmra.mxu1 %vm183_vm0, %v21141_v44  ;;  %17306 = vmatprep.mubr.msk.f32.mxu0 %vm183_vm0, %v8564_v20  ;;  %v21180_v38 = vld [vmem:[#allocation3 + $0x50] sm:$0xff]  ;;  %v21185_v47 = vld [vmem:[#allocation3 + $0x68] sm:$0xff] }
 0x47d   :  { %17404 = vmatprep.mubr.msk.f32.mxu1 %vm183_vm0, %v7278_v33  ;;  %v17999_v54 = vld [vmem:[#allocation3 + $0x6f] sm:$0xff]  ;;  %v18002_v32 = vld [vmem:[#allocation3 + $0xa7] sm:$0xff] }
 0x47e   :  { %v21190_v11 = vld [vmem:[#allocation3 + $0x70] sm:$0xff]  ;;  %v21195_v62 = vld [vmem:[#allocation3 + $0x88] sm:$0xff] }
 0x47f   :  { %17307 = vmatmul.mubr.msk.f32.vlgmr.msra.gmra.mxu0 %vm183_vm0, %v8565_v4  ;;  %v18001_v26 = vld [vmem:[#allocation3 + $0x8f] sm:$0xff]  ;;  %v18004_v27 = vld [vmem:[#allocation3 + $0xc7] sm:$0xff] }
 0x480   :  { %17405 = vmatmul.mubr.msk.f32.vlgmr.msra.gmra.mxu1 %vm183_vm0, %v7279_v51  ;;  %17501 = vmatpush3.msra.mxu0 %v17996_v22  ;;  %v21200_v46 = vld [vmem:[#allocation3 + $0x90] sm:$0xff]  ;;  %v21205_v53 = vld [vmem:[#allocation3 + $0xa8] sm:$0xff] }
 0x481   :  { %17309 = vmatprep.mubr.msk.f32.mxu0 %vm183_vm0, %v8566_v35  ;;  %17407 = vmatprep.mubr.msk.f32.mxu1 %vm183_vm0, %v21165_v17  ;;  %v18003_v33 = vld [vmem:[#allocation3 + $0xaf] sm:$0xff] }
 0x482   :  { %17599 = vmatpush3.msra.mxu1 %v14630_v61  ;;  %17696 = vmatprep.subr.mxu0 %v21159_v3  ;;  %v21210_v20 = vld [vmem:[#allocation3 + $0xb0] sm:$0xff]  ;;  %v21215_v4 = vld [vmem:[#allocation3 + $0xc8] sm:$0xff] }
 0x483   :  { %17310 = vmatmul.mubr.msk.f32.gmra.mxu0 %vm183_vm0, %v17997_v18  ;;  %v18005_v51 = vld [vmem:[#allocation3 + $0xcf] sm:$0xff]  ;;  %v18006_v61 = vld [vmem:[#allocation3 + $0xe7] sm:$0xff] }
 0x484   :  { %17408 = vmatmul.mubr.msk.f32.gmra.mxu1 %vm183_vm0, %v21169_v52  ;;  %17312 = vmatprep.mubr.msk.f32.mxu0 %vm183_vm0, %v17998_v24  ;;  %v21220_v35 = vld [vmem:[#allocation3 + $0xd0] sm:$0xff]  ;;  %v21225_v18 = vld [vmem:[#allocation3 + $0xe8] sm:$0xff] }
 0x485   :  { %17410 = vmatprep.mubr.msk.f32.mxu1 %vm183_vm0, %v21175_v60  ;;  %v18007_v22 = vld [vmem:[#allocation3 + $0xef] sm:$0xff]  ;;  %v18008_v24 = vld [vmem:[#allocation3 + $0x107] sm:$0xff] }
 0x486   :  { %v8595_v45 = vld [vmem:[#allocation3 + $0x20f] sm:$0xff] }
 0x487   :  { %17313 = vmatmul.mubr.msk.f32.gmra.mxu0 %vm183_vm0, %v17999_v54  ;;  %v21230_v54 = vld [vmem:[#allocation3 + $0xf0] sm:$0xff] }
 0x488   :  { %17411 = vmatmul.mubr.msk.f32.gmra.mxu1 %vm183_vm0, %v21180_v38  ;;  %17315 = vmatprep.mubr.msk.f32.mxu0 %vm183_vm0, %v18000_v23  ;;  %v18009_v23 = vld [vmem:[#allocation3 + $0x10f] sm:$0xff] }
 0x489   :  { %17413 = vmatprep.mubr.msk.f32.mxu1 %vm183_vm0, %v21185_v47 }
 0x48b   :  { %17316 = vmatmul.mubr.msk.f32.gmra.mxu0 %vm183_vm0, %v18001_v26  ;;  %v21235_v26 = vld [vmem:[#allocation3 + $0x108] sm:$0xff] }
 0x48c   :  { %17414 = vmatmul.mubr.msk.f32.gmra.mxu1 %vm183_vm0, %v21190_v11  ;;  %17318 = vmatprep.mubr.msk.f32.mxu0 %vm183_vm0, %v18002_v32  ;;  %v18010_v32 = vld [vmem:[#allocation3 + $0x127] sm:$0xff] }
 0x48d   :  { %17416 = vmatprep.mubr.msk.f32.mxu1 %vm183_vm0, %v21195_v62 }
 0x48f   :  { %17319 = vmatmul.mubr.msk.f32.gmra.mxu0 %vm183_vm0, %v18003_v33  ;;  %v21240_v33 = vld [vmem:[#allocation3 + $0x110] sm:$0xff] }
 0x490   :  { %17417 = vmatmul.mubr.msk.f32.gmra.mxu1 %vm183_vm0, %v21200_v46  ;;  %17321 = vmatprep.mubr.msk.f32.mxu0 %vm183_vm0, %v18004_v27  ;;  %v18011_v27 = vld [vmem:[#allocation3 + $0x12f] sm:$0xff] }
 0x491   :  { %17419 = vmatprep.mubr.msk.f32.mxu1 %vm183_vm0, %v21205_v53 }
 0x493   :  { %17322 = vmatmul.mubr.msk.f32.gmra.mxu0 %vm183_vm0, %v18005_v51  ;;  %v21245_v51 = vld [vmem:[#allocation3 + $0x128] sm:$0xff] }
 0x494   :  { %17420 = vmatmul.mubr.msk.f32.gmra.mxu1 %vm183_vm0, %v21210_v20  ;;  %17324 = vmatprep.mubr.msk.f32.mxu0 %vm183_vm0, %v18006_v61  ;;  %v18012_v61 = vld [vmem:[#allocation3 + $0x147] sm:$0xff] }
 0x495   :  { %17422 = vmatprep.mubr.msk.f32.mxu1 %vm183_vm0, %v21215_v4 }
 0x497   :  { %17325 = vmatmul.mubr.msk.f32.gmra.mxu0 %vm183_vm0, %v18007_v22  ;;  %v21250_v22 = vld [vmem:[#allocation3 + $0x130] sm:$0xff] }
 0x498   :  { %17423 = vmatmul.mubr.msk.f32.gmra.mxu1 %vm183_vm0, %v21220_v35  ;;  %17327 = vmatprep.mubr.msk.f32.mxu0 %vm183_vm0, %v18008_v24  ;;  %v18013_v24 = vld [vmem:[#allocation3 + $0x14f] sm:$0xff] }
 0x499   :  { %17425 = vmatprep.mubr.msk.f32.mxu1 %vm183_vm0, %v21225_v18 }
 0x49b   :  { %17328 = vmatmul.mubr.msk.f32.gmra.mxu0 %vm183_vm0, %v18009_v23  ;;  %v21255_v23 = vld [vmem:[#allocation3 + $0x148] sm:$0xff] }
 0x49c   :  { %17426 = vmatmul.mubr.msk.f32.gmra.mxu1 %vm183_vm0, %v21230_v54  ;;  %17330 = vmatprep.mubr.msk.f32.mxu0 %vm183_vm0, %v18010_v32  ;;  %v21261_v32 = vld [vmem:[#allocation3 + $0x150] sm:$0xff] }
 0x49d   :  { %17428 = vmatprep.mubr.msk.f32.mxu1 %vm183_vm0, %v21235_v26 }
 0x49f   :  { %17331 = vmatmul.mubr.msk.f32.gmra.mxu0 %vm183_vm0, %v18011_v27  ;;  %v18014_v27 = vld [vmem:[#allocation3 + $0x16f] sm:$0xff] }
 0x4a0   :  { %17429 = vmatmul.mubr.msk.f32.gmra.mxu1 %vm183_vm0, %v21240_v33  ;;  %17333 = vmatprep.mubr.msk.f32.mxu0 %vm183_vm0, %v18012_v61  ;;  %v21266_v61 = vld [vmem:[#allocation3 + $0x168] sm:$0xff] }
 0x4a1   :  { %17431 = vmatprep.mubr.msk.f32.mxu1 %vm183_vm0, %v21245_v51 }
 0x4a3   :  { %17334 = vmatmul.mubr.msk.f32.gmra.mxu0 %vm183_vm0, %v18013_v24  ;;  %v21278_v24 = vld [vmem:[#allocation3 + $0x188] sm:$0xff] }
 0x4a4   :  { %17432 = vmatmul.mubr.msk.f32.gmra.mxu1 %vm183_vm0, %v21250_v22  ;;  %17336 = vmatprep.mubr.msk.f32.mxu0 %vm183_vm0, %v20707_v30  ;;  %v21272_v30 = vld [vmem:[#allocation3 + $0x170] sm:$0xff] }
 0x4a5   :  { %17434 = vmatprep.mubr.msk.f32.mxu1 %vm183_vm0, %v21255_v23 }
 0x4a7   :  { %17337 = vmatmul.mubr.msk.f32.gmra.mxu0 %vm183_vm0, %v18014_v27  ;;  %v21314_v27 = vld [vmem:[#allocation3 + $0x1e8] sm:$0xff] }
 0x4a8   :  { %17435 = vmatmul.mubr.msk.f32.gmra.mxu1 %vm183_vm0, %v21261_v32  ;;  %17339 = vmatprep.mubr.msk.f32.mxu0 %vm183_vm0, %v20728_v1  ;;  %v21284_v1 = vld [vmem:[#allocation3 + $0x190] sm:$0xff]  ;;  %23904 = vst [vmem:[#allocation77_spill] sm:$0xff] %v21314_v27 }
 0x4a9   :  { %17437 = vmatprep.mubr.msk.f32.mxu1 %vm183_vm0, %v21266_v61 }
 0x4ab   :  { %17340 = vmatmul.mubr.msk.f32.gmra.mxu0 %vm183_vm0, %v20730_v63  ;;  %v21290_v63 = vld [vmem:[#allocation3 + $0x1a8] sm:$0xff] }
 0x4ac   :  { %17438 = vmatmul.mubr.msk.f32.gmra.mxu1 %vm183_vm0, %v21272_v30  ;;  %17342 = vmatprep.mubr.msk.f32.mxu0 %vm183_vm0, %v20752_v57  ;;  %v21296_v57 = vld [vmem:[#allocation3 + $0x1b0] sm:$0xff] }
 0x4ad   :  { %17440 = vmatprep.mubr.msk.f32.mxu1 %vm183_vm0, %v21278_v24  ;;  %23902 = vst [vmem:[#allocation75_spill] sm:$0xff] %v21296_v57 }
 0x4af   :  { %17343 = vmatmul.mubr.msk.f32.gmra.mxu0 %vm183_vm0, %v20754_v50  ;;  %v21302_v50 = vld [vmem:[#allocation3 + $0x1c8] sm:$0xff] }
 0x4b0   :  { %17441 = vmatmul.mubr.msk.f32.gmra.mxu1 %vm183_vm0, %v21284_v1  ;;  %17345 = vmatprep.mubr.msk.f32.mxu0 %vm183_vm0, %v20776_v10  ;;  %v21308_v10 = vld [vmem:[#allocation3 + $0x1d0] sm:$0xff] }
 0x4b1   :  { %17443 = vmatprep.mubr.msk.f32.mxu1 %vm183_vm0, %v21290_v63  ;;  %23903 = vst [vmem:[#allocation76_spill] sm:$0xff] %v21308_v10 }
 0x4b3   :  { %17346 = vmatmul.mubr.msk.f32.gmra.mxu0 %vm183_vm0, %v20778_v2  ;;  %v8594_v2 = vld [vmem:[#allocation3 + $0x207] sm:$0xff] }
 0x4b4   :  { %17444 = vmatmul.mubr.msk.f32.gmra.mxu1 %vm183_vm0, %v21296_v57  ;;  %17348 = vmatprep.mubr.msk.f32.mxu0 %vm183_vm0, %v20800_v0  ;;  %v7310_v0 = vld [vmem:[#allocation3 + $0x248] sm:$0xff]  ;;  %v21319_v57 = vld [vmem:[#allocation3 + $0x1f0] sm:$0xff] }
 0x4b5   :  { %17446 = vmatprep.mubr.msk.f32.mxu1 %vm183_vm0, %v21302_v50  ;;  %23905 = vst [vmem:[#allocation78_spill] sm:$0xff] %v21319_v57 }
 0x4b7   :  { %17349 = vmatmul.mubr.msk.f32.gmra.mxu0 %vm183_vm0, %v20802_v40  ;;  %v7311_v40 = vld [vmem:[#allocation3 + $0x250] sm:$0xff] }
 0x4b8   :  { %17447 = vmatmul.mubr.msk.f32.gmra.mxu1 %vm183_vm0, %v21308_v10  ;;  %17351 = vmatprep.mubr.msk.f32.mxu0 %vm183_vm0, %v8594_v2  ;;  %v21330_v2 = vld [vmem:[#allocation3 + $0x268] sm:$0xff] }
 0x4b9   :  { %17449 = vmatprep.mubr.msk.f32.mxu1 %vm183_vm0, %v21314_v27  ;;  %23906 = vst [vmem:[#allocation79_spill] sm:$0xff] %v21330_v2 }
 0x4bb   :  { %17352 = vmatmul.mubr.msk.f32.gmra.mxu0 %vm183_vm0, %v8595_v45  ;;  %v21336_v45 = vpop.f32.mrf.mxu0 }
 0x4bc   :  { %17450 = vmatmul.mubr.msk.f32.gmra.mxu1 %vm183_vm0, %v21319_v57  ;;  %17354 = vmatprep.mubr.msk.f32.mxu0 %vm183_vm0, %v20842_v34  ;;  %23907 = vst [vmem:[#allocation80_spill] sm:$0xff] %v21336_v45  ;;  %v21338_v57 = vpop.f32.mrf.mxu1  ;;  %v21340_v34 = vld [vmem:[#allocation3 + $0x270] sm:$0xff] }
 0x4bd   :  { %17452 = vmatprep.mubr.msk.f32.mxu1 %vm183_vm0, %v7310_v0  ;;  %23908 = vst [vmem:[#allocation81_spill] sm:$0xff] %v21338_v57 }
 0x4bf   :  { %17355 = vmatmul.mubr.msk.f32.gmra.mxu0 %vm183_vm0, %v20844_v49  ;;  %v21346_v49 = vld [vmem:[#allocation3 + $0x288] sm:$0xff] }
 0x4c0   :  { %17453 = vmatmul.mubr.msk.f32.gmra.mxu1 %vm183_vm0, %v7311_v40  ;;  %17357 = vmatprep.mubr.msk.f32.mxu0 %vm183_vm0, %v20866_v9 }
 0x4c1   :  { %17455 = vmatprep.mubr.msk.f32.mxu1 %vm183_vm0, %v21330_v2  ;;  %v21356_v2 = vld [vmem:[#allocation3 + $0x290] sm:$0xff] }
 0x4c2   :  { %v17115_v0 = vpop.f32.mrf.mxu0 }
 0x4c3   :  { %v17213_v27 = vpop.f32.mrf.mxu1  ;;  %17358 = vmatmul.mubr.msk.f32.gmra.mxu0 %vm183_vm0, %v20868_v25 }
 0x4c4   :  { %17456 = vmatmul.mubr.msk.f32.gmra.mxu1 %vm183_vm0, %v21340_v34  ;;  %v21348_v9 = vadd.f32 %v17213_v27, %v17115_v0  ;;  %17360 = vmatprep.mubr.msk.f32.mxu0 %vm183_vm0, %v20890_v31  ;;  %v7678_v40 = vpop.f32.mrf.mxu0  ;;  %v21362_v27 = vld [vmem:[#allocation3 + $0x2a8] sm:$0xff] }
 0x4c5   :  { %17458 = vmatprep.mubr.msk.f32.mxu1 %vm183_vm0, %v21346_v49  ;;  %v8255_v57 = vpop.f32.mrf.mxu1 }
 0x4c6   :  { %23909 = vst [vmem:[#allocation82_spill] sm:$0xff] %v21348_v9  ;;  %v21354_v45 = vadd.f32 %v8255_v57, %v7678_v40  ;;  %v17118_v25 = vpop.f32.mrf.mxu0 }
 0x4c7   :  { %v17216_v10 = vpop.f32.mrf.mxu1  ;;  %17361 = vmatmul.mubr.msk.f32.gmra.mxu0 %vm183_vm0, %v20892_v21 }
 0x4c8   :  { %23910 = vst [vmem:[#allocation83_spill] sm:$0xff] %v21354_v45  ;;  %17459 = vmatmul.mubr.msk.f32.gmra.mxu1 %vm183_vm0, %v21356_v2  ;;  %v21364_v31 = vadd.f32 %v17216_v10, %v17118_v25  ;;  %17363 = vmatprep.mubr.msk.f32.mxu0 %vm183_vm0, %v20914_v12  ;;  %v7688_v57 = vpop.f32.mrf.mxu0  ;;  %v21372_v45 = vld [vmem:[#allocation3 + $0x2b0] sm:$0xff]  ;;  %v21378_v10 = vld [vmem:[#allocation3 + $0x2c8] sm:$0xff] }
 0x4c9   :  { %17461 = vmatprep.mubr.msk.f32.mxu1 %vm183_vm0, %v21362_v27  ;;  %v8265_v0 = vpop.f32.mrf.mxu1 }
 0x4ca   :  { %23911 = vst [vmem:[#allocation84_spill] sm:$0xff] %v21364_v31  ;;  %v21370_v40 = vadd.f32 %v8265_v0, %v7688_v57  ;;  %v17121_v21 = vpop.f32.mrf.mxu0 }
 0x4cb   :  { %v17219_v9 = vpop.f32.mrf.mxu1  ;;  %17364 = vmatmul.mubr.msk.f32.gmra.mxu0 %vm183_vm0, %v20916_v37 }
 0x4cc   :  { %23912 = vst [vmem:[#allocation85_spill] sm:$0xff] %v21370_v40  ;;  %17462 = vmatmul.mubr.msk.f32.gmra.mxu1 %vm183_vm0, %v21372_v45  ;;  %v21380_v12 = vadd.f32 %v17219_v9, %v17121_v21  ;;  %17366 = vmatprep.mubr.msk.f32.mxu0 %vm183_vm0, %v20938_v28  ;;  %v7698_v25 = vpop.f32.mrf.mxu0  ;;  %v21388_v40 = vld [vmem:[#allocation3 + $0x2d0] sm:$0xff]  ;;  %v21394_v9 = vld [vmem:[#allocation3 + $0x2e8] sm:$0xff] }
 0x4cd   :  { %17464 = vmatprep.mubr.msk.f32.mxu1 %vm183_vm0, %v21378_v10  ;;  %v8275_v57 = vpop.f32.mrf.mxu1 }
 0x4ce   :  { %23913 = vst [vmem:[#allocation86_spill] sm:$0xff] %v21380_v12  ;;  %v21386_v0 = vadd.f32 %v8275_v57, %v7698_v25  ;;  %v17124_v37 = vpop.f32.mrf.mxu0 }
 0x4cf   :  { %v17222_v31 = vpop.f32.mrf.mxu1  ;;  %17367 = vmatmul.mubr.msk.f32.gmra.mxu0 %vm183_vm0, %v20940_v7 }
 0x4d0   :  { %23914 = vst [vmem:[#allocation87_spill] sm:$0xff] %v21386_v0  ;;  %17465 = vmatmul.mubr.msk.f32.gmra.mxu1 %vm183_vm0, %v21388_v40  ;;  %v21396_v28 = vadd.f32 %v17222_v31, %v17124_v37  ;;  %17369 = vmatprep.mubr.msk.f32.mxu0 %vm183_vm0, %v20967_v39  ;;  %v7708_v21 = vpop.f32.mrf.mxu0  ;;  %v21404_v0 = vld [vmem:[#allocation3 + $0x2f0] sm:$0xff]  ;;  %v21410_v31 = vld [vmem:[#allocation3 + $0x308] sm:$0xff] }
 0x4d1   :  { %17467 = vmatprep.mubr.msk.f32.mxu1 %vm183_vm0, %v21394_v9  ;;  %v8285_v25 = vpop.f32.mrf.mxu1 }
 0x4d2   :  { %23915 = vst [vmem:[#allocation88_spill] sm:$0xff] %v21396_v28  ;;  %v21402_v57 = vadd.f32 %v8285_v25, %v7708_v21  ;;  %v17127_v7 = vpop.f32.mrf.mxu0 }
 0x4d3   :  { %v17225_v12 = vpop.f32.mrf.mxu1  ;;  %17370 = vmatmul.mubr.msk.f32.gmra.mxu0 %vm183_vm0, %v20969_v6 }
 0x4d4   :  { %23916 = vst [vmem:[#allocation89_spill] sm:$0xff] %v21402_v57  ;;  %17468 = vmatmul.mubr.msk.f32.gmra.mxu1 %vm183_vm0, %v21404_v0  ;;  %v21412_v39 = vadd.f32 %v17225_v12, %v17127_v7  ;;  %17372 = vmatprep.mubr.msk.f32.mxu0 %vm183_vm0, %v20991_v29  ;;  %v7718_v37 = vpop.f32.mrf.mxu0  ;;  %v21420_v57 = vld [vmem:[#allocation3 + $0x310] sm:$0xff]  ;;  %v21426_v12 = vld [vmem:[#allocation3 + $0x328] sm:$0xff] }
 0x4d5   :  { %17470 = vmatprep.mubr.msk.f32.mxu1 %vm183_vm0, %v21410_v31  ;;  %v8295_v21 = vpop.f32.mrf.mxu1 }
 0x4d6   :  { %23917 = vst [vmem:[#allocation123_spill] sm:$0xff] %v21412_v39  ;;  %v21418_v25 = vadd.f32 %v8295_v21, %v7718_v37  ;;  %v17130_v6 = vpop.f32.mrf.mxu0 }
 0x4d7   :  { %v17228_v28 = vpop.f32.mrf.mxu1  ;;  %17373 = vmatmul.mubr.msk.f32.gmra.mxu0 %vm183_vm0, %v20993_v13 }
 0x4d8   :  { %23918 = vst [vmem:[#allocation149_spill] sm:$0xff] %v21418_v25  ;;  %17471 = vmatmul.mubr.msk.f32.gmra.mxu1 %vm183_vm0, %v21420_v57  ;;  %v21428_v29 = vadd.f32 %v17228_v28, %v17130_v6  ;;  %17375 = vmatprep.mubr.msk.f32.mxu0 %vm183_vm0, %v21013_v15  ;;  %v7728_v7 = vpop.f32.mrf.mxu0  ;;  %v21436_v25 = vld [vmem:[#allocation3 + $0x330] sm:$0xff]  ;;  %v21442_v28 = vld [vmem:[#allocation3 + $0x348] sm:$0xff] }
 0x4d9   :  { %17473 = vmatprep.mubr.msk.f32.mxu1 %vm183_vm0, %v21426_v12  ;;  %v8305_v37 = vpop.f32.mrf.mxu1 }
 0x4da   :  { %23919 = vst [vmem:[#allocation90_spill] sm:$0xff] %v21428_v29  ;;  %v21434_v21 = vadd.f32 %v8305_v37, %v7728_v7  ;;  %v17133_v13 = vpop.f32.mrf.mxu0 }
 0x4db   :  { %v17231_v39 = vpop.f32.mrf.mxu1  ;;  %17376 = vmatmul.mubr.msk.f32.gmra.mxu0 %vm183_vm0, %v21015_v56 }
 0x4dc   :  { %23920 = vst [vmem:[#allocation94_spill] sm:$0xff] %v21434_v21  ;;  %17474 = vmatmul.mubr.msk.f32.gmra.mxu1 %vm183_vm0, %v21436_v25  ;;  %v21444_v15 = vadd.f32 %v17231_v39, %v17133_v13  ;;  %17378 = vmatprep.mubr.msk.f32.mxu0 %vm183_vm0, %v21035_v14  ;;  %v7738_v6 = vpop.f32.mrf.mxu0  ;;  %v21452_v21 = vld [vmem:[#allocation3 + $0x350] sm:$0xff]  ;;  %v21458_v39 = vld [vmem:[#allocation3 + $0x368] sm:$0xff] }
 0x4dd   :  { %17476 = vmatprep.mubr.msk.f32.mxu1 %vm183_vm0, %v21442_v28  ;;  %v8315_v7 = vpop.f32.mrf.mxu1 }
 0x4de   :  { %23921 = vst [vmem:[#allocation150_spill] sm:$0xff] %v21444_v15  ;;  %v21450_v37 = vadd.f32 %v8315_v7, %v7738_v6  ;;  %v17136_v56 = vpop.f32.mrf.mxu0 }
 0x4df   :  { %v17234_v29 = vpop.f32.mrf.mxu1  ;;  %17379 = vmatmul.mubr.msk.f32.gmra.mxu0 %vm183_vm0, %v21037_v16 }
 0x4e0   :  { %23922 = vst [vmem:[#allocation92_spill] sm:$0xff] %v21450_v37  ;;  %17477 = vmatmul.mubr.msk.f32.gmra.mxu1 %vm183_vm0, %v21452_v21  ;;  %v21460_v14 = vadd.f32 %v17234_v29, %v17136_v56  ;;  %17381 = vmatprep.mubr.msk.f32.mxu0 %vm183_vm0, %v21057_v59  ;;  %v7748_v13 = vpop.f32.mrf.mxu0  ;;  %v21468_v37 = vld [vmem:[#allocation3 + $0x370] sm:$0xff]  ;;  %v21474_v29 = vld [vmem:[#allocation3 + $0x388] sm:$0xff] }
 0x4e1   :  { %17479 = vmatprep.mubr.msk.f32.mxu1 %vm183_vm0, %v21458_v39  ;;  %v8325_v6 = vpop.f32.mrf.mxu1 }
 0x4e2   :  { %23923 = vst [vmem:[#allocation93_spill] sm:$0xff] %v21460_v14  ;;  %v21466_v7 = vadd.f32 %v8325_v6, %v7748_v13  ;;  %v17139_v16 = vpop.f32.mrf.mxu0 }
 0x4e3   :  { %v17237_v15 = vpop.f32.mrf.mxu1  ;;  %17382 = vmatmul.mubr.msk.f32.gmra.mxu0 %vm183_vm0, %v21059_v5 }
 0x4e4   :  { %23924 = vst [vmem:[#allocation97_spill] sm:$0xff] %v21466_v7  ;;  %17480 = vmatmul.mubr.msk.f32.gmra.mxu1 %vm183_vm0, %v21468_v37  ;;  %v21476_v59 = vadd.f32 %v17237_v15, %v17139_v16  ;;  %17384 = vmatprep.mubr.msk.f32.mxu0 %vm183_vm0, %v21077_v8  ;;  %v7758_v56 = vpop.f32.mrf.mxu0  ;;  %v21484_v7 = vld [vmem:[#allocation3 + $0x390] sm:$0xff]  ;;  %v21490_v15 = vld [vmem:[#allocation3 + $0x3a8] sm:$0xff] }
 0x4e5   :  { %17482 = vmatprep.mubr.msk.f32.mxu1 %vm183_vm0, %v21474_v29  ;;  %v8335_v13 = vpop.f32.mrf.mxu1 }
 0x4e6   :  { %23925 = vst [vmem:[#allocation151_spill] sm:$0xff] %v21476_v59  ;;  %v21482_v6 = vadd.f32 %v8335_v13, %v7758_v56  ;;  %v17142_v5 = vpop.f32.mrf.mxu0 }
 0x4e7   :  { %v17240_v14 = vpop.f32.mrf.mxu1  ;;  %17385 = vmatmul.mubr.msk.f32.gmra.mxu0 %vm183_vm0, %v21079_v55 }
 0x4e8   :  { %23926 = vst [vmem:[#allocation95_spill] sm:$0xff] %v21482_v6  ;;  %17483 = vmatmul.mubr.msk.f32.gmra.mxu1 %vm183_vm0, %v21484_v7  ;;  %v21492_v8 = vadd.f32 %v17240_v14, %v17142_v5  ;;  %17387 = vmatprep.mubr.msk.f32.mxu0 %vm183_vm0, %v21097_v58  ;;  %v7768_v16 = vpop.f32.mrf.mxu0  ;;  %v21500_v6 = vld [vmem:[#allocation3 + $0x3b0] sm:$0xff]  ;;  %v21506_v14 = vld [vmem:[#allocation3 + $0x3c8] sm:$0xff] }
 0x4e9   :  { %17485 = vmatprep.mubr.msk.f32.mxu1 %vm183_vm0, %v21490_v15  ;;  %v8345_v56 = vpop.f32.mrf.mxu1 }
 0x4ea   :  { %23927 = vst [vmem:[#allocation96_spill] sm:$0xff] %v21492_v8  ;;  %v21498_v13 = vadd.f32 %v8345_v56, %v7768_v16  ;;  %v17145_v55 = vpop.f32.mrf.mxu0 }
 0x4eb   :  { %v17243_v59 = vpop.f32.mrf.mxu1  ;;  %17388 = vmatmul.mubr.msk.f32.gmra.mxu0 %vm183_vm0, %v21099_v41 }
 0x4ec   :  { %23928 = vst [vmem:[#allocation180_spill] sm:$0xff] %v21498_v13  ;;  %17486 = vmatmul.mubr.msk.f32.gmra.mxu1 %vm183_vm0, %v21500_v6  ;;  %v21508_v58 = vadd.f32 %v17243_v59, %v17145_v55  ;;  %17390 = vmatprep.mubr.msk.f32.mxu0 %vm183_vm0, %v21112_v36  ;;  %v7778_v5 = vpop.f32.mrf.mxu0  ;;  %v21516_v13 = vld [vmem:[#allocation3 + $0x3d0] sm:$0xff]  ;;  %v21522_v59 = vld [vmem:[#allocation3 + $0x3e8] sm:$0xff] }
 0x4ed   :  { %17488 = vmatprep.mubr.msk.f32.mxu1 %vm183_vm0, %v21506_v14  ;;  %v8355_v16 = vpop.f32.mrf.mxu1 }
 0x4ee   :  { %23929 = vst [vmem:[#allocation91_spill] sm:$0xff] %v21508_v58  ;;  %v21514_v56 = vadd.f32 %v8355_v16, %v7778_v5  ;;  %v17148_v41 = vpop.f32.mrf.mxu0 }
 0x4ef   :  { %v17246_v8 = vpop.f32.mrf.mxu1  ;;  %17391 = vmatmul.mubr.msk.f32.gmra.mxu0 %vm183_vm0, %v21114_v19 }
 0x4f0   :  { %23930 = vst [vmem:[#allocation23_spill] sm:$0xff] %v21514_v56  ;;  %17489 = vmatmul.mubr.msk.f32.gmra.mxu1 %vm183_vm0, %v21516_v13  ;;  %v21524_v36 = vadd.f32 %v17246_v8, %v17148_v41  ;;  %17393 = vmatprep.mubr.msk.f32.mxu0 %vm183_vm0, %v21128_v43  ;;  %v7788_v55 = vpop.f32.mrf.mxu0  ;;  %v21532_v56 = vld [vmem:[#allocation3 + $0x3f0] sm:$0xff]  ;;  %v21538_v8 = vld [vmem:[#allocation3 + $0x408] sm:$0xff] }
 0x4f1   :  { %17491 = vmatprep.mubr.msk.f32.mxu1 %vm183_vm0, %v21522_v59  ;;  %v8365_v5 = vpop.f32.mrf.mxu1  ;;  %23933 = vst [vmem:[#allocation20_spill] sm:$0xff] %v21532_v56  ;;  %23934 = vst [vmem:[#allocation182_spill] sm:$0xff] %v21538_v8 }
 0x4f2   :  { %23931 = vst [vmem:[#allocation152_spill] sm:$0xff] %v21524_v36  ;;  %v21530_v16 = vadd.f32 %v8365_v5, %v7788_v55  ;;  %v17151_v19 = vpop.f32.mrf.mxu0 }
 0x4f3   :  { %v17249_v58 = vpop.f32.mrf.mxu1  ;;  %17394 = vmatmul.mubr.msk.f32.gmra.mxu0 %vm183_vm0, %v21130_v48 }
 0x4f4   :  { %23932 = vst [vmem:[#allocation98_spill] sm:$0xff] %v21530_v16  ;;  %17492 = vmatmul.mubr.msk.f32.gmra.mxu1 %vm183_vm0, %v21532_v56  ;;  %v21540_v43 = vadd.f32 %v17249_v58, %v17151_v19  ;;  %17396 = vmatprep.mubr.msk.f32.mxu0 %vm183_vm0, %v21139_v42  ;;  %v7798_v41 = vpop.f32.mrf.mxu0  ;;  %v21548_v16 = vld [vmem:[#allocation3 + $0x410] sm:$0xff]  ;;  %v8626_v58 = vld [vmem:[#allocation3 + $0x447] sm:$0xff] }
 0x4f5   :  { %17494 = vmatprep.mubr.msk.f32.mxu1 %vm183_vm0, %v21538_v8  ;;  %v8375_v55 = vpop.f32.mrf.mxu1  ;;  %v21554_v19 = vld [vmem:[#allocation3 + $0x428] sm:$0xff]  ;;  %v21563_v8 = vld [vmem:[#allocation3 + $0x430] sm:$0xff] }
 0x4f6   :  { %23935 = vst [vmem:[#allocation181_spill] sm:$0xff] %v21540_v43  ;;  %v21546_v5 = vadd.f32 %v8375_v55, %v7798_v41  ;;  %23937 = vst [vmem:[#allocation153_spill] sm:$0xff] %v21554_v19  ;;  %v8627_v43 = vld [vmem:[#allocation3 + $0x44f] sm:$0xff] }
 0x4f7   :  { %v17154_v48 = vpop.f32.mrf.mxu0  ;;  %v17252_v36 = vpop.f32.mrf.mxu1  ;;  %17397 = vmatmul.mubr.msk.f32.gmra.mxu0 %vm183_vm0, %v21141_v44 }
 0x4f8   :  { %23936 = vst [vmem:[#allocation100_spill] sm:$0xff] %v21546_v5  ;;  %17495 = vmatmul.mubr.msk.f32.gmra.mxu1 %vm183_vm0, %v21548_v16  ;;  %v21556_v42 = vadd.f32 %v17252_v36, %v17154_v48  ;;  %17399 = vmatprep.mubr.msk.f32.mxu0 %vm183_vm0, %v8626_v58  ;;  %v10491_v36 = vld [vmem:[#allocation3 + $0x29] sm:$0xff] }
 0x4f9   :  { %17497 = vmatprep.mubr.msk.f32.mxu1 %vm183_vm0, %v21554_v19  ;;  %v7808_v41 = vpop.f32.mrf.mxu0  ;;  %v8385_v55 = vpop.f32.mrf.mxu1 }
 0x4fa   :  { %23938 = vst [vmem:[#allocation99_spill] sm:$0xff] %v21556_v42  ;;  %v21561_v5 = vadd.f32 %v8385_v55, %v7808_v41 }
 0x4fb   :  { %v17157_v44 = vpop.f32.mrf.mxu0  ;;  %v17255_v56 = vpop.f32.mrf.mxu1  ;;  %17400 = vmatmul.mubr.msk.f32.gmra.mxu0 %vm183_vm0, %v8627_v43  ;;  %v14760_v43 = vld [vmem:[%s23352_s3 + $0x38] sm:$0xff] }
 0x4fc   :  { %23939 = vst [vmem:[#allocation25_spill] sm:$0xff] %v21561_v5  ;;  %17498 = vmatmul.mubr.msk.f32.gmra.mxu1 %vm183_vm0, %v21563_v8  ;;  %v21568_v48 = vadd.f32 %v17255_v56, %v17157_v44  ;;  %17502 = vmatprep.mubr.msk.f32.mxu0 %vm183_vm0, %v21165_v17  ;;  %v10492_v5 = vld [vmem:[#allocation3 + $0x31] sm:$0xff]  ;;  %v21584_v17 = vld [vmem:[%s23352_s3 + $0x40] sm:$0xff]  ;;  %v10493_v44 = vld [vmem:[#allocation3 + $0x49] sm:$0xff] }
 0x4fd   :  { %17600 = vmatprep.mubr.msk.f32.mxu1 %vm183_vm0, %v10491_v36  ;;  %v7818_v58 = vpop.f32.mrf.mxu0  ;;  %v8395_v41 = vpop.f32.mrf.mxu1  ;;  %17794 = vmatprep.subr.mxu1 %v14760_v43 }
 0x4fe   :  { %v21573_v55 = vadd.f32 %v8395_v41, %v7818_v58 }
 0x4ff   :  { %v17160_v42 = vpop.f32.mrf.mxu0  ;;  %v17258_v19 = vpop.f32.mrf.mxu1  ;;  %17503 = vmatmul.mubr.msk.f32.vlgmr.msra.gmra.mxu0 %vm183_vm0, %v21169_v52 }
 0x500   :  { %17601 = vmatmul.mubr.msk.f32.vlgmr.msra.gmra.mxu1 %vm183_vm0, %v10492_v5  ;;  %v21586_v56 = vadd.f32 %v17258_v19, %v17160_v42  ;;  %17697 = vmatpush3.msra.mxu0 %v21159_v3  ;;  %v10494_v5 = vld [vmem:[#allocation3 + $0x51] sm:$0xff]  ;;  %v10495_v3 = vld [vmem:[#allocation3 + $0x69] sm:$0xff] }
 0x501   :  { %17505 = vmatprep.mubr.msk.f32.mxu0 %vm183_vm0, %v21175_v60  ;;  %17603 = vmatprep.mubr.msk.f32.mxu1 %vm183_vm0, %v10493_v44  ;;  %v7828_v36 = vpop.f32.mrf.mxu0  ;;  %v8405_v58 = vpop.f32.mrf.mxu1 }
 0x502   :  { %v21592_v52 = vadd.f32 %v8405_v58, %v7828_v36  ;;  %17795 = vmatpush3.msra.mxu1 %v14760_v43  ;;  %17892 = vmatprep.subr.mxu0 %v21584_v17  ;;  %v10496_v36 = vld [vmem:[#allocation3 + $0x71] sm:$0xff] }
 0x503   :  { %v17163_v41 = vpop.f32.mrf.mxu0  ;;  %v17261_v19 = vpop.f32.mrf.mxu1  ;;  %17506 = vmatmul.mubr.msk.f32.gmra.mxu0 %vm183_vm0, %v21180_v38  ;;  %v10497_v38 = vld [vmem:[#allocation3 + $0x89] sm:$0xff] }
 0x504   :  { %23940 = vst [vmem:[#allocation184_spill] sm:$0xff] %v21592_v52  ;;  %17604 = vmatmul.mubr.msk.f32.gmra.mxu1 %vm183_vm0, %v10494_v5  ;;  %v21598_v60 = vadd.f32 %v17261_v19, %v17163_v41  ;;  %17508 = vmatprep.mubr.msk.f32.mxu0 %vm183_vm0, %v21185_v47 }
 0x505   :  { %17606 = vmatprep.mubr.msk.f32.mxu1 %vm183_vm0, %v10495_v3  ;;  %v7838_v42 = vpop.f32.mrf.mxu0  ;;  %v8415_v44 = vpop.f32.mrf.mxu1  ;;  %v10498_v3 = vld [vmem:[#allocation3 + $0x91] sm:$0xff] }
 0x506   :  { %v21603_v43 = vadd.f32 %v8415_v44, %v7838_v42 }
 0x507   :  { %v17166_v58 = vpop.f32.mrf.mxu0  ;;  %17509 = vmatmul.mubr.msk.f32.gmra.mxu0 %vm183_vm0, %v21190_v11  ;;  %v10499_v11 = vld [vmem:[#allocation3 + $0xa9] sm:$0xff] }
 0x508   :  { %v17264_v52 = vpop.f32.mrf.mxu1  ;;  %17607 = vmatmul.mubr.msk.f32.gmra.mxu1 %vm183_vm0, %v10496_v36  ;;  %17511 = vmatprep.mubr.msk.f32.mxu0 %vm183_vm0, %v21195_v62 }
 0x509   :  { %v21608_v5 = vadd.f32 %v17264_v52, %v17166_v58  ;;  %17609 = vmatprep.mubr.msk.f32.mxu1 %vm183_vm0, %v10497_v38  ;;  %v7848_v47 = vpop.f32.mrf.mxu0  ;;  %v10500_v38 = vld [vmem:[#allocation3 + $0xb1] sm:$0xff] }
 0x50a   :  { %v8425_v41 = vpop.f32.mrf.mxu1 }
 0x50b   :  { %v21613_v19 = vadd.f32 %v8425_v41, %v7848_v47  ;;  %v17169_v42 = vpop.f32.mrf.mxu0  ;;  %17512 = vmatmul.mubr.msk.f32.gmra.mxu0 %vm183_vm0, %v21200_v46  ;;  %v10501_v46 = vld [vmem:[#allocation3 + $0xc9] sm:$0xff] }
 0x50c   :  { %v17267_v44 = vpop.f32.mrf.mxu1  ;;  %17610 = vmatmul.mubr.msk.f32.gmra.mxu1 %vm183_vm0, %v10498_v3  ;;  %17514 = vmatprep.mubr.msk.f32.mxu0 %vm183_vm0, %v21205_v53 }
 0x50d   :  { %v21618_v52 = vadd.f32 %v17267_v44, %v17169_v42  ;;  %17612 = vmatprep.mubr.msk.f32.mxu1 %vm183_vm0, %v10499_v11  ;;  %v7858_v62 = vpop.f32.mrf.mxu0  ;;  %v10502_v11 = vld [vmem:[#allocation3 + $0xd1] sm:$0xff] }
 0x50e   :  { %v8435_v36 = vpop.f32.mrf.mxu1 }
 0x50f   :  { %v21623_v58 = vadd.f32 %v8435_v36, %v7858_v62  ;;  %v17172_v47 = vpop.f32.mrf.mxu0  ;;  %17515 = vmatmul.mubr.msk.f32.gmra.mxu0 %vm183_vm0, %v21210_v20  ;;  %v10503_v20 = vld [vmem:[#allocation3 + $0xe9] sm:$0xff] }
 0x510   :  { %v17270_v41 = vpop.f32.mrf.mxu1  ;;  %17613 = vmatmul.mubr.msk.f32.gmra.mxu1 %vm183_vm0, %v10500_v38  ;;  %17517 = vmatprep.mubr.msk.f32.mxu0 %vm183_vm0, %v21215_v4 }
 0x511   :  { %23941 = vst [vmem:[#allocation183_spill] sm:$0xff] %v21623_v58  ;;  %v21628_v3 = vadd.f32 %v17270_v41, %v17172_v47  ;;  %17615 = vmatprep.mubr.msk.f32.mxu1 %vm183_vm0, %v10501_v46  ;;  %v7868_v53 = vpop.f32.mrf.mxu0  ;;  %v10504_v46 = vld [vmem:[#allocation3 + $0xf1] sm:$0xff] }
 0x512   :  { %v8445_v42 = vpop.f32.mrf.mxu1 }
 0x513   :  { %23942 = vst [vmem:[#allocation101_spill] sm:$0xff] %v21628_v3  ;;  %v21633_v44 = vadd.f32 %v8445_v42, %v7868_v53  ;;  %v17175_v62 = vpop.f32.mrf.mxu0  ;;  %17518 = vmatmul.mubr.msk.f32.gmra.mxu0 %vm183_vm0, %v21220_v35  ;;  %v10505_v35 = vld [vmem:[#allocation3 + $0x109] sm:$0xff] }
 0x514   :  { %v17273_v36 = vpop.f32.mrf.mxu1  ;;  %17616 = vmatmul.mubr.msk.f32.gmra.mxu1 %vm183_vm0, %v10502_v11  ;;  %17520 = vmatprep.mubr.msk.f32.mxu0 %vm183_vm0, %v21225_v18 }
 0x515   :  { %23943 = vst [vmem:[#allocation154_spill] sm:$0xff] %v21633_v44  ;;  %v21638_v38 = vadd.f32 %v17273_v36, %v17175_v62  ;;  %17618 = vmatprep.mubr.msk.f32.mxu1 %vm183_vm0, %v10503_v20  ;;  %v7878_v4 = vpop.f32.mrf.mxu0  ;;  %v10506_v20 = vld [vmem:[#allocation3 + $0x111] sm:$0xff] }
 0x516   :  { %v8455_v47 = vpop.f32.mrf.mxu1 }
 0x517   :  { %23944 = vst [vmem:[#allocation102_spill] sm:$0xff] %v21638_v38  ;;  %v21643_v41 = vadd.f32 %v8455_v47, %v7878_v4  ;;  %v17178_v53 = vpop.f32.mrf.mxu0  ;;  %17521 = vmatmul.mubr.msk.f32.gmra.mxu0 %vm183_vm0, %v21230_v54  ;;  %v10507_v54 = vld [vmem:[#allocation3 + $0x129] sm:$0xff] }
 0x518   :  { %v17276_v42 = vpop.f32.mrf.mxu1  ;;  %17619 = vmatmul.mubr.msk.f32.gmra.mxu1 %vm183_vm0, %v10504_v46  ;;  %17523 = vmatprep.mubr.msk.f32.mxu0 %vm183_vm0, %v21235_v26 }
 0x519   :  { %23945 = vst [vmem:[#allocation28_spill] sm:$0xff] %v21643_v41  ;;  %v21648_v11 = vadd.f32 %v17276_v42, %v17178_v53  ;;  %17621 = vmatprep.mubr.msk.f32.mxu1 %vm183_vm0, %v10505_v35  ;;  %v7888_v18 = vpop.f32.mrf.mxu0  ;;  %v10508_v35 = vld [vmem:[#allocation3 + $0x131] sm:$0xff] }
 0x51a   :  { %v8465_v62 = vpop.f32.mrf.mxu1 }
 0x51b   :  { %23946 = vst [vmem:[#allocation186_spill] sm:$0xff] %v21648_v11  ;;  %v21653_v36 = vadd.f32 %v8465_v62, %v7888_v18  ;;  %v17181_v4 = vpop.f32.mrf.mxu0  ;;  %17524 = vmatmul.mubr.msk.f32.gmra.mxu0 %vm183_vm0, %v21240_v33  ;;  %v10509_v33 = vld [vmem:[#allocation3 + $0x149] sm:$0xff] }
 0x51c   :  { %v17279_v47 = vpop.f32.mrf.mxu1  ;;  %17622 = vmatmul.mubr.msk.f32.gmra.mxu1 %vm183_vm0, %v10506_v20  ;;  %17526 = vmatprep.mubr.msk.f32.mxu0 %vm183_vm0, %v21245_v51 }
 0x51d   :  { %23947 = vst [vmem:[#allocation185_spill] sm:$0xff] %v21653_v36  ;;  %v21658_v46 = vadd.f32 %v17279_v47, %v17181_v4  ;;  %17624 = vmatprep.mubr.msk.f32.mxu1 %vm183_vm0, %v10507_v54  ;;  %v7898_v26 = vpop.f32.mrf.mxu0  ;;  %v10510_v54 = vld [vmem:[#allocation3 + $0x151] sm:$0xff] }
 0x51e   :  { %v8475_v53 = vpop.f32.mrf.mxu1 }
 0x51f   :  { %23948 = vst [vmem:[#allocation103_spill] sm:$0xff] %v21658_v46  ;;  %v21663_v42 = vadd.f32 %v8475_v53, %v7898_v26  ;;  %v17184_v18 = vpop.f32.mrf.mxu0  ;;  %17527 = vmatmul.mubr.msk.f32.gmra.mxu0 %vm183_vm0, %v21250_v22  ;;  %v10511_v22 = vld [vmem:[#allocation3 + $0x169] sm:$0xff] }
 0x520   :  { %v17282_v62 = vpop.f32.mrf.mxu1  ;;  %17625 = vmatmul.mubr.msk.f32.gmra.mxu1 %vm183_vm0, %v10508_v35  ;;  %17529 = vmatprep.mubr.msk.f32.mxu0 %vm183_vm0, %v21255_v23 }
 0x521   :  { %23949 = vst [vmem:[#allocation155_spill] sm:$0xff] %v21663_v42  ;;  %v21668_v20 = vadd.f32 %v17282_v62, %v17184_v18  ;;  %17627 = vmatprep.mubr.msk.f32.mxu1 %vm183_vm0, %v10509_v33  ;;  %v7908_v51 = vpop.f32.mrf.mxu0  ;;  %v10512_v33 = vld [vmem:[#allocation3 + $0x171] sm:$0xff] }
 0x522   :  { %v8485_v4 = vpop.f32.mrf.mxu1 }
 0x523   :  { %23950 = vst [vmem:[#allocation104_spill] sm:$0xff] %v21668_v20  ;;  %v21673_v47 = vadd.f32 %v8485_v4, %v7908_v51  ;;  %v17187_v26 = vpop.f32.mrf.mxu0  ;;  %17530 = vmatmul.mubr.msk.f32.gmra.mxu0 %vm183_vm0, %v21261_v32  ;;  %v10513_v32 = vld [vmem:[#allocation3 + $0x189] sm:$0xff] }
 0x524   :  { %v17285_v53 = vpop.f32.mrf.mxu1  ;;  %17628 = vmatmul.mubr.msk.f32.gmra.mxu1 %vm183_vm0, %v10510_v54  ;;  %17532 = vmatprep.mubr.msk.f32.mxu0 %vm183_vm0, %v21266_v61 }
 0x525   :  { %23951 = vst [vmem:[#allocation215_spill] sm:$0xff] %v21673_v47  ;;  %v21678_v35 = vadd.f32 %v17285_v53, %v17187_v26  ;;  %17630 = vmatprep.mubr.msk.f32.mxu1 %vm183_vm0, %v10511_v22  ;;  %v7918_v23 = vpop.f32.mrf.mxu0  ;;  %v10514_v22 = vld [vmem:[#allocation3 + $0x191] sm:$0xff] }
 0x526   :  { %v8495_v18 = vpop.f32.mrf.mxu1  ;;  %v11906_v47 = vld [vmem:[#allocation3 + $0x50] sm:$0xff] }
 0x527   :  { %23952 = vst [vmem:[#allocation105_spill] sm:$0xff] %v21678_v35  ;;  %v21683_v62 = vadd.f32 %v8495_v18, %v7918_v23  ;;  %v17190_v51 = vpop.f32.mrf.mxu0  ;;  %17533 = vmatmul.mubr.msk.f32.gmra.mxu0 %vm183_vm0, %v21272_v30  ;;  %v10515_v30 = vld [vmem:[#allocation3 + $0x1a9] sm:$0xff] }
 0x528   :  { %v17288_v4 = vpop.f32.mrf.mxu1  ;;  %17631 = vmatmul.mubr.msk.f32.gmra.mxu1 %vm183_vm0, %v10512_v33  ;;  %17535 = vmatprep.mubr.msk.f32.mxu0 %vm183_vm0, %v21278_v24  ;;  %v11199_v35 = vld [vmem:[#allocation3 + $0x4f] sm:$0xff] }
 0x529   :  { %23953 = vst [vmem:[#allocation188_spill] sm:$0xff] %v21683_v62  ;;  %v21688_v54 = vadd.f32 %v17288_v4, %v17190_v51  ;;  %17633 = vmatprep.mubr.msk.f32.mxu1 %vm183_vm0, %v10513_v32  ;;  %v7928_v61 = vpop.f32.mrf.mxu0  ;;  %v10516_v32 = vld [vmem:[#allocation3 + $0x1b1] sm:$0xff] }
 0x52a   :  { %v8505_v26 = vpop.f32.mrf.mxu1 }
 0x52b   :  { %23954 = vst [vmem:[#allocation187_spill] sm:$0xff] %v21688_v54  ;;  %v21693_v53 = vadd.f32 %v8505_v26, %v7928_v61  ;;  %v17193_v23 = vpop.f32.mrf.mxu0  ;;  %17536 = vmatmul.mubr.msk.f32.gmra.mxu0 %vm183_vm0, %v21284_v1  ;;  %v10517_v1 = vld [vmem:[#allocation3 + $0x1c9] sm:$0xff] }
 0x52c   :  { %v17291_v18 = vpop.f32.mrf.mxu1  ;;  %17634 = vmatmul.mubr.msk.f32.gmra.mxu1 %vm183_vm0, %v10514_v22  ;;  %17538 = vmatprep.mubr.msk.f32.mxu0 %vm183_vm0, %v21290_v63 }
 0x52d   :  { %23955 = vst [vmem:[#allocation218_spill] sm:$0xff] %v21693_v53  ;;  %v21698_v33 = vadd.f32 %v17291_v18, %v17193_v23  ;;  %17636 = vmatprep.mubr.msk.f32.mxu1 %vm183_vm0, %v10515_v30  ;;  %v7938_v24 = vpop.f32.mrf.mxu0  ;;  %v23958_v53 = vld [vmem:[#allocation75_spill] sm:$0xff] }
 0x52e   :  { %v8515_v51 = vpop.f32.mrf.mxu1  ;;  %v10518_v30 = vld [vmem:[#allocation3 + $0x1d1] sm:$0xff] }
 0x52f   :  { %23956 = vst [vmem:[#allocation124_spill] sm:$0xff] %v21698_v33  ;;  %v21703_v4 = vadd.f32 %v8515_v51, %v7938_v24  ;;  %v17196_v61 = vpop.f32.mrf.mxu0  ;;  %17539 = vmatmul.mubr.msk.f32.gmra.mxu0 %vm183_vm0, %v23958_v53  ;;  %v10519_v53 = vld [vmem:[#allocation3 + $0x1e9] sm:$0xff] }
 0x530   :  { %v17294_v26 = vpop.f32.mrf.mxu1  ;;  %17637 = vmatmul.mubr.msk.f32.gmra.mxu1 %vm183_vm0, %v10516_v32  ;;  %17541 = vmatprep.mubr.msk.f32.mxu0 %vm183_vm0, %v21302_v50 }
 0x531   :  { %23957 = vst [vmem:[#allocation157_spill] sm:$0xff] %v21703_v4  ;;  %v21708_v22 = vadd.f32 %v17294_v26, %v17196_v61  ;;  %17639 = vmatprep.mubr.msk.f32.mxu1 %vm183_vm0, %v10517_v1  ;;  %v7948_v63 = vpop.f32.mrf.mxu0  ;;  %v23961_v4 = vld [vmem:[#allocation76_spill] sm:$0xff]  ;;  %v23963_v61 = vld [vmem:[#allocation77_spill] sm:$0xff] }
 0x532   :  { %v8525_v23 = vpop.f32.mrf.mxu1 }
 0x533   :  { %23959 = vst [vmem:[#allocation156_spill] sm:$0xff] %v21708_v22  ;;  %v21713_v18 = vadd.f32 %v8525_v23, %v7948_v63  ;;  %v17199_v24 = vpop.f32.mrf.mxu0  ;;  %17542 = vmatmul.mubr.msk.f32.gmra.mxu0 %vm183_vm0, %v23961_v4  ;;  %v10520_v63 = vld [vmem:[#allocation3 + $0x1f1] sm:$0xff]  ;;  %v21728_v4 = vld [vmem:[#allocation3 + $0x208] sm:$0xff] }
 0x534   :  { %v17297_v51 = vpop.f32.mrf.mxu1  ;;  %17640 = vmatmul.mubr.msk.f32.gmra.mxu1 %vm183_vm0, %v10518_v30  ;;  %17544 = vmatprep.mubr.msk.f32.mxu0 %vm183_vm0, %v23963_v61  ;;  %v23965_v22 = vld [vmem:[#allocation78_spill] sm:$0xff] }
 0x535   :  { %23960 = vst [vmem:[#allocation221_spill] sm:$0xff] %v21713_v18  ;;  %v21718_v32 = vadd.f32 %v17297_v51, %v17199_v24  ;;  %17642 = vmatprep.mubr.msk.f32.mxu1 %vm183_vm0, %v10519_v53  ;;  %v7958_v50 = vpop.f32.mrf.mxu0  ;;  %v10521_v30 = vld [vmem:[#allocation3 + $0x209] sm:$0xff] }
 0x536   :  { %v8535_v26 = vpop.f32.mrf.mxu1 }
 0x537   :  { %23962 = vst [vmem:[#allocation158_spill] sm:$0xff] %v21718_v32  ;;  %v21723_v1 = vadd.f32 %v8535_v26, %v7958_v50  ;;  %v17202_v23 = vpop.f32.mrf.mxu0  ;;  %17545 = vmatmul.mubr.msk.f32.gmra.mxu0 %vm183_vm0, %v23965_v22  ;;  %v21737_v50 = vld [vmem:[#allocation3 + $0x210] sm:$0xff] }
 0x538   :  { %v17300_v18 = vpop.f32.mrf.mxu1  ;;  %17643 = vmatmul.mubr.msk.f32.gmra.mxu1 %vm183_vm0, %v10520_v63  ;;  %17547 = vmatprep.mubr.msk.f32.mxu0 %vm183_vm0, %v21728_v4  ;;  %v10522_v26 = vld [vmem:[#allocation3 + $0x211] sm:$0xff] }
 0x539   :  { %23964 = vst [vmem:[#allocation190_spill] sm:$0xff] %v21723_v1  ;;  %v21730_v24 = vadd.f32 %v17300_v18, %v17202_v23  ;;  %17645 = vmatprep.mubr.msk.f32.mxu1 %vm183_vm0, %v10521_v30  ;;  %v7968_v51 = vpop.f32.mrf.mxu0  ;;  %v10523_v18 = vld [vmem:[#allocation3 + $0x269] sm:$0xff]  ;;  %v23969_v23 = vld [vmem:[#allocation79_spill] sm:$0xff] }
 0x53a   :  { %v8545_v53 = vpop.f32.mrf.mxu1 }
 0x53b   :  { %23966 = vst [vmem:[#allocation189_spill] sm:$0xff] %v21730_v24  ;;  %v21735_v61 = vadd.f32 %v8545_v53, %v7968_v51  ;;  %v17205_v22 = vpop.f32.mrf.mxu0  ;;  %17548 = vmatmul.mubr.msk.f32.gmra.mxu0 %vm183_vm0, %v21737_v50 }
 0x53c   :  { %v17303_v1 = vpop.f32.mrf.mxu1  ;;  %17646 = vmatmul.mubr.msk.f32.gmra.mxu1 %vm183_vm0, %v10522_v26  ;;  %17550 = vmatprep.mubr.msk.f32.mxu0 %vm183_vm0, %v23969_v23  ;;  %v10525_v26 = vld [vmem:[#allocation3 + $0x289] sm:$0xff] }
 0x53d   :  { %23967 = vst [vmem:[#allocation224_spill] sm:$0xff] %v21735_v61  ;;  %v21742_v63 = vadd.f32 %v17303_v1, %v17205_v22  ;;  %17648 = vmatprep.mubr.msk.f32.mxu1 %vm183_vm0, %v10523_v18  ;;  %v7978_v30 = vpop.f32.mrf.mxu0  ;;  %v10524_v61 = vld [vmem:[#allocation3 + $0x271] sm:$0xff] }
 0x53e   :  { %v8555_v51 = vpop.f32.mrf.mxu1 }
 0x53f   :  { %23968 = vst [vmem:[#allocation125_spill] sm:$0xff] %v21742_v63  ;;  %v21747_v53 = vadd.f32 %v8555_v51, %v7978_v30  ;;  %v17308_v24 = vpop.f32.mrf.mxu0  ;;  %17551 = vmatmul.mubr.msk.f32.gmra.mxu0 %vm183_vm0, %v21340_v34  ;;  %v10526_v30 = vld [vmem:[#allocation3 + $0x291] sm:$0xff]  ;;  %v10527_v34 = vld [vmem:[#allocation3 + $0x2a9] sm:$0xff]  ;;  %v23971_v63 = vld [vmem:[#allocation20_spill] sm:$0xff] }
 0x540   :  { %v17406_v32 = vpop.f32.mrf.mxu1  ;;  %17649 = vmatmul.mubr.msk.f32.gmra.mxu1 %vm183_vm0, %v10524_v61  ;;  %17553 = vmatprep.mubr.msk.f32.mxu0 %vm183_vm0, %v21346_v49 }
 0x541   :  { %23970 = vst [vmem:[#allocation160_spill] sm:$0xff] %v21747_v53  ;;  %v21752_v1 = vadd.f32 %v17406_v32, %v17308_v24  ;;  %17651 = vmatprep.mubr.msk.f32.mxu1 %vm183_vm0, %v10525_v26  ;;  %v8888_v22 = vpop.f32.mrf.mxu0  ;;  %v10528_v26 = vld [vmem:[#allocation3 + $0x2b1] sm:$0xff] }
 0x542   :  { %v9465_v18 = vpop.f32.mrf.mxu1 }
 0x543   :  { %v21757_v23 = vadd.f32 %v9465_v18, %v8888_v22  ;;  %v17311_v51 = vpop.f32.mrf.mxu0  ;;  %17554 = vmatmul.mubr.msk.f32.gmra.mxu0 %vm183_vm0, %v21356_v2  ;;  %v10529_v2 = vld [vmem:[#allocation3 + $0x2c9] sm:$0xff] }
 0x544   :  { %v17409_v53 = vpop.f32.mrf.mxu1  ;;  %17652 = vmatmul.mubr.msk.f32.gmra.mxu1 %vm183_vm0, %v10526_v30  ;;  %17556 = vmatprep.mubr.msk.f32.mxu0 %vm183_vm0, %v21362_v27 }
 0x545   :  { %v21762_v32 = vadd.f32 %v17409_v53, %v17311_v51  ;;  %17654 = vmatprep.mubr.msk.f32.mxu1 %vm183_vm0, %v10527_v34  ;;  %v8898_v49 = vpop.f32.mrf.mxu0  ;;  %v10530_v34 = vld [vmem:[#allocation3 + $0x2d1] sm:$0xff] }
 0x546   :  { %v9475_v24 = vpop.f32.mrf.mxu1 }
 0x547   :  { %v21767_v61 = vadd.f32 %v9475_v24, %v8898_v49  ;;  %v17314_v22 = vpop.f32.mrf.mxu0  ;;  %17557 = vmatmul.mubr.msk.f32.gmra.mxu0 %vm183_vm0, %v21372_v45  ;;  %v10531_v45 = vld [vmem:[#allocation3 + $0x2e9] sm:$0xff] }
 0x548   :  { %v17412_v18 = vpop.f32.mrf.mxu1  ;;  %17655 = vmatmul.mubr.msk.f32.gmra.mxu1 %vm183_vm0, %v10528_v26  ;;  %17559 = vmatprep.mubr.msk.f32.mxu0 %vm183_vm0, %v21378_v10 }
 0x549   :  { %v21772_v53 = vadd.f32 %v17412_v18, %v17314_v22  ;;  %17657 = vmatprep.mubr.msk.f32.mxu1 %vm183_vm0, %v10529_v2  ;;  %v8908_v27 = vpop.f32.mrf.mxu0  ;;  %v10532_v2 = vld [vmem:[#allocation3 + $0x2f1] sm:$0xff] }
 0x54a   :  { %v9485_v30 = vpop.f32.mrf.mxu1 }
 0x54b   :  { %v21777_v51 = vadd.f32 %v9485_v30, %v8908_v27  ;;  %v17317_v49 = vpop.f32.mrf.mxu0  ;;  %17560 = vmatmul.mubr.msk.f32.gmra.mxu0 %vm183_vm0, %v21388_v40  ;;  %v10533_v40 = vld [vmem:[#allocation3 + $0x309] sm:$0xff] }
 0x54c   :  { %v17415_v24 = vpop.f32.mrf.mxu1  ;;  %17658 = vmatmul.mubr.msk.f32.gmra.mxu1 %vm183_vm0, %v10530_v34  ;;  %17562 = vmatprep.mubr.msk.f32.mxu0 %vm183_vm0, %v21394_v9 }
 0x54d   :  { %v21782_v26 = vadd.f32 %v17415_v24, %v17317_v49  ;;  %17660 = vmatprep.mubr.msk.f32.mxu1 %vm183_vm0, %v10531_v45  ;;  %v8918_v10 = vpop.f32.mrf.mxu0  ;;  %v10534_v45 = vld [vmem:[#allocation3 + $0x311] sm:$0xff] }
 0x54e   :  { %v9495_v22 = vpop.f32.mrf.mxu1 }
 0x54f   :  { %v21787_v18 = vadd.f32 %v9495_v22, %v8918_v10  ;;  %v17320_v27 = vpop.f32.mrf.mxu0  ;;  %17563 = vmatmul.mubr.msk.f32.gmra.mxu0 %vm183_vm0, %v21404_v0  ;;  %v10535_v0 = vld [vmem:[#allocation3 + $0x329] sm:$0xff] }
 0x550   :  { %v17418_v30 = vpop.f32.mrf.mxu1  ;;  %17661 = vmatmul.mubr.msk.f32.gmra.mxu1 %vm183_vm0, %v10532_v2  ;;  %17565 = vmatprep.mubr.msk.f32.mxu0 %vm183_vm0, %v21410_v31 }
 0x551   :  { %v21792_v34 = vadd.f32 %v17418_v30, %v17320_v27  ;;  %17663 = vmatprep.mubr.msk.f32.mxu1 %vm183_vm0, %v10533_v40  ;;  %v8928_v9 = vpop.f32.mrf.mxu0  ;;  %v10536_v40 = vld [vmem:[#allocation3 + $0x331] sm:$0xff] }
 0x552   :  { %v9505_v49 = vpop.f32.mrf.mxu1 }
 0x553   :  { %v21797_v24 = vadd.f32 %v9505_v49, %v8928_v9  ;;  %v17323_v10 = vpop.f32.mrf.mxu0  ;;  %17566 = vmatmul.mubr.msk.f32.gmra.mxu0 %vm183_vm0, %v21420_v57  ;;  %v10537_v57 = vld [vmem:[#allocation3 + $0x349] sm:$0xff] }
 0x554   :  { %v17421_v22 = vpop.f32.mrf.mxu1  ;;  %17664 = vmatmul.mubr.msk.f32.gmra.mxu1 %vm183_vm0, %v10534_v45  ;;  %17568 = vmatprep.mubr.msk.f32.mxu0 %vm183_vm0, %v21426_v12 }
 0x555   :  { %v21802_v2 = vadd.f32 %v17421_v22, %v17323_v10  ;;  %17666 = vmatprep.mubr.msk.f32.mxu1 %vm183_vm0, %v10535_v0  ;;  %v8938_v31 = vpop.f32.mrf.mxu0  ;;  %v10538_v0 = vld [vmem:[#allocation3 + $0x351] sm:$0xff] }
 0x556   :  { %v9515_v27 = vpop.f32.mrf.mxu1 }
 0x557   :  { %v21807_v30 = vadd.f32 %v9515_v27, %v8938_v31  ;;  %v17326_v9 = vpop.f32.mrf.mxu0  ;;  %17569 = vmatmul.mubr.msk.f32.gmra.mxu0 %vm183_vm0, %v21436_v25  ;;  %v10539_v25 = vld [vmem:[#allocation3 + $0x369] sm:$0xff] }
 0x558   :  { %v17424_v49 = vpop.f32.mrf.mxu1  ;;  %17667 = vmatmul.mubr.msk.f32.gmra.mxu1 %vm183_vm0, %v10536_v40  ;;  %17571 = vmatprep.mubr.msk.f32.mxu0 %vm183_vm0, %v21442_v28 }
 0x559   :  { %v21812_v45 = vadd.f32 %v17424_v49, %v17326_v9  ;;  %17669 = vmatprep.mubr.msk.f32.mxu1 %vm183_vm0, %v10537_v57  ;;  %v8948_v12 = vpop.f32.mrf.mxu0  ;;  %v10540_v57 = vld [vmem:[#allocation3 + $0x371] sm:$0xff] }
 0x55a   :  { %v9525_v10 = vpop.f32.mrf.mxu1 }
 0x55b   :  { %v21817_v22 = vadd.f32 %v9525_v10, %v8948_v12  ;;  %v17329_v31 = vpop.f32.mrf.mxu0  ;;  %17572 = vmatmul.mubr.msk.f32.gmra.mxu0 %vm183_vm0, %v21452_v21  ;;  %v10541_v21 = vld [vmem:[#allocation3 + $0x389] sm:$0xff] }
 0x55c   :  { %v17427_v27 = vpop.f32.mrf.mxu1  ;;  %17670 = vmatmul.mubr.msk.f32.gmra.mxu1 %vm183_vm0, %v10538_v0  ;;  %17574 = vmatprep.mubr.msk.f32.mxu0 %vm183_vm0, %v21458_v39 }
 0x55d   :  { %v21822_v40 = vadd.f32 %v17427_v27, %v17329_v31  ;;  %17672 = vmatprep.mubr.msk.f32.mxu1 %vm183_vm0, %v10539_v25  ;;  %v8958_v28 = vpop.f32.mrf.mxu0  ;;  %v10542_v25 = vld [vmem:[#allocation3 + $0x391] sm:$0xff] }
 0x55e   :  { %v9535_v9 = vpop.f32.mrf.mxu1 }
 0x55f   :  { %v21827_v49 = vadd.f32 %v9535_v9, %v8958_v28  ;;  %v17332_v12 = vpop.f32.mrf.mxu0  ;;  %17575 = vmatmul.mubr.msk.f32.gmra.mxu0 %vm183_vm0, %v21468_v37  ;;  %v10543_v37 = vld [vmem:[#allocation3 + $0x3a9] sm:$0xff] }
 0x560   :  { %v17430_v10 = vpop.f32.mrf.mxu1  ;;  %17673 = vmatmul.mubr.msk.f32.gmra.mxu1 %vm183_vm0, %v10540_v57  ;;  %17577 = vmatprep.mubr.msk.f32.mxu0 %vm183_vm0, %v21474_v29 }
 0x561   :  { %v21832_v0 = vadd.f32 %v17430_v10, %v17332_v12  ;;  %17675 = vmatprep.mubr.msk.f32.mxu1 %vm183_vm0, %v10541_v21  ;;  %v8968_v39 = vpop.f32.mrf.mxu0  ;;  %v10544_v21 = vld [vmem:[#allocation3 + $0x3b1] sm:$0xff] }
 0x562   :  { %v9545_v31 = vpop.f32.mrf.mxu1 }
 0x563   :  { %v21837_v27 = vadd.f32 %v9545_v31, %v8968_v39  ;;  %v17335_v28 = vpop.f32.mrf.mxu0  ;;  %17578 = vmatmul.mubr.msk.f32.gmra.mxu0 %vm183_vm0, %v21484_v7  ;;  %v10545_v7 = vld [vmem:[#allocation3 + $0x3c9] sm:$0xff] }
 0x564   :  { %v17433_v9 = vpop.f32.mrf.mxu1  ;;  %17676 = vmatmul.mubr.msk.f32.gmra.mxu1 %vm183_vm0, %v10542_v25  ;;  %17580 = vmatprep.mubr.msk.f32.mxu0 %vm183_vm0, %v21490_v15 }
 0x565   :  { %v21842_v57 = vadd.f32 %v17433_v9, %v17335_v28  ;;  %17678 = vmatprep.mubr.msk.f32.mxu1 %vm183_vm0, %v10543_v37  ;;  %v8978_v29 = vpop.f32.mrf.mxu0  ;;  %v10546_v37 = vld [vmem:[#allocation3 + $0x3d1] sm:$0xff] }
 0x566   :  { %v9555_v12 = vpop.f32.mrf.mxu1 }
 0x567   :  { %v21847_v10 = vadd.f32 %v9555_v12, %v8978_v29  ;;  %v17338_v39 = vpop.f32.mrf.mxu0  ;;  %17581 = vmatmul.mubr.msk.f32.gmra.mxu0 %vm183_vm0, %v21500_v6  ;;  %v10547_v6 = vld [vmem:[#allocation3 + $0x3e9] sm:$0xff] }
 0x568   :  { %v17436_v31 = vpop.f32.mrf.mxu1  ;;  %17679 = vmatmul.mubr.msk.f32.gmra.mxu1 %vm183_vm0, %v10544_v21  ;;  %17583 = vmatprep.mubr.msk.f32.mxu0 %vm183_vm0, %v21506_v14 }
 0x569   :  { %v21852_v25 = vadd.f32 %v17436_v31, %v17338_v39  ;;  %17681 = vmatprep.mubr.msk.f32.mxu1 %vm183_vm0, %v10545_v7  ;;  %v8988_v15 = vpop.f32.mrf.mxu0  ;;  %v10548_v7 = vld [vmem:[#allocation3 + $0x3f1] sm:$0xff] }
 0x56a   :  { %v9565_v28 = vpop.f32.mrf.mxu1 }
 0x56b   :  { %v21857_v9 = vadd.f32 %v9565_v28, %v8988_v15  ;;  %v17341_v29 = vpop.f32.mrf.mxu0  ;;  %17584 = vmatmul.mubr.msk.f32.gmra.mxu0 %vm183_vm0, %v21516_v13  ;;  %v10549_v13 = vld [vmem:[#allocation3 + $0x409] sm:$0xff] }
 0x56c   :  { %v17439_v12 = vpop.f32.mrf.mxu1  ;;  %17682 = vmatmul.mubr.msk.f32.gmra.mxu1 %vm183_vm0, %v10546_v37  ;;  %17586 = vmatprep.mubr.msk.f32.mxu0 %vm183_vm0, %v21522_v59 }
 0x56d   :  { %v21862_v21 = vadd.f32 %v17439_v12, %v17341_v29  ;;  %17684 = vmatprep.mubr.msk.f32.mxu1 %vm183_vm0, %v10547_v6  ;;  %v8998_v14 = vpop.f32.mrf.mxu0  ;;  %v23972_v29 = vld [vmem:[#allocation182_spill] sm:$0xff] }
 0x56e   :  { %v9575_v39 = vpop.f32.mrf.mxu1 }
 0x56f   :  { %v21867_v31 = vadd.f32 %v9575_v39, %v8998_v14  ;;  %v17344_v15 = vpop.f32.mrf.mxu0  ;;  %17587 = vmatmul.mubr.msk.f32.gmra.mxu0 %vm183_vm0, %v23971_v63  ;;  %v10550_v14 = vld [vmem:[#allocation3 + $0x411] sm:$0xff]  ;;  %v10551_v63 = vld [vmem:[#allocation3 + $0x429] sm:$0xff] }
 0x570   :  { %v17442_v28 = vpop.f32.mrf.mxu1  ;;  %17685 = vmatmul.mubr.msk.f32.gmra.mxu1 %vm183_vm0, %v10548_v7  ;;  %17589 = vmatprep.mubr.msk.f32.mxu0 %vm183_vm0, %v23972_v29 }
 0x571   :  { %v21872_v37 = vadd.f32 %v17442_v28, %v17344_v15  ;;  %17687 = vmatprep.mubr.msk.f32.mxu1 %vm183_vm0, %v10549_v13  ;;  %v9008_v59 = vpop.f32.mrf.mxu0  ;;  %v23973_v15 = vld [vmem:[#allocation153_spill] sm:$0xff] }
 0x572   :  { %v9585_v12 = vpop.f32.mrf.mxu1 }
 0x573   :  { %v21877_v6 = vadd.f32 %v9585_v12, %v9008_v59  ;;  %v17347_v39 = vpop.f32.mrf.mxu0  ;;  %17590 = vmatmul.mubr.msk.f32.gmra.mxu0 %vm183_vm0, %v21548_v16  ;;  %v10552_v59 = vld [vmem:[#allocation3 + $0x431] sm:$0xff]  ;;  %v21892_v16 = vld [vmem:[#allocation3 + $0x448] sm:$0xff] }
 0x574   :  { %v17445_v33 = vpop.f32.mrf.mxu1  ;;  %17688 = vmatmul.mubr.msk.f32.gmra.mxu1 %vm183_vm0, %v10550_v14  ;;  %17592 = vmatprep.mubr.msk.f32.mxu0 %vm183_vm0, %v23973_v15 }
 0x575   :  { %v21882_v7 = vadd.f32 %v17445_v33, %v17347_v39  ;;  %17690 = vmatprep.mubr.msk.f32.mxu1 %vm183_vm0, %v10551_v63  ;;  %v9018_v28 = vpop.f32.mrf.mxu0  ;;  %v10553_v33 = vld [vmem:[#allocation3 + $0x449] sm:$0xff] }
 0x576   :  { %v9595_v13 = vpop.f32.mrf.mxu1 }
 0x577   :  { %v21887_v29 = vadd.f32 %v9595_v13, %v9018_v28  ;;  %v17350_v12 = vpop.f32.mrf.mxu0  ;;  %17593 = vmatmul.mubr.msk.f32.gmra.mxu0 %vm183_vm0, %v21563_v8  ;;  %v21901_v28 = vld [vmem:[#allocation3 + $0x450] sm:$0xff] }
 0x578   :  { %v17448_v54 = vpop.f32.mrf.mxu1  ;;  %17691 = vmatmul.mubr.msk.f32.gmra.mxu1 %vm183_vm0, %v10552_v59  ;;  %17595 = vmatprep.mubr.msk.f32.mxu0 %vm183_vm0, %v21892_v16  ;;  %v10554_v13 = vld [vmem:[#allocation3 + $0x451] sm:$0xff]  ;;  %v11905_v59 = vld [vmem:[#allocation3 + $0x48] sm:$0xff] }
 0x579   :  { %v21894_v14 = vadd.f32 %v17448_v54, %v17350_v12  ;;  %17693 = vmatprep.mubr.msk.f32.mxu1 %vm183_vm0, %v10553_v33  ;;  %v9028_v39 = vpop.f32.mrf.mxu0  ;;  %v11198_v54 = vld [vmem:[#allocation3 + $0x47] sm:$0xff] }
 0x57a   :  { %v9605_v63 = vpop.f32.mrf.mxu1 }
 0x57b   :  { %v21899_v15 = vadd.f32 %v9605_v63, %v9028_v39  ;;  %v17353_v8 = vpop.f32.mrf.mxu0  ;;  %17596 = vmatmul.mubr.msk.f32.gmra.mxu0 %vm183_vm0, %v21901_v28 }
 0x57c   :  { %v17451_v62 = vpop.f32.mrf.mxu1  ;;  %17694 = vmatmul.mubr.msk.f32.gmra.mxu1 %vm183_vm0, %v10554_v13  ;;  %17698 = vmatprep.mubr.msk.f32.mxu0 %vm183_vm0, %v11198_v54  ;;  %v11200_v13 = vld [vmem:[#allocation3 + $0x67] sm:$0xff] }
 0x57d   :  { %v21906_v12 = vadd.f32 %v17451_v62, %v17353_v8  ;;  %17796 = vmatprep.mubr.msk.f32.mxu1 %vm183_vm0, %v11905_v59  ;;  %v9038_v33 = vpop.f32.mrf.mxu0  ;;  %v11907_v62 = vld [vmem:[#allocation3 + $0x68] sm:$0xff] }
 0x57e   :  { %v9615_v39 = vpop.f32.mrf.mxu1 }
 0x57f   :  { %v21910_v63 = vadd.f32 %v9615_v39, %v9038_v33  ;;  %v17356_v20 = vpop.f32.mrf.mxu0  ;;  %17699 = vmatmul.mubr.msk.f32.vlgmr.msra.gmra.mxu0 %vm183_vm0, %v11199_v35  ;;  %v11201_v33 = vld [vmem:[#allocation3 + $0x6f] sm:$0xff] }
 0x580   :  { %v17454_v42 = vpop.f32.mrf.mxu1  ;;  %17797 = vmatmul.mubr.msk.f32.vlgmr.msra.gmra.mxu1 %vm183_vm0, %v11906_v47  ;;  %17893 = vmatpush3.msra.mxu0 %v21584_v17  ;;  %v11908_v39 = vld [vmem:[#allocation3 + $0x70] sm:$0xff] }
 0x581   :  { %v21914_v46 = vadd.f32 %v17454_v42, %v17356_v20  ;;  %17701 = vmatprep.mubr.msk.f32.mxu0 %vm183_vm0, %v11200_v13  ;;  %17799 = vmatprep.mubr.msk.f32.mxu1 %vm183_vm0, %v11907_v62  ;;  %v9048_v8 = vpop.f32.mrf.mxu0  ;;  %v11202_v42 = vld [vmem:[#allocation3 + $0x87] sm:$0xff] }
 0x582   :  { %v9625_v54 = vpop.f32.mrf.mxu1  ;;  %v11909_v20 = vld [vmem:[#allocation3 + $0x88] sm:$0xff] }
 0x583   :  { %v21919_v59 = vadd.f32 %v9625_v54, %v9048_v8  ;;  %v17359_v36 = vpop.f32.mrf.mxu0  ;;  %17702 = vmatmul.mubr.msk.f32.gmra.mxu0 %vm183_vm0, %v11201_v33  ;;  %v11203_v8 = vld [vmem:[#allocation3 + $0x8f] sm:$0xff]  ;;  %v11204_v33 = vld [vmem:[#allocation3 + $0xa7] sm:$0xff] }
 0x584   :  { %v17457_v35 = vpop.f32.mrf.mxu1  ;;  %17800 = vmatmul.mubr.msk.f32.gmra.mxu1 %vm183_vm0, %v11908_v39  ;;  %17704 = vmatprep.mubr.msk.f32.mxu0 %vm183_vm0, %v11202_v42  ;;  %v11910_v54 = vld [vmem:[#allocation3 + $0x90] sm:$0xff]  ;;  %v11911_v39 = vld [vmem:[#allocation3 + $0xa8] sm:$0xff] }
 0x585   :  { %v21923_v17 = vadd.f32 %v17457_v35, %v17359_v36  ;;  %17802 = vmatprep.mubr.msk.f32.mxu1 %vm183_vm0, %v11909_v20  ;;  %v9058_v47 = vpop.f32.mrf.mxu0 }
 0x586   :  { %v9635_v13 = vpop.f32.mrf.mxu1 }
 0x587   :  { %v21927_v62 = vadd.f32 %v9635_v13, %v9058_v47  ;;  %v17362_v11 = vpop.f32.mrf.mxu0  ;;  %17705 = vmatmul.mubr.msk.f32.gmra.mxu0 %vm183_vm0, %v11203_v8  ;;  %v11205_v47 = vld [vmem:[#allocation3 + $0xaf] sm:$0xff]  ;;  %v11206_v8 = vld [vmem:[#allocation3 + $0xc7] sm:$0xff] }
 0x588   :  { %v17460_v41 = vpop.f32.mrf.mxu1  ;;  %17803 = vmatmul.mubr.msk.f32.gmra.mxu1 %vm183_vm0, %v11910_v54  ;;  %17707 = vmatprep.mubr.msk.f32.mxu0 %vm183_vm0, %v11204_v33  ;;  %v11912_v13 = vld [vmem:[#allocation3 + $0xb0] sm:$0xff]  ;;  %v11913_v54 = vld [vmem:[#allocation3 + $0xc8] sm:$0xff] }
 0x589   :  { %v21931_v36 = vadd.f32 %v17460_v41, %v17362_v11  ;;  %17805 = vmatprep.mubr.msk.f32.mxu1 %vm183_vm0, %v11911_v39  ;;  %v9068_v35 = vpop.f32.mrf.mxu0 }
 0x58a   :  { %v9645_v42 = vpop.f32.mrf.mxu1 }
 0x58b   :  { %v21935_v20 = vadd.f32 %v9645_v42, %v9068_v35  ;;  %v17365_v38 = vpop.f32.mrf.mxu0  ;;  %17708 = vmatmul.mubr.msk.f32.gmra.mxu0 %vm183_vm0, %v11205_v47  ;;  %v11207_v35 = vld [vmem:[#allocation3 + $0xcf] sm:$0xff]  ;;  %v11208_v47 = vld [vmem:[#allocation3 + $0xe7] sm:$0xff] }
 0x58c   :  { %v17463_v44 = vpop.f32.mrf.mxu1  ;;  %17806 = vmatmul.mubr.msk.f32.gmra.mxu1 %vm183_vm0, %v11912_v13  ;;  %17710 = vmatprep.mubr.msk.f32.mxu0 %vm183_vm0, %v11206_v8  ;;  %v11914_v42 = vld [vmem:[#allocation3 + $0xd0] sm:$0xff]  ;;  %v11915_v13 = vld [vmem:[#allocation3 + $0xe8] sm:$0xff] }
 0x58d   :  { %v21939_v41 = vadd.f32 %v17463_v44, %v17365_v38  ;;  %17808 = vmatprep.mubr.msk.f32.mxu1 %vm183_vm0, %v11913_v54  ;;  %v9078_v11 = vpop.f32.mrf.mxu0 }
 0x58e   :  { %v9655_v33 = vpop.f32.mrf.mxu1 }
 0x58f   :  { %23974 = vst [vmem:[#allocation159_spill] sm:$0xff] %v21939_v41  ;;  %v21943_v39 = vadd.f32 %v9655_v33, %v9078_v11  ;;  %v17368_v3 = vpop.f32.mrf.mxu0  ;;  %17711 = vmatmul.mubr.msk.f32.gmra.mxu0 %vm183_vm0, %v11207_v35  ;;  %v11209_v11 = vld [vmem:[#allocation3 + $0xef] sm:$0xff]  ;;  %v11210_v35 = vld [vmem:[#allocation3 + $0x107] sm:$0xff] }
 0x590   :  { %v17466_v58 = vpop.f32.mrf.mxu1  ;;  %17809 = vmatmul.mubr.msk.f32.gmra.mxu1 %vm183_vm0, %v11914_v42  ;;  %17713 = vmatprep.mubr.msk.f32.mxu0 %vm183_vm0, %v11208_v47  ;;  %v11916_v33 = vld [vmem:[#allocation3 + $0xf0] sm:$0xff]  ;;  %v11917_v42 = vld [vmem:[#allocation3 + $0x108] sm:$0xff] }
 0x591   :  { %23975 = vst [vmem:[#allocation227_spill] sm:$0xff] %v21943_v39  ;;  %v21947_v44 = vadd.f32 %v17466_v58, %v17368_v3  ;;  %17811 = vmatprep.mubr.msk.f32.mxu1 %vm183_vm0, %v11915_v13  ;;  %v9088_v38 = vpop.f32.mrf.mxu0 }
 0x592   :  { %v9665_v8 = vpop.f32.mrf.mxu1 }
 0x593   :  { %23976 = vst [vmem:[#allocation106_spill] sm:$0xff] %v21947_v44  ;;  %v21951_v54 = vadd.f32 %v9665_v8, %v9088_v38  ;;  %v17371_v39 = vpop.f32.mrf.mxu0  ;;  %17714 = vmatmul.mubr.msk.f32.gmra.mxu0 %vm183_vm0, %v11209_v11  ;;  %v11211_v38 = vld [vmem:[#allocation3 + $0x10f] sm:$0xff]  ;;  %v11212_v11 = vld [vmem:[#allocation3 + $0x127] sm:$0xff] }
 0x594   :  { %v17469_v41 = vpop.f32.mrf.mxu1  ;;  %17812 = vmatmul.mubr.msk.f32.gmra.mxu1 %vm183_vm0, %v11916_v33  ;;  %17716 = vmatprep.mubr.msk.f32.mxu0 %vm183_vm0, %v11210_v35  ;;  %v11918_v8 = vld [vmem:[#allocation3 + $0x110] sm:$0xff]  ;;  %v11919_v33 = vld [vmem:[#allocation3 + $0x128] sm:$0xff] }
 0x595   :  { %23977 = vst [vmem:[#allocation192_spill] sm:$0xff] %v21951_v54  ;;  %v21955_v58 = vadd.f32 %v17469_v41, %v17371_v39  ;;  %17814 = vmatprep.mubr.msk.f32.mxu1 %vm183_vm0, %v11917_v42  ;;  %v9098_v3 = vpop.f32.mrf.mxu0 }
 0x596   :  { %v9675_v47 = vpop.f32.mrf.mxu1 }
 0x597   :  { %23978 = vst [vmem:[#allocation191_spill] sm:$0xff] %v21955_v58  ;;  %v21959_v13 = vadd.f32 %v9675_v47, %v9098_v3  ;;  %v17374_v54 = vpop.f32.mrf.mxu0  ;;  %17717 = vmatmul.mubr.msk.f32.gmra.mxu0 %vm183_vm0, %v11211_v38  ;;  %v11213_v3 = vld [vmem:[#allocation3 + $0x12f] sm:$0xff]  ;;  %v11214_v38 = vld [vmem:[#allocation3 + $0x147] sm:$0xff] }
 0x598   :  { %v17472_v44 = vpop.f32.mrf.mxu1  ;;  %17815 = vmatmul.mubr.msk.f32.gmra.mxu1 %vm183_vm0, %v11918_v8  ;;  %17719 = vmatprep.mubr.msk.f32.mxu0 %vm183_vm0, %v11212_v11  ;;  %v11920_v47 = vld [vmem:[#allocation3 + $0x130] sm:$0xff]  ;;  %v11921_v8 = vld [vmem:[#allocation3 + $0x148] sm:$0xff] }
 0x599   :  { %23979 = vst [vmem:[#allocation126_spill] sm:$0xff] %v21959_v13  ;;  %v21963_v41 = vadd.f32 %v17472_v44, %v17374_v54  ;;  %17817 = vmatprep.mubr.msk.f32.mxu1 %vm183_vm0, %v11919_v33  ;;  %v9108_v39 = vpop.f32.mrf.mxu0 }
 0x59a   :  { %v9685_v35 = vpop.f32.mrf.mxu1 }
 0x59b   :  { %23980 = vst [vmem:[#allocation162_spill] sm:$0xff] %v21963_v41  ;;  %v21967_v42 = vadd.f32 %v9685_v35, %v9108_v39  ;;  %v17377_v13 = vpop.f32.mrf.mxu0  ;;  %17720 = vmatmul.mubr.msk.f32.gmra.mxu0 %vm183_vm0, %v11213_v3  ;;  %v11215_v39 = vld [vmem:[#allocation3 + $0x14f] sm:$0xff]  ;;  %v11216_v3 = vld [vmem:[#allocation3 + $0x167] sm:$0xff] }
 0x59c   :  { %v17475_v58 = vpop.f32.mrf.mxu1  ;;  %17818 = vmatmul.mubr.msk.f32.gmra.mxu1 %vm183_vm0, %v11920_v47  ;;  %17722 = vmatprep.mubr.msk.f32.mxu0 %vm183_vm0, %v11214_v38  ;;  %v11922_v35 = vld [vmem:[#allocation3 + $0x150] sm:$0xff]  ;;  %v11923_v47 = vld [vmem:[#allocation3 + $0x168] sm:$0xff] }
 0x59d   :  { %23981 = vst [vmem:[#allocation161_spill] sm:$0xff] %v21967_v42  ;;  %v21971_v44 = vadd.f32 %v17475_v58, %v17377_v13  ;;  %17820 = vmatprep.mubr.msk.f32.mxu1 %vm183_vm0, %v11921_v8  ;;  %v9118_v54 = vpop.f32.mrf.mxu0 }
 0x59e   :  { %v9695_v11 = vpop.f32.mrf.mxu1 }
 0x59f   :  { %23982 = vst [vmem:[#allocation163_spill] sm:$0xff] %v21971_v44  ;;  %v21975_v33 = vadd.f32 %v9695_v11, %v9118_v54  ;;  %v17380_v42 = vpop.f32.mrf.mxu0  ;;  %17723 = vmatmul.mubr.msk.f32.gmra.mxu0 %vm183_vm0, %v11215_v39  ;;  %v11217_v54 = vld [vmem:[#allocation3 + $0x16f] sm:$0xff]  ;;  %v11218_v39 = vld [vmem:[#allocation3 + $0x187] sm:$0xff] }
 0x5a0   :  { %v17478_v41 = vpop.f32.mrf.mxu1  ;;  %17821 = vmatmul.mubr.msk.f32.gmra.mxu1 %vm183_vm0, %v11922_v35  ;;  %17725 = vmatprep.mubr.msk.f32.mxu0 %vm183_vm0, %v11216_v3  ;;  %v11924_v11 = vld [vmem:[#allocation3 + $0x170] sm:$0xff]  ;;  %v11925_v35 = vld [vmem:[#allocation3 + $0x188] sm:$0xff] }
 0x5a1   :  { %23983 = vst [vmem:[#allocation194_spill] sm:$0xff] %v21975_v33  ;;  %v21979_v58 = vadd.f32 %v17478_v41, %v17380_v42  ;;  %17823 = vmatprep.mubr.msk.f32.mxu1 %vm183_vm0, %v11923_v47  ;;  %v9128_v13 = vpop.f32.mrf.mxu0 }
 0x5a2   :  { %v9705_v38 = vpop.f32.mrf.mxu1 }
 0x5a3   :  { %23984 = vst [vmem:[#allocation193_spill] sm:$0xff] %v21979_v58  ;;  %v21983_v8 = vadd.f32 %v9705_v38, %v9128_v13  ;;  %v17383_v33 = vpop.f32.mrf.mxu0  ;;  %17726 = vmatmul.mubr.msk.f32.gmra.mxu0 %vm183_vm0, %v11217_v54  ;;  %v11219_v13 = vld [vmem:[#allocation3 + $0x18f] sm:$0xff]  ;;  %v11220_v54 = vld [vmem:[#allocation3 + $0x1a7] sm:$0xff] }
 0x5a4   :  { %v17481_v44 = vpop.f32.mrf.mxu1  ;;  %17824 = vmatmul.mubr.msk.f32.gmra.mxu1 %vm183_vm0, %v11924_v11  ;;  %17728 = vmatprep.mubr.msk.f32.mxu0 %vm183_vm0, %v11218_v39  ;;  %v11926_v38 = vld [vmem:[#allocation3 + $0x190] sm:$0xff]  ;;  %v11927_v11 = vld [vmem:[#allocation3 + $0x1a8] sm:$0xff] }
 0x5a5   :  { %23985 = vst [vmem:[#allocation127_spill] sm:$0xff] %v21983_v8  ;;  %v21987_v41 = vadd.f32 %v17481_v44, %v17383_v33  ;;  %17826 = vmatprep.mubr.msk.f32.mxu1 %vm183_vm0, %v11925_v35  ;;  %v9138_v42 = vpop.f32.mrf.mxu0 }
 0x5a6   :  { %v9715_v3 = vpop.f32.mrf.mxu1 }
 0x5a7   :  { %23986 = vst [vmem:[#allocation165_spill] sm:$0xff] %v21987_v41  ;;  %v21991_v47 = vadd.f32 %v9715_v3, %v9138_v42  ;;  %v17386_v8 = vpop.f32.mrf.mxu0  ;;  %17729 = vmatmul.mubr.msk.f32.gmra.mxu0 %vm183_vm0, %v11219_v13  ;;  %v11221_v42 = vld [vmem:[#allocation3 + $0x1af] sm:$0xff]  ;;  %v11222_v13 = vld [vmem:[#allocation3 + $0x1c7] sm:$0xff] }
 0x5a8   :  { %v17484_v58 = vpop.f32.mrf.mxu1  ;;  %17827 = vmatmul.mubr.msk.f32.gmra.mxu1 %vm183_vm0, %v11926_v38  ;;  %17731 = vmatprep.mubr.msk.f32.mxu0 %vm183_vm0, %v11220_v54  ;;  %v11928_v3 = vld [vmem:[#allocation3 + $0x1b0] sm:$0xff]  ;;  %v11929_v38 = vld [vmem:[#allocation3 + $0x1c8] sm:$0xff] }
 0x5a9   :  { %23987 = vst [vmem:[#allocation164_spill] sm:$0xff] %v21991_v47  ;;  %v21995_v44 = vadd.f32 %v17484_v58, %v17386_v8  ;;  %17829 = vmatprep.mubr.msk.f32.mxu1 %vm183_vm0, %v11927_v11  ;;  %v9148_v33 = vpop.f32.mrf.mxu0 }
 0x5aa   :  { %v9725_v39 = vpop.f32.mrf.mxu1 }
 0x5ab   :  { %23988 = vst [vmem:[#allocation166_spill] sm:$0xff] %v21995_v44  ;;  %v21999_v35 = vadd.f32 %v9725_v39, %v9148_v33  ;;  %v17389_v47 = vpop.f32.mrf.mxu0  ;;  %17732 = vmatmul.mubr.msk.f32.gmra.mxu0 %vm183_vm0, %v11221_v42  ;;  %v11223_v33 = vld [vmem:[#allocation3 + $0x1cf] sm:$0xff]  ;;  %v11224_v42 = vld [vmem:[#allocation3 + $0x1e7] sm:$0xff] }
 0x5ac   :  { %v17487_v41 = vpop.f32.mrf.mxu1  ;;  %17830 = vmatmul.mubr.msk.f32.gmra.mxu1 %vm183_vm0, %v11928_v3  ;;  %17734 = vmatprep.mubr.msk.f32.mxu0 %vm183_vm0, %v11222_v13  ;;  %v11930_v39 = vld [vmem:[#allocation3 + $0x1d0] sm:$0xff]  ;;  %v11931_v3 = vld [vmem:[#allocation3 + $0x1e8] sm:$0xff] }
 0x5ad   :  { %23989 = vst [vmem:[#allocation196_spill] sm:$0xff] %v21999_v35  ;;  %v22003_v58 = vadd.f32 %v17487_v41, %v17389_v47  ;;  %17832 = vmatprep.mubr.msk.f32.mxu1 %vm183_vm0, %v11929_v38  ;;  %v9158_v8 = vpop.f32.mrf.mxu0 }
 0x5ae   :  { %v9735_v54 = vpop.f32.mrf.mxu1 }
 0x5af   :  { %23990 = vst [vmem:[#allocation195_spill] sm:$0xff] %v22003_v58  ;;  %v22007_v11 = vadd.f32 %v9735_v54, %v9158_v8  ;;  %v17392_v35 = vpop.f32.mrf.mxu0  ;;  %17735 = vmatmul.mubr.msk.f32.gmra.mxu0 %vm183_vm0, %v11223_v33  ;;  %v11225_v8 = vld [vmem:[#allocation3 + $0x1ef] sm:$0xff]  ;;  %v11226_v33 = vld [vmem:[#allocation3 + $0x207] sm:$0xff] }
 0x5b0   :  { %v17490_v44 = vpop.f32.mrf.mxu1  ;;  %17833 = vmatmul.mubr.msk.f32.gmra.mxu1 %vm183_vm0, %v11930_v39  ;;  %17737 = vmatprep.mubr.msk.f32.mxu0 %vm183_vm0, %v11224_v42  ;;  %v11932_v54 = vld [vmem:[#allocation3 + $0x1f0] sm:$0xff]  ;;  %v11228_v42 = vld [vmem:[#allocation3 + $0x227] sm:$0xff] }
 0x5b1   :  { %23991 = vst [vmem:[#allocation128_spill] sm:$0xff] %v22007_v11  ;;  %v22011_v41 = vadd.f32 %v17490_v44, %v17392_v35  ;;  %17835 = vmatprep.mubr.msk.f32.mxu1 %vm183_vm0, %v11931_v3  ;;  %v9168_v47 = vpop.f32.mrf.mxu0  ;;  %v11935_v3 = vld [vmem:[#allocation3 + $0x228] sm:$0xff] }
 0x5b2   :  { %v9745_v13 = vpop.f32.mrf.mxu1 }
 0x5b3   :  { %23992 = vst [vmem:[#allocation168_spill] sm:$0xff] %v22011_v41  ;;  %v22015_v38 = vadd.f32 %v9745_v13, %v9168_v47  ;;  %v17395_v11 = vpop.f32.mrf.mxu0  ;;  %17738 = vmatmul.mubr.msk.f32.gmra.mxu0 %vm183_vm0, %v11225_v8  ;;  %v11227_v13 = vld [vmem:[#allocation3 + $0x20f] sm:$0xff] }
 0x5b4   :  { %v17493_v58 = vpop.f32.mrf.mxu1  ;;  %17836 = vmatmul.mubr.msk.f32.gmra.mxu1 %vm183_vm0, %v11932_v54  ;;  %17740 = vmatprep.mubr.msk.f32.mxu0 %vm183_vm0, %v11226_v33 }
 0x5b5   :  { %23993 = vst [vmem:[#allocation167_spill] sm:$0xff] %v22015_v38  ;;  %v22019_v39 = vadd.f32 %v17493_v58, %v17395_v11  ;;  %17838 = vmatprep.mubr.msk.f32.mxu1 %vm183_vm0, %v21728_v4  ;;  %v9178_v44 = vpop.f32.mrf.mxu0  ;;  %v11229_v4 = vld [vmem:[#allocation3 + $0x22f] sm:$0xff] }
 0x5b6   :  { %v9755_v35 = vpop.f32.mrf.mxu1  ;;  %v11936_v11 = vld [vmem:[#allocation3 + $0x230] sm:$0xff] }
 0x5b7   :  { %v22024_v47 = vadd.f32 %v9755_v35, %v9178_v44  ;;  %v17398_v38 = vpop.f32.mrf.mxu0  ;;  %17741 = vmatmul.mubr.msk.f32.gmra.mxu0 %vm183_vm0, %v11227_v13  ;;  %v11230_v13 = vld [vmem:[#allocation3 + $0x287] sm:$0xff] }
 0x5b8   :  { %v17496_v41 = vpop.f32.mrf.mxu1  ;;  %17839 = vmatmul.mubr.msk.f32.gmra.mxu1 %vm183_vm0, %v21737_v50  ;;  %17743 = vmatprep.mubr.msk.f32.mxu0 %vm183_vm0, %v11228_v42  ;;  %v11937_v50 = vld [vmem:[#allocation3 + $0x288] sm:$0xff] }
 0x5b9   :  { %v22029_v58 = vadd.f32 %v17496_v41, %v17398_v38  ;;  %17841 = vmatprep.mubr.msk.f32.mxu1 %vm183_vm0, %v11935_v3  ;;  %v9188_v8 = vpop.f32.mrf.mxu0 }
 0x5ba   :  { %v9765_v54 = vpop.f32.mrf.mxu1 }
 0x5bb   :  { %23994 = vst [vmem:[#allocation169_spill] sm:$0xff] %v22029_v58  ;;  %v22033_v33 = vadd.f32 %v9765_v54, %v9188_v8  ;;  %v17401_v44 = vpop.f32.mrf.mxu0  ;;  %17744 = vmatmul.mubr.msk.f32.gmra.mxu0 %vm183_vm0, %v11229_v4  ;;  %v11231_v8 = vld [vmem:[#allocation3 + $0x28f] sm:$0xff]  ;;  %v11232_v4 = vld [vmem:[#allocation3 + $0x2a7] sm:$0xff] }
 0x5bc   :  { %v17499_v35 = vpop.f32.mrf.mxu1  ;;  %17842 = vmatmul.mubr.msk.f32.gmra.mxu1 %vm183_vm0, %v11936_v11  ;;  %17746 = vmatprep.mubr.msk.f32.mxu0 %vm183_vm0, %v11230_v13  ;;  %v11938_v54 = vld [vmem:[#allocation3 + $0x290] sm:$0xff]  ;;  %v11939_v11 = vld [vmem:[#allocation3 + $0x2a8] sm:$0xff] }
 0x5bd   :  { %23995 = vst [vmem:[#allocation198_spill] sm:$0xff] %v22033_v33  ;;  %v22037_v41 = vadd.f32 %v17499_v35, %v17401_v44  ;;  %17844 = vmatprep.mubr.msk.f32.mxu1 %vm183_vm0, %v11937_v50  ;;  %v9198_v38 = vpop.f32.mrf.mxu0  ;;  %v23998_v44 = vld [vmem:[#allocation74_spill] sm:$0xff] }
 0x5be   :  { %v9775_v42 = vpop.f32.mrf.mxu1 }
 0x5bf   :  { %23996 = vst [vmem:[#allocation197_spill] sm:$0xff] %v22037_v41  ;;  %v22041_v3 = vadd.f32 %v9775_v42, %v9198_v38  ;;  %v17504_v33 = vpop.f32.mrf.mxu0  ;;  %17747 = vmatmul.mubr.msk.f32.gmra.mxu0 %vm183_vm0, %v11231_v8  ;;  %v11233_v8 = vld [vmem:[#allocation3 + $0x2af] sm:$0xff] }
 0x5c0   :  { %v17602_v58 = vpop.f32.mrf.mxu1  ;;  %17845 = vmatmul.mubr.msk.f32.gmra.mxu1 %vm183_vm0, %v11938_v54  ;;  %v22046_v35 = vadd.f32 %v17504_v33, %v23998_v44  ;;  %17749 = vmatprep.mubr.msk.f32.mxu0 %vm183_vm0, %v11232_v4  ;;  %v11940_v54 = vld [vmem:[#allocation3 + $0x2b0] sm:$0xff] }
 0x5c1   :  { %23997 = vst [vmem:[#allocation129_spill] sm:$0xff] %v22041_v3  ;;  %v22049_v13 = vadd.f32 %v17602_v58, %v21752_v1  ;;  %17847 = vmatprep.mubr.msk.f32.mxu1 %vm183_vm0, %v11939_v11  ;;  %v22053_v50 = vpop.f32.mrf.mxu0  ;;  %v11234_v1 = vld [vmem:[#allocation3 + $0x2c7] sm:$0xff]  ;;  %v24002_v33 = vld [vmem:[#allocation82_spill] sm:$0xff] }
 0x5c2   :  { %23999 = vst [vmem:[#allocation171_spill] sm:$0xff] %v22046_v35  ;;  %v10815_v38 = vpop.f32.mrf.mxu1  ;;  %v11941_v58 = vld [vmem:[#allocation3 + $0x2c8] sm:$0xff] }
 0x5c3   :  { %24000 = vst [vmem:[#allocation170_spill] sm:$0xff] %v22049_v13  ;;  %v22056_v42 = vadd.f32 %v10815_v38, %v21757_v23  ;;  %v17507_v3 = vpop.f32.mrf.mxu0  ;;  %17750 = vmatmul.mubr.msk.f32.gmra.mxu0 %vm183_vm0, %v11233_v8  ;;  %v24004_v38 = vld [vmem:[#allocation83_spill] sm:$0xff]  ;;  %v11942_v13 = vld [vmem:[#allocation3 + $0x2d0] sm:$0xff] }
 0x5c4   :  { %v17605_v41 = vpop.f32.mrf.mxu1  ;;  %17848 = vmatmul.mubr.msk.f32.gmra.mxu1 %vm183_vm0, %v11940_v54  ;;  %v22061_v4 = vadd.f32 %v17507_v3, %v24002_v33  ;;  %17752 = vmatprep.mubr.msk.f32.mxu0 %vm183_vm0, %v11234_v1  ;;  %v11235_v54 = vld [vmem:[#allocation3 + $0x2cf] sm:$0xff]  ;;  %v24006_v1 = vld [vmem:[#allocation84_spill] sm:$0xff] }
 0x5c5   :  { %24001 = vst [vmem:[#allocation172_spill] sm:$0xff] %v22056_v42  ;;  %v22064_v11 = vadd.f32 %v17605_v41, %v21762_v32  ;;  %17850 = vmatprep.mubr.msk.f32.mxu1 %vm183_vm0, %v11941_v58  ;;  %v10118_v23 = vpop.f32.mrf.mxu0  ;;  %v11236_v32 = vld [vmem:[#allocation3 + $0x2e7] sm:$0xff] }
 0x5c6   :  { %v10825_v44 = vpop.f32.mrf.mxu1  ;;  %v22069_v42 = vadd.f32 %v10118_v23, %v24004_v38  ;;  %v11943_v41 = vld [vmem:[#allocation3 + $0x2e8] sm:$0xff] }
 0x5c7   :  { %24003 = vst [vmem:[#allocation200_spill] sm:$0xff] %v22064_v11  ;;  %v22072_v8 = vadd.f32 %v10825_v44, %v21767_v61  ;;  %v17510_v35 = vpop.f32.mrf.mxu0  ;;  %17753 = vmatmul.mubr.msk.f32.gmra.mxu0 %vm183_vm0, %v11235_v54  ;;  %v24008_v44 = vld [vmem:[#allocation85_spill] sm:$0xff] }
 0x5c8   :  { %v17608_v3 = vpop.f32.mrf.mxu1  ;;  %17851 = vmatmul.mubr.msk.f32.gmra.mxu1 %vm183_vm0, %v11942_v13  ;;  %v22077_v58 = vadd.f32 %v17510_v35, %v24006_v1  ;;  %17755 = vmatprep.mubr.msk.f32.mxu0 %vm183_vm0, %v11236_v32  ;;  %v11237_v13 = vld [vmem:[#allocation3 + $0x2ef] sm:$0xff] }
 0x5c9   :  { %24005 = vst [vmem:[#allocation199_spill] sm:$0xff] %v22072_v8  ;;  %v22080_v33 = vadd.f32 %v17608_v3, %v21772_v53  ;;  %17853 = vmatprep.mubr.msk.f32.mxu1 %vm183_vm0, %v11943_v41  ;;  %v10128_v61 = vpop.f32.mrf.mxu0  ;;  %v11944_v8 = vld [vmem:[#allocation3 + $0x2f0] sm:$0xff]  ;;  %v11238_v53 = vld [vmem:[#allocation3 + $0x307] sm:$0xff] }
 0x5ca   :  { %v10835_v23 = vpop.f32.mrf.mxu1  ;;  %v22085_v38 = vadd.f32 %v10128_v61, %v24008_v44  ;;  %v11945_v3 = vld [vmem:[#allocation3 + $0x308] sm:$0xff]  ;;  %v24010_v32 = vld [vmem:[#allocation86_spill] sm:$0xff] }
 0x5cb   :  { %24007 = vst [vmem:[#allocation130_spill] sm:$0xff] %v22080_v33  ;;  %v22088_v54 = vadd.f32 %v10835_v23, %v21777_v51  ;;  %v17513_v11 = vpop.f32.mrf.mxu0  ;;  %17756 = vmatmul.mubr.msk.f32.gmra.mxu0 %vm183_vm0, %v11237_v13  ;;  %v24012_v23 = vld [vmem:[#allocation87_spill] sm:$0xff] }
 0x5cc   :  { %v17611_v35 = vpop.f32.mrf.mxu1  ;;  %17854 = vmatmul.mubr.msk.f32.gmra.mxu1 %vm183_vm0, %v11944_v8  ;;  %v22093_v41 = vadd.f32 %v17513_v11, %v24010_v32  ;;  %17758 = vmatprep.mubr.msk.f32.mxu0 %vm183_vm0, %v11238_v53  ;;  %v11239_v8 = vld [vmem:[#allocation3 + $0x30f] sm:$0xff]  ;;  %v24014_v53 = vld [vmem:[#allocation88_spill] sm:$0xff] }
 0x5cd   :  { %24009 = vst [vmem:[#allocation174_spill] sm:$0xff] %v22088_v54  ;;  %v22096_v1 = vadd.f32 %v17611_v35, %v21782_v26  ;;  %17856 = vmatprep.mubr.msk.f32.mxu1 %vm183_vm0, %v11945_v3  ;;  %v10138_v51 = vpop.f32.mrf.mxu0  ;;  %v11946_v54 = vld [vmem:[#allocation3 + $0x310] sm:$0xff]  ;;  %v11240_v26 = vld [vmem:[#allocation3 + $0x327] sm:$0xff] }
 0x5ce   :  { %v10845_v61 = vpop.f32.mrf.mxu1  ;;  %v22101_v44 = vadd.f32 %v10138_v51, %v24012_v23  ;;  %v11947_v35 = vld [vmem:[#allocation3 + $0x328] sm:$0xff] }
 0x5cf   :  { %24011 = vst [vmem:[#allocation173_spill] sm:$0xff] %v22096_v1  ;;  %v22104_v13 = vadd.f32 %v10845_v61, %v21787_v18  ;;  %v17516_v33 = vpop.f32.mrf.mxu0  ;;  %17759 = vmatmul.mubr.msk.f32.gmra.mxu0 %vm183_vm0, %v11239_v8  ;;  %v24016_v61 = vld [vmem:[#allocation89_spill] sm:$0xff] }
 0x5d0   :  { %v17614_v11 = vpop.f32.mrf.mxu1  ;;  %17857 = vmatmul.mubr.msk.f32.gmra.mxu1 %vm183_vm0, %v11946_v54  ;;  %v22109_v3 = vadd.f32 %v17516_v33, %v24014_v53  ;;  %17761 = vmatprep.mubr.msk.f32.mxu0 %vm183_vm0, %v11240_v26  ;;  %v11241_v54 = vld [vmem:[#allocation3 + $0x32f] sm:$0xff]  ;;  %v24018_v26 = vld [vmem:[#allocation123_spill] sm:$0xff] }
 0x5d1   :  { %24013 = vst [vmem:[#allocation175_spill] sm:$0xff] %v22104_v13  ;;  %v22112_v32 = vadd.f32 %v17614_v11, %v21792_v34  ;;  %17859 = vmatprep.mubr.msk.f32.mxu1 %vm183_vm0, %v11947_v35  ;;  %v10148_v18 = vpop.f32.mrf.mxu0  ;;  %v11948_v13 = vld [vmem:[#allocation3 + $0x330] sm:$0xff]  ;;  %v11242_v34 = vld [vmem:[#allocation3 + $0x347] sm:$0xff] }
 0x5d2   :  { %v10855_v51 = vpop.f32.mrf.mxu1  ;;  %v22117_v23 = vadd.f32 %v10148_v18, %v24016_v61  ;;  %v11949_v11 = vld [vmem:[#allocation3 + $0x348] sm:$0xff] }
 0x5d3   :  { %24015 = vst [vmem:[#allocation202_spill] sm:$0xff] %v22112_v32  ;;  %v22120_v8 = vadd.f32 %v10855_v51, %v21797_v24  ;;  %v17519_v1 = vpop.f32.mrf.mxu0  ;;  %17762 = vmatmul.mubr.msk.f32.gmra.mxu0 %vm183_vm0, %v11241_v54  ;;  %v24020_v51 = vld [vmem:[#allocation149_spill] sm:$0xff] }
 0x5d4   :  { %v17617_v33 = vpop.f32.mrf.mxu1  ;;  %17860 = vmatmul.mubr.msk.f32.gmra.mxu1 %vm183_vm0, %v11948_v13  ;;  %v22125_v35 = vadd.f32 %v17519_v1, %v24018_v26  ;;  %17764 = vmatprep.mubr.msk.f32.mxu0 %vm183_vm0, %v11242_v34  ;;  %v11243_v13 = vld [vmem:[#allocation3 + $0x34f] sm:$0xff] }
 0x5d5   :  { %24017 = vst [vmem:[#allocation201_spill] sm:$0xff] %v22120_v8  ;;  %v22128_v53 = vadd.f32 %v17617_v33, %v21802_v2  ;;  %17862 = vmatprep.mubr.msk.f32.mxu1 %vm183_vm0, %v11949_v11  ;;  %v10158_v24 = vpop.f32.mrf.mxu0  ;;  %v11950_v8 = vld [vmem:[#allocation3 + $0x350] sm:$0xff]  ;;  %v11244_v2 = vld [vmem:[#allocation3 + $0x367] sm:$0xff] }
 0x5d6   :  { %v10865_v18 = vpop.f32.mrf.mxu1  ;;  %v22133_v61 = vadd.f32 %v10158_v24, %v24020_v51  ;;  %v11951_v33 = vld [vmem:[#allocation3 + $0x368] sm:$0xff]  ;;  %v24022_v34 = vld [vmem:[#allocation90_spill] sm:$0xff] }
 0x5d7   :  { %24019 = vst [vmem:[#allocation131_spill] sm:$0xff] %v22128_v53  ;;  %v22136_v54 = vadd.f32 %v10865_v18, %v21807_v30  ;;  %v17522_v32 = vpop.f32.mrf.mxu0  ;;  %17765 = vmatmul.mubr.msk.f32.gmra.mxu0 %vm183_vm0, %v11243_v13  ;;  %v24024_v18 = vld [vmem:[#allocation94_spill] sm:$0xff] }
 0x5d8   :  { %v17620_v1 = vpop.f32.mrf.mxu1  ;;  %17863 = vmatmul.mubr.msk.f32.gmra.mxu1 %vm183_vm0, %v11950_v8  ;;  %v22141_v11 = vadd.f32 %v17522_v32, %v24022_v34  ;;  %17767 = vmatprep.mubr.msk.f32.mxu0 %vm183_vm0, %v11244_v2  ;;  %v11245_v8 = vld [vmem:[#allocation3 + $0x36f] sm:$0xff] }
 0x5d9   :  { %24021 = vst [vmem:[#allocation177_spill] sm:$0xff] %v22136_v54  ;;  %v22144_v26 = vadd.f32 %v17620_v1, %v21812_v45  ;;  %17865 = vmatprep.mubr.msk.f32.mxu1 %vm183_vm0, %v11951_v33  ;;  %v10168_v30 = vpop.f32.mrf.mxu0  ;;  %v11952_v54 = vld [vmem:[#allocation3 + $0x370] sm:$0xff]  ;;  %v11246_v45 = vld [vmem:[#allocation3 + $0x387] sm:$0xff] }
 0x5da   :  { %v10875_v24 = vpop.f32.mrf.mxu1  ;;  %v22149_v51 = vadd.f32 %v10168_v30, %v24024_v18  ;;  %v11953_v1 = vld [vmem:[#allocation3 + $0x388] sm:$0xff]  ;;  %v24026_v2 = vld [vmem:[#allocation150_spill] sm:$0xff] }
 0x5db   :  { %24023 = vst [vmem:[#allocation176_spill] sm:$0xff] %v22144_v26  ;;  %v22152_v13 = vadd.f32 %v10875_v24, %v21817_v22  ;;  %v17525_v53 = vpop.f32.mrf.mxu0  ;;  %17768 = vmatmul.mubr.msk.f32.gmra.mxu0 %vm183_vm0, %v11245_v8  ;;  %v24028_v24 = vld [vmem:[#allocation92_spill] sm:$0xff] }
 0x5dc   :  { %v17623_v32 = vpop.f32.mrf.mxu1  ;;  %17866 = vmatmul.mubr.msk.f32.gmra.mxu1 %vm183_vm0, %v11952_v54  ;;  %v22157_v33 = vadd.f32 %v17525_v53, %v24026_v2  ;;  %17770 = vmatprep.mubr.msk.f32.mxu0 %vm183_vm0, %v11246_v45  ;;  %v11247_v54 = vld [vmem:[#allocation3 + $0x38f] sm:$0xff] }
 0x5dd   :  { %24025 = vst [vmem:[#allocation178_spill] sm:$0xff] %v22152_v13  ;;  %v22160_v34 = vadd.f32 %v17623_v32, %v21822_v40  ;;  %17868 = vmatprep.mubr.msk.f32.mxu1 %vm183_vm0, %v11953_v1  ;;  %v10178_v22 = vpop.f32.mrf.mxu0  ;;  %v11954_v13 = vld [vmem:[#allocation3 + $0x390] sm:$0xff]  ;;  %v11248_v40 = vld [vmem:[#allocation3 + $0x3a7] sm:$0xff] }
 0x5de   :  { %v10885_v30 = vpop.f32.mrf.mxu1  ;;  %v22165_v18 = vadd.f32 %v10178_v22, %v24028_v24  ;;  %v11955_v32 = vld [vmem:[#allocation3 + $0x3a8] sm:$0xff] }
 0x5df   :  { %24027 = vst [vmem:[#allocation204_spill] sm:$0xff] %v22160_v34  ;;  %v22168_v8 = vadd.f32 %v10885_v30, %v21827_v49  ;;  %v17528_v26 = vpop.f32.mrf.mxu0  ;;  %17771 = vmatmul.mubr.msk.f32.gmra.mxu0 %vm183_vm0, %v11247_v54  ;;  %v24030_v45 = vld [vmem:[#allocation93_spill] sm:$0xff] }
 0x5e0   :  { %v17626_v53 = vpop.f32.mrf.mxu1  ;;  %17869 = vmatmul.mubr.msk.f32.gmra.mxu1 %vm183_vm0, %v11954_v13  ;;  %v22173_v1 = vadd.f32 %v17528_v26, %v24030_v45  ;;  %17773 = vmatprep.mubr.msk.f32.mxu0 %vm183_vm0, %v11248_v40  ;;  %v24032_v30 = vld [vmem:[#allocation97_spill] sm:$0xff]  ;;  %v24034_v40 = vld [vmem:[#allocation151_spill] sm:$0xff] }
 0x5e1   :  { %24029 = vst [vmem:[#allocation203_spill] sm:$0xff] %v22168_v8  ;;  %v22176_v2 = vadd.f32 %v17626_v53, %v21832_v0  ;;  %17871 = vmatprep.mubr.msk.f32.mxu1 %vm183_vm0, %v11955_v32  ;;  %v10188_v49 = vpop.f32.mrf.mxu0  ;;  %v11249_v13 = vld [vmem:[#allocation3 + $0x3af] sm:$0xff]  ;;  %v11250_v0 = vld [vmem:[#allocation3 + $0x3c7] sm:$0xff] }
 0x5e2   :  { %v10895_v22 = vpop.f32.mrf.mxu1  ;;  %v22181_v24 = vadd.f32 %v10188_v49, %v24032_v30  ;;  %v11956_v8 = vld [vmem:[#allocation3 + $0x3b0] sm:$0xff]  ;;  %v11957_v53 = vld [vmem:[#allocation3 + $0x3c8] sm:$0xff] }
 0x5e3   :  { %24031 = vst [vmem:[#allocation133_spill] sm:$0xff] %v22176_v2  ;;  %v22184_v54 = vadd.f32 %v10895_v22, %v21837_v27  ;;  %v17531_v34 = vpop.f32.mrf.mxu0  ;;  %17774 = vmatmul.mubr.msk.f32.gmra.mxu0 %vm183_vm0, %v11249_v13  ;;  %v24036_v22 = vld [vmem:[#allocation95_spill] sm:$0xff] }
 0x5e4   :  { %v17629_v26 = vpop.f32.mrf.mxu1  ;;  %17872 = vmatmul.mubr.msk.f32.gmra.mxu1 %vm183_vm0, %v11956_v8  ;;  %v22189_v32 = vadd.f32 %v17531_v34, %v24034_v40  ;;  %17776 = vmatprep.mubr.msk.f32.mxu0 %vm183_vm0, %v11250_v0  ;;  %v11251_v8 = vld [vmem:[#allocation3 + $0x3cf] sm:$0xff]  ;;  %v24038_v0 = vld [vmem:[#allocation96_spill] sm:$0xff] }
 0x5e5   :  { %24033 = vst [vmem:[#allocation132_spill] sm:$0xff] %v22184_v54  ;;  %v22192_v45 = vadd.f32 %v17629_v26, %v21842_v57  ;;  %17874 = vmatprep.mubr.msk.f32.mxu1 %vm183_vm0, %v11957_v53  ;;  %v10198_v27 = vpop.f32.mrf.mxu0  ;;  %v11958_v54 = vld [vmem:[#allocation3 + $0x3d0] sm:$0xff]  ;;  %v11252_v57 = vld [vmem:[#allocation3 + $0x3e7] sm:$0xff] }
 0x5e6   :  { %v10905_v49 = vpop.f32.mrf.mxu1  ;;  %v22197_v30 = vadd.f32 %v10198_v27, %v24036_v22  ;;  %v11959_v26 = vld [vmem:[#allocation3 + $0x3e8] sm:$0xff] }
 0x5e7   :  { %24035 = vst [vmem:[#allocation107_spill] sm:$0xff] %v22192_v45  ;;  %v22200_v13 = vadd.f32 %v10905_v49, %v21847_v10  ;;  %v17534_v2 = vpop.f32.mrf.mxu0  ;;  %17777 = vmatmul.mubr.msk.f32.gmra.mxu0 %vm183_vm0, %v11251_v8  ;;  %v24040_v49 = vld [vmem:[#allocation180_spill] sm:$0xff] }
 0x5e8   :  { %v17632_v34 = vpop.f32.mrf.mxu1  ;;  %17875 = vmatmul.mubr.msk.f32.gmra.mxu1 %vm183_vm0, %v11958_v54  ;;  %v22205_v53 = vadd.f32 %v17534_v2, %v24038_v0  ;;  %17779 = vmatprep.mubr.msk.f32.mxu0 %vm183_vm0, %v11252_v57  ;;  %v11253_v54 = vld [vmem:[#allocation3 + $0x3ef] sm:$0xff]  ;;  %v24042_v57 = vld [vmem:[#allocation91_spill] sm:$0xff] }
 0x5e9   :  { %24037 = vst [vmem:[#allocation108_spill] sm:$0xff] %v22200_v13  ;;  %v22208_v40 = vadd.f32 %v17632_v34, %v21852_v25  ;;  %17877 = vmatprep.mubr.msk.f32.mxu1 %vm183_vm0, %v11959_v26  ;;  %v10208_v10 = vpop.f32.mrf.mxu0  ;;  %v11960_v13 = vld [vmem:[#allocation3 + $0x3f0] sm:$0xff]  ;;  %v11254_v25 = vld [vmem:[#allocation3 + $0x407] sm:$0xff] }
 0x5ea   :  { %v10915_v27 = vpop.f32.mrf.mxu1  ;;  %v22213_v22 = vadd.f32 %v10208_v10, %v24040_v49  ;;  %v11961_v34 = vld [vmem:[#allocation3 + $0x408] sm:$0xff] }
 0x5eb   :  { %24039 = vst [vmem:[#allocation206_spill] sm:$0xff] %v22208_v40  ;;  %v22216_v8 = vadd.f32 %v10915_v27, %v21857_v9  ;;  %v17537_v45 = vpop.f32.mrf.mxu0  ;;  %17780 = vmatmul.mubr.msk.f32.gmra.mxu0 %vm183_vm0, %v11253_v54  ;;  %v24044_v27 = vld [vmem:[#allocation23_spill] sm:$0xff] }
 0x5ec   :  { %v17635_v2 = vpop.f32.mrf.mxu1  ;;  %17878 = vmatmul.mubr.msk.f32.gmra.mxu1 %vm183_vm0, %v11960_v13  ;;  %v22221_v26 = vadd.f32 %v17537_v45, %v24042_v57  ;;  %17782 = vmatprep.mubr.msk.f32.mxu0 %vm183_vm0, %v11254_v25  ;;  %v11255_v13 = vld [vmem:[#allocation3 + $0x40f] sm:$0xff]  ;;  %v24046_v25 = vld [vmem:[#allocation152_spill] sm:$0xff] }
 0x5ed   :  { %24041 = vst [vmem:[#allocation205_spill] sm:$0xff] %v22216_v8  ;;  %v22224_v0 = vadd.f32 %v17635_v2, %v21862_v21  ;;  %17880 = vmatprep.mubr.msk.f32.mxu1 %vm183_vm0, %v11961_v34  ;;  %v10218_v9 = vpop.f32.mrf.mxu0  ;;  %v11962_v8 = vld [vmem:[#allocation3 + $0x410] sm:$0xff]  ;;  %v11256_v21 = vld [vmem:[#allocation3 + $0x427] sm:$0xff] }
 0x5ee   :  { %v10925_v10 = vpop.f32.mrf.mxu1  ;;  %v22229_v49 = vadd.f32 %v10218_v9, %v24044_v27  ;;  %v11963_v2 = vld [vmem:[#allocation3 + $0x428] sm:$0xff] }
 0x5ef   :  { %24043 = vst [vmem:[#allocation135_spill] sm:$0xff] %v22224_v0  ;;  %v22232_v54 = vadd.f32 %v10925_v10, %v21867_v31  ;;  %v17540_v40 = vpop.f32.mrf.mxu0  ;;  %17783 = vmatmul.mubr.msk.f32.gmra.mxu0 %vm183_vm0, %v11255_v13  ;;  %v24048_v10 = vld [vmem:[#allocation98_spill] sm:$0xff] }
 0x5f0   :  { %v17638_v45 = vpop.f32.mrf.mxu1  ;;  %17881 = vmatmul.mubr.msk.f32.gmra.mxu1 %vm183_vm0, %v11962_v8  ;;  %v22237_v34 = vadd.f32 %v17540_v40, %v24046_v25  ;;  %17785 = vmatprep.mubr.msk.f32.mxu0 %vm183_vm0, %v11256_v21  ;;  %v11257_v8 = vld [vmem:[#allocation3 + $0x42f] sm:$0xff] }
 0x5f1   :  { %24045 = vst [vmem:[#allocation134_spill] sm:$0xff] %v22232_v54  ;;  %v22240_v57 = vadd.f32 %v17638_v45, %v21872_v37  ;;  %17883 = vmatprep.mubr.msk.f32.mxu1 %vm183_vm0, %v11963_v2  ;;  %v10228_v31 = vpop.f32.mrf.mxu0  ;;  %v11964_v54 = vld [vmem:[#allocation3 + $0x430] sm:$0xff]  ;;  %v11258_v37 = vld [vmem:[#allocation3 + $0x447] sm:$0xff] }
 0x5f2   :  { %v10935_v9 = vpop.f32.mrf.mxu1  ;;  %v22245_v27 = vadd.f32 %v10228_v31, %v24048_v10  ;;  %v24050_v45 = vld [vmem:[#allocation181_spill] sm:$0xff]  ;;  %v24052_v10 = vld [vmem:[#allocation100_spill] sm:$0xff] }
 0x5f3   :  { %24047 = vst [vmem:[#allocation109_spill] sm:$0xff] %v22240_v57  ;;  %v22248_v13 = vadd.f32 %v10935_v9, %v21877_v6  ;;  %v17543_v0 = vpop.f32.mrf.mxu0  ;;  %17786 = vmatmul.mubr.msk.f32.gmra.mxu0 %vm183_vm0, %v11257_v8  ;;  %v11260_v31 = vld [vmem:[#allocation3 + $0x467] sm:$0xff] }
 0x5f4   :  { %v17641_v40 = vpop.f32.mrf.mxu1  ;;  %17884 = vmatmul.mubr.msk.f32.gmra.mxu1 %vm183_vm0, %v11964_v54  ;;  %v22253_v21 = vadd.f32 %v17543_v0, %v24050_v45  ;;  %17788 = vmatprep.mubr.msk.f32.mxu0 %vm183_vm0, %v11258_v37  ;;  %v11967_v9 = vld [vmem:[#allocation3 + $0x468] sm:$0xff]  ;;  %v11968_v37 = vld [vmem:[#allocation3 + $0x470] sm:$0xff] }
 0x5f5   :  { %24049 = vst [vmem:[#allocation110_spill] sm:$0xff] %v22248_v13  ;;  %v22256_v2 = vadd.f32 %v17641_v40, %v21882_v7  ;;  %17886 = vmatprep.mubr.msk.f32.mxu1 %vm183_vm0, %v21892_v16  ;;  %v10238_v6 = vpop.f32.mrf.mxu0  ;;  %v11259_v0 = vld [vmem:[#allocation3 + $0x44f] sm:$0xff]  ;;  %v24054_v7 = vld [vmem:[#allocation99_spill] sm:$0xff] }
 0x5f6   :  { %v10945_v25 = vpop.f32.mrf.mxu1  ;;  %v22262_v8 = vadd.f32 %v10238_v6, %v24052_v10  ;;  %v24056_v10 = vld [vmem:[#allocation25_spill] sm:$0xff] }
 0x5f7   :  { %24051 = vst [vmem:[#allocation208_spill] sm:$0xff] %v22256_v2  ;;  %v22265_v54 = vadd.f32 %v10945_v25, %v21887_v29  ;;  %v17546_v45 = vpop.f32.mrf.mxu0  ;;  %17789 = vmatmul.mubr.msk.f32.gmra.mxu0 %vm183_vm0, %v11259_v0  ;;  %v11261_v29 = vld [vmem:[#allocation3 + $0x46f] sm:$0xff] }
 0x5f8   :  { %v17644_v13 = vpop.f32.mrf.mxu1  ;;  %17887 = vmatmul.mubr.msk.f32.gmra.mxu1 %vm183_vm0, %v21901_v28  ;;  %v22271_v16 = vadd.f32 %v17546_v45, %v24054_v7  ;;  %17791 = vmatprep.mubr.msk.f32.mxu0 %vm183_vm0, %v11260_v31 }
 0x5f9   :  { %24053 = vst [vmem:[#allocation207_spill] sm:$0xff] %v22265_v54  ;;  %v22274_v40 = vadd.f32 %v17644_v13, %v21894_v14  ;;  %17889 = vmatprep.mubr.msk.f32.mxu1 %vm183_vm0, %v11967_v9  ;;  %v10248_v6 = vpop.f32.mrf.mxu0  ;;  %v12612_v14 = vld [vmem:[#allocation3 + $0x49] sm:$0xff] }
 0x5fa   :  { %v10955_v25 = vpop.f32.mrf.mxu1  ;;  %v22279_v54 = vadd.f32 %v10248_v6, %v24056_v10 }
 0x5fb   :  { %24055 = vst [vmem:[#allocation137_spill] sm:$0xff] %v22274_v40  ;;  %v22282_v0 = vadd.f32 %v10955_v25, %v21899_v15  ;;  %v17549_v28 = vpop.f32.mrf.mxu0  ;;  %17792 = vmatmul.mubr.msk.f32.gmra.mxu0 %vm183_vm0, %v11261_v29  ;;  %v12613_v29 = vld [vmem:[#allocation3 + $0x51] sm:$0xff] }
 0x5fc   :  { %v17647_v45 = vpop.f32.mrf.mxu1  ;;  %17890 = vmatmul.mubr.msk.f32.gmra.mxu1 %vm183_vm0, %v11968_v37  ;;  %v22287_v13 = vadd.f32 %v17549_v28, %v21568_v48  ;;  %17894 = vmatprep.mubr.msk.f32.mxu0 %vm183_vm0, %v12612_v14  ;;  %v12614_v48 = vld [vmem:[#allocation3 + $0x69] sm:$0xff] }
 0x5fd   :  { %24057 = vst [vmem:[#allocation136_spill] sm:$0xff] %v22282_v0  ;;  %v22290_v31 = vadd.f32 %v17647_v45, %v21906_v12  ;;  %v10258_v9 = vpop.f32.mrf.mxu0  ;;  %v24061_v45 = vld [vmem:[#allocation184_spill] sm:$0xff] }
 0x5fe   :  { %v10965_v7 = vpop.f32.mrf.mxu1  ;;  %v22294_v15 = vadd.f32 %v10258_v9, %v21573_v55  ;;  %v12615_v9 = vld [vmem:[#allocation3 + $0x71] sm:$0xff] }
 0x5ff   :  { %24058 = vst [vmem:[#allocation111_spill] sm:$0xff] %v22290_v31  ;;  %v22297_v6 = vadd.f32 %v10965_v7, %v21910_v63  ;;  %v17552_v25 = vpop.f32.mrf.mxu0  ;;  %17895 = vmatmul.mubr.msk.f32.vlgmr.msra.gmra.mxu0 %vm183_vm0, %v12613_v29 }
 0x600   :  { %v17650_v37 = vpop.f32.mrf.mxu1  ;;  %v22301_v10 = vadd.f32 %v17552_v25, %v21586_v56  ;;  %17897 = vmatprep.mubr.msk.f32.mxu0 %vm183_vm0, %v12614_v48  ;;  %v12616_v56 = vld [vmem:[#allocation3 + $0x89] sm:$0xff] }
 0x601   :  { %24059 = vst [vmem:[#allocation112_spill] sm:$0xff] %v22297_v6  ;;  %v22304_v12 = vadd.f32 %v17650_v37, %v21914_v46  ;;  %v10268_v28 = vpop.f32.mrf.mxu0 }
 0x602   :  { %v10975_v55 = vpop.f32.mrf.mxu1  ;;  %v22308_v14 = vadd.f32 %v10268_v28, %v24061_v45 }
 0x603   :  { %24060 = vst [vmem:[#allocation210_spill] sm:$0xff] %v22304_v12  ;;  %v22311_v63 = vadd.f32 %v10975_v55, %v21919_v59  ;;  %v17555_v7 = vpop.f32.mrf.mxu0  ;;  %17898 = vmatmul.mubr.msk.f32.gmra.mxu0 %vm183_vm0, %v12615_v9  ;;  %v12617_v55 = vld [vmem:[#allocation3 + $0x91] sm:$0xff] }
 0x604   :  { %v17653_v29 = vpop.f32.mrf.mxu1  ;;  %v22315_v25 = vadd.f32 %v17555_v7, %v21598_v60  ;;  %17900 = vmatprep.mubr.msk.f32.mxu0 %vm183_vm0, %v12616_v56  ;;  %v12618_v60 = vld [vmem:[#allocation3 + $0xa9] sm:$0xff] }
 0x605   :  { %24062 = vst [vmem:[#allocation209_spill] sm:$0xff] %v22311_v63  ;;  %v22318_v46 = vadd.f32 %v17653_v29, %v21923_v17  ;;  %v10278_v37 = vpop.f32.mrf.mxu0 }
 0x606   :  { %v10985_v48 = vpop.f32.mrf.mxu1  ;;  %v22322_v28 = vadd.f32 %v10278_v37, %v21603_v43  ;;  %v12619_v37 = vld [vmem:[#allocation3 + $0xb1] sm:$0xff] }
 0x607   :  { %24063 = vst [vmem:[#allocation139_spill] sm:$0xff] %v22318_v46  ;;  %v22325_v59 = vadd.f32 %v10985_v48, %v21927_v62  ;;  %v17558_v45 = vpop.f32.mrf.mxu0  ;;  %17901 = vmatmul.mubr.msk.f32.gmra.mxu0 %vm183_vm0, %v12617_v55 }
 0x608   :  { %v17656_v9 = vpop.f32.mrf.mxu1  ;;  %v22329_v7 = vadd.f32 %v17558_v45, %v21608_v5  ;;  %17903 = vmatprep.mubr.msk.f32.mxu0 %vm183_vm0, %v12618_v60  ;;  %v12620_v5 = vld [vmem:[#allocation3 + $0xc9] sm:$0xff] }
 0x609   :  { %24064 = vst [vmem:[#allocation138_spill] sm:$0xff] %v22325_v59  ;;  %v22332_v17 = vadd.f32 %v17656_v9, %v21931_v36  ;;  %v10288_v29 = vpop.f32.mrf.mxu0  ;;  %v24067_v36 = vld [vmem:[#allocation159_spill] sm:$0xff] }
 0x60a   :  { %v10995_v43 = vpop.f32.mrf.mxu1  ;;  %v22336_v56 = vadd.f32 %v10288_v29, %v21613_v19  ;;  %v24069_v29 = vld [vmem:[#allocation183_spill] sm:$0xff] }
 0x60b   :  { %24065 = vst [vmem:[#allocation113_spill] sm:$0xff] %v22332_v17  ;;  %v22339_v62 = vadd.f32 %v10995_v43, %v21935_v20  ;;  %v17561_v48 = vpop.f32.mrf.mxu0  ;;  %17904 = vmatmul.mubr.msk.f32.gmra.mxu0 %vm183_vm0, %v12619_v37  ;;  %v24070_v20 = vld [vmem:[#allocation227_spill] sm:$0xff] }
 0x60c   :  { %v17659_v55 = vpop.f32.mrf.mxu1  ;;  %v22343_v45 = vadd.f32 %v17561_v48, %v21618_v52  ;;  %17906 = vmatprep.mubr.msk.f32.mxu0 %vm183_vm0, %v12620_v5  ;;  %v12622_v52 = vld [vmem:[#allocation3 + $0xe9] sm:$0xff] }
 0x60d   :  { %24066 = vst [vmem:[#allocation114_spill] sm:$0xff] %v22339_v62  ;;  %v22346_v9 = vadd.f32 %v17659_v55, %v24067_v36  ;;  %v10298_v60 = vpop.f32.mrf.mxu0  ;;  %v12621_v62 = vld [vmem:[#allocation3 + $0xd1] sm:$0xff]  ;;  %v24072_v48 = vld [vmem:[#allocation101_spill] sm:$0xff] }
 0x60e   :  { %v11005_v19 = vpop.f32.mrf.mxu1  ;;  %v22350_v17 = vadd.f32 %v10298_v60, %v24069_v29  ;;  %v24073_v55 = vld [vmem:[#allocation106_spill] sm:$0xff] }
 0x60f   :  { %24068 = vst [vmem:[#allocation212_spill] sm:$0xff] %v22346_v9  ;;  %v22353_v43 = vadd.f32 %v11005_v19, %v24070_v20  ;;  %v17564_v59 = vpop.f32.mrf.mxu0  ;;  %17907 = vmatmul.mubr.msk.f32.gmra.mxu0 %vm183_vm0, %v12621_v62  ;;  %v24075_v29 = vld [vmem:[#allocation154_spill] sm:$0xff]  ;;  %v24076_v19 = vld [vmem:[#allocation192_spill] sm:$0xff] }
 0x610   :  { %v17662_v37 = vpop.f32.mrf.mxu1  ;;  %v22357_v46 = vadd.f32 %v17564_v59, %v24072_v48  ;;  %17909 = vmatprep.mubr.msk.f32.mxu0 %vm183_vm0, %v12622_v52  ;;  %v12624_v59 = vld [vmem:[#allocation3 + $0x109] sm:$0xff] }
 0x611   :  { %24071 = vst [vmem:[#allocation211_spill] sm:$0xff] %v22353_v43  ;;  %v22360_v36 = vadd.f32 %v17662_v37, %v24073_v55  ;;  %v10308_v5 = vpop.f32.mrf.mxu0  ;;  %v12623_v43 = vld [vmem:[#allocation3 + $0xf1] sm:$0xff] }
 0x612   :  { %v11015_v60 = vpop.f32.mrf.mxu1  ;;  %v22364_v9 = vadd.f32 %v10308_v5, %v24075_v29  ;;  %v24078_v48 = vld [vmem:[#allocation102_spill] sm:$0xff]  ;;  %v24079_v37 = vld [vmem:[#allocation191_spill] sm:$0xff]  ;;  %v24081_v29 = vld [vmem:[#allocation28_spill] sm:$0xff] }
 0x613   :  { %24074 = vst [vmem:[#allocation141_spill] sm:$0xff] %v22360_v36  ;;  %v22367_v20 = vadd.f32 %v11015_v60, %v24076_v19  ;;  %v17567_v63 = vpop.f32.mrf.mxu0  ;;  %17910 = vmatmul.mubr.msk.f32.gmra.mxu0 %vm183_vm0, %v12623_v43  ;;  %v24082_v60 = vld [vmem:[#allocation126_spill] sm:$0xff] }
 0x614   :  { %v17665_v62 = vpop.f32.mrf.mxu1  ;;  %v22371_v12 = vadd.f32 %v17567_v63, %v24078_v48  ;;  %17912 = vmatprep.mubr.msk.f32.mxu0 %vm183_vm0, %v12624_v59  ;;  %v12626_v63 = vld [vmem:[#allocation3 + $0x129] sm:$0xff] }
 0x615   :  { %24077 = vst [vmem:[#allocation140_spill] sm:$0xff] %v22367_v20  ;;  %v22374_v55 = vadd.f32 %v17665_v62, %v24079_v37  ;;  %v10318_v52 = vpop.f32.mrf.mxu0  ;;  %v12625_v20 = vld [vmem:[#allocation3 + $0x111] sm:$0xff] }
 0x616   :  { %v11025_v5 = vpop.f32.mrf.mxu1  ;;  %v22378_v36 = vadd.f32 %v10318_v52, %v24081_v29  ;;  %v24084_v48 = vld [vmem:[#allocation186_spill] sm:$0xff]  ;;  %v24087_v29 = vld [vmem:[#allocation185_spill] sm:$0xff] }
 0x617   :  { %24080 = vst [vmem:[#allocation115_spill] sm:$0xff] %v22374_v55  ;;  %v22381_v19 = vadd.f32 %v11025_v5, %v24082_v60  ;;  %v17570_v6 = vpop.f32.mrf.mxu0  ;;  %17913 = vmatmul.mubr.msk.f32.gmra.mxu0 %vm183_vm0, %v12625_v20  ;;  %v24085_v62 = vld [vmem:[#allocation162_spill] sm:$0xff]  ;;  %v24088_v5 = vld [vmem:[#allocation161_spill] sm:$0xff] }
 0x618   :  { %v17668_v43 = vpop.f32.mrf.mxu1  ;;  %v22385_v31 = vadd.f32 %v17570_v6, %v24084_v48  ;;  %17915 = vmatprep.mubr.msk.f32.mxu0 %vm183_vm0, %v12626_v63  ;;  %v12628_v6 = vld [vmem:[#allocation3 + $0x149] sm:$0xff]  ;;  %v24090_v48 = vld [vmem:[#allocation103_spill] sm:$0xff] }
 0x619   :  { %24083 = vst [vmem:[#allocation116_spill] sm:$0xff] %v22381_v19  ;;  %v22388_v37 = vadd.f32 %v17668_v43, %v24085_v62  ;;  %v10328_v59 = vpop.f32.mrf.mxu0  ;;  %v12627_v19 = vld [vmem:[#allocation3 + $0x131] sm:$0xff] }
 0x61a   :  { %v11035_v52 = vpop.f32.mrf.mxu1  ;;  %v22392_v55 = vadd.f32 %v10328_v59, %v24087_v29  ;;  %v24091_v43 = vld [vmem:[#allocation163_spill] sm:$0xff] }
 0x61b   :  { %24086 = vst [vmem:[#allocation214_spill] sm:$0xff] %v22388_v37  ;;  %v22395_v60 = vadd.f32 %v11035_v52, %v24088_v5  ;;  %v17573_v0 = vpop.f32.mrf.mxu0  ;;  %17916 = vmatmul.mubr.msk.f32.gmra.mxu0 %vm183_vm0, %v12627_v19  ;;  %v24093_v29 = vld [vmem:[#allocation155_spill] sm:$0xff]  ;;  %v24095_v52 = vld [vmem:[#allocation194_spill] sm:$0xff] }
 0x61c   :  { %v17671_v20 = vpop.f32.mrf.mxu1  ;;  %v22399_v40 = vadd.f32 %v17573_v0, %v24090_v48  ;;  %17918 = vmatprep.mubr.msk.f32.mxu0 %vm183_vm0, %v12628_v6  ;;  %v12630_v0 = vld [vmem:[#allocation3 + $0x169] sm:$0xff]  ;;  %v24097_v48 = vld [vmem:[#allocation104_spill] sm:$0xff] }
 0x61d   :  { %24089 = vst [vmem:[#allocation213_spill] sm:$0xff] %v22395_v60  ;;  %v22402_v62 = vadd.f32 %v17671_v20, %v24091_v43  ;;  %v10338_v63 = vpop.f32.mrf.mxu0  ;;  %v12629_v60 = vld [vmem:[#allocation3 + $0x151] sm:$0xff]  ;;  %v24099_v20 = vld [vmem:[#allocation193_spill] sm:$0xff] }
 0x61e   :  { %v11045_v59 = vpop.f32.mrf.mxu1  ;;  %v22406_v37 = vadd.f32 %v10338_v63, %v24093_v29  ;;  %v24101_v29 = vld [vmem:[#allocation215_spill] sm:$0xff] }
 0x61f   :  { %24092 = vst [vmem:[#allocation143_spill] sm:$0xff] %v22402_v62  ;;  %v22409_v5 = vadd.f32 %v11045_v59, %v24095_v52  ;;  %v17576_v2 = vpop.f32.mrf.mxu0  ;;  %17919 = vmatmul.mubr.msk.f32.gmra.mxu0 %vm183_vm0, %v12629_v60  ;;  %v24103_v59 = vld [vmem:[#allocation127_spill] sm:$0xff] }
 0x620   :  { %24094 = vst [vmem:[#allocation142_spill] sm:$0xff] %v22406_v37  ;;  %v17674_v19 = vpop.f32.mrf.mxu1  ;;  %v22413_v57 = vadd.f32 %v17576_v2, %v24097_v48  ;;  %17921 = vmatprep.mubr.msk.f32.mxu0 %vm183_vm0, %v12630_v0  ;;  %v12632_v2 = vld [vmem:[#allocation3 + $0x189] sm:$0xff] }
 0x621   :  { %24096 = vst [vmem:[#allocation117_spill] sm:$0xff] %v22409_v5  ;;  %v22416_v43 = vadd.f32 %v17674_v19, %v24099_v20  ;;  %v10348_v6 = vpop.f32.mrf.mxu0  ;;  %v12631_v5 = vld [vmem:[#allocation3 + $0x171] sm:$0xff]  ;;  %v24105_v48 = vld [vmem:[#allocation105_spill] sm:$0xff] }
 0x622   :  { %24098 = vst [vmem:[#allocation118_spill] sm:$0xff] %v22413_v57  ;;  %v11055_v63 = vpop.f32.mrf.mxu1  ;;  %v22420_v62 = vadd.f32 %v10348_v6, %v24101_v29  ;;  %v24107_v19 = vld [vmem:[#allocation165_spill] sm:$0xff]  ;;  %v24109_v29 = vld [vmem:[#allocation188_spill] sm:$0xff] }
 0x623   :  { %24100 = vst [vmem:[#allocation217_spill] sm:$0xff] %v22416_v43  ;;  %v22423_v52 = vadd.f32 %v11055_v63, %v24103_v59  ;;  %v17579_v37 = vpop.f32.mrf.mxu0  ;;  %17922 = vmatmul.mubr.msk.f32.gmra.mxu0 %vm183_vm0, %v12631_v5  ;;  %v24111_v63 = vld [vmem:[#allocation164_spill] sm:$0xff] }
 0x624   :  { %24102 = vst [vmem:[#allocation216_spill] sm:$0xff] %v22420_v62  ;;  %v17677_v60 = vpop.f32.mrf.mxu1  ;;  %v22427_v57 = vadd.f32 %v17579_v37, %v24105_v48  ;;  %17924 = vmatprep.mubr.msk.f32.mxu0 %vm183_vm0, %v12632_v2  ;;  %v12634_v37 = vld [vmem:[#allocation3 + $0x1a9] sm:$0xff]  ;;  %v24113_v48 = vld [vmem:[#allocation187_spill] sm:$0xff] }
 0x625   :  { %24104 = vst [vmem:[#allocation144_spill] sm:$0xff] %v22423_v52  ;;  %v22430_v20 = vadd.f32 %v17677_v60, %v24107_v19  ;;  %v10358_v0 = vpop.f32.mrf.mxu0  ;;  %v12633_v52 = vld [vmem:[#allocation3 + $0x191] sm:$0xff] }
 0x626   :  { %24106 = vst [vmem:[#allocation179_spill] sm:$0xff] %v22427_v57  ;;  %v11065_v6 = vpop.f32.mrf.mxu1  ;;  %v22434_v43 = vadd.f32 %v10358_v0, %v24109_v29  ;;  %v24115_v60 = vld [vmem:[#allocation166_spill] sm:$0xff] }
 0x627   :  { %24108 = vst [vmem:[#allocation66_spill] sm:$0xff] %v22430_v20  ;;  %v22437_v59 = vadd.f32 %v11065_v6, %v24111_v63  ;;  %v17582_v62 = vpop.f32.mrf.mxu0  ;;  %17925 = vmatmul.mubr.msk.f32.gmra.mxu0 %vm183_vm0, %v12633_v52  ;;  %v24117_v29 = vld [vmem:[#allocation218_spill] sm:$0xff]  ;;  %v24119_v6 = vld [vmem:[#allocation196_spill] sm:$0xff] }
 0x628   :  { %24110 = vst [vmem:[#allocation67_spill] sm:$0xff] %v22434_v43  ;;  %v17680_v5 = vpop.f32.mrf.mxu1  ;;  %v22441_v57 = vadd.f32 %v17582_v62, %v24113_v48  ;;  %17927 = vmatprep.mubr.msk.f32.mxu0 %vm183_vm0, %v12634_v37  ;;  %v12636_v62 = vld [vmem:[#allocation3 + $0x1c9] sm:$0xff]  ;;  %v24121_v48 = vld [vmem:[#allocation124_spill] sm:$0xff] }
 0x629   :  { %24112 = vst [vmem:[#allocation220_spill] sm:$0xff] %v22437_v59  ;;  %v22444_v19 = vadd.f32 %v17680_v5, %v24115_v60  ;;  %v10368_v2 = vpop.f32.mrf.mxu0  ;;  %v12635_v59 = vld [vmem:[#allocation3 + $0x1b1] sm:$0xff] }
 0x62a   :  { %24114 = vst [vmem:[#allocation219_spill] sm:$0xff] %v22441_v57  ;;  %v11075_v0 = vpop.f32.mrf.mxu1  ;;  %v22448_v20 = vadd.f32 %v10368_v2, %v24117_v29  ;;  %v24123_v5 = vld [vmem:[#allocation195_spill] sm:$0xff]  ;;  %v24125_v29 = vld [vmem:[#allocation157_spill] sm:$0xff] }
 0x62b   :  { %24116 = vst [vmem:[#allocation146_spill] sm:$0xff] %v22444_v19  ;;  %v22451_v63 = vadd.f32 %v11075_v0, %v24119_v6  ;;  %v17585_v43 = vpop.f32.mrf.mxu0  ;;  %17928 = vmatmul.mubr.msk.f32.gmra.mxu0 %vm183_vm0, %v12635_v59  ;;  %v24127_v0 = vld [vmem:[#allocation128_spill] sm:$0xff] }
 0x62c   :  { %24118 = vst [vmem:[#allocation145_spill] sm:$0xff] %v22448_v20  ;;  %v17683_v52 = vpop.f32.mrf.mxu1  ;;  %v22455_v57 = vadd.f32 %v17585_v43, %v24121_v48  ;;  %17930 = vmatprep.mubr.msk.f32.mxu0 %vm183_vm0, %v12636_v62  ;;  %v12638_v43 = vld [vmem:[#allocation3 + $0x1e9] sm:$0xff]  ;;  %v24129_v48 = vld [vmem:[#allocation156_spill] sm:$0xff] }
 0x62d   :  { %24120 = vst [vmem:[#allocation119_spill] sm:$0xff] %v22451_v63  ;;  %v22458_v60 = vadd.f32 %v17683_v52, %v24123_v5  ;;  %v10378_v37 = vpop.f32.mrf.mxu0  ;;  %v12637_v63 = vld [vmem:[#allocation3 + $0x1d1] sm:$0xff]  ;;  %v24131_v52 = vld [vmem:[#allocation168_spill] sm:$0xff] }
 0x62e   :  { %24122 = vst [vmem:[#allocation120_spill] sm:$0xff] %v22455_v57  ;;  %v11085_v2 = vpop.f32.mrf.mxu1  ;;  %v22462_v19 = vadd.f32 %v10378_v37, %v24125_v29  ;;  %v24133_v29 = vld [vmem:[#allocation221_spill] sm:$0xff] }
 0x62f   :  { %24124 = vst [vmem:[#allocation223_spill] sm:$0xff] %v22458_v60  ;;  %v22465_v6 = vadd.f32 %v11085_v2, %v24127_v0  ;;  %v17588_v20 = vpop.f32.mrf.mxu0  ;;  %17931 = vmatmul.mubr.msk.f32.gmra.mxu0 %vm183_vm0, %v12637_v63  ;;  %v24135_v2 = vld [vmem:[#allocation167_spill] sm:$0xff] }
 0x630   :  { %24126 = vst [vmem:[#allocation222_spill] sm:$0xff] %v22462_v19  ;;  %v17686_v59 = vpop.f32.mrf.mxu1  ;;  %v22469_v57 = vadd.f32 %v17588_v20, %v24129_v48  ;;  %17933 = vmatprep.mubr.msk.f32.mxu0 %vm183_vm0, %v12638_v43  ;;  %v12640_v20 = vld [vmem:[#allocation3 + $0x209] sm:$0xff] }
 0x631   :  { %24128 = vst [vmem:[#allocation148_spill] sm:$0xff] %v22465_v6  ;;  %v22472_v5 = vadd.f32 %v17686_v59, %v24131_v52  ;;  %v10388_v62 = vpop.f32.mrf.mxu0  ;;  %v12639_v6 = vld [vmem:[#allocation3 + $0x1f1] sm:$0xff] }
 0x632   :  { %24130 = vst [vmem:[#allocation147_spill] sm:$0xff] %v22469_v57  ;;  %v11095_v37 = vpop.f32.mrf.mxu1  ;;  %v22476_v60 = vadd.f32 %v10388_v62, %v24133_v29  ;;  %v24137_v48 = vld [vmem:[#allocation158_spill] sm:$0xff] }
 0x633   :  { %24132 = vst [vmem:[#allocation121_spill] sm:$0xff] %v22472_v5  ;;  %v22479_v0 = vadd.f32 %v11095_v37, %v24135_v2  ;;  %v17591_v19 = vpop.f32.mrf.mxu0  ;;  %17934 = vmatmul.mubr.msk.f32.gmra.mxu0 %vm183_vm0, %v12639_v6  ;;  %v12642_v62 = vld [vmem:[#allocation3 + $0x229] sm:$0xff] }
 0x634   :  { %24134 = vst [vmem:[#allocation122_spill] sm:$0xff] %v22476_v60  ;;  %v17689_v63 = vpop.f32.mrf.mxu1  ;;  %v22483_v57 = vadd.f32 %v17591_v19, %v24137_v48  ;;  %17936 = vmatprep.mubr.msk.f32.mxu0 %vm183_vm0, %v12640_v20  ;;  %v24140_v29 = vld [vmem:[#allocation190_spill] sm:$0xff]  ;;  %v24143_v19 = vld [vmem:[#allocation189_spill] sm:$0xff] }
 0x635   :  { %24136 = vst [vmem:[#allocation226_spill] sm:$0xff] %v22479_v0  ;;  %v22486_v59 = vadd.f32 %v17689_v63, %v22019_v39  ;;  %v10398_v43 = vpop.f32.mrf.mxu0  ;;  %v12641_v0 = vld [vmem:[#allocation3 + $0x211] sm:$0xff]  ;;  %v24145_v39 = vld [vmem:[#allocation169_spill] sm:$0xff] }
 0x636   :  { %24138 = vst [vmem:[#allocation225_spill] sm:$0xff] %v22483_v57  ;;  %v11105_v52 = vpop.f32.mrf.mxu1  ;;  %v22490_v37 = vadd.f32 %v10398_v43, %v24140_v29  ;;  %v12643_v20 = vld [vmem:[#allocation3 + $0x231] sm:$0xff]  ;;  %v24147_v29 = vld [vmem:[#allocation224_spill] sm:$0xff] }
 0x637   :  { %24139 = vst [vmem:[#allocation75_spill] sm:$0xff] %v22486_v59  ;;  %v22493_v2 = vadd.f32 %v11105_v52, %v22024_v47  ;;  %v17594_v6 = vpop.f32.mrf.mxu0  ;;  %17937 = vmatmul.mubr.msk.f32.gmra.mxu0 %vm183_vm0, %v12641_v0  ;;  %v24149_v47 = vld [vmem:[#allocation198_spill] sm:$0xff] }
 0x638   :  { %24141 = vst [vmem:[#allocation76_spill] sm:$0xff] %v22490_v37  ;;  %v17692_v5 = vpop.f32.mrf.mxu1  ;;  %v22497_v48 = vadd.f32 %v17594_v6, %v24143_v19  ;;  %17939 = vmatprep.mubr.msk.f32.mxu0 %vm183_vm0, %v12642_v62  ;;  %v12644_v0 = vld [vmem:[#allocation3 + $0x289] sm:$0xff] }
 0x639   :  { %24142 = vst [vmem:[#allocation77_spill] sm:$0xff] %v22493_v2  ;;  %v22500_v63 = vadd.f32 %v17692_v5, %v24145_v39  ;;  %v10408_v59 = vpop.f32.mrf.mxu0  ;;  %v24151_v6 = vld [vmem:[#allocation125_spill] sm:$0xff] }
 0x63a   :  { %24144 = vst [vmem:[#allocation78_spill] sm:$0xff] %v22497_v48  ;;  %v11115_v43 = vpop.f32.mrf.mxu1  ;;  %v22504_v37 = vadd.f32 %v10408_v59, %v24147_v29  ;;  %v24152_v5 = vld [vmem:[#allocation197_spill] sm:$0xff]  ;;  %v24154_v59 = vld [vmem:[#allocation80_spill] sm:$0xff] }
 0x63b   :  { %24146 = vst [vmem:[#allocation79_spill] sm:$0xff] %v22500_v63  ;;  %v22507_v52 = vadd.f32 %v11115_v43, %v24149_v47  ;;  %v17597_v2 = vpop.f32.mrf.mxu0  ;;  %17940 = vmatmul.mubr.msk.f32.gmra.mxu0 %vm183_vm0, %v12643_v20  ;;  %v24155_v29 = vld [vmem:[#allocation81_spill] sm:$0xff]  ;;  %v24156_v43 = vld [vmem:[#allocation160_spill] sm:$0xff]  ;;  %v12645_v20 = vld [vmem:[#allocation3 + $0x291] sm:$0xff] }
 0x63c   :  { %24148 = vst [vmem:[#allocation20_spill] sm:$0xff] %v22504_v37  ;;  %v17695_v57 = vpop.f32.mrf.mxu1  ;;  %v22511_v19 = vadd.f32 %v17597_v2, %v24151_v6  ;;  %17942 = vmatprep.mubr.msk.f32.mxu0 %vm183_vm0, %v12644_v0  ;;  %v8246_v37 = vadd.f32 %v24155_v29, %v24154_v59  ;;  %v24159_v6 = vld [vmem:[#allocation171_spill] sm:$0xff] }
 0x63d   :  { %24150 = vst [vmem:[#allocation182_spill] sm:$0xff] %v22507_v52  ;;  %v22514_v39 = vadd.f32 %v17695_v57, %v24152_v5  ;;  %v10418_v62 = vpop.f32.mrf.mxu0  ;;  %v24157_v52 = vld [vmem:[#allocation129_spill] sm:$0xff] }
 0x63e   :  { %v11125_v63 = vpop.f32.mrf.mxu1  ;;  %v22520_v47 = vadd.f32 %v10418_v62, %v24156_v43  ;;  %v12646_v57 = vld [vmem:[#allocation3 + $0x2a9] sm:$0xff]  ;;  %v10427_v0 = vadd.f32 %v22053_v50, %v8246_v37 }
 0x63f   :  { %24153 = vst [vmem:[#allocation153_spill] sm:$0xff] %v22514_v39  ;;  %v22523_v48 = vadd.f32 %v11125_v63, %v24157_v52  ;;  %v17700_v60 = vpop.f32.mrf.mxu0  ;;  %17943 = vmatmul.mubr.msk.f32.gmra.mxu0 %vm183_vm0, %v12645_v20  ;;  %v12647_v63 = vld [vmem:[#allocation3 + $0x2b1] sm:$0xff]  ;;  %v12648_v43 = vld [vmem:[#allocation3 + $0x2c9] sm:$0xff] }
 0x640   :  { %v22525_v2 = vpop.f32.mrf.mxu1  ;;  %v22530_v5 = vadd.f32 %v17700_v60, %v24159_v6  ;;  %17945 = vmatprep.mubr.msk.f32.mxu0 %vm183_vm0, %v12646_v57  ;;  %v12649_v57 = vld [vmem:[#allocation3 + $0x2d1] sm:$0xff]  ;;  %v12650_v6 = vld [vmem:[#allocation3 + $0x2e9] sm:$0xff] }
 0x641   :  { %24158 = vst [vmem:[#allocation74_spill] sm:$0xff] %v22523_v48  ;;  %v11522_v59 = vpop.f32.mrf.mxu0 }
 0x642   :  { %v22533_v62 = vadd.f32 %v11522_v59, %v10427_v0  ;;  %v22535_v29 = vpop.f32.mrf.mxu1 }
 0x643   :  { %v17703_v52 = vpop.f32.mrf.mxu0  ;;  %17946 = vmatmul.mubr.msk.f32.gmra.mxu0 %vm183_vm0, %v12647_v63 }
 0x644   :  { %v22539_v20 = vadd.f32 %v17703_v52, %v22061_v4  ;;  %17948 = vmatprep.mubr.msk.f32.mxu0 %vm183_vm0, %v12648_v43  ;;  %v22542_v60 = vpop.f32.mrf.mxu1  ;;  %v12651_v43 = vld [vmem:[#allocation3 + $0x2f1] sm:$0xff] }
 0x645   :  { %v11532_v50 = vpop.f32.mrf.mxu0 }
 0x646   :  { %v22545_v37 = vadd.f32 %v11532_v50, %v22069_v42  ;;  %v22552_v63 = vpop.f32.mrf.mxu1  ;;  %v12652_v42 = vld [vmem:[#allocation3 + $0x309] sm:$0xff] }
 0x647   :  { %v17706_v0 = vpop.f32.mrf.mxu0  ;;  %17949 = vmatmul.mubr.msk.f32.gmra.mxu0 %vm183_vm0, %v12649_v57 }
 0x648   :  { %v22549_v59 = vadd.f32 %v17706_v0, %v22077_v58  ;;  %17951 = vmatprep.mubr.msk.f32.mxu0 %vm183_vm0, %v12650_v6  ;;  %v22562_v57 = vpop.f32.mrf.mxu1  ;;  %v12653_v6 = vld [vmem:[#allocation3 + $0x311] sm:$0xff] }
 0x649   :  { %v11542_v4 = vpop.f32.mrf.mxu0 }
 0x64a   :  { %v22555_v52 = vadd.f32 %v11542_v4, %v22085_v38  ;;  %v12654_v38 = vld [vmem:[#allocation3 + $0x329] sm:$0xff] }
 0x64b   :  { %v17709_v48 = vpop.f32.mrf.mxu0  ;;  %17952 = vmatmul.mubr.msk.f32.gmra.mxu0 %vm183_vm0, %v12651_v43 }
 0x64c   :  { %v22559_v50 = vadd.f32 %v17709_v48, %v22093_v41  ;;  %17954 = vmatprep.mubr.msk.f32.mxu0 %vm183_vm0, %v12652_v42  ;;  %v22572_v48 = vpop.f32.mrf.mxu1  ;;  %v12655_v42 = vld [vmem:[#allocation3 + $0x331] sm:$0xff] }
 0x64d   :  { %v11552_v58 = vpop.f32.mrf.mxu0 }
 0x64e   :  { %24160 = vst [vmem:[#allocation82_spill] sm:$0xff] %v22559_v50  ;;  %v22565_v0 = vadd.f32 %v11552_v58, %v22101_v44  ;;  %v12656_v44 = vld [vmem:[#allocation3 + $0x349] sm:$0xff] }
 0x64f   :  { %v17712_v39 = vpop.f32.mrf.mxu0  ;;  %17955 = vmatmul.mubr.msk.f32.gmra.mxu0 %vm183_vm0, %v12653_v6 }
 0x650   :  { %v22569_v4 = vadd.f32 %v17712_v39, %v22109_v3  ;;  %17957 = vmatprep.mubr.msk.f32.mxu0 %vm183_vm0, %v12654_v38  ;;  %v22582_v39 = vpop.f32.mrf.mxu1  ;;  %v12657_v38 = vld [vmem:[#allocation3 + $0x351] sm:$0xff] }
 0x651   :  { %v11562_v41 = vpop.f32.mrf.mxu0 }
 0x652   :  { %24161 = vst [vmem:[#allocation83_spill] sm:$0xff] %v22569_v4  ;;  %v22575_v43 = vadd.f32 %v11562_v41, %v22117_v23  ;;  %v12658_v23 = vld [vmem:[#allocation3 + $0x369] sm:$0xff] }
 0x653   :  { %v17715_v50 = vpop.f32.mrf.mxu0  ;;  %17958 = vmatmul.mubr.msk.f32.gmra.mxu0 %vm183_vm0, %v12655_v42 }
 0x654   :  { %v22579_v58 = vadd.f32 %v17715_v50, %v22125_v35  ;;  %17960 = vmatprep.mubr.msk.f32.mxu0 %vm183_vm0, %v12656_v44  ;;  %v22592_v50 = vpop.f32.mrf.mxu1  ;;  %v12659_v44 = vld [vmem:[#allocation3 + $0x371] sm:$0xff] }
 0x655   :  { %v11572_v3 = vpop.f32.mrf.mxu0 }
 0x656   :  { %24162 = vst [vmem:[#allocation84_spill] sm:$0xff] %v22579_v58  ;;  %v22585_v6 = vadd.f32 %v11572_v3, %v22133_v61  ;;  %v12660_v61 = vld [vmem:[#allocation3 + $0x389] sm:$0xff] }
 0x657   :  { %v17718_v4 = vpop.f32.mrf.mxu0  ;;  %17961 = vmatmul.mubr.msk.f32.gmra.mxu0 %vm183_vm0, %v12657_v38 }
 0x658   :  { %v22589_v41 = vadd.f32 %v17718_v4, %v22141_v11  ;;  %17963 = vmatprep.mubr.msk.f32.mxu0 %vm183_vm0, %v12658_v23  ;;  %v22602_v4 = vpop.f32.mrf.mxu1  ;;  %v12661_v23 = vld [vmem:[#allocation3 + $0x391] sm:$0xff] }
 0x659   :  { %v11582_v35 = vpop.f32.mrf.mxu0 }
 0x65a   :  { %24163 = vst [vmem:[#allocation85_spill] sm:$0xff] %v22589_v41  ;;  %v22595_v42 = vadd.f32 %v11582_v35, %v22149_v51  ;;  %v12662_v51 = vld [vmem:[#allocation3 + $0x3a9] sm:$0xff] }
 0x65b   :  { %v17721_v58 = vpop.f32.mrf.mxu0  ;;  %17964 = vmatmul.mubr.msk.f32.gmra.mxu0 %vm183_vm0, %v12659_v44 }
 0x65c   :  { %v22599_v3 = vadd.f32 %v17721_v58, %v22157_v33  ;;  %17966 = vmatprep.mubr.msk.f32.mxu0 %vm183_vm0, %v12660_v61  ;;  %v22612_v58 = vpop.f32.mrf.mxu1  ;;  %v12663_v61 = vld [vmem:[#allocation3 + $0x3b1] sm:$0xff] }
 0x65d   :  { %v11592_v11 = vpop.f32.mrf.mxu0 }
 0x65e   :  { %24164 = vst [vmem:[#allocation86_spill] sm:$0xff] %v22599_v3  ;;  %v22605_v38 = vadd.f32 %v11592_v11, %v22165_v18  ;;  %v12664_v18 = vld [vmem:[#allocation3 + $0x3c9] sm:$0xff] }
 0x65f   :  { %v17724_v41 = vpop.f32.mrf.mxu0  ;;  %17967 = vmatmul.mubr.msk.f32.gmra.mxu0 %vm183_vm0, %v12661_v23 }
 0x660   :  { %v22609_v35 = vadd.f32 %v17724_v41, %v22173_v1  ;;  %17969 = vmatprep.mubr.msk.f32.mxu0 %vm183_vm0, %v12662_v51  ;;  %v22622_v41 = vpop.f32.mrf.mxu1  ;;  %v12665_v51 = vld [vmem:[#allocation3 + $0x3d1] sm:$0xff] }
 0x661   :  { %v11602_v33 = vpop.f32.mrf.mxu0 }
 0x662   :  { %24165 = vst [vmem:[#allocation87_spill] sm:$0xff] %v22609_v35  ;;  %v22615_v44 = vadd.f32 %v11602_v33, %v22181_v24  ;;  %v12666_v24 = vld [vmem:[#allocation3 + $0x3e9] sm:$0xff] }
 0x663   :  { %v17727_v3 = vpop.f32.mrf.mxu0  ;;  %17970 = vmatmul.mubr.msk.f32.gmra.mxu0 %vm183_vm0, %v12663_v61 }
 0x664   :  { %v22619_v11 = vadd.f32 %v17727_v3, %v22189_v32  ;;  %17972 = vmatprep.mubr.msk.f32.mxu0 %vm183_vm0, %v12664_v18  ;;  %v22632_v3 = vpop.f32.mrf.mxu1  ;;  %v12667_v18 = vld [vmem:[#allocation3 + $0x3f1] sm:$0xff] }
 0x665   :  { %v11612_v1 = vpop.f32.mrf.mxu0 }
 0x666   :  { %24166 = vst [vmem:[#allocation88_spill] sm:$0xff] %v22619_v11  ;;  %v22625_v23 = vadd.f32 %v11612_v1, %v22197_v30  ;;  %v12668_v30 = vld [vmem:[#allocation3 + $0x409] sm:$0xff] }
 0x667   :  { %v17730_v35 = vpop.f32.mrf.mxu0  ;;  %17973 = vmatmul.mubr.msk.f32.gmra.mxu0 %vm183_vm0, %v12665_v51 }
 0x668   :  { %v22629_v33 = vadd.f32 %v17730_v35, %v22205_v53  ;;  %17975 = vmatprep.mubr.msk.f32.mxu0 %vm183_vm0, %v12666_v24  ;;  %v22642_v35 = vpop.f32.mrf.mxu1  ;;  %v12669_v24 = vld [vmem:[#allocation3 + $0x411] sm:$0xff] }
 0x669   :  { %v11622_v32 = vpop.f32.mrf.mxu0 }
 0x66a   :  { %24167 = vst [vmem:[#allocation89_spill] sm:$0xff] %v22629_v33  ;;  %v22635_v61 = vadd.f32 %v11622_v32, %v22213_v22  ;;  %v12670_v22 = vld [vmem:[#allocation3 + $0x429] sm:$0xff] }
 0x66b   :  { %v17733_v11 = vpop.f32.mrf.mxu0  ;;  %17976 = vmatmul.mubr.msk.f32.gmra.mxu0 %vm183_vm0, %v12667_v18 }
 0x66c   :  { %v22639_v1 = vadd.f32 %v17733_v11, %v22221_v26  ;;  %17978 = vmatprep.mubr.msk.f32.mxu0 %vm183_vm0, %v12668_v30  ;;  %v22652_v11 = vpop.f32.mrf.mxu1  ;;  %v12671_v30 = vld [vmem:[#allocation3 + $0x431] sm:$0xff] }
 0x66d   :  { %v11632_v53 = vpop.f32.mrf.mxu0 }
 0x66e   :  { %24168 = vst [vmem:[#allocation123_spill] sm:$0xff] %v22639_v1  ;;  %v22645_v51 = vadd.f32 %v11632_v53, %v22229_v49  ;;  %v12672_v49 = vld [vmem:[#allocation3 + $0x449] sm:$0xff] }
 0x66f   :  { %v17736_v33 = vpop.f32.mrf.mxu0  ;;  %17979 = vmatmul.mubr.msk.f32.gmra.mxu0 %vm183_vm0, %v12669_v24  ;;  %v22662_v24 = vpop.f32.mrf.mxu1 }
 0x670   :  { %v22649_v32 = vadd.f32 %v17736_v33, %v22237_v34  ;;  %17981 = vmatprep.mubr.msk.f32.mxu0 %vm183_vm0, %v12670_v22  ;;  %v12674_v33 = vld [vmem:[#allocation3 + $0x469] sm:$0xff] }
 0x671   :  { %v11642_v26 = vpop.f32.mrf.mxu0 }
 0x672   :  { %24169 = vst [vmem:[#allocation149_spill] sm:$0xff] %v22649_v32  ;;  %v22655_v18 = vadd.f32 %v11642_v26, %v22245_v27  ;;  %v12673_v32 = vld [vmem:[#allocation3 + $0x451] sm:$0xff] }
 0x673   :  { %v17739_v1 = vpop.f32.mrf.mxu0  ;;  %17982 = vmatmul.mubr.msk.f32.gmra.mxu0 %vm183_vm0, %v12671_v30  ;;  %v22672_v30 = vpop.f32.mrf.mxu1 }
 0x674   :  { %v22659_v53 = vadd.f32 %v17739_v1, %v22253_v21  ;;  %17984 = vmatprep.mubr.msk.f32.mxu0 %vm183_vm0, %v12672_v49  ;;  %v12675_v21 = vld [vmem:[#allocation3 + $0x471] sm:$0xff] }
 0x675   :  { %v11652_v34 = vpop.f32.mrf.mxu0 }
 0x676   :  { %24170 = vst [vmem:[#allocation90_spill] sm:$0xff] %v22659_v53  ;;  %v22665_v22 = vadd.f32 %v11652_v34, %v22262_v8 }
 0x677   :  { %v17742_v27 = vpop.f32.mrf.mxu0  ;;  %17985 = vmatmul.mubr.msk.f32.gmra.mxu0 %vm183_vm0, %v12673_v32  ;;  %v22681_v32 = vpop.f32.mrf.mxu1 }
 0x678   :  { %24171 = vst [vmem:[#allocation94_spill] sm:$0xff] %v22665_v22  ;;  %v22669_v26 = vadd.f32 %v17742_v27, %v22271_v16  ;;  %17987 = vmatprep.mubr.msk.f32.mxu0 %vm183_vm0, %v12674_v33 }
 0x679   :  { %v11662_v1 = vpop.f32.mrf.mxu0  ;;  %v22689_v22 = vpop.f32.mrf.mxu1 }
 0x67a   :  { %24172 = vst [vmem:[#allocation150_spill] sm:$0xff] %v22669_v26  ;;  %v22675_v49 = vadd.f32 %v11662_v1, %v22279_v54 }
 0x67b   :  { %v17745_v53 = vpop.f32.mrf.mxu0  ;;  %17988 = vmatmul.mubr.msk.f32.gmra.mxu0 %vm183_vm0, %v12675_v21  ;;  %v22697_v1 = vpop.f32.mrf.mxu1 }
 0x67c   :  { %24173 = vst [vmem:[#allocation92_spill] sm:$0xff] %v22675_v49  ;;  %v22679_v8 = vadd.f32 %v17745_v53, %v22287_v13  ;;  %v24220_v49 = vld [vmem:[#allocation20_spill] sm:$0xff] }
 0x67d   :  { %v11672_v34 = vpop.f32.mrf.mxu0 }
 0x67e   :  { %24174 = vst [vmem:[#allocation93_spill] sm:$0xff] %v22679_v8  ;;  %v22684_v16 = vadd.f32 %v11672_v34, %v22294_v15  ;;  %v24215_v8 = vld [vmem:[#allocation76_spill] sm:$0xff] }
 0x67f   :  { %v17748_v33 = vpop.f32.mrf.mxu0 }
 0x680   :  { %24175 = vst [vmem:[#allocation97_spill] sm:$0xff] %v22684_v16  ;;  %v22687_v27 = vadd.f32 %v17748_v33, %v22301_v10  ;;  %v24211_v16 = vld [vmem:[#allocation122_spill] sm:$0xff] }
 0x681   :  { %v11682_v26 = vpop.f32.mrf.mxu0 }
 0x682   :  { %24176 = vst [vmem:[#allocation151_spill] sm:$0xff] %v22687_v27  ;;  %v22692_v54 = vadd.f32 %v11682_v26, %v22308_v14  ;;  %v22705_v27 = vpop.f32.mrf.mxu1 }
 0x683   :  { %v17751_v21 = vpop.f32.mrf.mxu0 }
 0x684   :  { %24177 = vst [vmem:[#allocation95_spill] sm:$0xff] %v22692_v54  ;;  %v22695_v13 = vadd.f32 %v17751_v21, %v22315_v25  ;;  %v24207_v54 = vld [vmem:[#allocation222_spill] sm:$0xff] }
 0x685   :  { %v11692_v53 = vpop.f32.mrf.mxu0 }
 0x686   :  { %24178 = vst [vmem:[#allocation96_spill] sm:$0xff] %v22695_v13  ;;  %v22700_v15 = vadd.f32 %v11692_v53, %v22322_v28  ;;  %v22713_v13 = vpop.f32.mrf.mxu1 }
 0x687   :  { %v17754_v34 = vpop.f32.mrf.mxu0 }
 0x688   :  { %24179 = vst [vmem:[#allocation180_spill] sm:$0xff] %v22700_v15  ;;  %v22703_v10 = vadd.f32 %v17754_v34, %v22329_v7  ;;  %v24203_v15 = vld [vmem:[#allocation145_spill] sm:$0xff] }
 0x689   :  { %v11702_v33 = vpop.f32.mrf.mxu0 }
 0x68a   :  { %24180 = vst [vmem:[#allocation91_spill] sm:$0xff] %v22703_v10  ;;  %v22708_v14 = vadd.f32 %v11702_v33, %v22336_v56  ;;  %v22721_v10 = vpop.f32.mrf.mxu1 }
 0x68b   :  { %v17757_v26 = vpop.f32.mrf.mxu0 }
 0x68c   :  { %24181 = vst [vmem:[#allocation23_spill] sm:$0xff] %v22708_v14  ;;  %v22711_v25 = vadd.f32 %v17757_v26, %v22343_v45  ;;  %v24199_v14 = vld [vmem:[#allocation67_spill] sm:$0xff] }
 0x68d   :  { %v11712_v21 = vpop.f32.mrf.mxu0 }
 0x68e   :  { %24182 = vst [vmem:[#allocation152_spill] sm:$0xff] %v22711_v25  ;;  %v22716_v28 = vadd.f32 %v11712_v21, %v22350_v17  ;;  %v22729_v25 = vpop.f32.mrf.mxu1 }
 0x68f   :  { %v17760_v53 = vpop.f32.mrf.mxu0 }
 0x690   :  { %24183 = vst [vmem:[#allocation98_spill] sm:$0xff] %v22716_v28  ;;  %v22719_v7 = vadd.f32 %v17760_v53, %v22357_v46  ;;  %v24195_v28 = vld [vmem:[#allocation216_spill] sm:$0xff] }
 0x691   :  { %v11722_v34 = vpop.f32.mrf.mxu0 }
 0x692   :  { %24184 = vst [vmem:[#allocation181_spill] sm:$0xff] %v22719_v7  ;;  %v22724_v56 = vadd.f32 %v11722_v34, %v22364_v9  ;;  %v22737_v7 = vpop.f32.mrf.mxu1 }
 0x693   :  { %v17763_v33 = vpop.f32.mrf.mxu0 }
 0x694   :  { %24185 = vst [vmem:[#allocation100_spill] sm:$0xff] %v22724_v56  ;;  %v22727_v45 = vadd.f32 %v17763_v33, %v22371_v12  ;;  %v24191_v56 = vld [vmem:[#allocation142_spill] sm:$0xff] }
 0x695   :  { %v11732_v26 = vpop.f32.mrf.mxu0 }
 0x696   :  { %24186 = vst [vmem:[#allocation99_spill] sm:$0xff] %v22727_v45  ;;  %v22732_v17 = vadd.f32 %v11732_v26, %v22378_v36  ;;  %v22745_v45 = vpop.f32.mrf.mxu1 }
 0x697   :  { %v17766_v21 = vpop.f32.mrf.mxu0 }
 0x698   :  { %24187 = vst [vmem:[#allocation25_spill] sm:$0xff] %v22732_v17  ;;  %v22735_v46 = vadd.f32 %v17766_v21, %v22385_v31  ;;  %v24193_v17 = vld [vmem:[#allocation118_spill] sm:$0xff] }
 0x699   :  { %v11742_v53 = vpop.f32.mrf.mxu0 }
 0x69a   :  { %24188 = vst [vmem:[#allocation184_spill] sm:$0xff] %v22735_v46  ;;  %v22740_v9 = vadd.f32 %v11742_v53, %v22392_v55  ;;  %v22753_v46 = vpop.f32.mrf.mxu1 }
 0x69b   :  { %v17769_v34 = vpop.f32.mrf.mxu0 }
 0x69c   :  { %24189 = vst [vmem:[#allocation159_spill] sm:$0xff] %v22740_v9  ;;  %v22743_v12 = vadd.f32 %v17769_v34, %v22399_v40  ;;  %v24197_v9 = vld [vmem:[#allocation179_spill] sm:$0xff] }
 0x69d   :  { %v11752_v33 = vpop.f32.mrf.mxu0 }
 0x69e   :  { %24190 = vst [vmem:[#allocation183_spill] sm:$0xff] %v22743_v12  ;;  %v22748_v36 = vadd.f32 %v11752_v33, %v24191_v56  ;;  %v22761_v12 = vpop.f32.mrf.mxu1 }
 0x69f   :  { %v17772_v26 = vpop.f32.mrf.mxu0 }
 0x6a0   :  { %24192 = vst [vmem:[#allocation227_spill] sm:$0xff] %v22748_v36  ;;  %v22751_v31 = vadd.f32 %v17772_v26, %v24193_v17  ;;  %v24201_v36 = vld [vmem:[#allocation219_spill] sm:$0xff] }
 0x6a1   :  { %v11762_v21 = vpop.f32.mrf.mxu0 }
 0x6a2   :  { %24194 = vst [vmem:[#allocation101_spill] sm:$0xff] %v22751_v31  ;;  %v22756_v55 = vadd.f32 %v11762_v21, %v24195_v28  ;;  %v22769_v31 = vpop.f32.mrf.mxu1 }
 0x6a3   :  { %v17775_v53 = vpop.f32.mrf.mxu0 }
 0x6a4   :  { %24196 = vst [vmem:[#allocation106_spill] sm:$0xff] %v22756_v55  ;;  %v22759_v40 = vadd.f32 %v17775_v53, %v24197_v9  ;;  %v24205_v55 = vld [vmem:[#allocation120_spill] sm:$0xff] }
 0x6a5   :  { %v11772_v34 = vpop.f32.mrf.mxu0 }
 0x6a6   :  { %24198 = vst [vmem:[#allocation154_spill] sm:$0xff] %v22759_v40  ;;  %v22764_v56 = vadd.f32 %v11772_v34, %v24199_v14  ;;  %v22777_v40 = vpop.f32.mrf.mxu1 }
 0x6a7   :  { %v17778_v33 = vpop.f32.mrf.mxu0 }
 0x6a8   :  { %24200 = vst [vmem:[#allocation192_spill] sm:$0xff] %v22764_v56  ;;  %v22767_v17 = vadd.f32 %v17778_v33, %v24201_v36  ;;  %v24209_v56 = vld [vmem:[#allocation147_spill] sm:$0xff] }
 0x6a9   :  { %v11782_v26 = vpop.f32.mrf.mxu0 }
 0x6aa   :  { %24202 = vst [vmem:[#allocation102_spill] sm:$0xff] %v22767_v17  ;;  %v22772_v28 = vadd.f32 %v11782_v26, %v24203_v15  ;;  %v22785_v17 = vpop.f32.mrf.mxu1 }
 0x6ab   :  { %v17781_v21 = vpop.f32.mrf.mxu0 }
 0x6ac   :  { %24204 = vst [vmem:[#allocation191_spill] sm:$0xff] %v22772_v28  ;;  %v22775_v9 = vadd.f32 %v17781_v21, %v24205_v55  ;;  %v24213_v28 = vld [vmem:[#allocation225_spill] sm:$0xff] }
 0x6ad   :  { %v11792_v53 = vpop.f32.mrf.mxu0 }
 0x6ae   :  { %24206 = vst [vmem:[#allocation28_spill] sm:$0xff] %v22775_v9  ;;  %v22780_v14 = vadd.f32 %v11792_v53, %v24207_v54  ;;  %v22793_v9 = vpop.f32.mrf.mxu1 }
 0x6af   :  { %v17784_v34 = vpop.f32.mrf.mxu0 }
 0x6b0   :  { %24208 = vst [vmem:[#allocation126_spill] sm:$0xff] %v22780_v14  ;;  %v22783_v36 = vadd.f32 %v17784_v34, %v24209_v56  ;;  %v24217_v14 = vld [vmem:[#allocation78_spill] sm:$0xff] }
 0x6b1   :  { %v11802_v33 = vpop.f32.mrf.mxu0 }
 0x6b2   :  { %24210 = vst [vmem:[#allocation186_spill] sm:$0xff] %v22783_v36  ;;  %v22788_v15 = vadd.f32 %v11802_v33, %v24211_v16  ;;  %v22801_v36 = vpop.f32.mrf.mxu1 }
 0x6b3   :  { %v17787_v26 = vpop.f32.mrf.mxu0  ;;  %24219 = vst [vmem:[#allocation163_spill] sm:$0xff] %v22801_v36  ;;  %v24230_v36 = vld [vmem:[#allocation5_spill] sm:$0xff] }
 0x6b4   :  { %24212 = vst [vmem:[#allocation162_spill] sm:$0xff] %v22788_v15  ;;  %v22791_v55 = vadd.f32 %v17787_v26, %v24213_v28 }
 0x6b5   :  { %v11812_v21 = vpop.f32.mrf.mxu0 }
 0x6b6   :  { %24214 = vst [vmem:[#allocation185_spill] sm:$0xff] %v22791_v55  ;;  %v22796_v54 = vadd.f32 %v11812_v21, %v24215_v8  ;;  %v22809_v55 = vpop.f32.mrf.mxu1 }
 0x6b7   :  { %v17790_v53 = vpop.f32.mrf.mxu0  ;;  %24223 = vst [vmem:[#allocation104_spill] sm:$0xff] %v22809_v55 }
 0x6b8   :  { %24216 = vst [vmem:[#allocation161_spill] sm:$0xff] %v22796_v54  ;;  %v22799_v56 = vadd.f32 %v17790_v53, %v24217_v14  ;;  %v24225_v54 = vld [vmem:[#allocation170_spill] sm:$0xff] }
 0x6b9   :  { %v11822_v34 = vpop.f32.mrf.mxu0  ;;  %v12549_v14 = vadd.f32 %v22525_v2, %v24225_v54 }
 0x6ba   :  { %24218 = vst [vmem:[#allocation103_spill] sm:$0xff] %v22799_v56  ;;  %v22804_v16 = vadd.f32 %v11822_v34, %v24220_v49  ;;  %v22820_v49 = vld [vmem:[%s23354_s4] ss:$0 sm:$0xff] }
 0x6bb   :  { %v17793_v33 = vpop.f32.mrf.mxu0 }
 0x6bc   :  { %24221 = vst [vmem:[#allocation155_spill] sm:$0xff] %v22804_v16  ;;  %v22807_v28 = vadd.f32 %v17793_v33, %v22511_v19  ;;  %v22825_v19 = vld [vmem:[%s23355_s6] ss:$0 sm:$0xff] }
 0x6bd   :  { %v11832_v26 = vpop.f32.mrf.mxu0  ;;  %v24226_v33 = vld [vmem:[#allocation172_spill] sm:$0xff] }
 0x6be   :  { %24222 = vst [vmem:[#allocation194_spill] sm:$0xff] %v22807_v28  ;;  %v22812_v8 = vadd.f32 %v11832_v26, %v22520_v47  ;;  %v12548_v47 = vadd.f32 %v22535_v29, %v24226_v33  ;;  %v22829_v26 = vpop.f32.mrf.mxu1  ;;  %v24229_v28 = vld [vmem:[#allocation200_spill] sm:$0xff]  ;;  %v443_v29 = vadd.f32 %v22825_v19, %v24230_v36  ;;  %v24231_v33 = vld [vmem:[#allocation199_spill] sm:$0xff] }
 0x6bf   :  { %v17896_v21 = vpop.f32.mrf.mxu0  ;;  %24227 = vst [vmem:[#allocation215_spill] sm:$0xff] %v22829_v26  ;;  %v12551_v16 = vadd.f32 %v22542_v60, %v24229_v28  ;;  %v24233_v28 = vld [vmem:[#allocation6_spill] sm:$0xff] }
 0x6c0   :  { %24224 = vst [vmem:[#allocation193_spill] sm:$0xff] %v22812_v8  ;;  %v13256_v53 = vadd.f32 %v17896_v21, %v22530_v5  ;;  %v24228_v5 = vld [vmem:[#allocation4_spill] sm:$0xff] }
 0x6c1   :  { %v12936_v34 = vpop.f32.mrf.mxu0  ;;  %v448_v54 = vadd.f32 %v24228_v5, %v22825_v19 }
 0x6c2   :  { %v13320_v8 = vadd.f32 %v13256_v53, %v12549_v14  ;;  %v13255_v2 = vadd.f32 %v12936_v34, %v22533_v62  ;;  %v12550_v14 = vadd.f32 %v22552_v63, %v24231_v33  ;;  %v22842_v62 = vpop.f32.mrf.mxu1 }
 0x6c3   :  { %v17899_v21 = vpop.f32.mrf.mxu0  ;;  %24232 = vst [vmem:[#allocation127_spill] sm:$0xff] %v22842_v62 }
 0x6c4   :  { %v13391_v56 = vadd.f32 %v22820_v49, %v13320_v8  ;;  %v13319_v15 = vadd.f32 %v13255_v2, %v12548_v47  ;;  %v13258_v55 = vadd.f32 %v17899_v21, %v22539_v20  ;;  %v458_v8 = vadd.f32 %v24233_v28, %v22825_v19  ;;  %v24234_v47 = vld [vmem:[#allocation130_spill] sm:$0xff]  ;;  %v24237_v28 = vld [vmem:[#allocation173_spill] sm:$0xff] }
 0x6c5   :  { %v12946_v53 = vpop.f32.mrf.mxu0  ;;  %v12553_v20 = vadd.f32 %v22562_v57, %v24234_v47  ;;  %v24236_v57 = vld [vmem:[#allocation8_spill] sm:$0xff]  ;;  %v24239_v47 = vld [vmem:[#allocation7_spill] sm:$0xff] }
 0x6c6   :  { %v13322_v34 = vadd.f32 %v13258_v55, %v12551_v16  ;;  %v13257_v5 = vadd.f32 %v12946_v53, %v22545_v37  ;;  %v13390_v26 = vadd.f32 %v22820_v49, %v13319_v15  ;;  %v13455_v60 = vadd.f32 %v13391_v56, %v448_v54  ;;  %v24235_v55 = vld [vmem:[#allocation174_spill] sm:$0xff]  ;;  %v22854_v16 = vpop.f32.mrf.mxu1 }
 0x6c7   :  { %v17902_v2 = vpop.f32.mrf.mxu0  ;;  %v12552_v37 = vadd.f32 %v22572_v48, %v24235_v55  ;;  %v468_v53 = vadd.f32 %v24236_v57, %v22825_v19  ;;  %v24238_v48 = vld [vmem:[#allocation82_spill] sm:$0xff] }
 0x6c8   :  { %v13393_v36 = vadd.f32 %v22820_v49, %v13322_v34  ;;  %v13321_v21 = vadd.f32 %v13257_v5, %v12550_v14  ;;  %v13260_v63 = vadd.f32 %v17902_v2, %v22549_v59  ;;  %v13454_v33 = vadd.f32 %v13390_v26, %v443_v29  ;;  %v22868_v2 = vpop.f32.mrf.mxu1  ;;  %v24242_v55 = vld [vmem:[#allocation202_spill] sm:$0xff] }
 0x6c9   :  { %v12956_v62 = vpop.f32.mrf.mxu0  ;;  %v12555_v14 = vadd.f32 %v22582_v39, %v24237_v28  ;;  %v24243_v28 = vld [vmem:[#allocation83_spill] sm:$0xff] }
 0x6ca   :  { %v13324_v15 = vadd.f32 %v13260_v63, %v12553_v20  ;;  %v13259_v56 = vadd.f32 %v12956_v62, %v22555_v52  ;;  %13518 = vxpose.xlu0.b32.start [1/16] (narrow) %v13454_v33, 8  ;;  %v13457_v54 = vadd.f32 %v13393_v36, %v458_v8  ;;  %v13392_v59 = vadd.f32 %v22820_v49, %v13321_v21  ;;  %v24240_v62 = vld [vmem:[#allocation175_spill] sm:$0xff]  ;;  %v24241_v21 = vld [vmem:[#allocation10_spill] sm:$0xff] }
 0x6cb   :  { %v17905_v34 = vpop.f32.mrf.mxu0  ;;  %v453_v20 = vadd.f32 %v22825_v19, %v24239_v47  ;;  %v12554_v8 = vadd.f32 %v22592_v50, %v24240_v62  ;;  %v478_v33 = vadd.f32 %v24241_v21, %v22825_v19  ;;  %v24244_v47 = vld [vmem:[#allocation201_spill] sm:$0xff] }
 0x6cc   :  { %v13395_v26 = vadd.f32 %v22820_v49, %v13324_v15  ;;  %v13323_v29 = vadd.f32 %v13259_v56, %v12552_v37  ;;  %v13262_v5 = vadd.f32 %v17905_v34, %v24238_v48  ;;  %v12557_v37 = vadd.f32 %v22602_v4, %v24242_v55  ;;  %v24245_v4 = vld [vmem:[#allocation13_spill] sm:$0xff] }
 0x6cd   :  { %v12966_v52 = vpop.f32.mrf.mxu0  ;;  %v13456_v50 = vadd.f32 %v13392_v59, %v453_v20  ;;  %v24248_v21 = vld [vmem:[#allocation9_spill] sm:$0xff] }
 0x6ce   :  { %v13326_v36 = vadd.f32 %v13262_v5, %v12555_v14  ;;  %v13261_v39 = vadd.f32 %v12966_v52, %v22565_v0  ;;  %13519 = vxpose.xlu0.b32.cont [2/16] (narrow) %v13455_v60, 8  ;;  %v13459_v63 = vadd.f32 %v13395_v26, %v468_v53  ;;  %v12556_v14 = vadd.f32 %v22612_v58, %v24244_v47  ;;  %v22879_v0 = vpop.f32.mrf.mxu1  ;;  %v24246_v52 = vld [vmem:[#allocation131_spill] sm:$0xff] }
 0x6cf   :  { %v17908_v15 = vpop.f32.mrf.mxu0  ;;  %v488_v5 = vadd.f32 %v24245_v4, %v22825_v19  ;;  %v12559_v62 = vadd.f32 %v22622_v41, %v24246_v52  ;;  %v13394_v59 = vadd.f32 %v22820_v49, %v13323_v29  ;;  %v24250_v29 = vld [vmem:[#allocation18_spill] sm:$0xff] }
 0x6d0   :  { %v13397_v56 = vadd.f32 %v22820_v49, %v13326_v36  ;;  %v13325_v57 = vadd.f32 %v13261_v39, %v12554_v8  ;;  %v13264_v34 = vadd.f32 %v17908_v15, %v24243_v28  ;;  %v24247_v36 = vld [vmem:[#allocation84_spill] sm:$0xff]  ;;  %v22895_v15 = vpop.f32.mrf.mxu1 }
 0x6d1   :  { %v12976_v48 = vpop.f32.mrf.mxu0 }
 0x6d2   :  { %v13328_v60 = vadd.f32 %v13264_v34, %v12557_v37  ;;  %v13263_v53 = vadd.f32 %v12976_v48, %v22575_v43  ;;  %13520 = vxpose.xlu0.b32.cont [3/16] (narrow) %v13456_v50, 8  ;;  %v22882_v26 = vadd.f32 %v13397_v56, %v478_v33  ;;  %v463_v43 = vadd.f32 %v22825_v19, %v24248_v21  ;;  %v24249_v33 = vld [vmem:[#allocation177_spill] sm:$0xff]  ;;  %v24251_v50 = vld [vmem:[#allocation176_spill] sm:$0xff] }
 0x6d3   :  { %v17911_v8 = vpop.f32.mrf.mxu0  ;;  %v12558_v37 = vadd.f32 %v22632_v3, %v24249_v33  ;;  %v498_v34 = vadd.f32 %v24250_v29, %v22825_v19  ;;  %v12561_v48 = vadd.f32 %v22642_v35, %v24251_v50  ;;  %v24252_v3 = vld [vmem:[#allocation85_spill] sm:$0xff]  ;;  %v24254_v35 = vld [vmem:[#allocation26_spill] sm:$0xff]  ;;  %v24258_v29 = vld [vmem:[#allocation203_spill] sm:$0xff] }
 0x6d4   :  { %v13399_v20 = vadd.f32 %v22820_v49, %v13328_v60  ;;  %v13327_v58 = vadd.f32 %v13263_v53, %v12556_v14  ;;  %v13266_v39 = vadd.f32 %v17911_v8, %v24247_v36  ;;  %v13458_v4 = vadd.f32 %v13394_v59, %v463_v43  ;;  %v24256_v33 = vld [vmem:[#allocation86_spill] sm:$0xff] }
 0x6d5   :  { %v12986_v55 = vpop.f32.mrf.mxu0  ;;  %v508_v36 = vadd.f32 %v24254_v35, %v22825_v19  ;;  %v13396_v59 = vadd.f32 %v22820_v49, %v13325_v57 }
 0x6d6   :  { %v13330_v56 = vadd.f32 %v13266_v39, %v12559_v62  ;;  %v13265_v41 = vadd.f32 %v12986_v55, %v22585_v6  ;;  %13521 = vxpose.xlu0.b32.cont [4/16] (narrow) %v13457_v54, 8  ;;  %v22898_v28 = vadd.f32 %v13399_v20, %v488_v5  ;;  %v24253_v62 = vld [vmem:[#allocation178_spill] sm:$0xff]  ;;  %v22910_v54 = vpop.f32.mrf.mxu1  ;;  %v24255_v39 = vld [vmem:[#allocation204_spill] sm:$0xff] }
 0x6d7   :  { %v17914_v47 = vpop.f32.mrf.mxu0  ;;  %v12560_v6 = vadd.f32 %v22652_v11, %v24253_v62  ;;  %v12563_v21 = vadd.f32 %v22662_v24, %v24255_v39 }
 0x6d8   :  { %v13401_v14 = vadd.f32 %v22820_v49, %v13330_v56  ;;  %v22905_v60 = vadd.f32 %v13265_v41, %v12558_v37  ;;  %v13268_v53 = vadd.f32 %v17914_v47, %v24252_v3  ;;  %v24257_v56 = vld [vmem:[#allocation11_spill] sm:$0xff]  ;;  %v22928_v50 = vpop.f32.mrf.mxu1  ;;  %v24260_v3 = vld [vmem:[#allocation133_spill] sm:$0xff] }
 0x6d9   :  { %v12996_v52 = vpop.f32.mrf.mxu0  ;;  %v24259_v47 = vld [vmem:[#allocation31_spill] sm:$0xff] }
 0x6da   :  { %v13332_v5 = vadd.f32 %v13268_v53, %v12561_v48  ;;  %v13267_v8 = vadd.f32 %v12996_v52, %v22595_v42  ;;  %13522 = vxpose.xlu0.b32.cont [5/16] (narrow) %v13458_v4, 8  ;;  %v22913_v20 = vadd.f32 %v13401_v14, %v498_v34  ;;  %v473_v42 = vadd.f32 %v22825_v19, %v24257_v56  ;;  %v22943_v39 = vpop.f32.mrf.mxu1 }
 0x6db   :  { %v17917_v55 = vpop.f32.mrf.mxu0  ;;  %v12562_v34 = vadd.f32 %v22672_v30, %v24258_v29  ;;  %v518_v14 = vadd.f32 %v24259_v47, %v22825_v19  ;;  %v12565_v53 = vadd.f32 %v22681_v32, %v24260_v3 }
 0x6dc   :  { %v13403_v43 = vadd.f32 %v22820_v49, %v13332_v5  ;;  %v22921_v11 = vadd.f32 %v13267_v8, %v12560_v6  ;;  %v13270_v37 = vadd.f32 %v17917_v55, %v24256_v33  ;;  %v24261_v6 = vld [vmem:[#allocation87_spill] sm:$0xff]  ;;  %v13460_v5 = vadd.f32 %v13396_v59, %v473_v42  ;;  %v24262_v8 = vld [vmem:[#allocation34_spill] sm:$0xff]  ;;  %v24264_v33 = vld [vmem:[#allocation36_spill] sm:$0xff] }
 0x6dd   :  { %v13006_v41 = vpop.f32.mrf.mxu0  ;;  %v513_v35 = vadd.f32 %v22825_v19, %v24262_v8  ;;  %v528_v59 = vadd.f32 %v24264_v33, %v22825_v19  ;;  %v13398_v42 = vadd.f32 %v22820_v49, %v13327_v58 }
 0x6de   :  { %v13334_v48 = vadd.f32 %v13270_v37, %v12563_v21  ;;  %v13269_v24 = vadd.f32 %v13006_v41, %v22605_v38  ;;  %13523 = vxpose.xlu0.b32.cont [6/16] (narrow) %v13459_v63, 8  ;;  %v22931_v57 = vadd.f32 %v13403_v43, %v508_v36  ;;  %v24263_v38 = vld [vmem:[#allocation132_spill] sm:$0xff]  ;;  %v24265_v37 = vld [vmem:[#allocation107_spill] sm:$0xff] }
 0x6df   :  { %v17920_v4 = vpop.f32.mrf.mxu0  ;;  %v12564_v63 = vadd.f32 %v22689_v22, %v24263_v38  ;;  %v12567_v56 = vadd.f32 %v22697_v1, %v24265_v37  ;;  %v24274_v37 = vld [vmem:[#allocation205_spill] sm:$0xff] }
 0x6e0   :  { %v13405_v52 = vadd.f32 %v22820_v49, %v13334_v48  ;;  %v13333_v62 = vadd.f32 %v13269_v24, %v12562_v34  ;;  %v13272_v30 = vadd.f32 %v17920_v4, %v24261_v6  ;;  %v24266_v34 = vld [vmem:[#allocation88_spill] sm:$0xff] }
 0x6e1   :  { %v13016_v36 = vpop.f32.mrf.mxu0 }
 0x6e2   :  { %v13404_v21 = vadd.f32 %v22820_v49, %v13333_v62  ;;  %v13336_v55 = vadd.f32 %v13272_v30, %v12565_v53  ;;  %v13271_v32 = vadd.f32 %v13016_v36, %v22615_v44  ;;  %13524 = vxpose.xlu0.b32.cont [7/16] (narrow) %v13460_v5, 8  ;;  %v22947_v43 = vadd.f32 %v13405_v52, %v518_v14  ;;  %v24267_v44 = vld [vmem:[#allocation16_spill] sm:$0xff]  ;;  %v24268_v14 = vld [vmem:[#allocation38_spill] sm:$0xff]  ;;  %v22964_v52 = vpop.f32.mrf.mxu1 }
 0x6e3   :  { %v17923_v22 = vpop.f32.mrf.mxu0  ;;  %v483_v47 = vadd.f32 %v22825_v19, %v24267_v44  ;;  %v523_v3 = vadd.f32 %v22825_v19, %v24268_v14  ;;  %v24269_v53 = vld [vmem:[#allocation108_spill] sm:$0xff]  ;;  %v24270_v5 = vld [vmem:[#allocation206_spill] sm:$0xff] }
 0x6e4   :  { %v13407_v41 = vadd.f32 %v22820_v49, %v13336_v55  ;;  %v13335_v29 = vadd.f32 %v13271_v32, %v12564_v63  ;;  %v13274_v48 = vadd.f32 %v17923_v22, %v24266_v34  ;;  %v22956_v24 = vadd.f32 %v13404_v21, %v513_v35  ;;  %v24272_v32 = vld [vmem:[#allocation41_spill] sm:$0xff]  ;;  %v22979_v22 = vpop.f32.mrf.mxu1 }
 0x6e5   :  { %v12566_v4 = vadd.f32 %v22705_v27, %v24269_v53  ;;  %v13026_v1 = vpop.f32.mrf.mxu0  ;;  %v12569_v8 = vadd.f32 %v22713_v13, %v24270_v5  ;;  %v13462_v38 = vadd.f32 %v13398_v42, %v483_v47  ;;  %v24271_v27 = vld [vmem:[#allocation89_spill] sm:$0xff]  ;;  %v538_v33 = vadd.f32 %v24272_v32, %v22825_v19  ;;  %v24280_v5 = vld [vmem:[#allocation134_spill] sm:$0xff] }
 0x6e6   :  { %v13338_v58 = vadd.f32 %v13274_v48, %v12567_v56  ;;  %v13273_v62 = vadd.f32 %v13026_v1, %v22625_v23  ;;  %13525 = vxpose.xlu0.b32.cont [8/16] (narrow) %v22882_v26, 8  ;;  %v13406_v6 = vadd.f32 %v22820_v49, %v13335_v29  ;;  %v13471_v30 = vadd.f32 %v13407_v41, %v528_v59  ;;  %v24273_v23 = vld [vmem:[#allocation43_spill] sm:$0xff]  ;;  %v24277_v1 = vld [vmem:[#allocation21_spill] sm:$0xff] }
 0x6e7   :  { %v17926_v35 = vpop.f32.mrf.mxu0  ;;  %v533_v26 = vadd.f32 %v22825_v19, %v24273_v23  ;;  %v12568_v59 = vadd.f32 %v22721_v10, %v24274_v37  ;;  %v24275_v29 = vld [vmem:[#allocation135_spill] sm:$0xff]  ;;  %v13400_v48 = vadd.f32 %v22820_v49, %v22905_v60  ;;  %v12570_v60 = vadd.f32 %v22737_v7, %v24280_v5  ;;  %v24290_v5 = vld [vmem:[#allocation57_spill] sm:$0xff] }
 0x6e8   :  { %v13409_v63 = vadd.f32 %v22820_v49, %v13338_v58  ;;  %v13337_v36 = vadd.f32 %v13273_v62, %v12566_v4  ;;  %v13276_v21 = vadd.f32 %v17926_v35, %v24271_v27  ;;  %v13470_v55 = vadd.f32 %v13406_v6, %v523_v3  ;;  %v24276_v3 = vld [vmem:[#allocation123_spill] sm:$0xff]  ;;  %v24279_v6 = vld [vmem:[#allocation48_spill] sm:$0xff]  ;;  %v22997_v35 = vpop.f32.mrf.mxu1  ;;  %v24281_v27 = vld [vmem:[#allocation109_spill] sm:$0xff] }
 0x6e9   :  { %v13036_v56 = vpop.f32.mrf.mxu0  ;;  %v12571_v34 = vadd.f32 %v22729_v25, %v24275_v29  ;;  %v493_v58 = vadd.f32 %v22825_v19, %v24277_v1  ;;  %v543_v25 = vadd.f32 %v22825_v19, %v24279_v6  ;;  %v24288_v6 = vld [vmem:[#allocation29_spill] sm:$0xff] }
 0x6ea   :  { %v13408_v13 = vadd.f32 %v22820_v49, %v13337_v36  ;;  %v13340_v42 = vadd.f32 %v13276_v21, %v12569_v8  ;;  %v13275_v41 = vadd.f32 %v13036_v56, %v22635_v61  ;;  %13526 = vxpose.xlu0.b32.cont [9/16] (narrow) %v13462_v38, 8  ;;  %13550 = vxpose.xlu1.b32.start [1/16] (narrow) %v13470_v55, 8  ;;  %v24278_v61 = vld [vmem:[#allocation45_spill] sm:$0xff]  ;;  %v24283_v56 = vld [vmem:[#allocation50_spill] sm:$0xff] }
 0x6eb   :  { %v17929_v44 = vpop.f32.mrf.mxu0  ;;  %v13473_v47 = vadd.f32 %v13409_v63, %v538_v33  ;;  %v548_v62 = vadd.f32 %v24278_v61, %v22825_v19  ;;  %v12573_v21 = vadd.f32 %v22745_v45, %v24281_v27  ;;  %v13464_v32 = vadd.f32 %v13400_v48, %v493_v58  ;;  %v24287_v58 = vld [vmem:[#allocation90_spill] sm:$0xff] }
 0x6ec   :  { %v13411_v10 = vadd.f32 %v22820_v49, %v13340_v42  ;;  %v13339_v14 = vadd.f32 %v13275_v41, %v12568_v59  ;;  %v13278_v53 = vadd.f32 %v17929_v44, %v24276_v3  ;;  %v13472_v4 = vadd.f32 %v13408_v13, %v533_v26  ;;  %v24282_v26 = vld [vmem:[#allocation149_spill] sm:$0xff]  ;;  %v23014_v41 = vpop.f32.mrf.mxu1  ;;  %v24286_v44 = vld [vmem:[#allocation208_spill] sm:$0xff]  ;;  %v24292_v27 = vld [vmem:[#allocation94_spill] sm:$0xff] }
 0x6ed   :  { %v13046_v8 = vpop.f32.mrf.mxu0  ;;  %v558_v13 = vadd.f32 %v24283_v56, %v22825_v19  ;;  %v24294_v56 = vld [vmem:[#allocation150_spill] sm:$0xff] }
 0x6ee   :  { %v13410_v38 = vadd.f32 %v22820_v49, %v13339_v14  ;;  %v13342_v63 = vadd.f32 %v13278_v53, %v12571_v34  ;;  %v13277_v36 = vadd.f32 %v13046_v8, %v22645_v51  ;;  %13527 = vxpose.xlu0.b32.cont [10/16] (narrow) %v22898_v28, 8  ;;  %13551 = vxpose.xlu1.b32.cont [2/16] (narrow) %v13471_v30, 8  ;;  %v24284_v51 = vld [vmem:[#allocation52_spill] sm:$0xff]  ;;  %v24285_v30 = vld [vmem:[#allocation110_spill] sm:$0xff] }
 0x6ef   :  { %v17932_v55 = vpop.f32.mrf.mxu0  ;;  %v23004_v33 = vadd.f32 %v13411_v10, %v548_v62  ;;  %v553_v28 = vadd.f32 %v22825_v19, %v24284_v51  ;;  %v12572_v42 = vadd.f32 %v22753_v46, %v24285_v30  ;;  %v12575_v10 = vadd.f32 %v22761_v12, %v24286_v44  ;;  %v24298_v44 = vld [vmem:[#allocation92_spill] sm:$0xff] }
 0x6f0   :  { %v13413_v7 = vadd.f32 %v22820_v49, %v13342_v63  ;;  %v13341_v23 = vadd.f32 %v13277_v36, %v12570_v60  ;;  %v13280_v37 = vadd.f32 %v17932_v55, %v24282_v26  ;;  %v13474_v59 = vadd.f32 %v13410_v38, %v543_v25  ;;  %v24291_v60 = vld [vmem:[#allocation207_spill] sm:$0xff]  ;;  %v23034_v38 = vpop.f32.mrf.mxu1  ;;  %v24293_v55 = vld [vmem:[#allocation137_spill] sm:$0xff] }
 0x6f1   :  { %v13056_v45 = vpop.f32.mrf.mxu0  ;;  %v13402_v14 = vadd.f32 %v22820_v49, %v22921_v11  ;;  %v563_v12 = vadd.f32 %v22825_v19, %v24290_v5  ;;  %v12574_v11 = vadd.f32 %v22769_v31, %v24291_v60  ;;  %v24302_v5 = vld [vmem:[#allocation68_spill] sm:$0xff]  ;;  %v24304_v60 = vld [vmem:[#allocation163_spill] sm:$0xff] }
 0x6f2   :  { %v13412_v29 = vadd.f32 %v22820_v49, %v13341_v23  ;;  %v13344_v34 = vadd.f32 %v13280_v37, %v12573_v21  ;;  %v13279_v48 = vadd.f32 %v13056_v45, %v22655_v18  ;;  %13528 = vxpose.xlu0.b32.cont [11/16] (narrow) %v13464_v32, 8  ;;  %13552 = vxpose.xlu1.b32.cont [3/16] (narrow) %v13472_v4, 8  ;;  %v24289_v4 = vld [vmem:[#allocation55_spill] sm:$0xff] }
 0x6f3   :  { %v17935_v3 = vpop.f32.mrf.mxu0  ;;  %v23022_v53 = vadd.f32 %v13413_v7, %v558_v13  ;;  %v503_v18 = vadd.f32 %v22825_v19, %v24288_v6  ;;  %v568_v25 = vadd.f32 %v24289_v4, %v22825_v19  ;;  %v12577_v32 = vadd.f32 %v22777_v40, %v24293_v55  ;;  %v24301_v4 = vld [vmem:[#allocation64_spill] sm:$0xff]  ;;  %v24306_v55 = vld [vmem:[#allocation210_spill] sm:$0xff] }
 0x6f4   :  { %v13415_v46 = vadd.f32 %v22820_v49, %v13344_v34  ;;  %v13343_v1 = vadd.f32 %v13279_v48, %v12572_v42  ;;  %v13282_v61 = vadd.f32 %v17935_v3, %v24287_v58  ;;  %v13476_v62 = vadd.f32 %v13412_v29, %v553_v28  ;;  %v24295_v28 = vld [vmem:[#allocation59_spill] sm:$0xff]  ;;  %v24296_v42 = vld [vmem:[#allocation62_spill] sm:$0xff]  ;;  %v23053_v29 = vpop.f32.mrf.mxu1 }
 0x6f5   :  { %v13066_v8 = vpop.f32.mrf.mxu0  ;;  %v13466_v23 = vadd.f32 %v13402_v14, %v503_v18  ;;  %v578_v30 = vadd.f32 %v24295_v28, %v22825_v19  ;;  %v24299_v14 = vld [vmem:[#allocation111_spill] sm:$0xff] }
 0x6f6   :  { %v13414_v63 = vadd.f32 %v22820_v49, %v13343_v1  ;;  %v13346_v36 = vadd.f32 %v13282_v61, %v12575_v10  ;;  %v13281_v21 = vadd.f32 %v13066_v8, %v24292_v27  ;;  %13529 = vxpose.xlu0.b32.cont [12/16] (narrow) %v22913_v20, 8  ;;  %13553 = vxpose.xlu1.b32.cont [4/16] (narrow) %v13473_v47, 8  ;;  %v24297_v47 = vld [vmem:[#allocation136_spill] sm:$0xff]  ;;  %v23071_v8 = vpop.f32.mrf.mxu1  ;;  %v24305_v27 = vld [vmem:[#allocation97_spill] sm:$0xff] }
 0x6f7   :  { %v17938_v7 = vpop.f32.mrf.mxu0  ;;  %v23041_v26 = vadd.f32 %v13415_v46, %v568_v25  ;;  %v573_v20 = vadd.f32 %v22825_v19, %v24296_v42  ;;  %v12576_v40 = vadd.f32 %v22785_v17, %v24297_v47  ;;  %v12579_v3 = vadd.f32 %v22793_v9, %v24299_v14  ;;  %v24300_v17 = vld [vmem:[#allocation93_spill] sm:$0xff]  ;;  %v24309_v42 = vld [vmem:[#allocation70_spill] sm:$0xff]  ;;  %v24310_v47 = vld [vmem:[#allocation72_spill] sm:$0xff] }
 0x6f8   :  { %v13417_v31 = vadd.f32 %v22820_v49, %v13346_v36  ;;  %v13345_v37 = vadd.f32 %v13281_v21, %v12574_v11  ;;  %v13284_v13 = vadd.f32 %v17938_v7, %v24294_v56  ;;  %v23045_v51 = vadd.f32 %v13414_v63, %v563_v12  ;;  %v24313_v14 = vld [vmem:[#allocation95_spill] sm:$0xff] }
 0x6f9   :  { %v13076_v45 = vpop.f32.mrf.mxu0  ;;  %v588_v25 = vadd.f32 %v24301_v4, %v22825_v19  ;;  %v583_v12 = vadd.f32 %v22825_v19, %v24302_v5  ;;  %v24316_v5 = vld [vmem:[#allocation96_spill] sm:$0xff] }
 0x6fa   :  { %v13416_v34 = vadd.f32 %v22820_v49, %v13345_v37  ;;  %v13348_v48 = vadd.f32 %v13284_v13, %v12577_v32  ;;  %v13283_v10 = vadd.f32 %v13076_v45, %v24298_v44  ;;  %13530 = vxpose.xlu0.b32.cont [13/16] (narrow) %v13466_v23, 8  ;;  %13554 = vxpose.xlu1.b32.cont [5/16] (narrow) %v13474_v59, 8  ;;  %v24303_v59 = vld [vmem:[#allocation112_spill] sm:$0xff]  ;;  %v24308_v13 = vld [vmem:[#allocation151_spill] sm:$0xff] }
 0x6fb   :  { %v17941_v46 = vpop.f32.mrf.mxu0  ;;  %v23059_v1 = vadd.f32 %v13417_v31, %v578_v30  ;;  %v12578_v11 = vadd.f32 %v24304_v60, %v24303_v59  ;;  %v24307_v32 = vld [vmem:[#allocation104_spill] sm:$0xff] }
 0x6fc   :  { %v13419_v58 = vadd.f32 %v22820_v49, %v13348_v48  ;;  %v13347_v61 = vadd.f32 %v13283_v10, %v12576_v40  ;;  %v13286_v6 = vadd.f32 %v17941_v46, %v24300_v17  ;;  %v23063_v18 = vadd.f32 %v13416_v34, %v573_v20  ;;  %v24312_v40 = vld [vmem:[#allocation215_spill] sm:$0xff]  ;;  %v23091_v48 = vpop.f32.mrf.mxu1  ;;  %v24317_v60 = vld [vmem:[#allocation12_spill] sm:$0xff] }
 0x6fd   :  { %v13086_v9 = vpop.f32.mrf.mxu0  ;;  %v12581_v7 = vadd.f32 %v24307_v32, %v24306_v55  ;;  %v598_v20 = vadd.f32 %v24309_v42, %v22825_v19  ;;  %v24314_v46 = vld [vmem:[#allocation139_spill] sm:$0xff]  ;;  %v24320_v55 = vld [vmem:[#allocation180_spill] sm:$0xff] }
 0x6fe   :  { %v13418_v63 = vadd.f32 %v22820_v49, %v13347_v61  ;;  %v13350_v36 = vadd.f32 %v13286_v6, %v12579_v3  ;;  %v13285_v21 = vadd.f32 %v13086_v9, %v24305_v27  ;;  %13531 = vxpose.xlu0.b32.cont [14/16] (narrow) %v22931_v57, 8  ;;  %13555 = vxpose.xlu1.b32.cont [6/16] (narrow) %v23004_v33, 8  ;;  %v24311_v33 = vld [vmem:[#allocation209_spill] sm:$0xff]  ;;  %v24318_v9 = vld [vmem:[#allocation14_spill] sm:$0xff]  ;;  %v23110_v27 = vpop.f32.mrf.mxu1  ;;  %v24322_v42 = vld [vmem:[#allocation91_spill] sm:$0xff] }
 0x6ff   :  { %v17944_v23 = vpop.f32.mrf.mxu0  ;;  %v23079_v31 = vadd.f32 %v13419_v58, %v588_v25  ;;  %v593_v57 = vadd.f32 %v22825_v19, %v24310_v47  ;;  %v12580_v45 = vadd.f32 %v24312_v40, %v24311_v33  ;;  %v24315_v58 = vld [vmem:[#allocation127_spill] sm:$0xff] }
 0x700   :  { %v13421_v37 = vadd.f32 %v22820_v49, %v13350_v36  ;;  %v13349_v56 = vadd.f32 %v13285_v21, %v12578_v11  ;;  %v13288_v28 = vadd.f32 %v17944_v23, %v24308_v13  ;;  %v23083_v30 = vadd.f32 %v13418_v63, %v583_v12  ;;  %v24321_v23 = vld [vmem:[#allocation113_spill] sm:$0xff] }
 0x701   :  { %v13096_v34 = vpop.f32.mrf.mxu0  ;;  %v12583_v61 = vadd.f32 %v24315_v58, %v24314_v46  ;;  %v608_v11 = vadd.f32 %v24317_v60, %v22825_v19 }
 0x702   :  { %v13420_v44 = vadd.f32 %v22820_v49, %v13349_v56  ;;  %v13352_v10 = vadd.f32 %v13288_v28, %v12581_v7  ;;  %v13287_v3 = vadd.f32 %v13096_v34, %v24313_v14  ;;  %13532 = vxpose.xlu0.b32.cont [15/16] (narrow) %v22956_v24, 8  ;;  %13556 = vxpose.xlu1.b32.cont [7/16] (narrow) %v13476_v62, 8  ;;  %v24319_v62 = vld [vmem:[#allocation138_spill] sm:$0xff] }
 0x703   :  { %v17947_v17 = vpop.f32.mrf.mxu0  ;;  %v23098_v6 = vadd.f32 %v13421_v37, %v598_v20  ;;  %v603_v24 = vadd.f32 %v22825_v19, %v24318_v9  ;;  %v12582_v63 = vadd.f32 %v22854_v16, %v24319_v62  ;;  %v12585_v37 = vadd.f32 %v22868_v2, %v24321_v23  ;;  %v24331_v62 = vld [vmem:[#allocation98_spill] sm:$0xff] }
 0x704   :  { %v13423_v4 = vadd.f32 %v22820_v49, %v13352_v10  ;;  %v13351_v25 = vadd.f32 %v13287_v3, %v12580_v45  ;;  %v13290_v12 = vadd.f32 %v17947_v17, %v24316_v5  ;;  %v23102_v59 = vadd.f32 %v13420_v44, %v593_v57  ;;  %v24323_v57 = vld [vmem:[#allocation15_spill] sm:$0xff]  ;;  %v23124_v45 = vpop.f32.mrf.mxu1  ;;  %v24326_v10 = vld [vmem:[#allocation212_spill] sm:$0xff] }
 0x705   :  { %v13106_v36 = vpop.f32.mrf.mxu0  ;;  %v618_v33 = vadd.f32 %v24323_v57, %v22825_v19  ;;  %v24325_v44 = vld [vmem:[#allocation23_spill] sm:$0xff]  ;;  %v12587_v14 = vadd.f32 %v22895_v15, %v24326_v10  ;;  %v24336_v57 = vld [vmem:[#allocation100_spill] sm:$0xff] }
 0x706   :  { %v13354_v21 = vadd.f32 %v13290_v12, %v12583_v61  ;;  %v13289_v32 = vadd.f32 %v13106_v36, %v24320_v55  ;;  %13533 = vxpose.xlu0.b32.end [16/16] (narrow) %v22947_v43, 8  ;;  %13557 = vxpose.xlu1.b32.cont [8/16] (narrow) %v23022_v53, 8  ;;  %v13422_v7 = vadd.f32 %v22820_v49, %v13351_v25  ;;  %v24324_v43 = vld [vmem:[#allocation114_spill] sm:$0xff]  ;;  %v24328_v25 = vld [vmem:[#allocation17_spill] sm:$0xff]  ;;  %v24329_v12 = vld [vmem:[#allocation19_spill] sm:$0xff]  ;;  %v23139_v15 = vpop.f32.mrf.mxu1 }
 0x707   :  { %v17950_v56 = vpop.f32.mrf.mxu0  ;;  %v13487_v13 = vadd.f32 %v13423_v4, %v608_v11  ;;  %v12584_v53 = vadd.f32 %v22879_v0, %v24324_v43  ;;  %v24327_v4 = vld [vmem:[#allocation152_spill] sm:$0xff]  ;;  %v613_v5 = vadd.f32 %v22825_v19, %v24328_v25  ;;  %v628_v60 = vadd.f32 %v24329_v12, %v22825_v19  ;;  %v24330_v11 = vld [vmem:[#allocation211_spill] sm:$0xff]  ;;  %v24332_v36 = vld [vmem:[#allocation141_spill] sm:$0xff] }
 0x708   :  { %v13425_v28 = vadd.f32 %v22820_v49, %v13354_v21  ;;  %v13353_v16 = vadd.f32 %v13289_v32, %v12582_v63  ;;  %v13292_v20 = vadd.f32 %v17950_v56, %v24322_v42  ;;  %v13486_v47 = vadd.f32 %v13422_v7, %v603_v24  ;;  %v24343_v12 = vld [vmem:[#allocation214_spill] sm:$0xff] }
 0x709   :  { %v13116_v40 = vpop.f32.mrf.mxu0  ;;  %v12586_v9 = vadd.f32 %v22910_v54, %v24330_v11  ;;  %v12589_v21 = vadd.f32 %v22928_v50, %v24332_v36  ;;  %v24334_v54 = vld [vmem:[#allocation24_spill] sm:$0xff]  ;;  %v24345_v36 = vld [vmem:[#allocation33_spill] sm:$0xff] }
 0x70a   :  { %v13356_v34 = vadd.f32 %v13292_v20, %v12585_v37  ;;  %v13291_v2 = vadd.f32 %v13116_v40, %v24325_v44  ;;  %13558 = vxpose.xlu1.b32.cont [9/16] (narrow) %v23045_v51, 8  ;;  %13582 = vxpose.xlu0.b32.start [1/16] (narrow) %v13486_v47, 8  ;;  %v13489_v46 = vadd.f32 %v13425_v28, %v618_v33  ;;  %v24333_v37 = vld [vmem:[#allocation181_spill] sm:$0xff]  ;;  %v24335_v20 = vld [vmem:[#allocation140_spill] sm:$0xff]  ;;  %v24337_v33 = vld [vmem:[#allocation115_spill] sm:$0xff] }
 0x70b   :  { %v17953_v3 = vpop.f32.mrf.mxu0  ;;  %v13424_v58 = vadd.f32 %v22820_v49, %v13353_v16  ;;  %v638_v16 = vadd.f32 %v24334_v54, %v22825_v19  ;;  %v12588_v47 = vadd.f32 %v22943_v39, %v24335_v20  ;;  %v12591_v40 = vadd.f32 %v22964_v52, %v24337_v33  ;;  %v24338_v39 = vld [vmem:[#allocation99_spill] sm:$0xff] }
 0x70c   :  { %v13427_v61 = vadd.f32 %v22820_v49, %v13356_v34  ;;  %v13355_v17 = vadd.f32 %v13291_v2, %v12584_v53  ;;  %v13294_v0 = vadd.f32 %v17953_v3, %v24327_v4  ;;  %v24341_v4 = vld [vmem:[#allocation116_spill] sm:$0xff] }
 0x70d   :  { %v13126_v51 = vpop.f32.mrf.mxu0  ;;  %v13488_v28 = vadd.f32 %v13424_v58, %v613_v5  ;;  %v24340_v58 = vld [vmem:[#allocation30_spill] sm:$0xff]  ;;  %v12590_v52 = vadd.f32 %v22979_v22, %v24341_v4  ;;  %v24342_v5 = vld [vmem:[#allocation25_spill] sm:$0xff] }
 0x70e   :  { %v13358_v24 = vadd.f32 %v13294_v0, %v12587_v14  ;;  %v13293_v63 = vadd.f32 %v13126_v51, %v24331_v62  ;;  %13559 = vxpose.xlu1.b32.cont [10/16] (narrow) %v23041_v26, 8  ;;  %13583 = vxpose.xlu0.b32.cont [2/16] (narrow) %v13487_v13, 8  ;;  %v13491_v32 = vadd.f32 %v13427_v61, %v628_v60  ;;  %v23151_v26 = vpop.f32.mrf.mxu1  ;;  %v24339_v14 = vld [vmem:[#allocation22_spill] sm:$0xff]  ;;  %v24344_v62 = vld [vmem:[#allocation184_spill] sm:$0xff] }
 0x70f   :  { %v17956_v55 = vpop.f32.mrf.mxu0  ;;  %v13426_v34 = vadd.f32 %v22820_v49, %v13355_v17  ;;  %v623_v3 = vadd.f32 %v22825_v19, %v24339_v14  ;;  %v12593_v60 = vadd.f32 %v22997_v35, %v24343_v12  ;;  %v24354_v14 = vld [vmem:[#allocation217_spill] sm:$0xff]  ;;  %v24357_v12 = vld [vmem:[#allocation42_spill] sm:$0xff] }
 0x710   :  { %v13429_v7 = vadd.f32 %v22820_v49, %v13358_v24  ;;  %v13357_v23 = vadd.f32 %v13293_v63, %v12586_v9  ;;  %v13296_v56 = vadd.f32 %v17956_v55, %v24333_v37  ;;  %v23168_v0 = vpop.f32.mrf.mxu1  ;;  %v24347_v37 = vld [vmem:[#allocation159_spill] sm:$0xff] }
 0x711   :  { %v13136_v42 = vpop.f32.mrf.mxu0  ;;  %v13490_v63 = vadd.f32 %v13426_v34, %v623_v3  ;;  %v24352_v34 = vld [vmem:[#allocation117_spill] sm:$0xff]  ;;  %v12597_v3 = vadd.f32 %v23071_v8, %v24354_v14 }
 0x712   :  { %v13360_v13 = vadd.f32 %v13296_v56, %v12589_v21  ;;  %v13295_v50 = vadd.f32 %v13136_v42, %v24336_v57  ;;  %13560 = vxpose.xlu1.b32.cont [11/16] (narrow) %v23063_v18, 8  ;;  %13584 = vxpose.xlu0.b32.cont [3/16] (narrow) %v13488_v28, 8  ;;  %v23157_v53 = vadd.f32 %v13429_v7, %v638_v16  ;;  %v24346_v7 = vld [vmem:[#allocation213_spill] sm:$0xff]  ;;  %v24348_v28 = vld [vmem:[#allocation143_spill] sm:$0xff] }
 0x713   :  { %v17959_v43 = vpop.f32.mrf.mxu0  ;;  %v648_v18 = vadd.f32 %v24340_v58, %v22825_v19  ;;  %v658_v21 = vadd.f32 %v24345_v36, %v22825_v19  ;;  %v12595_v54 = vadd.f32 %v23034_v38, %v24348_v28  ;;  %v13428_v20 = vadd.f32 %v22820_v49, %v13357_v23  ;;  %v24353_v23 = vld [vmem:[#allocation227_spill] sm:$0xff]  ;;  %v24360_v36 = vld [vmem:[#allocation66_spill] sm:$0xff] }
 0x714   :  { %v13431_v44 = vadd.f32 %v22820_v49, %v13360_v13  ;;  %v13359_v2 = vadd.f32 %v13295_v50, %v12588_v47  ;;  %v13298_v10 = vadd.f32 %v17959_v43, %v24338_v39  ;;  %v24350_v50 = vld [vmem:[#allocation27_spill] sm:$0xff]  ;;  %v12594_v38 = vadd.f32 %v23053_v29, %v24352_v34  ;;  %v24367_v34 = vld [vmem:[#allocation146_spill] sm:$0xff] }
 0x715   :  { %v13146_v61 = vpop.f32.mrf.mxu0  ;;  %v633_v33 = vadd.f32 %v22825_v19, %v24350_v50 }
 0x716   :  { %v13362_v25 = vadd.f32 %v13298_v10, %v12591_v40  ;;  %v13297_v17 = vadd.f32 %v13146_v61, %v24342_v5  ;;  %13561 = vxpose.xlu1.b32.cont [12/16] (narrow) %v23059_v1, 8  ;;  %13585 = vxpose.xlu0.b32.cont [4/16] (narrow) %v13489_v46, 8  ;;  %v23174_v11 = vadd.f32 %v13431_v44, %v648_v18  ;;  %v23184_v46 = vpop.f32.mrf.mxu1  ;;  %v24356_v5 = vld [vmem:[#allocation40_spill] sm:$0xff] }
 0x717   :  { %v17962_v51 = vpop.f32.mrf.mxu0  ;;  %v12592_v1 = vadd.f32 %v23014_v41, %v24346_v7  ;;  %v24349_v41 = vld [vmem:[#allocation183_spill] sm:$0xff]  ;;  %v13492_v29 = vadd.f32 %v13428_v20, %v633_v33 }
 0x718   :  { %v13433_v9 = vadd.f32 %v22820_v49, %v13362_v25  ;;  %v23177_v24 = vadd.f32 %v13297_v17, %v12590_v52  ;;  %v13300_v22 = vadd.f32 %v17962_v51, %v24344_v62  ;;  %v23203_v44 = vpop.f32.mrf.mxu1  ;;  %v24355_v52 = vld [vmem:[#allocation101_spill] sm:$0xff]  ;;  %v678_v17 = vadd.f32 %v24356_v5, %v22825_v19 }
 0x719   :  { %v13156_v55 = vpop.f32.mrf.mxu0 }
 0x71a   :  { %v13364_v35 = vadd.f32 %v13300_v22, %v12593_v60  ;;  %v13299_v56 = vadd.f32 %v13156_v55, %v24347_v37  ;;  %13562 = vxpose.xlu1.b32.cont [13/16] (narrow) %v23083_v30, 8  ;;  %13586 = vxpose.xlu0.b32.cont [5/16] (narrow) %v13490_v63, 8  ;;  %v23190_v42 = vadd.f32 %v13433_v9, %v658_v21  ;;  %v24351_v30 = vld [vmem:[#allocation37_spill] sm:$0xff]  ;;  %v23219_v8 = vpop.f32.mrf.mxu1  ;;  %v24359_v22 = vld [vmem:[#allocation106_spill] sm:$0xff] }
 0x71b   :  { %v17965_v16 = vpop.f32.mrf.mxu0  ;;  %v668_v40 = vadd.f32 %v24351_v30, %v22825_v19  ;;  %v673_v60 = vadd.f32 %v22825_v19, %v24357_v12  ;;  %v12599_v21 = vadd.f32 %v23110_v27, %v24360_v36  ;;  %v13430_v55 = vadd.f32 %v22820_v49, %v13359_v2  ;;  %v24361_v37 = vld [vmem:[#allocation154_spill] sm:$0xff]  ;;  %v24365_v2 = vld [vmem:[#allocation220_spill] sm:$0xff] }
 0x71c   :  { %v13435_v47 = vadd.f32 %v22820_v49, %v13364_v35  ;;  %v23194_v13 = vadd.f32 %v13299_v56, %v12592_v1  ;;  %v13302_v57 = vadd.f32 %v17965_v16, %v24349_v41  ;;  %v12598_v41 = vadd.f32 %v23124_v45, %v24365_v2  ;;  %v17885_v50 = vpop.f32.mrf.mxu1  ;;  %v24366_v30 = vld [vmem:[#allocation192_spill] sm:$0xff] }
 0x71d   :  { %v13166_v43 = vpop.f32.mrf.mxu0  ;;  %v24374_v36 = vld [vmem:[#allocation28_spill] sm:$0xff] }
 0x71e   :  { %v13366_v39 = vadd.f32 %v13302_v57, %v12595_v54  ;;  %v13301_v10 = vadd.f32 %v13166_v43, %v24353_v23  ;;  %13563 = vxpose.xlu1.b32.cont [14/16] (narrow) %v23079_v31, 8  ;;  %13587 = vxpose.xlu0.b32.cont [6/16] (narrow) %v13491_v32, 8  ;;  %v23209_v18 = vadd.f32 %v13435_v47, %v668_v40  ;;  %v24358_v31 = vld [vmem:[#allocation144_spill] sm:$0xff]  ;;  %v24364_v47 = vld [vmem:[#allocation46_spill] sm:$0xff] }
 0x71f   :  { %v17968_v58 = vpop.f32.mrf.mxu0  ;;  %v12596_v32 = vadd.f32 %v23091_v48, %v24358_v31  ;;  %v24362_v54 = vld [vmem:[#allocation32_spill] sm:$0xff]  ;;  %v683_v27 = vadd.f32 %v22825_v19, %v24364_v47 }
 0x720   :  { %v13437_v61 = vadd.f32 %v22820_v49, %v13366_v39  ;;  %v13365_v4 = vadd.f32 %v13301_v10, %v12594_v38  ;;  %v13304_v25 = vadd.f32 %v17968_v58, %v24355_v52  ;;  %v643_v16 = vadd.f32 %v22825_v19, %v24362_v54  ;;  %v24378_v54 = vld [vmem:[#allocation148_spill] sm:$0xff] }
 0x721   :  { %v13176_v51 = vpop.f32.mrf.mxu0  ;;  %v12601_v38 = vadd.f32 %v23139_v15, %v24367_v34  ;;  %v12519_v15 = vpop.f32.mrf.mxu1  ;;  %v24381_v34 = vld [vmem:[#allocation186_spill] sm:$0xff] }
 0x722   :  { %v13436_v9 = vadd.f32 %v22820_v49, %v13365_v4  ;;  %v13368_v62 = vadd.f32 %v13304_v25, %v12597_v3  ;;  %v13303_v63 = vadd.f32 %v13176_v51, %v24359_v22  ;;  %13564 = vxpose.xlu1.b32.cont [15/16] (narrow) %v23102_v59, 8  ;;  %13588 = vxpose.xlu0.b32.cont [7/16] (narrow) %v13492_v29, 8  ;;  %v24363_v59 = vld [vmem:[#allocation44_spill] sm:$0xff]  ;;  %v24368_v3 = vld [vmem:[#allocation102_spill] sm:$0xff]  ;;  %v24369_v4 = vld [vmem:[#allocation47_spill] sm:$0xff] }
 0x723   :  { %v17971_v7 = vpop.f32.mrf.mxu0  ;;  %v23227_v1 = vadd.f32 %v13437_v61, %v678_v17  ;;  %v688_v20 = vadd.f32 %v24363_v59, %v22825_v19  ;;  %v13494_v23 = vadd.f32 %v13430_v55, %v643_v16  ;;  %v698_v52 = vadd.f32 %v24369_v4, %v22825_v19  ;;  %v24371_v25 = vld [vmem:[#allocation119_spill] sm:$0xff]  ;;  %v17888_v59 = vpop.f32.mrf.mxu1 }
 0x724   :  { %v13439_v48 = vadd.f32 %v22820_v49, %v13368_v62  ;;  %v13367_v35 = vadd.f32 %v13303_v63, %v12596_v32  ;;  %v13306_v56 = vadd.f32 %v17971_v7, %v24361_v37  ;;  %v23231_v28 = vadd.f32 %v13436_v9, %v673_v60  ;;  %v24372_v60 = vld [vmem:[#allocation191_spill] sm:$0xff] }
 0x725   :  { %v13186_v57 = vpop.f32.mrf.mxu0  ;;  %v12600_v29 = vadd.f32 %v23151_v26, %v24371_v25  ;;  %v24373_v32 = vld [vmem:[#allocation223_spill] sm:$0xff]  ;;  %v13432_v9 = vadd.f32 %v22820_v49, %v23177_v24  ;;  %v12602_v24 = vadd.f32 %v23184_v46, %v24378_v54 }
 0x726   :  { %v13370_v33 = vadd.f32 %v13306_v56, %v12599_v21  ;;  %v13305_v40 = vadd.f32 %v13186_v57, %v24366_v30  ;;  %13565 = vxpose.xlu1.b32.end [16/16] (narrow) %v23098_v6, 8  ;;  %13589 = vxpose.xlu0.b32.cont [8/16] (narrow) %v23157_v53, 8  ;;  %v13438_v43 = vadd.f32 %v22820_v49, %v13367_v35  ;;  %v24370_v6 = vld [vmem:[#allocation49_spill] sm:$0xff]  ;;  %v24375_v7 = vld [vmem:[#allocation35_spill] sm:$0xff] }
 0x727   :  { %v17974_v39 = vpop.f32.mrf.mxu0  ;;  %v13503_v10 = vadd.f32 %v13439_v48, %v688_v20  ;;  %v693_v53 = vadd.f32 %v22825_v19, %v24370_v6  ;;  %v12603_v51 = vadd.f32 %v23168_v0, %v24373_v32  ;;  %v653_v48 = vadd.f32 %v22825_v19, %v24375_v7  ;;  %v24376_v35 = vld [vmem:[#allocation51_spill] sm:$0xff]  ;;  %v24377_v56 = vld [vmem:[#allocation53_spill] sm:$0xff] }
 0x728   :  { %v13441_v14 = vadd.f32 %v22820_v49, %v13370_v33  ;;  %v13369_v45 = vadd.f32 %v13305_v40, %v12598_v41  ;;  %v13308_v58 = vadd.f32 %v17974_v39, %v24368_v3  ;;  %v13502_v61 = vadd.f32 %v13438_v43, %v683_v27  ;;  %v24379_v27 = vld [vmem:[#allocation126_spill] sm:$0xff]  ;;  %v24380_v41 = vld [vmem:[#allocation121_spill] sm:$0xff] }
 0x729   :  { %v13196_v5 = vpop.f32.mrf.mxu0  ;;  %v708_v37 = vadd.f32 %v24376_v35, %v22825_v19  ;;  %v703_v0 = vadd.f32 %v22825_v19, %v24377_v56  ;;  %v12605_v57 = vadd.f32 %v23203_v44, %v24380_v41  ;;  %v13496_v30 = vadd.f32 %v13432_v9, %v653_v48  ;;  %v24392_v35 = vld [vmem:[#allocation161_spill] sm:$0xff]  ;;  %v24393_v56 = vld [vmem:[#allocation79_spill] sm:$0xff] }
 0x72a   :  { %v13440_v17 = vadd.f32 %v22820_v49, %v13369_v45  ;;  %v13372_v12 = vadd.f32 %v13308_v58, %v12601_v38  ;;  %v13307_v31 = vadd.f32 %v13196_v5, %v24372_v60  ;;  %13590 = vxpose.xlu0.b32.cont [9/16] (narrow) %v13494_v23, 8  ;;  %13614 = vxpose.xlu1.b32.start [1/16] (narrow) %v13502_v61, 8  ;;  %v24382_v23 = vld [vmem:[#allocation54_spill] sm:$0xff]  ;;  %v24383_v45 = vld [vmem:[#allocation56_spill] sm:$0xff]  ;;  %v12529_v58 = vpop.f32.mrf.mxu1  ;;  %v24387_v60 = vld [vmem:[#allocation185_spill] sm:$0xff] }
 0x72b   :  { %v17977_v62 = vpop.f32.mrf.mxu0  ;;  %v13505_v22 = vadd.f32 %v13441_v14, %v698_v52  ;;  %v718_v14 = vadd.f32 %v24382_v23, %v22825_v19  ;;  %v24385_v52 = vld [vmem:[#allocation162_spill] sm:$0xff]  ;;  %v24395_v41 = vld [vmem:[#allocation61_spill] sm:$0xff] }
 0x72c   :  { %v13443_v63 = vadd.f32 %v22820_v49, %v13372_v12  ;;  %v13371_v26 = vadd.f32 %v13307_v31, %v12600_v29  ;;  %v13310_v21 = vadd.f32 %v17977_v62, %v24374_v36  ;;  %v13504_v55 = vadd.f32 %v13440_v17, %v693_v53  ;;  %v24386_v53 = vld [vmem:[#allocation75_spill] sm:$0xff]  ;;  %v24389_v62 = vld [vmem:[#allocation58_spill] sm:$0xff]  ;;  %v24391_v36 = vld [vmem:[#allocation77_spill] sm:$0xff] }
 0x72d   :  { %v13206_v16 = vpop.f32.mrf.mxu0  ;;  %v12607_v25 = vadd.f32 %v17885_v50, %v24386_v53  ;;  %v13434_v29 = vadd.f32 %v22820_v49, %v23194_v13  ;;  %v12606_v13 = vadd.f32 %v12519_v15, %v24391_v36  ;;  %v24402_v53 = vld [vmem:[#allocation69_spill] sm:$0xff] }
 0x72e   :  { %v13442_v20 = vadd.f32 %v22820_v49, %v13371_v26  ;;  %v13374_v47 = vadd.f32 %v13310_v21, %v12603_v51  ;;  %v13309_v2 = vadd.f32 %v13206_v16, %v24379_v27  ;;  %13591 = vxpose.xlu0.b32.cont [10/16] (narrow) %v23174_v11, 8  ;;  %13615 = vxpose.xlu1.b32.cont [2/16] (narrow) %v13503_v10, 8  ;;  %v24384_v10 = vld [vmem:[#allocation226_spill] sm:$0xff]  ;;  %v24388_v51 = vld [vmem:[#allocation39_spill] sm:$0xff]  ;;  %v24390_v26 = vld [vmem:[#allocation60_spill] sm:$0xff] }
 0x72f   :  { %v17980_v33 = vpop.f32.mrf.mxu0  ;;  %v23276_v40 = vadd.f32 %v13443_v63, %v708_v37  ;;  %v713_v11 = vadd.f32 %v22825_v19, %v24383_v45  ;;  %v12604_v3 = vadd.f32 %v23219_v8, %v24384_v10  ;;  %v663_v9 = vadd.f32 %v22825_v19, %v24388_v51  ;;  %v24394_v27 = vld [vmem:[#allocation103_spill] sm:$0xff]  ;;  %v24406_v36 = vld [vmem:[#allocation73_spill] sm:$0xff] }
 0x730   :  { %v13445_v43 = vadd.f32 %v22820_v49, %v13374_v47  ;;  %v13373_v46 = vadd.f32 %v13309_v2, %v12602_v24  ;;  %v13312_v38 = vadd.f32 %v17980_v33, %v24381_v34  ;;  %v13506_v39 = vadd.f32 %v13442_v20, %v703_v0  ;;  %v24396_v33 = vld [vmem:[#allocation63_spill] sm:$0xff] }
 0x731   :  { %v13216_v44 = vpop.f32.mrf.mxu0  ;;  %v728_v63 = vadd.f32 %v24389_v62, %v22825_v19  ;;  %v723_v50 = vadd.f32 %v22825_v19, %v24390_v26  ;;  %v12609_v0 = vadd.f32 %v17888_v59, %v24393_v56  ;;  %v13498_v24 = vadd.f32 %v13434_v29, %v663_v9  ;;  %v24403_v29 = vld [vmem:[#allocation74_spill] sm:$0xff]  ;;  %v24405_v9 = vld [vmem:[#allocation71_spill] sm:$0xff] }
 0x732   :  { %v13444_v61 = vadd.f32 %v22820_v49, %v13373_v46  ;;  %v13376_v4 = vadd.f32 %v13312_v38, %v12605_v57  ;;  %v13311_v6 = vadd.f32 %v13216_v44, %v24385_v52  ;;  %13592 = vxpose.xlu0.b32.cont [11/16] (narrow) %v13496_v30, 8  ;;  %13616 = vxpose.xlu1.b32.cont [3/16] (narrow) %v13504_v55, 8  ;;  %v17891_v55 = vpop.f32.mrf.mxu1  ;;  %v24398_v38 = vld [vmem:[#allocation155_spill] sm:$0xff] }
 0x733   :  { %v17983_v5 = vpop.f32.mrf.mxu0  ;;  %v23291_v17 = vadd.f32 %v13445_v43, %v718_v14  ;;  %v738_v57 = vadd.f32 %v24395_v41, %v22825_v19  ;;  %v733_v30 = vadd.f32 %v22825_v19, %v24396_v33  ;;  %v24397_v43 = vld [vmem:[#allocation182_spill] sm:$0xff]  ;;  %v24399_v14 = vld [vmem:[#allocation153_spill] sm:$0xff] }
 0x734   :  { %v13447_v12 = vadd.f32 %v22820_v49, %v13376_v4  ;;  %v13375_v8 = vadd.f32 %v13311_v6, %v12604_v3  ;;  %v13314_v31 = vadd.f32 %v17983_v5, %v24387_v60  ;;  %v13508_v32 = vadd.f32 %v13444_v61, %v713_v11  ;;  %v12539_v46 = vpop.f32.mrf.mxu1  ;;  %v24400_v61 = vld [vmem:[#allocation194_spill] sm:$0xff] }
 0x735   :  { %v13226_v21 = vpop.f32.mrf.mxu0  ;;  %v12611_v45 = vadd.f32 %v17891_v55, %v24399_v14  ;;  %v12610_v5 = vadd.f32 %v12539_v46, %v24403_v29 }
 0x736   :  { %v13446_v7 = vadd.f32 %v22820_v49, %v13375_v8  ;;  %v13378_v48 = vadd.f32 %v13314_v31, %v12607_v25  ;;  %v13313_v37 = vadd.f32 %v13226_v21, %v24392_v35  ;;  %13593 = vxpose.xlu0.b32.cont [12/16] (narrow) %v23190_v42, 8  ;;  %13617 = vxpose.xlu1.b32.cont [4/16] (narrow) %v13505_v22, 8 }
 0x737   :  { %v17986_v54 = vpop.f32.mrf.mxu0  ;;  %v13511_v16 = vadd.f32 %v13447_v12, %v728_v63  ;;  %v12608_v42 = vadd.f32 %v12529_v58, %v24397_v43  ;;  %v24401_v58 = vld [vmem:[#allocation65_spill] sm:$0xff]  ;;  %v743_v25 = vadd.f32 %v22825_v19, %v24402_v53 }
 0x738   :  { %v13449_v20 = vadd.f32 %v22820_v49, %v13378_v48  ;;  %v13377_v47 = vadd.f32 %v13313_v37, %v12606_v13  ;;  %v13316_v15 = vadd.f32 %v17986_v54, %v24394_v27  ;;  %v13510_v2 = vadd.f32 %v13446_v7, %v723_v50 }
 0x739   :  { %v13236_v22 = vpop.f32.mrf.mxu0  ;;  %v748_v6 = vadd.f32 %v24401_v58, %v22825_v19  ;;  %v18016_v19 = vld [vmem:[%s23355_s6] ss:$0 sm:$0xff] }
 0x73a   :  { %v13448_v59 = vadd.f32 %v22820_v49, %v13377_v47  ;;  %v13380_v34 = vadd.f32 %v13316_v15, %v12609_v0  ;;  %v13315_v23 = vadd.f32 %v13236_v22, %v24398_v38  ;;  %13594 = vxpose.xlu0.b32.cont [13/16] (narrow) %v13498_v24, 8  ;;  %13618 = vxpose.xlu1.b32.cont [5/16] (narrow) %v13506_v39, 8  ;;  %v18015_v39 = vld [vmem:[%s23354_s4] ss:$0 sm:$0xff] }
 0x73b   :  { %v17989_v11 = vpop.f32.mrf.mxu0  ;;  %v13513_v10 = vadd.f32 %v13449_v20, %v738_v57  ;;  %v758_v62 = vadd.f32 %v18016_v19, %v24405_v9  ;;  %v753_v13 = vadd.f32 %v18016_v19, %v24406_v36 }
 0x73c   :  { %v13451_v3 = vadd.f32 %v22820_v49, %v13380_v34  ;;  %v13379_v44 = vadd.f32 %v13315_v23, %v12608_v42  ;;  %v13318_v4 = vadd.f32 %v17989_v11, %v24400_v61  ;;  %v13512_v52 = vadd.f32 %v13448_v59, %v733_v30  ;;  %v24404_v49 = vld [vmem:[#allocation193_spill] sm:$0xff] }
 0x73d   :  { %v13246_v12 = vpop.f32.mrf.mxu0 }
 0x73e   :  { %v13450_v8 = vadd.f32 %v18015_v39, %v13379_v44  ;;  %v13382_v60 = vadd.f32 %v13318_v4, %v12611_v45  ;;  %v13317_v31 = vadd.f32 %v13246_v12, %v24404_v49  ;;  %13595 = vxpose.xlu0.b32.cont [14/16] (narrow) %v23209_v18, 8  ;;  %13619 = vxpose.xlu1.b32.cont [6/16] (narrow) %v23276_v40, 8 }
 0x73f   :  { %v13515_v51 = vadd.f32 %v13451_v3, %v748_v6 }
 0x740   :  { %v13453_v63 = vadd.f32 %v18015_v39, %v13382_v60  ;;  %v13381_v26 = vadd.f32 %v13317_v31, %v12610_v5  ;;  %v13514_v50 = vadd.f32 %v13450_v8, %v743_v25 }
 0x742   :  { %v13452_v21 = vadd.f32 %v18015_v39, %v13381_v26  ;;  %13596 = vxpose.xlu0.b32.cont [15/16] (narrow) %v23231_v28, 8  ;;  %13620 = vxpose.xlu1.b32.cont [7/16] (narrow) %v13508_v32, 8  ;;  %v13517_v55 = vadd.f32 %v13453_v63, %v758_v62 }
 0x744   :  { %v13516_v18 = vadd.f32 %v13452_v21, %v753_v13 }
 0x746   :  { %13597 = vxpose.xlu0.b32.end [16/16] (narrow) %v23227_v1, 8  ;;  %13621 = vxpose.xlu1.b32.cont [8/16] (narrow) %v23291_v17, 8  ;;  %v13534_v40 = vpop.trf.xlu0 }
 0x747   :  { %13646 = vst [vmem:[%s23356_s7] sm:$0xff] %v13534_v40 }
 0x74a   :  { %13622 = vxpose.xlu1.b32.cont [9/16] (narrow) %v13510_v2, 8 }
 0x74e   :  { %13623 = vxpose.xlu1.b32.cont [10/16] (narrow) %v13511_v16, 8 }
 0x752   :  { %13624 = vxpose.xlu1.b32.cont [11/16] (narrow) %v13512_v52, 8 }
 0x756   :  { %13625 = vxpose.xlu1.b32.cont [12/16] (narrow) %v13513_v10, 8 }
 0x75a   :  { %13626 = vxpose.xlu1.b32.cont [13/16] (narrow) %v13514_v50, 8 }
 0x75e   :  { %13627 = vxpose.xlu1.b32.cont [14/16] (narrow) %v13515_v51, 8 }
 0x762   :  { %13628 = vxpose.xlu1.b32.cont [15/16] (narrow) %v13516_v18, 8 }
 0x766   :  { %13629 = vxpose.xlu1.b32.end [16/16] (narrow) %v13517_v55, 8  ;;  %v13566_v28 = vpop.trf.xlu1 }
 0x767   :  { %13647 = vst [vmem:[%s23356_s7 + $0x8] sm:$0xff] %v13566_v28 }
 0x786   :  { %v13598_v1 = vpop.trf.xlu0 }
 0x787   :  { %14891 = vst [vmem:[%s23356_s7 + $0x10] sm:$0xff] %v13598_v1 }
 0x7a6   :  { %v13630_v17 = vpop.trf.xlu1 }
 0x7a7   :  { %14892 = vst [vmem:[%s23356_s7 + $0x18] sm:$0xff] %v13630_v17 }

</bundles_post_ra>
